<compile_context>
chip_gen: v7x
topology: tpu7x:2x2x1
jax: 0.10.0
libtpu: 0.0.40
codegen_flags: <defaults>
</compile_context>

<pallas_src>
import functools

import jax
import jax.numpy as jnp
from jax.experimental import pallas as pl
from jax.experimental.pallas import tpu as pltpu

EPS = 1e-5
LANE = 128


def _vmem_limit_bytes():
    # Per-generation scoped-VMEM budget: v7x has only 64 MiB per TensorCore,
    # so stay <= ~48 MiB there; v5e/v6e have 128 MiB physical.
    try:
        kind = jax.devices()[0].device_kind.lower()
    except Exception:
        kind = ""
    if "v7" in kind or "7x" in kind:
        return 48 * 1024 * 1024
    return 96 * 1024 * 1024


def _pick_block_rows(h, target=8):
    """Largest divisor of h that is <= target (row-tile height)."""
    for tr in range(min(h, target), 0, -1):
        if h % tr == 0:
            return tr
    return 1


def _conv_stage_kernel(*refs, TR, W, Cp, apply_bn_relu):
    """3x3 conv (stride 1, pad 1) over one (TR, W, Cp) row tile.

    Inputs: centre rows + one halo row above/below.  The zero-padded conv
    input is assembled in a bf16 VMEM scratch (each element written exactly
    once).  The conv is 4 tap-pair matmuls (K=2*Cp) + 1 single-tap matmul,
    accumulated in f32.  Outputs: the *un-normalized* conv tile plus per-tile
    (sum, sumsq) channel statistics (BN is finalized between pallas_calls).

    apply_bn_relu=True additionally applies relu(x*scale + shift) to the
    inputs before the conv (fuses the previous stage's BN + ReLU).
    """
    if apply_bn_relu:
        ss_ref, xc_ref, xt_ref, xb_ref, w_ref, y_ref, st_ref, pad_ref = refs
        scale = ss_ref[0:1, :].reshape(1, 1, Cp)
        shift = ss_ref[1:2, :].reshape(1, 1, Cp)
        pre = lambda v: jnp.maximum(v.astype(jnp.float32) * scale + shift, 0.0)
    else:
        xc_ref, xt_ref, xb_ref, w_ref, y_ref, st_ref, pad_ref = refs
        pre = lambda v: v

    r = pl.program_id(1)
    n_rows = pl.num_programs(1)

    def fill(rows, value):
        # bn/relu (if any) -> cast once to bf16 -> add the two zero halo
        # columns in registers -> one full-width, sublane-aligned store.
        v = pre(value).astype(jnp.bfloat16)
        zc = jnp.zeros((v.shape[0], 1, Cp), jnp.bfloat16)
        pad_ref[rows, :, :] = jnp.concatenate([zc, v, zc], axis=1)

    zero_row = jnp.zeros((1, W + 2, Cp), jnp.bfloat16)

    fill(slice(1, TR + 1), xc_ref[...])               # interior rows

    @pl.when(r == 0)
    def _():
        pad_ref[0:1, :, :] = zero_row                 # image top border

    @pl.when(r > 0)
    def _():
        fill(slice(0, 1), xt_ref[...])                # halo row from tile above

    @pl.when(r == n_rows - 1)
    def _():
        pad_ref[TR + 1:TR + 2, :, :] = zero_row       # image bottom border

    @pl.when(r < n_rows - 1)
    def _():
        fill(slice(TR + 1, TR + 2), xb_ref[...])      # halo row from tile below

    M = TR * W

    def tap(t):                                        # (M, Cp) bf16 slab, tap t
        ky, kx = divmod(t, 3)
        return pad_ref[ky:ky + TR, kx:kx + W, :].reshape(M, Cp)

    def w_rows(lo, hi):                                # weight rows [lo*Cp, hi*Cp)
        return w_ref[lo * Cp:hi * Cp, :]

    # 4 paired taps (K = 2*Cp = 256) + 1 single tap, accumulated in f32.
    acc = jnp.dot(jnp.concatenate([tap(0), tap(1)], axis=-1), w_rows(0, 2),
                  preferred_element_type=jnp.float32)
    for j in range(1, 4):
        patch = jnp.concatenate([tap(2 * j), tap(2 * j + 1)], axis=-1)
        acc += jnp.dot(patch, w_rows(2 * j, 2 * j + 2),
                       preferred_element_type=jnp.float32)
    acc += jnp.dot(tap(8), w_rows(8, 9), preferred_element_type=jnp.float32)

    y_ref[...] = acc.reshape(TR, W, Cp).astype(y_ref.dtype)
    # Single-traversal BN statistics for this tile (reduced outside).
    st_ref[...] = jnp.concatenate(
        [jnp.sum(acc, axis=0, keepdims=True),
         jnp.sum(acc * acc, axis=0, keepdims=True)], axis=0)


def _bn_residual_relu_kernel(ss_ref, y_ref, res_ref, o_ref, *, Cp):
    """out = relu(bn2(y2) + residual), all in f32."""
    scale = ss_ref[0:1, :].reshape(1, 1, Cp)
    shift = ss_ref[1:2, :].reshape(1, 1, Cp)
    o_ref[...] = jnp.maximum(y_ref[...] * scale + shift + res_ref[...], 0.0)


def _bn_fold(part_stats, gamma, beta, count):
    """Reduce per-tile (sum, sumsq) -> folded per-channel (scale, shift)."""
    s = jnp.sum(part_stats.astype(jnp.float32), axis=(0, 1))        # (2, Cp)
    mean = s[0] / count
    var = jnp.maximum(s[1] / count - mean * mean, 0.0)               # clamp >= 0
    scale = gamma.reshape(-1) * jax.lax.rsqrt(var + EPS)
    shift = beta.reshape(-1) - mean * scale
    return jnp.stack([scale, shift], axis=0).astype(jnp.float32)     # (2, Cp)


def _pad_last(a, target, axis=-1):
    pad = target - a.shape[axis]
    if pad == 0:
        return a
    widths = [(0, 0)] * a.ndim
    widths[axis] = (0, pad)
    return jnp.pad(a, widths)


def _prepare_params(params, Cp):
    """Zero-pad weights / gamma / beta to Cp lanes (padded lanes must stay 0)."""
    def prep_w(w):                                     # (3, 3, Cin, Cout) HWIO
        w = _pad_last(_pad_last(w, Cp, axis=2), Cp, axis=3)
        return w.reshape(9 * Cp, Cp).astype(jnp.bfloat16)  # rows: (ky, kx, cin)
    return dict(
        w1=prep_w(params["w1"]), w2=prep_w(params["w2"]),
        g1=_pad_last(params["g1"].astype(jnp.float32), Cp),
        b1=_pad_last(params["b1"].astype(jnp.float32), Cp),
        g2=_pad_last(params["g2"].astype(jnp.float32), Cp),
        b2=_pad_last(params["b2"].astype(jnp.float32), Cp))


def basic_block_forward_nhwc_padded(xp, pp, *, block_rows=None):
    """BasicBlock forward on channel-padded NHWC input (N, H, W, Cp), f32.

    For stacked blocks keep activations in this layout end-to-end (no
    per-block channel slice / NCHW<->NHWC transposes at the boundary).
    """
    N, H, W, Cp = xp.shape
    TR = _pick_block_rows(H) if block_rows is None else block_rows
    assert H % TR == 0, "row tile must divide H"
    R = H // TR
    grid = (N, R)
    count = float(N * H * W)

    cparams = pltpu.CompilerParams(
        dimension_semantics=("parallel", "parallel"),   # megacore-friendly
        vmem_limit_bytes=_vmem_limit_bytes())

    # Activation tiles: centre rows + one halo row above/below, clamped at the
    # image border (the kernel substitutes zeros there).
    centre = pl.BlockSpec((None, TR, W, Cp), lambda n, r: (n, r, 0, 0))
    top = pl.BlockSpec((None, 1, W, Cp),
                       lambda n, r: (n, jnp.maximum(r * TR - 1, 0), 0, 0))
    bot = pl.BlockSpec((None, 1, W, Cp),
                       lambda n, r: (n, jnp.minimum(r * TR + TR, H - 1), 0, 0))
    # Weights / folded BN params: constant index_map -> loaded once, resident.
    w_spec = pl.BlockSpec((9 * Cp, Cp), lambda n, r: (0, 0))
    ss_spec = pl.BlockSpec((2, Cp), lambda n, r: (0, 0))
    st_spec = pl.BlockSpec((None, None, 2, Cp), lambda n, r: (n, r, 0, 0))

    scratch = [pltpu.VMEM((TR + 2, W + 2, Cp), jnp.bfloat16)]
    st_shape = jax.ShapeDtypeStruct((N, R, 2, Cp), jnp.float32)

    # ---- pass 1: y1 = conv1(x) (un-normalized, bf16) + bn1 partial stats
    y1, st1 = pl.pallas_call(
        functools.partial(_conv_stage_kernel, TR=TR, W=W, Cp=Cp,
                          apply_bn_relu=False),
        grid=grid,
        in_specs=[centre, top, bot, w_spec],
        out_specs=(centre, st_spec),
        out_shape=(jax.ShapeDtypeStruct((N, H, W, Cp), jnp.bfloat16), st_shape),
        scratch_shapes=scratch,
        compiler_params=cparams,
    )(xp, xp, xp, pp["w1"])
    ss1 = _bn_fold(st1, pp["g1"], pp["b1"], count)       # tiny XLA reduce

    # ---- pass 2: y2 = conv2(relu(bn1(y1))) (un-normalized) + bn2 partial stats
    y2, st2 = pl.pallas_call(
        functools.partial(_conv_stage_kernel, TR=TR, W=W, Cp=Cp,
                          apply_bn_relu=True),
        grid=grid,
        in_specs=[ss_spec, centre, top, bot, w_spec],
        out_specs=(centre, st_spec),
        out_shape=(jax.ShapeDtypeStruct((N, H, W, Cp), jnp.float32), st_shape),
        scratch_shapes=scratch,
        compiler_params=cparams,
    )(ss1, y1, y1, y1, pp["w2"])
    ss2 = _bn_fold(st2, pp["g2"], pp["b2"], count)

    # ---- pass 3: out = relu(bn2(y2) + x), residual kept in exact f32
    out = pl.pallas_call(
        functools.partial(_bn_residual_relu_kernel, Cp=Cp),
        grid=grid,
        in_specs=[ss_spec, centre, centre],
        out_specs=centre,
        out_shape=jax.ShapeDtypeStruct((N, H, W, Cp), jnp.float32),
        compiler_params=cparams,
    )(ss2, y2, xp)
    return out


def basic_block_forward_nhwc(x, params, *, block_rows=None):
    """BasicBlock forward on NHWC input (N, H, W, C) -> (N, H, W, C), f32."""
    N, H, W, C = x.shape
    assert params["w1"].shape[2] == C and params["w1"].shape[3] == C, (
        "default BasicBlock path (stride=1, downsample=None) needs inplanes == planes")
    Cp = ((C + LANE - 1) // LANE) * LANE
    xp = _pad_last(x.astype(jnp.float32), Cp)
    pp = _prepare_params(params, Cp)
    out = basic_block_forward_nhwc_padded(xp, pp, block_rows=block_rows)
    return out[..., :C]


@jax.jit
def basic_block_forward(x_nchw, params):
    """PyTorch-layout entry: (N, C, H, W) f32 -> (N, C, H, W) f32."""
    x = jnp.transpose(x_nchw, (0, 2, 3, 1)).astype(jnp.float32)     # NHWC
    out = basic_block_forward_nhwc(x, params)
    return jnp.transpose(out, (0, 3, 1, 2))                         # back to NCHW


def init_params(key, inplanes, planes):
    k1, k2, k3, k4 = jax.random.split(key, 4)
    # conv weights stored HWIO (3, 3, Cin, Cout); no bias (bias=False).
    w1 = 0.1 * jax.random.normal(k1, (3, 3, inplanes, planes), jnp.float32)
    w2 = 0.1 * jax.random.normal(k2, (3, 3, planes, planes), jnp.float32)
    g1 = 1.0 + 0.1 * jax.random.normal(k3, (1, planes), jnp.float32)
    b1 = 0.1 * jax.random.normal(k4, (1, planes), jnp.float32)
    g2 = 1.0 + 0.05 * jax.random.normal(k3, (1, planes), jnp.float32)
    b2 = 0.05 * jax.random.normal(k4, (1, planes), jnp.float32)
    return dict(w1=w1, w2=w2, g1=g1, b1=b1, g2=g2, b2=b2)


def _reference_forward(x_nchw, params):
    """Pure-JAX f32 reference (exact PyTorch-module math) for validation."""
    x = jnp.transpose(x_nchw, (0, 2, 3, 1)).astype(jnp.float32)

    def conv(inp, w):
        return jax.lax.conv_general_dilated(
            inp, w, window_strides=(1, 1), padding=((1, 1), (1, 1)),
            dimension_numbers=("NHWC", "HWIO", "NHWC"))

    def bn(inp, g, b):
        mean = jnp.mean(inp, axis=(0, 1, 2), keepdims=True)
        var = jnp.mean(jnp.square(inp - mean), axis=(0, 1, 2), keepdims=True)
        return ((inp - mean) * jax.lax.rsqrt(var + EPS)
                * g.reshape(1, 1, 1, -1) + b.reshape(1, 1, 1, -1))

    out = jax.nn.relu(bn(conv(x, params["w1"]), params["g1"], params["b1"]))
    out = bn(conv(out, params["w2"]), params["g2"], params["b2"])
    out = jax.nn.relu(out + x)
    return jnp.transpose(out, (0, 3, 1, 2))


if __name__ == "__main__":
    key = jax.random.PRNGKey(0)
    kx, kp = jax.random.split(key)

    N, C, H, W = 2, 8, 16, 16            # inplanes == planes == 8, stride=1
    x = jax.random.normal(kx, (N, C, H, W), jnp.float32)
    params = init_params(kp, inplanes=C, planes=C)

    out = jax.block_until_ready(basic_block_forward(x, params))
    ref = _reference_forward(x, params)

    assert out.shape == (N, C, H, W) and out.dtype == jnp.float32
    # Tolerance sized for bf16 MXU operands / bf16 inter-conv activation vs
    # the f32 reference across two chained convs (not bit-exact by design).
    assert jnp.allclose(out, ref, atol=5e-2, rtol=5e-2), (
        "Pallas BasicBlock mismatch vs JAX reference: "
        f"max abs err {jnp.max(jnp.abs(out - ref))}")

    print("KERNEL_OK")
</pallas_src>

<mosaic_0001>
module attributes {stable_mosaic.version = 11 : i64} {
  func.func @_conv_stage_kernel(%arg0: i32, %arg1: i32, %arg2: memref<1x8x16x128xf32, #tpu.memory_space<vmem>>, %arg3: memref<1x1x16x128xf32, #tpu.memory_space<vmem>>, %arg4: memref<1x1x16x128xf32, #tpu.memory_space<vmem>>, %arg5: memref<1152x128xbf16, #tpu.memory_space<vmem>>, %arg6: memref<1x8x16x128xbf16, #tpu.memory_space<vmem>>, %arg7: memref<1x1x2x128xf32, #tpu.memory_space<vmem>>, %arg8: memref<10x18x128xbf16, #tpu.memory_space<vmem>>) attributes {dimension_semantics = [#tpu.dimension_semantics<parallel>, #tpu.dimension_semantics<parallel>], iteration_bounds = array<i64: 2, 2>, scalar_prefetch = 0 : i64, scratch_operands = 1 : i64, tpu.core_type = #tpu.core_type<tc>, window_params = [{transform_indices = @transform_0, window_bounds = array<i64: 1, 8, 16, 128>}, {transform_indices = @transform_1, window_bounds = array<i64: 1, 1, 16, 128>}, {transform_indices = @transform_2, window_bounds = array<i64: 1, 1, 16, 128>}, {pipeline_mode = #tpu.pipeline_mode<synchronous>, transform_indices = @transform_3, window_bounds = array<i64: 1152, 128>}, {transform_indices = @transform_4, window_bounds = array<i64: 1, 8, 16, 128>}, {transform_indices = @transform_5, window_bounds = array<i64: 1, 1, 2, 128>}]} {
    %cst = arith.constant 0.000000e+00 : bf16
    %0 = vector.broadcast %cst : bf16 to vector<1x18x128xbf16>
    %c0 = arith.constant 0 : index
    %c0_0 = arith.constant 0 : index
    %c0_1 = arith.constant 0 : index
    %c0_2 = arith.constant 0 : index
    %1 = vector.load %arg2[%c0, %c0_0, %c0_1, %c0_2] : memref<1x8x16x128xf32, #tpu.memory_space<vmem>>, vector<1x8x16x128xf32>
    %2 = vector.shape_cast %1 : vector<1x8x16x128xf32> to vector<8x16x128xf32>
    %3 = arith.truncf %2 : vector<8x16x128xf32> to vector<8x16x128xbf16>
    %cst_3 = arith.constant 0.000000e+00 : bf16
    %4 = vector.broadcast %cst_3 : bf16 to vector<8x1x128xbf16>
    %5 = tpu.concatenate %4, %3, %4 in 1 : vector<8x1x128xbf16>, vector<8x16x128xbf16>, vector<8x1x128xbf16> -> vector<8x18x128xbf16>
    %c1 = arith.constant 1 : index
    %c0_4 = arith.constant 0 : index
    %c0_5 = arith.constant 0 : index
    %6 = vector.load %arg8[%c1, %c0_4, %c0_5] : memref<10x18x128xbf16, #tpu.memory_space<vmem>>, vector<8x18x128xbf16>
    tpu.vector_store %arg8[%c1, %c0_4, %c0_5], %5 {strides = array<i32>} : memref<10x18x128xbf16, #tpu.memory_space<vmem>>, vector<8x18x128xbf16>,
    %c0_i32 = arith.constant 0 : i32
    %7 = arith.cmpi eq, %arg1, %c0_i32 : i32
    %8 = arith.extui %7 : i1 to i32
    %c0_i32_6 = arith.constant 0 : i32
    %9 = arith.cmpi ne, %8, %c0_i32_6 : i32
    scf.if %9 {
      %c0_59 = arith.constant 0 : index
      %c0_60 = arith.constant 0 : index
      %c0_61 = arith.constant 0 : index
      %69 = vector.load %arg8[%c0_59, %c0_60, %c0_61] : memref<10x18x128xbf16, #tpu.memory_space<vmem>>, vector<1x18x128xbf16>
      tpu.vector_store %arg8[%c0_59, %c0_60, %c0_61], %0 {strides = array<i32>} : memref<10x18x128xbf16, #tpu.memory_space<vmem>>, vector<1x18x128xbf16>,
    } else {
    }
    %c0_i32_7 = arith.constant 0 : i32
    %10 = arith.cmpi sgt, %arg1, %c0_i32_7 : i32
    %11 = arith.extui %10 : i1 to i32
    %c0_i32_8 = arith.constant 0 : i32
    %12 = arith.cmpi ne, %11, %c0_i32_8 : i32
    scf.if %12 {
      %c0_59 = arith.constant 0 : index
      %c0_60 = arith.constant 0 : index
      %c0_61 = arith.constant 0 : index
      %c0_62 = arith.constant 0 : index
      %69 = vector.load %arg3[%c0_59, %c0_60, %c0_61, %c0_62] : memref<1x1x16x128xf32, #tpu.memory_space<vmem>>, vector<1x1x16x128xf32>
      %70 = vector.shape_cast %69 : vector<1x1x16x128xf32> to vector<1x16x128xf32>
      %71 = arith.truncf %70 : vector<1x16x128xf32> to vector<1x16x128xbf16>
      %cst_63 = arith.constant 0.000000e+00 : bf16
      %72 = vector.broadcast %cst_63 : bf16 to vector<1x1x128xbf16>
      %73 = tpu.concatenate %72, %71, %72 in 1 : vector<1x1x128xbf16>, vector<1x16x128xbf16>, vector<1x1x128xbf16> -> vector<1x18x128xbf16>
      %c0_64 = arith.constant 0 : index
      %c0_65 = arith.constant 0 : index
      %c0_66 = arith.constant 0 : index
      %74 = vector.load %arg8[%c0_64, %c0_65, %c0_66] : memref<10x18x128xbf16, #tpu.memory_space<vmem>>, vector<1x18x128xbf16>
      tpu.vector_store %arg8[%c0_64, %c0_65, %c0_66], %73 {strides = array<i32>} : memref<10x18x128xbf16, #tpu.memory_space<vmem>>, vector<1x18x128xbf16>,
    } else {
    }
    %c1_i32 = arith.constant 1 : i32
    %13 = arith.cmpi eq, %arg1, %c1_i32 : i32
    %14 = arith.extui %13 : i1 to i32
    %c0_i32_9 = arith.constant 0 : i32
    %15 = arith.cmpi ne, %14, %c0_i32_9 : i32
    scf.if %15 {
      %c9 = arith.constant 9 : index
      %c0_59 = arith.constant 0 : index
      %c0_60 = arith.constant 0 : index
      %69 = vector.load %arg8[%c9, %c0_59, %c0_60] : memref<10x18x128xbf16, #tpu.memory_space<vmem>>, vector<1x18x128xbf16>
      tpu.vector_store %arg8[%c9, %c0_59, %c0_60], %0 {strides = array<i32>} : memref<10x18x128xbf16, #tpu.memory_space<vmem>>, vector<1x18x128xbf16>,
    } else {
    }
    %c1_i32_10 = arith.constant 1 : i32
    %16 = arith.cmpi slt, %arg1, %c1_i32_10 : i32
    %17 = arith.extui %16 : i1 to i32
    %c0_i32_11 = arith.constant 0 : i32
    %18 = arith.cmpi ne, %17, %c0_i32_11 : i32
    scf.if %18 {
      %c0_59 = arith.constant 0 : index
      %c0_60 = arith.constant 0 : index
      %c0_61 = arith.constant 0 : index
      %c0_62 = arith.constant 0 : index
      %69 = vector.load %arg4[%c0_59, %c0_60, %c0_61, %c0_62] : memref<1x1x16x128xf32, #tpu.memory_space<vmem>>, vector<1x1x16x128xf32>
      %70 = vector.shape_cast %69 : vector<1x1x16x128xf32> to vector<1x16x128xf32>
      %71 = arith.truncf %70 : vector<1x16x128xf32> to vector<1x16x128xbf16>
      %cst_63 = arith.constant 0.000000e+00 : bf16
      %72 = vector.broadcast %cst_63 : bf16 to vector<1x1x128xbf16>
      %73 = tpu.concatenate %72, %71, %72 in 1 : vector<1x1x128xbf16>, vector<1x16x128xbf16>, vector<1x1x128xbf16> -> vector<1x18x128xbf16>
      %c9 = arith.constant 9 : index
      %c0_64 = arith.constant 0 : index
      %c0_65 = arith.constant 0 : index
      %74 = vector.load %arg8[%c9, %c0_64, %c0_65] : memref<10x18x128xbf16, #tpu.memory_space<vmem>>, vector<1x18x128xbf16>
      tpu.vector_store %arg8[%c9, %c0_64, %c0_65], %73 {strides = array<i32>} : memref<10x18x128xbf16, #tpu.memory_space<vmem>>, vector<1x18x128xbf16>,
    } else {
    }
    %c0_12 = arith.constant 0 : index
    %c0_13 = arith.constant 0 : index
    %c0_14 = arith.constant 0 : index
    %19 = vector.load %arg8[%c0_12, %c0_13, %c0_14] : memref<10x18x128xbf16, #tpu.memory_space<vmem>>, vector<8x16x128xbf16>
    %20 = vector.shape_cast %19 : vector<8x16x128xbf16> to vector<128x128xbf16>
    %c0_15 = arith.constant 0 : index
    %c1_16 = arith.constant 1 : index
    %c0_17 = arith.constant 0 : index
    %21 = vector.load %arg8[%c0_15, %c1_16, %c0_17] : memref<10x18x128xbf16, #tpu.memory_space<vmem>>, vector<8x16x128xbf16>
    %22 = vector.shape_cast %21 : vector<8x16x128xbf16> to vector<128x128xbf16>
    %23 = tpu.concatenate %20, %22 in 1 : vector<128x128xbf16>, vector<128x128xbf16> -> vector<128x256xbf16>
    %c0_18 = arith.constant 0 : index
    %c0_19 = arith.constant 0 : index
    %24 = vector.load %arg5[%c0_18, %c0_19] : memref<1152x128xbf16, #tpu.memory_space<vmem>>, vector<256x128xbf16>
    %cst_20 = arith.constant dense<0.000000e+00> : vector<128x128xf32>
    %25 = tpu.matmul %23, %24, %cst_20 {dimension_numbers = #tpu.dot_dimension_numbers<[1], [0], [0], [1], [0, 0, 1, 1], [], []>} : vector<128x256xbf16>, vector<256x128xbf16>, vector<128x128xf32> -> vector<128x128xf32>
    %c0_21 = arith.constant 0 : index
    %c2 = arith.constant 2 : index
    %c0_22 = arith.constant 0 : index
    %26 = vector.load %arg8[%c0_21, %c2, %c0_22] : memref<10x18x128xbf16, #tpu.memory_space<vmem>>, vector<8x16x128xbf16>
    %27 = vector.shape_cast %26 : vector<8x16x128xbf16> to vector<128x128xbf16>
    %c1_23 = arith.constant 1 : index
    %c0_24 = arith.constant 0 : index
    %c0_25 = arith.constant 0 : index
    %28 = vector.load %arg8[%c1_23, %c0_24, %c0_25] : memref<10x18x128xbf16, #tpu.memory_space<vmem>>, vector<8x16x128xbf16>
    %29 = vector.shape_cast %28 : vector<8x16x128xbf16> to vector<128x128xbf16>
    %30 = tpu.concatenate %27, %29 in 1 : vector<128x128xbf16>, vector<128x128xbf16> -> vector<128x256xbf16>
    %c256 = arith.constant 256 : index
    %c0_26 = arith.constant 0 : index
    %31 = vector.load %arg5[%c256, %c0_26] : memref<1152x128xbf16, #tpu.memory_space<vmem>>, vector<256x128xbf16>
    %cst_27 = arith.constant dense<0.000000e+00> : vector<128x128xf32>
    %32 = tpu.matmul %30, %31, %cst_27 {dimension_numbers = #tpu.dot_dimension_numbers<[1], [0], [0], [1], [0, 0, 1, 1], [], []>} : vector<128x256xbf16>, vector<256x128xbf16>, vector<128x128xf32> -> vector<128x128xf32>
    %33 = arith.addf %25, %32 : vector<128x128xf32>
    %c1_28 = arith.constant 1 : index
    %c1_29 = arith.constant 1 : index
    %c0_30 = arith.constant 0 : index
    %34 = vector.load %arg8[%c1_28, %c1_29, %c0_30] : memref<10x18x128xbf16, #tpu.memory_space<vmem>>, vector<8x16x128xbf16>
    %35 = vector.shape_cast %34 : vector<8x16x128xbf16> to vector<128x128xbf16>
    %c1_31 = arith.constant 1 : index
    %c2_32 = arith.constant 2 : index
    %c0_33 = arith.constant 0 : index
    %36 = vector.load %arg8[%c1_31, %c2_32, %c0_33] : memref<10x18x128xbf16, #tpu.memory_space<vmem>>, vector<8x16x128xbf16>
    %37 = vector.shape_cast %36 : vector<8x16x128xbf16> to vector<128x128xbf16>
    %38 = tpu.concatenate %35, %37 in 1 : vector<128x128xbf16>, vector<128x128xbf16> -> vector<128x256xbf16>
    %c512 = arith.constant 512 : index
    %c0_34 = arith.constant 0 : index
    %39 = vector.load %arg5[%c512, %c0_34] : memref<1152x128xbf16, #tpu.memory_space<vmem>>, vector<256x128xbf16>
    %cst_35 = arith.constant dense<0.000000e+00> : vector<128x128xf32>
    %40 = tpu.matmul %38, %39, %cst_35 {dimension_numbers = #tpu.dot_dimension_numbers<[1], [0], [0], [1], [0, 0, 1, 1], [], []>} : vector<128x256xbf16>, vector<256x128xbf16>, vector<128x128xf32> -> vector<128x128xf32>
    %41 = arith.addf %33, %40 : vector<128x128xf32>
    %c2_36 = arith.constant 2 : index
    %c0_37 = arith.constant 0 : index
    %c0_38 = arith.constant 0 : index
    %42 = vector.load %arg8[%c2_36, %c0_37, %c0_38] : memref<10x18x128xbf16, #tpu.memory_space<vmem>>, vector<8x16x128xbf16>
    %43 = vector.shape_cast %42 : vector<8x16x128xbf16> to vector<128x128xbf16>
    %c2_39 = arith.constant 2 : index
    %c1_40 = arith.constant 1 : index
    %c0_41 = arith.constant 0 : index
    %44 = vector.load %arg8[%c2_39, %c1_40, %c0_41] : memref<10x18x128xbf16, #tpu.memory_space<vmem>>, vector<8x16x128xbf16>
    %45 = vector.shape_cast %44 : vector<8x16x128xbf16> to vector<128x128xbf16>
    %46 = tpu.concatenate %43, %45 in 1 : vector<128x128xbf16>, vector<128x128xbf16> -> vector<128x256xbf16>
    %c768 = arith.constant 768 : index
    %c0_42 = arith.constant 0 : index
    %47 = vector.load %arg5[%c768, %c0_42] : memref<1152x128xbf16, #tpu.memory_space<vmem>>, vector<256x128xbf16>
    %cst_43 = arith.constant dense<0.000000e+00> : vector<128x128xf32>
    %48 = tpu.matmul %46, %47, %cst_43 {dimension_numbers = #tpu.dot_dimension_numbers<[1], [0], [0], [1], [0, 0, 1, 1], [], []>} : vector<128x256xbf16>, vector<256x128xbf16>, vector<128x128xf32> -> vector<128x128xf32>
    %49 = arith.addf %41, %48 : vector<128x128xf32>
    %c2_44 = arith.constant 2 : index
    %c2_45 = arith.constant 2 : index
    %c0_46 = arith.constant 0 : index
    %50 = vector.load %arg8[%c2_44, %c2_45, %c0_46] : memref<10x18x128xbf16, #tpu.memory_space<vmem>>, vector<8x16x128xbf16>
    %51 = vector.shape_cast %50 : vector<8x16x128xbf16> to vector<128x128xbf16>
    %c1024 = arith.constant 1024 : index
    %c0_47 = arith.constant 0 : index
    %52 = vector.load %arg5[%c1024, %c0_47] : memref<1152x128xbf16, #tpu.memory_space<vmem>>, vector<128x128xbf16>
    %cst_48 = arith.constant dense<0.000000e+00> : vector<128x128xf32>
    %53 = tpu.matmul %51, %52, %cst_48 {dimension_numbers = #tpu.dot_dimension_numbers<[1], [0], [0], [1], [0, 0, 1, 1], [], []>} : vector<128x128xbf16>, vector<128x128xbf16>, vector<128x128xf32> -> vector<128x128xf32>
    %54 = arith.addf %49, %53 : vector<128x128xf32>
    %55 = vector.shape_cast %54 : vector<128x128xf32> to vector<8x16x128xf32>
    %56 = arith.truncf %55 : vector<8x16x128xf32> to vector<8x16x128xbf16>
    %c0_49 = arith.constant 0 : index
    %c0_50 = arith.constant 0 : index
    %c0_51 = arith.constant 0 : index
    %c0_52 = arith.constant 0 : index
    %57 = vector.load %arg6[%c0_49, %c0_50, %c0_51, %c0_52] : memref<1x8x16x128xbf16, #tpu.memory_space<vmem>>, vector<1x8x16x128xbf16>
    %58 = vector.shape_cast %57 : vector<1x8x16x128xbf16> to vector<8x16x128xbf16>
    %59 = vector.shape_cast %56 : vector<8x16x128xbf16> to vector<1x8x16x128xbf16>
    tpu.vector_store %arg6[%c0_49, %c0_50, %c0_51, %c0_52], %59 {strides = array<i32>} : memref<1x8x16x128xbf16, #tpu.memory_space<vmem>>, vector<1x8x16x128xbf16>,
    %cst_53 = arith.constant dense<0.000000e+00> : vector<128xf32>
    %60 = vector.multi_reduction <add>, %54, %cst_53 [0] : vector<128x128xf32> to vector<128xf32>
    %61 = vector.shape_cast %60 : vector<128xf32> to vector<1x128xf32>
    %62 = arith.mulf %54, %54 : vector<128x128xf32>
    %cst_54 = arith.constant dense<0.000000e+00> : vector<128xf32>
    %63 = vector.multi_reduction <add>, %62, %cst_54 [0] : vector<128x128xf32> to vector<128xf32>
    %64 = vector.shape_cast %63 : vector<128xf32> to vector<1x128xf32>
    %65 = tpu.concatenate %61, %64 in 0 : vector<1x128xf32>, vector<1x128xf32> -> vector<2x128xf32>
    %c0_55 = arith.constant 0 : index
    %c0_56 = arith.constant 0 : index
    %c0_57 = arith.constant 0 : index
    %c0_58 = arith.constant 0 : index
    %66 = vector.load %arg7[%c0_55, %c0_56, %c0_57, %c0_58] : memref<1x1x2x128xf32, #tpu.memory_space<vmem>>, vector<1x1x2x128xf32>
    %67 = vector.shape_cast %66 : vector<1x1x2x128xf32> to vector<2x128xf32>
    %68 = vector.shape_cast %65 : vector<2x128xf32> to vector<1x1x2x128xf32>
    tpu.vector_store %arg7[%c0_55, %c0_56, %c0_57, %c0_58], %68 {strides = array<i32>} : memref<1x1x2x128xf32, #tpu.memory_space<vmem>>, vector<1x1x2x128xf32>,
    return
  }
  func.func @transform_0(%arg0: i32, %arg1: i32) -> (i32, i32, i32, i32) {
    %c0_i32 = arith.constant 0 : i32
    %c0_i32_0 = arith.constant 0 : i32
    %c0_i32_1 = arith.constant 0 : i32
    return %arg0, %arg1, %c0_i32, %c0_i32_0 : i32, i32, i32, i32
  }
  func.func @transform_1(%arg0: i32, %arg1: i32) -> (i32, i32, i32, i32) {
    %c8_i32 = arith.constant 8 : i32
    %0 = arith.muli %arg1, %c8_i32 : i32
    %c1_i32 = arith.constant 1 : i32
    %1 = arith.subi %0, %c1_i32 : i32
    %c0_i32 = arith.constant 0 : i32
    %2 = arith.maxsi %1, %c0_i32 : i32
    %c0_i32_0 = arith.constant 0 : i32
    %c0_i32_1 = arith.constant 0 : i32
    %c0_i32_2 = arith.constant 0 : i32
    return %arg0, %2, %c0_i32_0, %c0_i32_1 : i32, i32, i32, i32
  }
  func.func @transform_2(%arg0: i32, %arg1: i32) -> (i32, i32, i32, i32) {
    %c8_i32 = arith.constant 8 : i32
    %0 = arith.muli %arg1, %c8_i32 : i32
    %c8_i32_0 = arith.constant 8 : i32
    %1 = arith.addi %0, %c8_i32_0 : i32
    %c15_i32 = arith.constant 15 : i32
    %2 = arith.minsi %1, %c15_i32 : i32
    %c0_i32 = arith.constant 0 : i32
    %c0_i32_1 = arith.constant 0 : i32
    %c0_i32_2 = arith.constant 0 : i32
    return %arg0, %2, %c0_i32, %c0_i32_1 : i32, i32, i32, i32
  }
  func.func @transform_3(%arg0: i32, %arg1: i32) -> (i32, i32) {
    %c0_i32 = arith.constant 0 : i32
    %c0_i32_0 = arith.constant 0 : i32
    %c0_i32_1 = arith.constant 0 : i32
    return %c0_i32, %c0_i32_0 : i32, i32
  }
  func.func @transform_4(%arg0: i32, %arg1: i32) -> (i32, i32, i32, i32) {
    %c0_i32 = arith.constant 0 : i32
    %c0_i32_0 = arith.constant 0 : i32
    %c0_i32_1 = arith.constant 0 : i32
    return %arg0, %arg1, %c0_i32, %c0_i32_0 : i32, i32, i32, i32
  }
  func.func @transform_5(%arg0: i32, %arg1: i32) -> (i32, i32, i32, i32) {
    %c0_i32 = arith.constant 0 : i32
    %c0_i32_0 = arith.constant 0 : i32
    %c0_i32_1 = arith.constant 0 : i32
    return %arg0, %arg1, %c0_i32, %c0_i32_0 : i32, i32, i32, i32
  }
}

module attributes {stable_mosaic.version = 11 : i64} {
  func.func @_bn_residual_relu_kernel(%arg0: i32, %arg1: i32, %arg2: memref<2x128xf32, #tpu.memory_space<vmem>>, %arg3: memref<1x8x16x128xf32, #tpu.memory_space<vmem>>, %arg4: memref<1x8x16x128xf32, #tpu.memory_space<vmem>>, %arg5: memref<1x8x16x128xf32, #tpu.memory_space<vmem>>) attributes {dimension_semantics = [#tpu.dimension_semantics<parallel>, #tpu.dimension_semantics<parallel>], iteration_bounds = array<i64: 2, 2>, scalar_prefetch = 0 : i64, scratch_operands = 0 : i64, tpu.core_type = #tpu.core_type<tc>, window_params = [{pipeline_mode = #tpu.pipeline_mode<synchronous>, transform_indices = @transform_0, window_bounds = array<i64: 2, 128>}, {transform_indices = @transform_1, window_bounds = array<i64: 1, 8, 16, 128>}, {transform_indices = @transform_2, window_bounds = array<i64: 1, 8, 16, 128>}, {transform_indices = @transform_3, window_bounds = array<i64: 1, 8, 16, 128>}]} {
    %c0 = arith.constant 0 : index
    %c0_0 = arith.constant 0 : index
    %0 = vector.load %arg2[%c0, %c0_0] : memref<2x128xf32, #tpu.memory_space<vmem>>, vector<1x128xf32>
    %1 = vector.shape_cast %0 : vector<1x128xf32> to vector<1x1x128xf32>
    %c1 = arith.constant 1 : index
    %c0_1 = arith.constant 0 : index
    %2 = vector.load %arg2[%c1, %c0_1] : memref<2x128xf32, #tpu.memory_space<vmem>>, vector<1x128xf32>
    %3 = vector.shape_cast %2 : vector<1x128xf32> to vector<1x1x128xf32>
    %c0_2 = arith.constant 0 : index
    %c0_3 = arith.constant 0 : index
    %c0_4 = arith.constant 0 : index
    %c0_5 = arith.constant 0 : index
    %4 = vector.load %arg3[%c0_2, %c0_3, %c0_4, %c0_5] : memref<1x8x16x128xf32, #tpu.memory_space<vmem>>, vector<1x8x16x128xf32>
    %5 = vector.shape_cast %4 : vector<1x8x16x128xf32> to vector<8x16x128xf32>
    %6 = vector.broadcast %1 : vector<1x1x128xf32> to vector<8x16x128xf32>
    %7 = arith.mulf %5, %6 : vector<8x16x128xf32>
    %8 = vector.broadcast %3 : vector<1x1x128xf32> to vector<8x16x128xf32>
    %9 = arith.addf %7, %8 : vector<8x16x128xf32>
    %c0_6 = arith.constant 0 : index
    %c0_7 = arith.constant 0 : index
    %c0_8 = arith.constant 0 : index
    %c0_9 = arith.constant 0 : index
    %10 = vector.load %arg4[%c0_6, %c0_7, %c0_8, %c0_9] : memref<1x8x16x128xf32, #tpu.memory_space<vmem>>, vector<1x8x16x128xf32>
    %11 = vector.shape_cast %10 : vector<1x8x16x128xf32> to vector<8x16x128xf32>
    %12 = arith.addf %9, %11 : vector<8x16x128xf32>
    %cst = arith.constant 0.000000e+00 : f32
    %13 = vector.broadcast %cst : f32 to vector<8x16x128xf32>
    %14 = arith.maximumf %12, %13 : vector<8x16x128xf32>
    %c0_10 = arith.constant 0 : index
    %c0_11 = arith.constant 0 : index
    %c0_12 = arith.constant 0 : index
    %c0_13 = arith.constant 0 : index
    %15 = vector.load %arg5[%c0_10, %c0_11, %c0_12, %c0_13] : memref<1x8x16x128xf32, #tpu.memory_space<vmem>>, vector<1x8x16x128xf32>
    %16 = vector.shape_cast %15 : vector<1x8x16x128xf32> to vector<8x16x128xf32>
    %17 = vector.shape_cast %14 : vector<8x16x128xf32> to vector<1x8x16x128xf32>
    tpu.vector_store %arg5[%c0_10, %c0_11, %c0_12, %c0_13], %17 {strides = array<i32>} : memref<1x8x16x128xf32, #tpu.memory_space<vmem>>, vector<1x8x16x128xf32>,
    return
  }
  func.func @transform_0(%arg0: i32, %arg1: i32) -> (i32, i32) {
    %c0_i32 = arith.constant 0 : i32
    %c0_i32_0 = arith.constant 0 : i32
    %c0_i32_1 = arith.constant 0 : i32
    return %c0_i32, %c0_i32_0 : i32, i32
  }
  func.func @transform_1(%arg0: i32, %arg1: i32) -> (i32, i32, i32, i32) {
    %c0_i32 = arith.constant 0 : i32
    %c0_i32_0 = arith.constant 0 : i32
    %c0_i32_1 = arith.constant 0 : i32
    return %arg0, %arg1, %c0_i32, %c0_i32_0 : i32, i32, i32, i32
  }
  func.func @transform_2(%arg0: i32, %arg1: i32) -> (i32, i32, i32, i32) {
    %c0_i32 = arith.constant 0 : i32
    %c0_i32_0 = arith.constant 0 : i32
    %c0_i32_1 = arith.constant 0 : i32
    return %arg0, %arg1, %c0_i32, %c0_i32_0 : i32, i32, i32, i32
  }
  func.func @transform_3(%arg0: i32, %arg1: i32) -> (i32, i32, i32, i32) {
    %c0_i32 = arith.constant 0 : i32
    %c0_i32_0 = arith.constant 0 : i32
    %c0_i32_1 = arith.constant 0 : i32
    return %arg0, %arg1, %c0_i32, %c0_i32_0 : i32, i32, i32, i32
  }
}

module attributes {stable_mosaic.version = 11 : i64} {
  func.func @_conv_stage_kernel(%arg0: i32, %arg1: i32, %arg2: memref<2x128xf32, #tpu.memory_space<vmem>>, %arg3: memref<1x8x16x128xbf16, #tpu.memory_space<vmem>>, %arg4: memref<1x1x16x128xbf16, #tpu.memory_space<vmem>>, %arg5: memref<1x1x16x128xbf16, #tpu.memory_space<vmem>>, %arg6: memref<1152x128xbf16, #tpu.memory_space<vmem>>, %arg7: memref<1x8x16x128xf32, #tpu.memory_space<vmem>>, %arg8: memref<1x1x2x128xf32, #tpu.memory_space<vmem>>, %arg9: memref<10x18x128xbf16, #tpu.memory_space<vmem>>) attributes {dimension_semantics = [#tpu.dimension_semantics<parallel>, #tpu.dimension_semantics<parallel>], iteration_bounds = array<i64: 2, 2>, scalar_prefetch = 0 : i64, scratch_operands = 1 : i64, tpu.core_type = #tpu.core_type<tc>, window_params = [{pipeline_mode = #tpu.pipeline_mode<synchronous>, transform_indices = @transform_0, window_bounds = array<i64: 2, 128>}, {transform_indices = @transform_1, window_bounds = array<i64: 1, 8, 16, 128>}, {transform_indices = @transform_2, window_bounds = array<i64: 1, 1, 16, 128>}, {transform_indices = @transform_3, window_bounds = array<i64: 1, 1, 16, 128>}, {pipeline_mode = #tpu.pipeline_mode<synchronous>, transform_indices = @transform_4, window_bounds = array<i64: 1152, 128>}, {transform_indices = @transform_5, window_bounds = array<i64: 1, 8, 16, 128>}, {transform_indices = @transform_6, window_bounds = array<i64: 1, 1, 2, 128>}]} {
    %c0 = arith.constant 0 : index
    %c0_0 = arith.constant 0 : index
    %0 = vector.load %arg2[%c0, %c0_0] : memref<2x128xf32, #tpu.memory_space<vmem>>, vector<1x128xf32>
    %1 = vector.shape_cast %0 : vector<1x128xf32> to vector<1x1x128xf32>
    %c1 = arith.constant 1 : index
    %c0_1 = arith.constant 0 : index
    %2 = vector.load %arg2[%c1, %c0_1] : memref<2x128xf32, #tpu.memory_space<vmem>>, vector<1x128xf32>
    %3 = vector.shape_cast %2 : vector<1x128xf32> to vector<1x1x128xf32>
    %cst = arith.constant 0.000000e+00 : bf16
    %4 = vector.broadcast %cst : bf16 to vector<1x18x128xbf16>
    %c0_2 = arith.constant 0 : index
    %c0_3 = arith.constant 0 : index
    %c0_4 = arith.constant 0 : index
    %c0_5 = arith.constant 0 : index
    %5 = vector.load %arg3[%c0_2, %c0_3, %c0_4, %c0_5] : memref<1x8x16x128xbf16, #tpu.memory_space<vmem>>, vector<1x8x16x128xbf16>
    %6 = vector.shape_cast %5 : vector<1x8x16x128xbf16> to vector<8x16x128xbf16>
    %7 = arith.extf %6 : vector<8x16x128xbf16> to vector<8x16x128xf32>
    %8 = vector.broadcast %1 : vector<1x1x128xf32> to vector<8x16x128xf32>
    %9 = arith.mulf %7, %8 : vector<8x16x128xf32>
    %10 = vector.broadcast %3 : vector<1x1x128xf32> to vector<8x16x128xf32>
    %11 = arith.addf %9, %10 : vector<8x16x128xf32>
    %cst_6 = arith.constant 0.000000e+00 : f32
    %12 = vector.broadcast %cst_6 : f32 to vector<8x16x128xf32>
    %13 = arith.maximumf %11, %12 : vector<8x16x128xf32>
    %14 = arith.truncf %13 : vector<8x16x128xf32> to vector<8x16x128xbf16>
    %cst_7 = arith.constant 0.000000e+00 : bf16
    %15 = vector.broadcast %cst_7 : bf16 to vector<8x1x128xbf16>
    %16 = tpu.concatenate %15, %14, %15 in 1 : vector<8x1x128xbf16>, vector<8x16x128xbf16>, vector<8x1x128xbf16> -> vector<8x18x128xbf16>
    %c1_8 = arith.constant 1 : index
    %c0_9 = arith.constant 0 : index
    %c0_10 = arith.constant 0 : index
    %17 = vector.load %arg9[%c1_8, %c0_9, %c0_10] : memref<10x18x128xbf16, #tpu.memory_space<vmem>>, vector<8x18x128xbf16>
    tpu.vector_store %arg9[%c1_8, %c0_9, %c0_10], %16 {strides = array<i32>} : memref<10x18x128xbf16, #tpu.memory_space<vmem>>, vector<8x18x128xbf16>,
    %c0_i32 = arith.constant 0 : i32
    %18 = arith.cmpi eq, %arg1, %c0_i32 : i32
    %19 = arith.extui %18 : i1 to i32
    %c0_i32_11 = arith.constant 0 : i32
    %20 = arith.cmpi ne, %19, %c0_i32_11 : i32
    scf.if %20 {
      %c0_64 = arith.constant 0 : index
      %c0_65 = arith.constant 0 : index
      %c0_66 = arith.constant 0 : index
      %79 = vector.load %arg9[%c0_64, %c0_65, %c0_66] : memref<10x18x128xbf16, #tpu.memory_space<vmem>>, vector<1x18x128xbf16>
      tpu.vector_store %arg9[%c0_64, %c0_65, %c0_66], %4 {strides = array<i32>} : memref<10x18x128xbf16, #tpu.memory_space<vmem>>, vector<1x18x128xbf16>,
    } else {
    }
    %c0_i32_12 = arith.constant 0 : i32
    %21 = arith.cmpi sgt, %arg1, %c0_i32_12 : i32
    %22 = arith.extui %21 : i1 to i32
    %c0_i32_13 = arith.constant 0 : i32
    %23 = arith.cmpi ne, %22, %c0_i32_13 : i32
    scf.if %23 {
      %c0_64 = arith.constant 0 : index
      %c0_65 = arith.constant 0 : index
      %c0_66 = arith.constant 0 : index
      %c0_67 = arith.constant 0 : index
      %79 = vector.load %arg4[%c0_64, %c0_65, %c0_66, %c0_67] : memref<1x1x16x128xbf16, #tpu.memory_space<vmem>>, vector<1x1x16x128xbf16>
      %80 = vector.shape_cast %79 : vector<1x1x16x128xbf16> to vector<1x16x128xbf16>
      %81 = arith.extf %80 : vector<1x16x128xbf16> to vector<1x16x128xf32>
      %82 = vector.broadcast %1 : vector<1x1x128xf32> to vector<1x16x128xf32>
      %83 = arith.mulf %81, %82 : vector<1x16x128xf32>
      %84 = vector.broadcast %3 : vector<1x1x128xf32> to vector<1x16x128xf32>
      %85 = arith.addf %83, %84 : vector<1x16x128xf32>
      %cst_68 = arith.constant 0.000000e+00 : f32
      %86 = vector.broadcast %cst_68 : f32 to vector<1x16x128xf32>
      %87 = arith.maximumf %85, %86 : vector<1x16x128xf32>
      %88 = arith.truncf %87 : vector<1x16x128xf32> to vector<1x16x128xbf16>
      %cst_69 = arith.constant 0.000000e+00 : bf16
      %89 = vector.broadcast %cst_69 : bf16 to vector<1x1x128xbf16>
      %90 = tpu.concatenate %89, %88, %89 in 1 : vector<1x1x128xbf16>, vector<1x16x128xbf16>, vector<1x1x128xbf16> -> vector<1x18x128xbf16>
      %c0_70 = arith.constant 0 : index
      %c0_71 = arith.constant 0 : index
      %c0_72 = arith.constant 0 : index
      %91 = vector.load %arg9[%c0_70, %c0_71, %c0_72] : memref<10x18x128xbf16, #tpu.memory_space<vmem>>, vector<1x18x128xbf16>
      tpu.vector_store %arg9[%c0_70, %c0_71, %c0_72], %90 {strides = array<i32>} : memref<10x18x128xbf16, #tpu.memory_space<vmem>>, vector<1x18x128xbf16>,
    } else {
    }
    %c1_i32 = arith.constant 1 : i32
    %24 = arith.cmpi eq, %arg1, %c1_i32 : i32
    %25 = arith.extui %24 : i1 to i32
    %c0_i32_14 = arith.constant 0 : i32
    %26 = arith.cmpi ne, %25, %c0_i32_14 : i32
    scf.if %26 {
      %c9 = arith.constant 9 : index
      %c0_64 = arith.constant 0 : index
      %c0_65 = arith.constant 0 : index
      %79 = vector.load %arg9[%c9, %c0_64, %c0_65] : memref<10x18x128xbf16, #tpu.memory_space<vmem>>, vector<1x18x128xbf16>
      tpu.vector_store %arg9[%c9, %c0_64, %c0_65], %4 {strides = array<i32>} : memref<10x18x128xbf16, #tpu.memory_space<vmem>>, vector<1x18x128xbf16>,
    } else {
    }
    %c1_i32_15 = arith.constant 1 : i32
    %27 = arith.cmpi slt, %arg1, %c1_i32_15 : i32
    %28 = arith.extui %27 : i1 to i32
    %c0_i32_16 = arith.constant 0 : i32
    %29 = arith.cmpi ne, %28, %c0_i32_16 : i32
    scf.if %29 {
      %c0_64 = arith.constant 0 : index
      %c0_65 = arith.constant 0 : index
      %c0_66 = arith.constant 0 : index
      %c0_67 = arith.constant 0 : index
      %79 = vector.load %arg5[%c0_64, %c0_65, %c0_66, %c0_67] : memref<1x1x16x128xbf16, #tpu.memory_space<vmem>>, vector<1x1x16x128xbf16>
      %80 = vector.shape_cast %79 : vector<1x1x16x128xbf16> to vector<1x16x128xbf16>
      %81 = arith.extf %80 : vector<1x16x128xbf16> to vector<1x16x128xf32>
      %82 = vector.broadcast %1 : vector<1x1x128xf32> to vector<1x16x128xf32>
      %83 = arith.mulf %81, %82 : vector<1x16x128xf32>
      %84 = vector.broadcast %3 : vector<1x1x128xf32> to vector<1x16x128xf32>
      %85 = arith.addf %83, %84 : vector<1x16x128xf32>
      %cst_68 = arith.constant 0.000000e+00 : f32
      %86 = vector.broadcast %cst_68 : f32 to vector<1x16x128xf32>
      %87 = arith.maximumf %85, %86 : vector<1x16x128xf32>
      %88 = arith.truncf %87 : vector<1x16x128xf32> to vector<1x16x128xbf16>
      %cst_69 = arith.constant 0.000000e+00 : bf16
      %89 = vector.broadcast %cst_69 : bf16 to vector<1x1x128xbf16>
      %90 = tpu.concatenate %89, %88, %89 in 1 : vector<1x1x128xbf16>, vector<1x16x128xbf16>, vector<1x1x128xbf16> -> vector<1x18x128xbf16>
      %c9 = arith.constant 9 : index
      %c0_70 = arith.constant 0 : index
      %c0_71 = arith.constant 0 : index
      %91 = vector.load %arg9[%c9, %c0_70, %c0_71] : memref<10x18x128xbf16, #tpu.memory_space<vmem>>, vector<1x18x128xbf16>
      tpu.vector_store %arg9[%c9, %c0_70, %c0_71], %90 {strides = array<i32>} : memref<10x18x128xbf16, #tpu.memory_space<vmem>>, vector<1x18x128xbf16>,
    } else {
    }
    %c0_17 = arith.constant 0 : index
    %c0_18 = arith.constant 0 : index
    %c0_19 = arith.constant 0 : index
    %30 = vector.load %arg9[%c0_17, %c0_18, %c0_19] : memref<10x18x128xbf16, #tpu.memory_space<vmem>>, vector<8x16x128xbf16>
    %31 = vector.shape_cast %30 : vector<8x16x128xbf16> to vector<128x128xbf16>
    %c0_20 = arith.constant 0 : index
    %c1_21 = arith.constant 1 : index
    %c0_22 = arith.constant 0 : index
    %32 = vector.load %arg9[%c0_20, %c1_21, %c0_22] : memref<10x18x128xbf16, #tpu.memory_space<vmem>>, vector<8x16x128xbf16>
    %33 = vector.shape_cast %32 : vector<8x16x128xbf16> to vector<128x128xbf16>
    %34 = tpu.concatenate %31, %33 in 1 : vector<128x128xbf16>, vector<128x128xbf16> -> vector<128x256xbf16>
    %c0_23 = arith.constant 0 : index
    %c0_24 = arith.constant 0 : index
    %35 = vector.load %arg6[%c0_23, %c0_24] : memref<1152x128xbf16, #tpu.memory_space<vmem>>, vector<256x128xbf16>
    %cst_25 = arith.constant dense<0.000000e+00> : vector<128x128xf32>
    %36 = tpu.matmul %34, %35, %cst_25 {dimension_numbers = #tpu.dot_dimension_numbers<[1], [0], [0], [1], [0, 0, 1, 1], [], []>} : vector<128x256xbf16>, vector<256x128xbf16>, vector<128x128xf32> -> vector<128x128xf32>
    %c0_26 = arith.constant 0 : index
    %c2 = arith.constant 2 : index
    %c0_27 = arith.constant 0 : index
    %37 = vector.load %arg9[%c0_26, %c2, %c0_27] : memref<10x18x128xbf16, #tpu.memory_space<vmem>>, vector<8x16x128xbf16>
    %38 = vector.shape_cast %37 : vector<8x16x128xbf16> to vector<128x128xbf16>
    %c1_28 = arith.constant 1 : index
    %c0_29 = arith.constant 0 : index
    %c0_30 = arith.constant 0 : index
    %39 = vector.load %arg9[%c1_28, %c0_29, %c0_30] : memref<10x18x128xbf16, #tpu.memory_space<vmem>>, vector<8x16x128xbf16>
    %40 = vector.shape_cast %39 : vector<8x16x128xbf16> to vector<128x128xbf16>
    %41 = tpu.concatenate %38, %40 in 1 : vector<128x128xbf16>, vector<128x128xbf16> -> vector<128x256xbf16>
    %c256 = arith.constant 256 : index
    %c0_31 = arith.constant 0 : index
    %42 = vector.load %arg6[%c256, %c0_31] : memref<1152x128xbf16, #tpu.memory_space<vmem>>, vector<256x128xbf16>
    %cst_32 = arith.constant dense<0.000000e+00> : vector<128x128xf32>
    %43 = tpu.matmul %41, %42, %cst_32 {dimension_numbers = #tpu.dot_dimension_numbers<[1], [0], [0], [1], [0, 0, 1, 1], [], []>} : vector<128x256xbf16>, vector<256x128xbf16>, vector<128x128xf32> -> vector<128x128xf32>
    %44 = arith.addf %36, %43 : vector<128x128xf32>
    %c1_33 = arith.constant 1 : index
    %c1_34 = arith.constant 1 : index
    %c0_35 = arith.constant 0 : index
    %45 = vector.load %arg9[%c1_33, %c1_34, %c0_35] : memref<10x18x128xbf16, #tpu.memory_space<vmem>>, vector<8x16x128xbf16>
    %46 = vector.shape_cast %45 : vector<8x16x128xbf16> to vector<128x128xbf16>
    %c1_36 = arith.constant 1 : index
    %c2_37 = arith.constant 2 : index
    %c0_38 = arith.constant 0 : index
    %47 = vector.load %arg9[%c1_36, %c2_37, %c0_38] : memref<10x18x128xbf16, #tpu.memory_space<vmem>>, vector<8x16x128xbf16>
    %48 = vector.shape_cast %47 : vector<8x16x128xbf16> to vector<128x128xbf16>
    %49 = tpu.concatenate %46, %48 in 1 : vector<128x128xbf16>, vector<128x128xbf16> -> vector<128x256xbf16>
    %c512 = arith.constant 512 : index
    %c0_39 = arith.constant 0 : index
    %50 = vector.load %arg6[%c512, %c0_39] : memref<1152x128xbf16, #tpu.memory_space<vmem>>, vector<256x128xbf16>
    %cst_40 = arith.constant dense<0.000000e+00> : vector<128x128xf32>
    %51 = tpu.matmul %49, %50, %cst_40 {dimension_numbers = #tpu.dot_dimension_numbers<[1], [0], [0], [1], [0, 0, 1, 1], [], []>} : vector<128x256xbf16>, vector<256x128xbf16>, vector<128x128xf32> -> vector<128x128xf32>
    %52 = arith.addf %44, %51 : vector<128x128xf32>
    %c2_41 = arith.constant 2 : index
    %c0_42 = arith.constant 0 : index
    %c0_43 = arith.constant 0 : index
    %53 = vector.load %arg9[%c2_41, %c0_42, %c0_43] : memref<10x18x128xbf16, #tpu.memory_space<vmem>>, vector<8x16x128xbf16>
    %54 = vector.shape_cast %53 : vector<8x16x128xbf16> to vector<128x128xbf16>
    %c2_44 = arith.constant 2 : index
    %c1_45 = arith.constant 1 : index
    %c0_46 = arith.constant 0 : index
    %55 = vector.load %arg9[%c2_44, %c1_45, %c0_46] : memref<10x18x128xbf16, #tpu.memory_space<vmem>>, vector<8x16x128xbf16>
    %56 = vector.shape_cast %55 : vector<8x16x128xbf16> to vector<128x128xbf16>
    %57 = tpu.concatenate %54, %56 in 1 : vector<128x128xbf16>, vector<128x128xbf16> -> vector<128x256xbf16>
    %c768 = arith.constant 768 : index
    %c0_47 = arith.constant 0 : index
    %58 = vector.load %arg6[%c768, %c0_47] : memref<1152x128xbf16, #tpu.memory_space<vmem>>, vector<256x128xbf16>
    %cst_48 = arith.constant dense<0.000000e+00> : vector<128x128xf32>
    %59 = tpu.matmul %57, %58, %cst_48 {dimension_numbers = #tpu.dot_dimension_numbers<[1], [0], [0], [1], [0, 0, 1, 1], [], []>} : vector<128x256xbf16>, vector<256x128xbf16>, vector<128x128xf32> -> vector<128x128xf32>
    %60 = arith.addf %52, %59 : vector<128x128xf32>
    %c2_49 = arith.constant 2 : index
    %c2_50 = arith.constant 2 : index
    %c0_51 = arith.constant 0 : index
    %61 = vector.load %arg9[%c2_49, %c2_50, %c0_51] : memref<10x18x128xbf16, #tpu.memory_space<vmem>>, vector<8x16x128xbf16>
    %62 = vector.shape_cast %61 : vector<8x16x128xbf16> to vector<128x128xbf16>
    %c1024 = arith.constant 1024 : index
    %c0_52 = arith.constant 0 : index
    %63 = vector.load %arg6[%c1024, %c0_52] : memref<1152x128xbf16, #tpu.memory_space<vmem>>, vector<128x128xbf16>
    %cst_53 = arith.constant dense<0.000000e+00> : vector<128x128xf32>
    %64 = tpu.matmul %62, %63, %cst_53 {dimension_numbers = #tpu.dot_dimension_numbers<[1], [0], [0], [1], [0, 0, 1, 1], [], []>} : vector<128x128xbf16>, vector<128x128xbf16>, vector<128x128xf32> -> vector<128x128xf32>
    %65 = arith.addf %60, %64 : vector<128x128xf32>
    %66 = vector.shape_cast %65 : vector<128x128xf32> to vector<8x16x128xf32>
    %c0_54 = arith.constant 0 : index
    %c0_55 = arith.constant 0 : index
    %c0_56 = arith.constant 0 : index
    %c0_57 = arith.constant 0 : index
    %67 = vector.load %arg7[%c0_54, %c0_55, %c0_56, %c0_57] : memref<1x8x16x128xf32, #tpu.memory_space<vmem>>, vector<1x8x16x128xf32>
    %68 = vector.shape_cast %67 : vector<1x8x16x128xf32> to vector<8x16x128xf32>
    %69 = vector.shape_cast %66 : vector<8x16x128xf32> to vector<1x8x16x128xf32>
    tpu.vector_store %arg7[%c0_54, %c0_55, %c0_56, %c0_57], %69 {strides = array<i32>} : memref<1x8x16x128xf32, #tpu.memory_space<vmem>>, vector<1x8x16x128xf32>,
    %cst_58 = arith.constant dense<0.000000e+00> : vector<128xf32>
    %70 = vector.multi_reduction <add>, %65, %cst_58 [0] : vector<128x128xf32> to vector<128xf32>
    %71 = vector.shape_cast %70 : vector<128xf32> to vector<1x128xf32>
    %72 = arith.mulf %65, %65 : vector<128x128xf32>
    %cst_59 = arith.constant dense<0.000000e+00> : vector<128xf32>
    %73 = vector.multi_reduction <add>, %72, %cst_59 [0] : vector<128x128xf32> to vector<128xf32>
    %74 = vector.shape_cast %73 : vector<128xf32> to vector<1x128xf32>
    %75 = tpu.concatenate %71, %74 in 0 : vector<1x128xf32>, vector<1x128xf32> -> vector<2x128xf32>
    %c0_60 = arith.constant 0 : index
    %c0_61 = arith.constant 0 : index
    %c0_62 = arith.constant 0 : index
    %c0_63 = arith.constant 0 : index
    %76 = vector.load %arg8[%c0_60, %c0_61, %c0_62, %c0_63] : memref<1x1x2x128xf32, #tpu.memory_space<vmem>>, vector<1x1x2x128xf32>
    %77 = vector.shape_cast %76 : vector<1x1x2x128xf32> to vector<2x128xf32>
    %78 = vector.shape_cast %75 : vector<2x128xf32> to vector<1x1x2x128xf32>
    tpu.vector_store %arg8[%c0_60, %c0_61, %c0_62, %c0_63], %78 {strides = array<i32>} : memref<1x1x2x128xf32, #tpu.memory_space<vmem>>, vector<1x1x2x128xf32>,
    return
  }
  func.func @transform_0(%arg0: i32, %arg1: i32) -> (i32, i32) {
    %c0_i32 = arith.constant 0 : i32
    %c0_i32_0 = arith.constant 0 : i32
    %c0_i32_1 = arith.constant 0 : i32
    return %c0_i32, %c0_i32_0 : i32, i32
  }
  func.func @transform_1(%arg0: i32, %arg1: i32) -> (i32, i32, i32, i32) {
    %c0_i32 = arith.constant 0 : i32
    %c0_i32_0 = arith.constant 0 : i32
    %c0_i32_1 = arith.constant 0 : i32
    return %arg0, %arg1, %c0_i32, %c0_i32_0 : i32, i32, i32, i32
  }
  func.func @transform_2(%arg0: i32, %arg1: i32) -> (i32, i32, i32, i32) {
    %c8_i32 = arith.constant 8 : i32
    %0 = arith.muli %arg1, %c8_i32 : i32
    %c1_i32 = arith.constant 1 : i32
    %1 = arith.subi %0, %c1_i32 : i32
    %c0_i32 = arith.constant 0 : i32
    %2 = arith.maxsi %1, %c0_i32 : i32
    %c0_i32_0 = arith.constant 0 : i32
    %c0_i32_1 = arith.constant 0 : i32
    %c0_i32_2 = arith.constant 0 : i32
    return %arg0, %2, %c0_i32_0, %c0_i32_1 : i32, i32, i32, i32
  }
  func.func @transform_3(%arg0: i32, %arg1: i32) -> (i32, i32, i32, i32) {
    %c8_i32 = arith.constant 8 : i32
    %0 = arith.muli %arg1, %c8_i32 : i32
    %c8_i32_0 = arith.constant 8 : i32
    %1 = arith.addi %0, %c8_i32_0 : i32
    %c15_i32 = arith.constant 15 : i32
    %2 = arith.minsi %1, %c15_i32 : i32
    %c0_i32 = arith.constant 0 : i32
    %c0_i32_1 = arith.constant 0 : i32
    %c0_i32_2 = arith.constant 0 : i32
    return %arg0, %2, %c0_i32, %c0_i32_1 : i32, i32, i32, i32
  }
  func.func @transform_4(%arg0: i32, %arg1: i32) -> (i32, i32) {
    %c0_i32 = arith.constant 0 : i32
    %c0_i32_0 = arith.constant 0 : i32
    %c0_i32_1 = arith.constant 0 : i32
    return %c0_i32, %c0_i32_0 : i32, i32
  }
  func.func @transform_5(%arg0: i32, %arg1: i32) -> (i32, i32, i32, i32) {
    %c0_i32 = arith.constant 0 : i32
    %c0_i32_0 = arith.constant 0 : i32
    %c0_i32_1 = arith.constant 0 : i32
    return %arg0, %arg1, %c0_i32, %c0_i32_0 : i32, i32, i32, i32
  }
  func.func @transform_6(%arg0: i32, %arg1: i32) -> (i32, i32, i32, i32) {
    %c0_i32 = arith.constant 0 : i32
    %c0_i32_0 = arith.constant 0 : i32
    %c0_i32_1 = arith.constant 0 : i32
    return %arg0, %arg1, %c0_i32, %c0_i32_0 : i32, i32, i32, i32
  }
}

</mosaic_0001>

<bundles_post_ra>
// kernel: basic_block_forward.5
= control target key start
LH: loop header
LB: loop body
LE: loop exit
PB: predicated region body
PF: predicated region fallthrough
CT: control target
= control target key end

     0   :  { %s1278_s0 = inlined_call_operand.hbm [shape: f32[2,128], index: 0, kind: input, shape index: {}]   ;;  %s1279_s1 = inlined_call_operand.hbm [shape: f32[2,16,16,128], index: 1, kind: input, shape index: {}]   ;;  %s1280_s2 = inlined_call_operand.hbm [shape: f32[2,16,16,128], index: 2, kind: input, shape index: {}]   ;;  %s1281_s3 = inlined_call_operand.hbm [shape: f32[2,16,16,128], index: 3, kind: output, shape index: {}]  }
   0x1   :  { %1288 = sst [smem:[#allocation12_spill]] %s1279_s1 }
   0x2   :  { %8 = vsyncpa [#allocation3], 0 }
   0x3   :  { %9 = vsyncpa [#allocation6], 0 }
   0x4   :  { %11 = vsyncpa [#allocation6 + $0x1], 0 }
   0x5   :  { %12 = vsyncpa [#allocation4], 0 }
   0x6   :  { %14 = vsyncpa [#allocation4 + $0x1], 0  ;;  %s880_s12 = smov 0   ;;  %s882_s13 = smov 0  }
   0x7   :  { %s884_s14 = smov 0   ;;  %s886_s15 = smov 0  }
   0x8   :  { %s888_s16 = smov 0   ;;  %s890_s17 = smov 0  }
   0x9   :  { %s892_s18 = smov 0   ;;  %s894_s19 = smov 0  }
   0xa LB: > { %s29_s20 = sadd.s32 1, %s842_s17  ;;  %s32_s21 = sadd.s32 1, %s846_s18  ;;  %s850_s19 = sphi %s894_s19, %s20_s19   ;;  %s846_s18 = sphi %s892_s18, %s1313_s18   ;;  %s842_s17 = sphi %s890_s17, %s1312_s17   ;;  %s838_s16 = sphi %s888_s16, %s1311_s16   ;;  %s834_s15 = sphi %s886_s15, %s1310_s15   ;;  %s830_s14 = sphi %s884_s14, %s1309_s14   ;;  %s826_s13 = sphi %s882_s13, %s1308_s13   ;;  %s822_s12 = sphi %s880_s12, %s1307_s12  }
   0xb   : > { %p30_p0 = scmp.ge.s32.totalorder %s29_s20, 2  ;;  %s62_s22 = sadd.s32 1, %s830_s14 }
   0xc   : > { %p69_p1 = scmp.ne.s32.totalorder %s830_s14, %s826_s13  ;;  %p70_p2 = scmp.eq.s32.totalorder %s850_s19, 0 }
   0xd   : > { %s1315_s20 = smov (%p30_p0, %s29_s20), 0  ;;  %s1317_s21 = smov (!%p30_p0, %s32_s21), %s846_s18 }
   0xe   : > { %s58_s23 = ssub.s32 %s842_s17, %s1315_s20  ;;  %p934_p3 = por %p70_p2, %p69_p1 }
   0xf   : > { %p34_p4 = scmp.ge.s32.totalorder %s1317_s21, 2  ;;  %p588_p5 = scmp.lt.s32.totalorder %s850_s19, 4 }
  0x10   : > { %s166_s25 = sand.u32 1, %s850_s19   ;;  %s168_s26 = sand.u32 1, %s830_s14  }
  0x11   : > { %s1319_s21 = smov (%p34_p4, %s1317_s21), 0  ;;  %s945_s28 = sshll.u32 %s168_s26, 7 }
  0x12   : > { %s57_s27 = ssub.s32 %s846_s18, %s1319_s21  ;;  %s559_s30 = sshll.u32 %s842_s17, 4 }
  0x13   : > { %s59_s29 = sor.u32 %s58_s23, %s57_s27  ;;  %s538_s4 = sshll.u32 %s846_s18, 5 }
  0x14   : > { %p60_p6 = scmp.eq.s32.totalorder %s59_s29, 0  ;;  %s170_s5 = scalar_lea.vmem [#allocation5], %s945_s28 }
  0x15   : > { %s180_s6 = sshll.u32 %s170_s5, 4  ;;  %s953_s8 = sadd.s32 %s559_s30, %s538_s4  ;;  %s955_s6 = int_to_ptr.vmem [resolvable:$true] %s180_s6 }
  0x16   : > { %s951_s7 = scalar_select %p60_p6, %s830_s14, %s62_s22  }
  0x17   : > { %s539_s9 = sshll.u32 %s953_s8, 7  ;;  %p962_p7 = pnand %p588_p5, %p934_p3 }
  0x18   : > { %s1291_s1 = sld [smem:[#allocation12_spill]]  ;;  %s973_s26 = scalar_lea.sflag [#allocation6], %s166_s25 }
  0x19   : > { %p662_p9 = pneg %p962_p7 }
  0x1e   : > { %s971_s22 = scalar_lea.hbm %s1291_s1, %s539_s9  ;;  %s665_s30 = scalar_lea.hbm %s1291_s1, 8192 }
  0x1f   : > { %s660_s24 = scalar_lea.hbm %s971_s22, 2048  ;;  %p666_p12 = scmp.lt.u32.totalorder %s971_s22, %s1291_s1 }
  0x20   : > { %p661_p8 = scmp.ne.s32.totalorder %s971_s22, %s660_s24  ;;  %p667_p13 = scmp.lt.u32.totalorder %s665_s30, %s660_s24 }
  0x21   : > { %p669_p2 = scmp.lt.u32.totalorder %s660_s24, %s971_s22 }
  0x22   : > { %p663_p10 = pnand %p662_p9, %p661_p8  ;;  %p668_p0 = por %p667_p13, %p666_p12 }
  0x24   : > { %p664_p11 = pneg %p663_p10  ;;  %p670_p3 = por %p669_p2, %p668_p0 }
  0x26   : > { %p671_p4 = pnand %p670_p3, %p664_p11 }
  0x28   : > { %674 = shalt.err (!%p671_p4)
}
  0x29   : > { %s675_s25 = scalar_lea.vmem %s955_s6, 2048  ;;  %s852_s11 = smov [#allocation5]  }
  0x2a   : > { %p676_p5 = scmp.ne.s32.totalorder %s955_s6, %s675_s25  ;;  %s680_s23 = sshll.u32 %s852_s11, 4  ;;  %s681_s23 = int_to_ptr.vmem [resolvable:$false] %s680_s23 }
  0x2b   : > { %s682_s27 = scalar_lea.vmem %s681_s23, 4096  ;;  %p683_p10 = scmp.lt.s32.totalorder %s955_s6, %s681_s23 }
  0x2c   : > { %p678_p6 = pnand %p676_p5, %p662_p9  ;;  %p684_p12 = scmp.lt.s32.totalorder %s682_s27, %s675_s25 }
  0x2e   : > { %p679_p8 = pneg %p678_p6  ;;  %p685_p13 = por %p684_p12, %p683_p10 }
  0x30   : > { %p686_p0 = pnand %p685_p13, %p679_p8 }
  0x32   : > { %689 = shalt.err (!%p686_p0)
}
  0x33   : > { %s1282_s24 = smov 128   ;;  %s1283_s29 = smov 8  }
  0x34   : > { %579 = dma.hbm_to_vmem [thread:$0]  (!%p962_p7), %s971_s22, 2048, %s955_s6, %s973_s26, %s1282_s24, %s1282_s24, %s1283_s29  }
  0x35   : > { %s194_s30 = scalar_lea.vmem [#allocation7], %s945_s28  ;;  %s1006_s5 = sadd.s32 4294967295, %s850_s19  }
  0x36   : > { %s204_s4 = sshll.u32 %s194_s30, 4  ;;  %s531_s25 = sadd.s32 4294967294, %s850_s19   ;;  %s1039_s4 = int_to_ptr.vmem [resolvable:$true] %s204_s4 }
  0x37   : > { %p75_p11 = scmp.ne.s32.totalorder %s826_s13, %s822_s12  ;;  %p1284_p2 = scmp.eq.s32.totalorder %s1006_s5, 0 }
  0x38   : > { %p129_p3 = scmp.eq.s32.totalorder %s1006_s5, 3  ;;  %p135_p4 = scmp.eq.s32.totalorder %s531_s25, 3 }
  0x39   : > { %p1015_p5 = por %p1284_p2, %p75_p11  ;;  %p532_p6 = scmp.ge.s32.totalorder %s850_s19, 1 }
  0x3a   : > { %p1023_p8 = por %p129_p3, %p69_p1  ;;  %p1027_p10 = por %p135_p4, %p75_p11 }
  0x3b   : > { %s1292_s11 = scalar_select %p1015_p5, 1, 0 }
  0x3c   : > { %s1293_s28 = scalar_select %p1023_p8, 1, 0 }
  0x3d   : > { %s1294_s6 = scalar_select %p1027_p10, 1, 0 }
  0x3e   : > { %p142_p12 = scmp.lt.s32.totalorder %s850_s19, 5  ;;  %s1037_s27 = scalar_lea.hbm %s1280_s2, %s539_s9 }
  0x3f   : > { %s855_s25 = smov [#allocation2]   ;;  %s690_s8 = scalar_lea.hbm %s1037_s27, 2048 }
  0x40   : > { %p1041_p1 = pnand %p532_p6, %p142_p12  ;;  %s1045_s24 = sshll.u32 %s855_s25, 4  ;;  %s156_s24 = int_to_ptr.vmem [resolvable:$true] %s1045_s24 }
  0x41   : > { %p691_p0 = scmp.ne.s32.totalorder %s1037_s27, %s690_s8  ;;  %s695_s23 = scalar_lea.hbm %s1280_s2, 8192 }
  0x42   : > { %s1295_s30 = scalar_select %p1041_p1, 1, 0 }
  0x43   : > { %p693_p11 = pnand %p691_p0, %p662_p9  ;;  %p696_p4 = scmp.lt.u32.totalorder %s1037_s27, %s1280_s2 }
  0x44   : > { %p697_p6 = scmp.lt.u32.totalorder %s695_s23, %s690_s8  ;;  %p699_p2 = scmp.lt.u32.totalorder %s690_s8, %s1037_s27 }
  0x45   : > { %p694_p3 = pneg %p693_p11 }
  0x46   : > { %p698_p12 = por %p697_p6, %p696_p4 }
  0x48   : > { %p700_p10 = por %p699_p2, %p698_p12 }
  0x4a   : > { %p701_p8 = pnand %p700_p10, %p694_p3 }
  0x4c   : > { %704 = shalt.err (!%p701_p8)
}
  0x4d   : > { %s705_s25 = scalar_lea.vmem %s1039_s4, 2048  ;;  %s856_s9 = smov [#allocation7]  }
  0x4e   : > { %p706_p0 = scmp.ne.s32.totalorder %s1039_s4, %s705_s25  ;;  %s710_s22 = sshll.u32 %s856_s9, 4  ;;  %s711_s22 = int_to_ptr.vmem [resolvable:$false] %s710_s22 }
  0x4f   : > { %s712_s1 = scalar_lea.vmem %s711_s22, 4096  ;;  %p713_p5 = scmp.lt.s32.totalorder %s1039_s4, %s711_s22 }
  0x50   : > { %p708_p11 = pnand %p706_p0, %p662_p9  ;;  %p714_p4 = scmp.lt.s32.totalorder %s712_s1, %s705_s25 }
  0x52   : > { %p709_p13 = pneg %p708_p11  ;;  %p715_p6 = por %p714_p4, %p713_p5 }
  0x54   : > { %p716_p2 = pnand %p715_p6, %p709_p13 }
  0x56   : > { %719 = shalt.err (!%p716_p2)
}
  0x57   : > { %s1296_s29 = smov 8   ;;  %s1297_s8 = smov 128  }
  0x58   : > { %582 = dma.hbm_to_vmem [thread:$0]  (!%p962_p7), %s1037_s27, 2048, %s1039_s4, %s973_s26, %s1297_s8, %s1297_s8, %s1296_s29  }
  0x59   : > { %p1298_p9 = scmp.eq.s32.totalorder %s1006_s5, 0  ;;  %p1299_p8 = pneg %p1041_p1 }
  0x5a   : > { %s720_s9 = scalar_lea.hbm %s1278_s0, 32 }
  0x5b   : > { %p1082_p10 = pnand %p1299_p8, %p1298_p9  ;;  %p721_p5 = scmp.ne.s32.totalorder %s1278_s0, %s720_s9 }
  0x5c   : > { %p727_p12 = scmp.lt.u32.totalorder %s720_s9, %s1278_s0 }
  0x5d   : > { %p722_p13 = pneg %p1082_p10 }
  0x5f   : > { %p723_p7 = pnand %p722_p13, %p721_p5 }
  0x61   : > { %p724_p3 = pneg %p723_p7 }
  0x63   : > { %p729_p0 = pnand %p727_p12, %p724_p3 }
  0x65   : > { %732 = shalt.err (!%p729_p0)
}
  0x66   : > { %s733_s27 = scalar_lea.vmem %s156_s24, 32  ;;  %p741_p2 = scmp.lt.s32.totalorder %s156_s24, %s156_s24 }
  0x67   : > { %p734_p11 = scmp.ne.s32.totalorder %s156_s24, %s733_s27  ;;  %p742_p9 = scmp.lt.s32.totalorder %s733_s27, %s733_s27 }
  0x69   : > { %p736_p4 = pnand %p734_p11, %p722_p13  ;;  %p743_p8 = por %p742_p9, %p741_p2 }
  0x6b   : > { %p737_p6 = pneg %p736_p4 }
  0x6d   : > { %p744_p1 = pnand %p743_p8, %p737_p6 }
  0x6f   : > { %747 = shalt.err (!%p744_p1)
}
  0x70   : > { %575 = dma.hbm_to_vmem [thread:$0]  (!%p1082_p10), %s1278_s0, 32, %s156_s24, [#allocation3]  }
  0x71   : > { %p1301_p5 = scmp.ne.s32.totalorder %s1295_s30, 0 }
  0x72   : > { %p1302_p7 = scmp.eq.s32.totalorder (!%p1301_p5), %s1006_s5, 0 }
  0x73   : > { %216 = sbr.rel (%p1301_p5) target bundleno = 166 (0xa6), region = 32 }
  0x7a   : > { %809 = dma.done.wait (%p1302_p7), [#allocation3], 32   ;;  %p1303_p13 = pmov %p1302_p7 }
  0x7b   : > { %s222_s25 = sand.u32 1, %s1006_s5   ;;  %s224_s10 = sand.u32 1, %s826_s13  }
  0x7c   : > { %811 = vsyncadd (%p1303_p13), [#allocation3], 4294967264  ;;  %s1112_s23 = sshll.u32 %s224_s10, 7  ;;  %s223_s24 = scalar_lea.sflag [#allocation6], %s222_s25 }
  0x7d   : > { %s1115_s9 = scalar_lea.vmem [#allocation5], %s1112_s23  ;;  %p1304_p1 = scmp.ne.s32.totalorder %s1292_s11, 0 }
  0x7f   : > { %813 = dma.done.wait (%p1304_p1), %s223_s24, 4096  }
  0x80   : > { %815 = vsyncadd (%p1304_p1), %s223_s24, 4294963200  ;;  %v1121_v0 = vld [vmem:[#allocation2] ss:$0 sm:$0xff]  ;;  %v1123_v1 = vld [vmem:[#allocation2 + $0x1] ss:$0 sm:$0xff]  ;;  %s1129_s5 = scalar_lea.vmem [#allocation7], %s1112_s23 }
  0x81   : > { %v268_v2 = vld [vmem:[%s1115_s9] sm:$0xff]  ;;  %v269_v4 = vld [vmem:[%s1115_s9 + $0x8] sm:$0xff]  ;;  %v270_v7 = vld [vmem:[%s1115_s9 + $0x10] sm:$0xff]  ;;  %s1165_s11 = scalar_lea.vmem [#allocation8], %s1112_s23  ;;  %s561_s30 = sshll.u32 %s834_s15, 4 }
  0x82   : > { %v288_v3 = vmul.f32 %v1121_v0, %v268_v2  ;;  %v324_v5 = vld [vmem:[%s1129_s5] sm:$0xff]  ;;  %v289_v6 = vmul.f32 %v1121_v0, %v269_v4  ;;  %v271_v8 = vld [vmem:[%s1115_s9 + $0x18] sm:$0xff]  ;;  %v325_v10 = vld [vmem:[%s1129_s5 + $0x8] sm:$0xff]  ;;  %v290_v11 = vmul.f32 %v1121_v0, %v270_v7  ;;  %s555_s22 = sshll.u32 %s838_s16, 5  ;;  %s405_s16 = sshll.u32 %s1165_s11, 4  ;;  %s1213_s16 = int_to_ptr.vmem [resolvable:$true] %s405_s16 }
  0x83   : > { %v326_v12 = vld [vmem:[%s1129_s5 + $0x10] sm:$0xff]  ;;  %v291_v13 = vmul.f32 %v1121_v0, %v271_v8  ;;  %v272_v14 = vld [vmem:[%s1115_s9 + $0x20] sm:$0xff]  ;;  %v327_v16 = vld [vmem:[%s1129_s5 + $0x18] sm:$0xff]  ;;  %s1200_s15 = sadd.s32 %s561_s30, %s555_s22  ;;  %s1226_s29 = scalar_lea.sflag [#allocation4], %s224_s10 }
  0x84   : > { %v308_v9 = vadd.f32 %v1123_v1, %v288_v3  ;;  %v309_v15 = vadd.f32 %v1123_v1, %v289_v6  ;;  %v292_v17 = vmul.f32 %v1121_v0, %v272_v14  ;;  %v273_v18 = vld [vmem:[%s1115_s9 + $0x28] sm:$0xff]  ;;  %v274_v19 = vld [vmem:[%s1115_s9 + $0x30] sm:$0xff]  ;;  %v310_v21 = vadd.f32 %v1123_v1, %v290_v11  ;;  %v328_v23 = vld [vmem:[%s1129_s5 + $0x20] sm:$0xff]  ;;  %s556_s1 = sshll.u32 %s1200_s15, 7  ;;  %s748_s8 = scalar_lea.vmem %s1213_s16, 2048 }
  0x85   : > { %v311_v22 = vadd.f32 %v1123_v1, %v291_v13  ;;  %v293_v24 = vmul.f32 %v1121_v0, %v273_v18  ;;  %v275_v25 = vld [vmem:[%s1115_s9 + $0x38] sm:$0xff]  ;;  %v329_v28 = vld [vmem:[%s1129_s5 + $0x28] sm:$0xff]  ;;  %v294_v29 = vmul.f32 %v1121_v0, %v274_v19  ;;  %v276_v31 = vld [vmem:[%s1115_s9 + $0x40] sm:$0xff]  ;;  %s1219_s27 = scalar_lea.hbm %s1281_s3, %s556_s1  ;;  %p749_p10 = scmp.ne.s32.totalorder %s1213_s16, %s748_s8 }
  0x86   : > { %v340_v20 = vadd.f32 %v324_v5, %v308_v9  ;;  %v341_v26 = vadd.f32 %v325_v10, %v309_v15  ;;  %v312_v27 = vadd.f32 %v1123_v1, %v292_v17  ;;  %v295_v30 = vmul.f32 %v1121_v0, %v275_v25  ;;  %v330_v36 = vld [vmem:[%s1129_s5 + $0x30] sm:$0xff]  ;;  %v331_v37 = vld [vmem:[%s1129_s5 + $0x38] sm:$0xff]  ;;  %v277_v38 = vld [vmem:[%s1115_s9 + $0x48] sm:$0xff]  ;;  %p1305_p3 = scmp.ne.s32.totalorder %s1293_s28, 0  ;;  %s857_s25 = smov [#allocation8]  }
  0x87   : > { %v342_v33 = vadd.f32 %v326_v12, %v310_v21  ;;  %v343_v34 = vadd.f32 %v327_v16, %v311_v22  ;;  %v313_v35 = vadd.f32 %v1123_v1, %v293_v24  ;;  %v314_v41 = vadd.f32 %v1123_v1, %v294_v29  ;;  %v278_v43 = vld [vmem:[%s1115_s9 + $0x50] sm:$0xff]  ;;  %v279_v44 = vld [vmem:[%s1115_s9 + $0x58] sm:$0xff]  ;;  %v280_v49 = vld [vmem:[%s1115_s9 + $0x60] sm:$0xff]  ;;  %s752_s23 = sshll.u32 %s857_s25, 4  ;;  %s753_s23 = int_to_ptr.vmem [resolvable:$false] %s752_s23 }
  0x88   : > { %v356_v32 = vmax.f32 %v340_v20, 0.0  ;;  %v357_v39 = vmax.f32 %v341_v26, 0.0  ;;  %v344_v40 = vadd.f32 %v328_v23, %v312_v27  ;;  %v315_v42 = vadd.f32 %v1123_v1, %v295_v30  ;;  %v332_v53 = vld [vmem:[%s1129_s5 + $0x40] sm:$0xff]  ;;  %v281_v55 = vld [vmem:[%s1115_s9 + $0x68] sm:$0xff]  ;;  %v282_v61 = vld [vmem:[%s1115_s9 + $0x70] sm:$0xff]  ;;  %p750_p12 = pnand %p749_p10, %p1305_p3  ;;  %s754_s24 = scalar_lea.vmem %s753_s23, 4096 }
  0x89   : > { %v358_v45 = vmax.f32 %v342_v33, 0.0  ;;  %v359_v46 = vmax.f32 %v343_v34, 0.0  ;;  %v345_v47 = vadd.f32 %v329_v28, %v313_v35  ;;  %v296_v48 = vmul.f32 %v1121_v0, %v276_v31  ;;  %v333_v58 = vld [vmem:[%s1129_s5 + $0x48] sm:$0xff]  ;;  %v283_v62 = vld [vmem:[%s1115_s9 + $0x78] sm:$0xff]  ;;  %v334_v4 = vld [vmem:[%s1129_s5 + $0x50] sm:$0xff]  ;;  %p755_p11 = scmp.lt.s32.totalorder %s1213_s16, %s753_s23  ;;  %p756_p4 = scmp.lt.s32.totalorder %s754_s24, %s748_s8 }
  0x8a   : > { %372 = vst [vmem:[%s1165_s11] sm:$0xff] %v356_v32  ;;  %373 = vst [vmem:[%s1165_s11 + $0x8] sm:$0xff] %v357_v39  ;;  %v360_v50 = vmax.f32 %v344_v40, 0.0  ;;  %v346_v51 = vadd.f32 %v330_v36, %v314_v41  ;;  %v347_v52 = vadd.f32 %v331_v37, %v315_v42  ;;  %v297_v54 = vmul.f32 %v1121_v0, %v277_v38  ;;  %v335_v5 = vld [vmem:[%s1129_s5 + $0x58] sm:$0xff]  ;;  %v336_v10 = vld [vmem:[%s1129_s5 + $0x60] sm:$0xff]  ;;  %p751_p0 = pneg %p750_p12 }
  0x8b   : > { %374 = vst [vmem:[%s1165_s11 + $0x10] sm:$0xff] %v358_v45  ;;  %375 = vst [vmem:[%s1165_s11 + $0x18] sm:$0xff] %v359_v46  ;;  %v361_v56 = vmax.f32 %v345_v47, 0.0  ;;  %v316_v57 = vadd.f32 %v1123_v1, %v296_v48  ;;  %v298_v59 = vmul.f32 %v1121_v0, %v278_v43  ;;  %v299_v60 = vmul.f32 %v1121_v0, %v279_v44  ;;  %v337_v14 = vld [vmem:[%s1129_s5 + $0x68] sm:$0xff]  ;;  %v338_v21 = vld [vmem:[%s1129_s5 + $0x70] sm:$0xff]  ;;  %p757_p6 = por %p756_p4, %p755_p11 }
  0x8c   : > { %376 = vst [vmem:[%s1165_s11 + $0x20] sm:$0xff] %v360_v50  ;;  %v362_v63 = vmax.f32 %v346_v51, 0.0  ;;  %v363_v2 = vmax.f32 %v347_v52, 0.0  ;;  %v317_v3 = vadd.f32 %v1123_v1, %v297_v54  ;;  %v300_v6 = vmul.f32 %v1121_v0, %v280_v49  ;;  %v339_v22 = vld [vmem:[%s1129_s5 + $0x78] sm:$0xff] }
  0x8d   : > { %377 = vst [vmem:[%s1165_s11 + $0x28] sm:$0xff] %v361_v56  ;;  %v348_v7 = vadd.f32 %v332_v53, %v316_v57  ;;  %v318_v8 = vadd.f32 %v1123_v1, %v298_v59  ;;  %v319_v9 = vadd.f32 %v1123_v1, %v299_v60  ;;  %v301_v11 = vmul.f32 %v1121_v0, %v281_v55  ;;  %p758_p2 = pnand %p757_p6, %p751_p0 }
  0x8e   : > { %378 = vst [vmem:[%s1165_s11 + $0x30] sm:$0xff] %v362_v63  ;;  %379 = vst [vmem:[%s1165_s11 + $0x38] sm:$0xff] %v363_v2  ;;  %v349_v12 = vadd.f32 %v333_v58, %v317_v3  ;;  %v320_v13 = vadd.f32 %v1123_v1, %v300_v6  ;;  %v302_v15 = vmul.f32 %v1121_v0, %v282_v61 }
  0x8f   : > { %v303_v16 = vmul.f32 %v1121_v0, %v283_v62  ;;  %v364_v17 = vmax.f32 %v348_v7, 0.0  ;;  %v350_v18 = vadd.f32 %v334_v4, %v318_v8  ;;  %v351_v19 = vadd.f32 %v335_v5, %v319_v9 }
  0x90   : > { %v321_v20 = vadd.f32 %v1123_v1, %v301_v11  ;;  %v365_v23 = vmax.f32 %v349_v12, 0.0  ;;  %v352_v24 = vadd.f32 %v336_v10, %v320_v13  ;;  %v322_v25 = vadd.f32 %v1123_v1, %v302_v15 }
  0x91   : > { %v323_v0 = vadd.f32 %v1123_v1, %v303_v16  ;;  %380 = vst [vmem:[%s1165_s11 + $0x40] sm:$0xff] %v364_v17  ;;  %v366_v26 = vmax.f32 %v350_v18, 0.0  ;;  %v367_v27 = vmax.f32 %v351_v19, 0.0 }
  0x92   : > { %v353_v28 = vadd.f32 %v337_v14, %v321_v20  ;;  %381 = vst [vmem:[%s1165_s11 + $0x48] sm:$0xff] %v365_v23  ;;  %v368_v29 = vmax.f32 %v352_v24, 0.0  ;;  %v354_v30 = vadd.f32 %v338_v21, %v322_v25 }
  0x93   : > { %v355_v31 = vadd.f32 %v339_v22, %v323_v0  ;;  %382 = vst [vmem:[%s1165_s11 + $0x50] sm:$0xff] %v366_v26  ;;  %383 = vst [vmem:[%s1165_s11 + $0x58] sm:$0xff] %v367_v27 }
  0x94   : > { %v369_v32 = vmax.f32 %v353_v28, 0.0  ;;  %384 = vst [vmem:[%s1165_s11 + $0x60] sm:$0xff] %v368_v29  ;;  %v370_v1 = vmax.f32 %v354_v30, 0.0 }
  0x95   : > { %v371_v33 = vmax.f32 %v355_v31, 0.0 }
  0x96   : > { %385 = vst [vmem:[%s1165_s11 + $0x68] sm:$0xff] %v369_v32  ;;  %386 = vst [vmem:[%s1165_s11 + $0x70] sm:$0xff] %v370_v1 }
  0x97   : > { %387 = vst [vmem:[%s1165_s11 + $0x78] sm:$0xff] %v371_v33 }
  0x98   : > { %761 = shalt.err (!%p758_p2)
}
  0x99   : > { %s762_s10 = scalar_lea.hbm %s1219_s27, 2048  ;;  %s766_s11 = scalar_lea.hbm %s1281_s3, 8192 }
  0x9a   : > { %p763_p9 = scmp.ne.s32.totalorder %s1219_s27, %s762_s10  ;;  %p767_p7 = scmp.lt.u32.totalorder %s1219_s27, %s1281_s3 }
  0x9b   : > { %p768_p13 = scmp.lt.u32.totalorder %s766_s11, %s762_s10  ;;  %p770_p10 = scmp.lt.u32.totalorder %s762_s10, %s1219_s27 }
  0x9c   : > { %p764_p8 = pnand %p763_p9, %p1305_p3 }
  0x9d   : > { %p769_p1 = por %p768_p13, %p767_p7 }
  0x9e   : > { %p765_p5 = pneg %p764_p8 }
  0x9f   : > { %p771_p12 = por %p770_p10, %p769_p1 }
  0xa1   : > { %p772_p0 = pnand %p771_p12, %p765_p5 }
  0xa3   : > { %775 = shalt.err (!%p772_p0)
}
  0xa4   : > { %s858_s15 = smov 128   ;;  %s859_s1 = smov 8  }
  0xa5   : > { %570 = dma.vmem_to_hbm [thread:$0]  (%p1305_p3), %s1213_s16, 2048, %s1219_s27, %s1226_s29, %s858_s15, %s858_s15, %s859_s1  }
  0xa6 PF: > { %p590_p11 = scmp.ge.s32.totalorder %s850_s19, 2  ;;  %s420_s26 = sand.u32 1, %s822_s12  }
  0xa7   : > { %p1306_p4 = scmp.ne.s32.totalorder %s1294_s6, 0  ;;  %s421_s4 = scalar_lea.sflag [#allocation4], %s420_s26 }
  0xa9   : > { %p584_p6 = pnand %p590_p11, %p1306_p4 }
  0xab   : > { %817 = dma.done.wait (!%p584_p6), %s421_s4, 2048  }
  0xac   : > { %819 = vsyncadd (!%p584_p6), %s421_s4, 4294965248  ;;  %s20_s19 = sadd.s32 1, %s850_s19   ;;  %s1307_s12 = smov %s826_s13 }
  0xad   : > { %p17_p2 = scmp.ge.s32.totalorder %s20_s19, 6   ;;  %s1308_s13 = smov %s830_s14 }
  0xae   : > { %s1309_s14 = smov %s951_s7  ;;  %s1310_s15 = smov %s842_s17 }
  0xaf   : > { %s1311_s16 = smov %s846_s18  ;;  %s1312_s17 = smov %s1315_s20 }
  0xb0   : > { %s1313_s18 = smov %s1319_s21  ;;  %19 = sbr.rel (!%p17_p2) target bundleno = 10 (0xa), region = 93 }
  0xb7   :  { %426 = vsyncpa [#allocation3], 1 }
  0xb8   :  { %428 = vsyncpa [#allocation3 + $0x1], 1 }
  0xb9   :  { %429 = vsyncpa [#allocation6], 1 }
  0xba   :  { %431 = vsyncpa [#allocation6 + $0x1], 1 }
  0xbb   :  { %432 = vsyncpa [#allocation4], 1 }
  0xbc   :  { %434 = vsyncpa [#allocation4 + $0x1], 1 }

// kernel: basic_block_forward.4
= control target key start
LH: loop header
LB: loop body
LE: loop exit
PB: predicated region body
PF: predicated region fallthrough
CT: control target
= control target key end

     0   :  { %s6064_s0 = inlined_call_operand.hbm [shape: f32[2,128], index: 0, kind: input, shape index: {}]   ;;  %s6065_s1 = inlined_call_operand.hbm [shape: bf16[2,16,16,128], index: 1, kind: input, shape index: {}, may-alias: {1,2,3}]   ;;  %s6066_s2 = inlined_call_operand.hbm [shape: bf16[2,16,16,128], index: 2, kind: input, shape index: {}, may-alias: {1,2,3}]   ;;  %s6067_s3 = inlined_call_operand.hbm [shape: bf16[2,16,16,128], index: 3, kind: input, shape index: {}, may-alias: {1,2,3}]   ;;  %s6068_s4 = inlined_call_operand.hbm [shape: bf16[1152,128], index: 4, kind: input, shape index: {}]   ;;  %s6069_s5 = inlined_call_operand.hbm [shape: f32[2,16,16,128], index: 5, kind: output, shape index: {0}]   ;;  %s6070_s6 = inlined_call_operand.hbm [shape: f32[2,2,2,128], index: 6, kind: output, shape index: {1}]  }
   0x1   :  { %6100 = sst [smem:[#allocation34_spill]] %s6064_s0 }
   0x2   :  { %6101 = sst [smem:[#allocation35_spill]] %s6065_s1 }
   0x3   :  { %6102 = sst [smem:[#allocation36_spill]] %s6066_s2 }
   0x4   :  { %6103 = sst [smem:[#allocation37_spill]] %s6067_s3 }
   0x5   :  { %6104 = sst [smem:[#allocation38_spill]] %s6068_s4 }
   0x6   :  { %6105 = sst [smem:[#allocation39_spill]] %s6069_s5 }
   0x7   :  { %6106 = sst [smem:[#allocation40_spill]] %s6070_s6 }
   0x8   :  { %12 = vsyncpa [#allocation4], 0 }
   0x9   :  { %13 = vsyncpa [#allocation7], 0 }
   0xa   :  { %15 = vsyncpa [#allocation7 + $0x1], 0 }
   0xb   :  { %16 = vsyncpa [#allocation10], 0 }
   0xc   :  { %18 = vsyncpa [#allocation10 + $0x1], 0 }
   0xd   :  { %19 = vsyncpa [#allocation5], 0 }
   0xe   :  { %21 = vsyncpa [#allocation5 + $0x1], 0 }
   0xf   :  { %22 = vsyncpa [#allocation14], 0 }
  0x10   :  { %24 = vsyncpa [#allocation14 + $0x1], 0  ;;  %s4792_s21 = smov 0   ;;  %s4794_s22 = smov 0  }
  0x11   :  { %s4796_s23 = smov 0   ;;  %s4798_s24 = smov 0  }
  0x12   :  { %s4800_s25 = smov 0   ;;  %s4802_s26 = smov 0  }
  0x13   :  { %s4804_s27 = smov 0   ;;  %s4806_s28 = smov 0  }
  0x14   :  { %s4808_s29 = smov 0   ;;  %s4810_s30 = smov 0  }
  0x15   :  { %s4812_s7 = smov 0   ;;  %s4814_s8 = smov 0  }
  0x16   :  { %s4816_s9 = smov 0   ;;  %s4818_s10 = smov 0  }
  0x17 LB: > { %6107 = sst [smem:[#allocation22_spill]] %s4714_s27  ;;  %s4744_s11 = smov [#allocation11]   ;;  %s4742_s10 = sphi %s4818_s10, %s30_s10   ;;  %s4738_s9 = sphi %s4816_s9, %s6188_s9   ;;  %s4734_s8 = sphi %s4814_s8, %s6196_s8   ;;  %s4730_s7 = sphi %s4812_s7, %s6186_s7   ;;  %s4726_s30 = sphi %s4810_s30, %s6195_s30   ;;  %s4722_s29 = sphi %s4808_s29, %s6185_s29   ;;  %s4718_s28 = sphi %s4806_s28, %s6184_s28   ;;  %s4714_s27 = sphi %s4804_s27, %s6183_s27   ;;  %s4710_s26 = sphi %s4802_s26, %s6194_s26   ;;  %s4706_s25 = sphi %s4800_s25, %s6193_s25   ;;  %s4702_s24 = sphi %s4798_s24, %s6192_s24   ;;  %s4698_s23 = sphi %s4796_s23, %s6191_s23   ;;  %s4694_s22 = sphi %s4794_s22, %s6190_s22   ;;  %s4690_s21 = sphi %s4792_s21, %s6189_s21  }
  0x18   : > { %6108 = sst [smem:[#allocation23_spill]] %s4718_s28  ;;  %s268_s12 = sshll.u32 %s4744_s11, 4  ;;  %s269_s12 = int_to_ptr.vmem [resolvable:$true] %s268_s12 }
  0x19   : > { %6109 = sst [smem:[#allocation24_spill]] %s4722_s29  ;;  %s4863_s13 = sadd.s32 4294967295, %s4742_s10  }
  0x1a   : > { %6110 = sst [smem:[#allocation25_spill]] %s4726_s30  ;;  %p3527_p0 = scmp.ge.s32.totalorder %s4742_s10, 1 }
  0x1b   : > { %6111 = sst [smem:[#allocation26_spill]] %s4730_s7  ;;  %p6072_p1 = scmp.eq.s32.totalorder %s4863_s13, 0 }
  0x1c   : > { %6112 = sst [smem:[#allocation27_spill]] %s4738_s9  ;;  %p245_p3 = scmp.lt.s32.totalorder %s4742_s10, 5 }
  0x1d   : > { %s6116_s4 = sld [smem:[#allocation38_spill]] }
  0x1e   : > { %p4869_p4 = pnand %p3527_p0, %p245_p3 }
  0x20   : > { %s6113_s14 = scalar_select %p4869_p4, 1, 0 }
  0x21   : > { %p4156_p5 = pneg %p4869_p4 }
  0x22   : > { %6114 = sst [smem:[#allocation28_spill]] %s6113_s14 }
  0x23   : > { %p4877_p6 = pnand %p4156_p5, %p6072_p1  ;;  %s4402_s18 = scalar_lea.hbm %s6116_s4, 9216 }
  0x24   : > { %p4403_p7 = scmp.ne.s32.totalorder %s6116_s4, %s4402_s18  ;;  %p4409_p11 = scmp.lt.u32.totalorder %s4402_s18, %s6116_s4 }
  0x25   : > { %p6093_p8 = pneg %p4877_p6 }
  0x27   : > { %p4405_p9 = pnand %p6093_p8, %p4403_p7 }
  0x29   : > { %p4406_p10 = pneg %p4405_p9 }
  0x2b   : > { %p4411_p12 = pnand %p4409_p11, %p4406_p10 }
  0x2d   : > { %4414 = shalt.err (!%p4411_p12)
}
  0x2e   : > { %s4415_s16 = scalar_lea.vmem %s269_s12, 9216  ;;  %p4423_p5 = scmp.lt.s32.totalorder %s269_s12, %s269_s12 }
  0x2f   : > { %p4416_p13 = scmp.ne.s32.totalorder %s269_s12, %s4415_s16  ;;  %p4424_p2 = scmp.lt.s32.totalorder %s4415_s16, %s4415_s16 }
  0x31   : > { %p4418_p0 = pnand %p4416_p13, %p6093_p8  ;;  %p4425_p1 = por %p4424_p2, %p4423_p5 }
  0x33   : > { %p4419_p3 = pneg %p4418_p0 }
  0x35   : > { %p4426_p4 = pnand %p4425_p1, %p4419_p3 }
  0x37   : > { %4429 = shalt.err (!%p4426_p4)
}
  0x38   : > { %s6076_s17 = smov 64   ;;  %s6078_s6 = smov 4  }
  0x39   : > { %4162 = dma.hbm_to_vmem [thread:$0]  (!%p4877_p6), %s6116_s4, 9216, %s269_s12, [#allocation10], %s6076_s17, %s6076_s17, %s6078_s6  }
  0x3a   : > { %s3520_s20 = sadd.s32 4294967294, %s4742_s10   ;;  %s39_s11 = sadd.s32 1, %s4734_s8 }
  0x3b   : > { %p40_p1 = scmp.ge.s32.totalorder %s39_s11, 2  ;;  %s42_s16 = sadd.s32 1, %s4738_s9 }
  0x3c   : > { %s72_s5 = sadd.s32 1, %s4722_s29  ;;  %p79_p2 = scmp.ne.s32.totalorder %s4722_s29, %s4718_s28 }
  0x3d   : > { %s6198_s11 = smov (%p40_p1, %s39_s11), 0  ;;  %s6200_s16 = smov (!%p40_p1, %s42_s16), %s4738_s9 }
  0x3e   : > { %6117 = sst [smem:[#allocation29_spill]] %s6198_s11  ;;  %s68_s7 = ssub.s32 %s4734_s8, %s6198_s11 }
  0x3f   : > { %p6092_p4 = scmp.eq.s32.totalorder %s4742_s10, 0  ;;  %p44_p7 = scmp.ge.s32.totalorder %s6200_s16, 2 }
  0x40   : > { %p85_p9 = scmp.ne.s32.totalorder %s4718_s28, %s4714_s27  ;;  %p6120_p11 = scmp.eq.s32.totalorder %s4863_s13, 0 }
  0x41   : > { %p4922_p10 = por %p6092_p4, %p79_p2  ;;  %s6202_s16 = smov (%p44_p7, %s6200_s16), 0 }
  0x42   : > { %6119 = sst [smem:[#allocation30_spill]] %s6202_s16  ;;  %p4931_p12 = por %p6120_p11, %p85_p9 }
  0x43   : > { %p6123_p13 = scmp.eq.s32.totalorder %s4863_s13, 3  ;;  %s4943_s6 = ssub.s32 %s4738_s9, %s6202_s16 }
  0x44   : > { %s6121_s19 = scalar_select %p4931_p12, 1, 0 }
  0x45   : > { %p4937_p0 = por %p6123_p13, %p79_p2  ;;  %p210_p3 = scmp.eq.s32.totalorder %s3520_s20, 3 }
  0x46   : > { %6122 = sst [smem:[#allocation31_spill]] %s6121_s19  ;;  %s69_s18 = sor.u32 %s68_s7, %s4943_s6 }
  0x47   : > { %s6124_s17 = scalar_select %p4937_p0, 1, 0 }
  0x48   : > { %p6091_p5 = scmp.lt.s32.totalorder %s4742_s10, 4  ;;  %p70_p1 = scmp.eq.s32.totalorder %s69_s18, 0 }
  0x49   : > { %6125 = sst [smem:[#allocation32_spill]] %s6124_s17  ;;  %p4947_p7 = por %p210_p3, %p85_p9 }
  0x4a   : > { %s284_s30 = sand.u32 1, %s4722_s29   ;;  %s3769_s17 = sshll.u32 %s4734_s8, 4 }
  0x4b   : > { %s6126_s4 = scalar_select %p4947_p7, 1, 0 }
  0x4c   : > { %s4954_s19 = scalar_select %p70_p1, %s4722_s29, %s72_s5  }
  0x4d   : > { %s3531_s28 = sshll.u32 %s284_s30, 6  ;;  %s4958_s16 = sshll.u32 %s4738_s9, 5 }
  0x4e   : > { %6127 = sst [smem:[#allocation33_spill]] %s4954_s19  ;;  %s286_s20 = scalar_lea.vmem [#allocation6], %s3531_s28 }
  0x4f   : > { %s296_s14 = sshll.u32 %s286_s20, 4  ;;  %s293_s3 = sadd.s32 %s3769_s17, %s4958_s16  ;;  %s4961_s14 = int_to_ptr.vmem [resolvable:$true] %s296_s14 }
  0x50   : > { %s3535_s7 = sshll.u32 %s293_s3, 6  ;;  %p4967_p2 = pnand %p6091_p5, %p4922_p10 }
  0x51   : > { %s6129_s1 = sld [smem:[#allocation35_spill]]  ;;  %s6130_s9 = sand.u32 1, %s4742_s10  }
  0x52   : > { %s4978_s28 = scalar_lea.sflag [#allocation7], %s6130_s9  ;;  %p4432_p10 = pneg %p4967_p2 }
  0x57   : > { %s4974_s30 = scalar_lea.hbm %s6129_s1, %s3535_s7  ;;  %s4435_s12 = scalar_lea.hbm %s6129_s1, 4096 }
  0x58   : > { %s4430_s3 = scalar_lea.hbm %s4974_s30, 1024  ;;  %p4436_p3 = scmp.lt.u32.totalorder %s4974_s30, %s6129_s1 }
  0x59   : > { %p4431_p9 = scmp.ne.s32.totalorder %s4974_s30, %s4430_s3  ;;  %p4437_p1 = scmp.lt.u32.totalorder %s4435_s12, %s4430_s3 }
  0x5a   : > { %p4439_p4 = scmp.lt.u32.totalorder %s4430_s3, %s4974_s30 }
  0x5b   : > { %p4433_p11 = pnand %p4432_p10, %p4431_p9  ;;  %p4438_p5 = por %p4437_p1, %p4436_p3 }
  0x5d   : > { %p4434_p13 = pneg %p4433_p11  ;;  %p4440_p8 = por %p4439_p4, %p4438_p5 }
  0x5f   : > { %p4441_p7 = pnand %p4440_p8, %p4434_p13 }
  0x61   : > { %4444 = shalt.err (!%p4441_p7)
}
  0x62   : > { %s4445_s9 = scalar_lea.vmem %s4961_s14, 1024  ;;  %s4747_s5 = smov [#allocation6]  }
  0x63   : > { %p4446_p9 = scmp.ne.s32.totalorder %s4961_s14, %s4445_s9  ;;  %s4450_s27 = sshll.u32 %s4747_s5, 4  ;;  %s4451_s27 = int_to_ptr.vmem [resolvable:$false] %s4450_s27 }
  0x64   : > { %s4452_s17 = scalar_lea.vmem %s4451_s27, 2048  ;;  %p4453_p12 = scmp.lt.s32.totalorder %s4961_s14, %s4451_s27 }
  0x65   : > { %p4448_p11 = pnand %p4446_p9, %p4432_p10  ;;  %p4454_p3 = scmp.lt.s32.totalorder %s4452_s17, %s4445_s9 }
  0x67   : > { %p4449_p0 = pneg %p4448_p11  ;;  %p4455_p1 = por %p4454_p3, %p4453_p12 }
  0x69   : > { %p4456_p4 = pnand %p4455_p1, %p4449_p0 }
  0x6b   : > { %4459 = shalt.err (!%p4456_p4)
}
  0x6c   : > { %s6131_s3 = smov 4   ;;  %s6132_s12 = smov 64  }
  0x6d   : > { %4166 = dma.hbm_to_vmem [thread:$0]  (!%p4967_p2), %s4974_s30, 1024, %s4961_s14, %s4978_s28, %s6132_s12, %s6132_s12, %s6131_s3  }
  0x6e   : > { %s4748_s20 = smov [#allocation3]   ;;  %s6133_s0 = sld [smem:[#allocation34_spill]] }
  0x6f   : > { %s258_s7 = sshll.u32 %s4748_s20, 4  ;;  %p6134_p12 = pneg %p4877_p6  ;;  %s259_s7 = int_to_ptr.vmem [resolvable:$true] %s258_s7 }
  0x74   : > { %s4460_s9 = scalar_lea.hbm %s6133_s0, 32 }
  0x75   : > { %p4461_p8 = scmp.ne.s32.totalorder %s6133_s0, %s4460_s9  ;;  %p4467_p7 = scmp.lt.u32.totalorder %s4460_s9, %s6133_s0 }
  0x77   : > { %p4463_p0 = pnand %p4461_p8, %p6134_p12 }
  0x79   : > { %p4464_p5 = pneg %p4463_p0 }
  0x7b   : > { %p4469_p2 = pnand %p4467_p7, %p4464_p5 }
  0x7d   : > { %4472 = shalt.err (!%p4469_p2)
}
  0x7e   : > { %s4473_s14 = scalar_lea.vmem %s259_s7, 32  ;;  %p6135_p13 = pmov %p6134_p12 }
  0x7f   : > { %p4474_p10 = scmp.ne.s32.totalorder %s259_s7, %s4473_s14  ;;  %p4481_p3 = scmp.lt.s32.totalorder %s259_s7, %s259_s7 }
  0x80   : > { %p4482_p1 = scmp.lt.s32.totalorder %s4473_s14, %s4473_s14 }
  0x81   : > { %p4476_p9 = pnand %p4474_p10, %p6135_p13 }
  0x82   : > { %p4483_p4 = por %p4482_p1, %p4481_p3 }
  0x83   : > { %p4477_p11 = pneg %p4476_p9 }
  0x85   : > { %p4484_p8 = pnand %p4483_p4, %p4477_p11 }
  0x87   : > { %4487 = shalt.err (!%p4484_p8)
}
  0x88   : > { %4159 = dma.hbm_to_vmem [thread:$0]  (!%p4877_p6), %s6133_s0, 32, %s259_s7, [#allocation4]  }
  0x89   : > { %s6096_s19 = sshll.u32 %s4734_s8, 3  ;;  %s6136_s20 = sshll.u32 %s6198_s11, 3 }
  0x8a   : > { %s3524_s5 = sadd.s32 4294967295, %s6136_s20  ;;  %s3522_s15 = sadd.s32 4294967295, %s6096_s19 }
  0x8b   : > { %p101_p12 = scmp.gt.s32.totalorder %s3524_s5, 0  ;;  %p97_p0 = scmp.gt.s32.totalorder %s3522_s15, 0 }
  0x8c   : > { %s108_s9 = sadd.s32 1, %s4710_s26  ;;  %p115_p5 = scmp.ne.s32.totalorder %s4710_s26, %s4706_s25 }
  0x8d   : > { %s6204_s5 = smov (!%p101_p12, %s3524_s5), 0  ;;  %s6206_s15 = smov (!%p97_p0, %s3522_s15), 0 }
  0x8e   : > { %p121_p7 = scmp.ne.s32.totalorder %s4706_s25, %s4702_s24  ;;  %s104_s27 = ssub.s32 %s6206_s15, %s6204_s5 }
  0x8f   : > { %s308_s17 = sand.u32 1, %s4710_s26   ;;  %s105_s18 = sor.u32 %s104_s27, %s4943_s6 }
  0x90   : > { %p6137_p6 = scmp.eq.s32.totalorder %s4742_s10, 0  ;;  %p106_p10 = scmp.eq.s32.totalorder %s105_s18, 0 }
  0x91   : > { %p6138_p13 = scmp.eq.s32.totalorder %s4863_s13, 0  ;;  %s3536_s14 = sshll.u32 %s308_s17, 3 }
  0x92   : > { %p117_p2 = por %p115_p5, %p6137_p6  ;;  %s3539_s1 = sshll.u32 %s6206_s15, 1 }
  0x93   : > { %p5045_p9 = por %p121_p7, %p6138_p13  ;;  %s320_s20 = sadd.s32 %s3539_s1, %s4958_s16 }
  0x94   : > { %s5050_s30 = scalar_select %p106_p10, %s4710_s26, %s108_s9  }
  0x95   : > { %s3541_s19 = sshll.u32 %s320_s20, 6  ;;  %s310_s0 = scalar_lea.vmem [#allocation8], %s3536_s14 }
  0x96   : > { %s323_s24 = sshll.u32 %s310_s0, 4  ;;  %s6140_s2 = sld [smem:[#allocation36_spill]]  ;;  %s5058_s24 = int_to_ptr.vmem [resolvable:$true] %s323_s24 }
  0x97   : > { %p6141_p11 = scmp.lt.s32.totalorder %s4742_s10, 4 }
  0x99   : > { %p5062_p3 = pnand %p6141_p11, %p117_p2 }
  0x9b   : > { %p4490_p4 = pneg %p5062_p3 }
  0x9c   : > { %s5056_s27 = scalar_lea.hbm %s6140_s2, %s3541_s19  ;;  %s4493_s19 = scalar_lea.hbm %s6140_s2, 4096 }
  0x9d   : > { %s4488_s9 = scalar_lea.hbm %s5056_s27, 128  ;;  %p4494_p0 = scmp.lt.u32.totalorder %s5056_s27, %s6140_s2 }
  0x9e   : > { %p4489_p1 = scmp.ne.s32.totalorder %s5056_s27, %s4488_s9  ;;  %p4495_p5 = scmp.lt.u32.totalorder %s4493_s19, %s4488_s9 }
  0x9f   : > { %p4497_p6 = scmp.lt.u32.totalorder %s4488_s9, %s5056_s27 }
  0xa0   : > { %p4491_p8 = pnand %p4490_p4, %p4489_p1  ;;  %p4496_p7 = por %p4495_p5, %p4494_p0 }
  0xa2   : > { %p4492_p12 = pneg %p4491_p8  ;;  %p4498_p2 = por %p4497_p6, %p4496_p7 }
  0xa4   : > { %p4499_p10 = pnand %p4498_p2, %p4492_p12 }
  0xa6   : > { %4502 = shalt.err (!%p4499_p10)
}
  0xa7   : > { %s4503_s14 = scalar_lea.vmem %s5058_s24, 128  ;;  %s4749_s1 = smov [#allocation8]  }
  0xa8   : > { %p4504_p13 = scmp.ne.s32.totalorder %s5058_s24, %s4503_s14  ;;  %s4508_s20 = sshll.u32 %s4749_s1, 4  ;;  %s4509_s20 = int_to_ptr.vmem [resolvable:$false] %s4508_s20 }
  0xa9   : > { %s4510_s5 = scalar_lea.vmem %s4509_s20, 256  ;;  %p4511_p8 = scmp.lt.s32.totalorder %s5058_s24, %s4509_s20 }
  0xaa   : > { %p4506_p11 = pnand %p4504_p13, %p4490_p4  ;;  %p4512_p0 = scmp.lt.s32.totalorder %s4510_s5, %s4503_s14 }
  0xac   : > { %p4507_p1 = pneg %p4506_p11  ;;  %p4513_p5 = por %p4512_p0, %p4511_p8 }
  0xae   : > { %p4514_p7 = pnand %p4513_p5, %p4507_p1 }
  0xb0   : > { %4517 = shalt.err (!%p4514_p7)
}
  0xb1   : > { %4169 = dma.hbm_to_vmem [thread:$0]  (!%p5062_p3), %s5056_s27, 128, %s5058_s24, %s4978_s28, %s6132_s12, %s6132_s12, %s6131_s3  }
  0xb2   : > { %s6143_s9 = sshll.u32 %s4734_s8, 3  ;;  %s6144_s0 = sshll.u32 %s6198_s11, 3 }
  0xb3   : > { %s132_s15 = sadd.s32 8, %s6143_s9  ;;  %s136_s29 = sadd.s32 8, %s6144_s0 }
  0xb4   : > { %p133_p4 = scmp.lt.s32.totalorder %s132_s15, 15  ;;  %p137_p12 = scmp.lt.s32.totalorder %s136_s29, 15 }
  0xb5   : > { %s144_s19 = sadd.s32 1, %s4698_s23  ;;  %p151_p6 = scmp.ne.s32.totalorder %s4698_s23, %s4694_s22 }
  0xb6   : > { %s6208_s15 = smov (!%p133_p4, %s132_s15), 15  ;;  %s6210_s29 = smov (!%p137_p12, %s136_s29), 15 }
  0xb7   : > { %p6145_p2 = scmp.eq.s32.totalorder %s4742_s10, 0  ;;  %p157_p3 = scmp.ne.s32.totalorder %s4694_s22, %s4690_s21 }
  0xb8   : > { %s140_s28 = ssub.s32 %s6208_s15, %s6210_s29  ;;  %s335_s24 = sand.u32 1, %s4698_s23  }
  0xb9   : > { %p5104_p10 = por %p151_p6, %p6145_p2  ;;  %s141_s27 = sor.u32 %s140_s28, %s4943_s6 }
  0xba   : > { %p6147_p13 = scmp.eq.s32.totalorder %s4863_s13, 0  ;;  %p142_p1 = scmp.eq.s32.totalorder %s141_s27, 0 }
  0xbb   : > { %s3542_s14 = sshll.u32 %s335_s24, 3  ;;  %s3544_s1 = sshll.u32 %s6208_s15, 1 }
  0xbc   : > { %p5114_p11 = por %p157_p3, %p6147_p13  ;;  %s347_s5 = sadd.s32 %s3544_s1, %s4958_s16 }
  0xbd   : > { %s5119_s20 = scalar_select %p142_p1, %s4698_s23, %s144_s19  }
  0xbe   : > { %s6148_s18 = scalar_select %p5114_p11, 1, 0 }
  0xbf   : > { %s337_s9 = scalar_lea.vmem [#allocation9], %s3542_s14  ;;  %s3546_s2 = sshll.u32 %s347_s5, 6 }
  0xc0   : > { %s350_s0 = sshll.u32 %s337_s9, 4  ;;  %s6149_s11 = sld [smem:[#allocation37_spill]]  ;;  %s5122_s0 = int_to_ptr.vmem [resolvable:$true] %s350_s0 }
  0xc1   : > { %p6150_p8 = scmp.lt.s32.totalorder %s4742_s10, 4  ;;  %s6152_s16 = sand.u32 1, %s4742_s10  }
  0xc2   : > { %s5139_s19 = scalar_lea.sflag [#allocation10], %s6152_s16 }
  0xc3   : > { %p5133_p0 = pnand %p6150_p8, %p5104_p10 }
  0xc5   : > { %p4520_p7 = pneg %p5133_p0 }
  0xc6   : > { %s5127_s6 = scalar_lea.hbm %s6149_s11, %s3546_s2  ;;  %s4523_s24 = scalar_lea.hbm %s6149_s11, 4096 }
  0xc7   : > { %s4518_s28 = scalar_lea.hbm %s5127_s6, 128  ;;  %p4524_p6 = scmp.lt.u32.totalorder %s5127_s6, %s6149_s11 }
  0xc8   : > { %p4519_p5 = scmp.ne.s32.totalorder %s5127_s6, %s4518_s28  ;;  %p4525_p2 = scmp.lt.u32.totalorder %s4523_s24, %s4518_s28 }
  0xc9   : > { %p4527_p3 = scmp.lt.u32.totalorder %s4518_s28, %s5127_s6 }
  0xca   : > { %p4521_p4 = pnand %p4520_p7, %p4519_p5  ;;  %p4526_p10 = por %p4525_p2, %p4524_p6 }
  0xcc   : > { %p4522_p12 = pneg %p4521_p4  ;;  %p4528_p13 = por %p4527_p3, %p4526_p10 }
  0xce   : > { %p4529_p1 = pnand %p4528_p13, %p4522_p12 }
  0xd0   : > { %4532 = shalt.err (!%p4529_p1)
}
  0xd1   : > { %s4533_s1 = scalar_lea.vmem %s5122_s0, 128  ;;  %s4750_s5 = smov [#allocation9]  }
  0xd2   : > { %p4534_p8 = scmp.ne.s32.totalorder %s5122_s0, %s4533_s1  ;;  %s4538_s9 = sshll.u32 %s4750_s5, 4  ;;  %s4539_s9 = int_to_ptr.vmem [resolvable:$false] %s4538_s9 }
  0xd3   : > { %s4540_s21 = scalar_lea.vmem %s4539_s9, 256  ;;  %p4541_p11 = scmp.lt.s32.totalorder %s5122_s0, %s4539_s9 }
  0xd4   : > { %p4536_p5 = pnand %p4534_p8, %p4520_p7  ;;  %p4542_p6 = scmp.lt.s32.totalorder %s4540_s21, %s4533_s1 }
  0xd6   : > { %p4537_p4 = pneg %p4536_p5  ;;  %p4543_p2 = por %p4542_p6, %p4541_p11 }
  0xd8   : > { %p4544_p10 = pnand %p4543_p2, %p4537_p4 }
  0xda   : > { %4547 = shalt.err (!%p4544_p10)
}
  0xdb   : > { %4172 = dma.hbm_to_vmem [thread:$0]  (!%p5133_p0), %s5127_s6, 128, %s5122_s0, %s5139_s19, %s6132_s12, %s6132_s12, %s6131_s3  }
  0xdc   : > { %s6153_s29 = sld [smem:[#allocation28_spill]] }
  0xe2   : > { %p6154_p7 = scmp.ne.s32.totalorder %s6153_s29, 0 }
  0xe3   : > { %p6155_p12 = scmp.eq.s32.totalorder (!%p6154_p7), %s4863_s13, 0 }
  0xe4   : > { %362 = sbr.rel (%p6154_p7) target bundleno = 832 (0x340), region = 40 }
  0xeb   : > { %4661 = dma.done.wait (%p6155_p12), [#allocation4], 32   ;;  %p6156_p3 = pmov %p6155_p12 }
  0xec   : > { %s6157_s16 = sld [smem:[#allocation23_spill]]  ;;  %s6158_s28 = sld [smem:[#allocation31_spill]] }
  0xed   : > { %4663 = vsyncadd (%p6156_p3), [#allocation4], 4294967264  ;;  %s368_s15 = sand.u32 1, %s4863_s13  }
  0xee   : > { %s369_s24 = scalar_lea.sflag [#allocation7], %s368_s15 }
  0xf2   : > { %s5178_s2 = sand.u32 1, %s6157_s16   ;;  %p6159_p11 = scmp.ne.s32.totalorder %s6158_s28, 0 }
  0xf3   : > { %s3549_s17 = sshll.u32 %s5178_s2, 6 }
  0xf4   : > { %s5181_s27 = scalar_lea.vmem [#allocation6], %s3549_s17 }
  0xf5   : > { %4665 = dma.done.wait (%p6159_p11), %s369_s24, 1024  }
  0xf6   : > { %4667 = vsyncadd (%p6159_p11), %s369_s24, 4294966272  ;;  %s379_s3 = sand.u32 1, %s4706_s25  }
  0xf7   : > { %s5188_s12 = sshll.u32 %s379_s3, 3 }
  0xf8   : > { %s381_s0 = scalar_lea.vmem [#allocation8], %s5188_s12 }
  0xf9   : > { %4669 = dma.done.wait (%p5045_p9), %s369_s24, 128  }
  0xfa   : > { %4671 = vsyncadd (%p5045_p9), %s369_s24, 4294967168  ;;  %s388_s6 = sand.u32 1, %s4694_s22   ;;  %s387_s14 = scalar_lea.sflag [#allocation10], %s368_s15 }
  0xfb   : > { %s5196_s19 = sshll.u32 %s388_s6, 3  ;;  %p6160_p0 = scmp.ne.s32.totalorder %s6148_s18, 0 }
  0xfc   : > { %s390_s1 = scalar_lea.vmem [#allocation9], %s5196_s19 }
  0xfd   : > { %4673 = dma.done.wait (%p6160_p0), %s387_s14, 128  }
  0xfe   : > { %4675 = vsyncadd (%p6160_p0), %s387_s14, 4294967168  ;;  %p6161_p13 = pmov %p6156_p3 }
  0xff   : > { %p6162_p1 = pmov %p6156_p3 }
 0x100   : > { %4677 = dma.done.wait (%p6161_p13), [#allocation10], 9216  }
 0x101   : > { %4679 = vsyncadd (%p6162_p1), [#allocation10], 4294958080  ;;  %s3553_s7 = sshll.u32 %s5178_s2, 7  ;;  %s3554_s5 = sshll.u32 %s5178_s2, 1  ;;  %v5209_v0 = vld [vmem:[#allocation3] ss:$0 sm:$0xff] }
 0x102   : > { %v3772_v1 = vld [vmem:[%s5181_s27] sm:$0xff]   ;;  %vm619_vm0 = vcmask 1040384   ;;  %vm620_vm1 = vsmask.f32 256  ;;  %v3811_v4 = vld [vmem:[%s5181_s27 + $0x8] sm:$0xff]   ;;  %v3812_v5 = vld [vmem:[%s5181_s27 + $0x10] sm:$0xff]  }
 0x103   : > { %v3773_v2 = vunpack.c.l.bf16 %v3772_v1  ;;  %v3774_v3 = vunpack.c.h.bf16 %v3772_v1  ;;  %v3813_v6 = vld [vmem:[%s5181_s27 + $0x18] sm:$0xff]   ;;  %v3777_v8 = vunpack.c.l.bf16 %v3811_v4  ;;  %v3778_v9 = vunpack.c.h.bf16 %v3811_v4  ;;  %v3814_v28 = vld [vmem:[%s5181_s27 + $0x20] sm:$0xff]   ;;  %v5235_v33 = vld [vmem:[%s5181_s27 + $0x28] sm:$0xff]   ;;  %s5297_s13 = scalar_lea.vmem [#allocation12], %s3553_s7  ;;  %s5301_s18 = scalar_lea.vmem [#allocation13], %s3554_s5 }
 0x104   : > { %v5215_v7 = vld [vmem:[#allocation3 + $0x1] ss:$0 sm:$0xff]  ;;  %v3781_v10 = vunpack.c.l.bf16 %v3812_v5  ;;  %v3782_v11 = vunpack.c.h.bf16 %v3812_v5  ;;  %v3785_v14 = vunpack.c.l.bf16 %v3813_v6  ;;  %v3786_v15 = vunpack.c.h.bf16 %v3813_v6  ;;  %vm5241_vm2 = vmand %vm619_vm0, %vm620_vm1  ;;  %s6165_s9 = sld [smem:[#allocation25_spill]] }
 0x105   : > { %v487_v12 = vmul.f32 %v3773_v2, %v5209_v0  ;;  %v488_v13 = vmul.f32 %v3774_v3, %v5209_v0  ;;  %v489_v16 = vmul.f32 %v3777_v8, %v5209_v0  ;;  %v490_v17 = vmul.f32 %v3778_v9, %v5209_v0 }
 0x106   : > { %v491_v18 = vmul.f32 %v3781_v10, %v5209_v0  ;;  %v492_v19 = vmul.f32 %v3782_v11, %v5209_v0  ;;  %v493_v22 = vmul.f32 %v3785_v14, %v5209_v0  ;;  %v494_v23 = vmul.f32 %v3786_v15, %v5209_v0 }
 0x107   : > { %v507_v20 = vadd.f32 %v5215_v7, %v487_v12  ;;  %v508_v21 = vadd.f32 %v5215_v7, %v488_v13  ;;  %v509_v24 = vadd.f32 %v5215_v7, %v489_v16  ;;  %v510_v25 = vadd.f32 %v5215_v7, %v490_v17 }
 0x108   : > { %v511_v26 = vadd.f32 %v5215_v7, %v491_v18  ;;  %v512_v27 = vadd.f32 %v5215_v7, %v492_v19  ;;  %v513_v31 = vadd.f32 %v5215_v7, %v493_v22  ;;  %v514_v32 = vadd.f32 %v5215_v7, %v494_v23 }
 0x109   : > { %v523_v29 = vmax.f32 %v507_v20, 0.0  ;;  %v524_v30 = vmax.f32 %v508_v21, 0.0  ;;  %v525_v34 = vmax.f32 %v509_v24, 0.0  ;;  %v526_v35 = vmax.f32 %v510_v25, 0.0  ;;  %v3816_v21 = vld [vmem:[%s5181_s27 + $0x30] sm:$0xff]  }
 0x10a   : > { %v527_v36 = vmax.f32 %v511_v26, 0.0  ;;  %v528_v37 = vmax.f32 %v512_v27, 0.0  ;;  %v529_v39 = vmax.f32 %v513_v31, 0.0  ;;  %v530_v40 = vmax.f32 %v514_v32, 0.0  ;;  %v3817_v26 = vld [vmem:[%s5181_s27 + $0x38] sm:$0xff]   ;;  %p3581_p9 = scmp.ne.s32.totalorder %s6165_s9, 0 }
 0x10b   : > { %v539_v38 = vpack.c.bf16 %v524_v30, %v523_v29  ;;  %v3789_v41 = vunpack.c.l.bf16 %v3814_v28  ;;  %v540_v42 = vpack.c.bf16 %v526_v35, %v525_v34  ;;  %v3790_v44 = vunpack.c.h.bf16 %v3814_v28 }
 0x10c   : > { %v541_v43 = vpack.c.bf16 %v528_v37, %v527_v36  ;;  %v3793_v45 = vunpack.c.l.bf16 %v5235_v33  ;;  %v542_v48 = vpack.c.bf16 %v530_v40, %v529_v39  ;;  %v3794_v62 = vunpack.c.h.bf16 %v5235_v33 }
 0x10d   : > { %v548_v46 = vshrl.u32 %v539_v38, 16  ;;  %v551_v47 = vshll.u32 %v539_v38, 16  ;;  %v495_v49 = vmul.f32 %v3789_v41, %v5209_v0  ;;  %v555_v51 = vshrl.u32 %v540_v42, 16 }
 0x10e   : > { %v558_v52 = vshll.u32 %v540_v42, 16  ;;  %v562_v53 = vshrl.u32 %v541_v43, 16  ;;  %v565_v54 = vshll.u32 %v541_v43, 16  ;;  %v569_v56 = vshrl.u32 %v542_v48, 16 }
 0x10f   : > { %v550_v55 = vrot.slane %v548_v46, 7  ;;  %v572_v57 = vshll.u32 %v542_v48, 16  ;;  %v496_v58 = vmul.f32 %v3790_v44, %v5209_v0  ;;  %v557_v59 = vrot.slane %v555_v51, 7 }
 0x110   : > { %v564_v60 = vrot.slane %v562_v53, 7  ;;  %v515_v61 = vadd.f32 %v5215_v7, %v495_v49  ;;  %v571_v2 = vrot.slane %v569_v56, 7  ;;  %v497_v31 = vmul.f32 %v3793_v45, %v5209_v0 }
 0x111   : > { %v553_v63 = vor.u32 %v551_v47, %v550_v55  ;;  %v630_v1 = vsel %vm5241_vm2, %v550_v55, 0  ;;  %v516_v3 = vadd.f32 %v5215_v7, %v496_v58  ;;  %v560_v5 = vor.u32 %v558_v52, %v557_v59 }
 0x112   : > { %v3559_v4 = vcombine.low %v630_v1, %v630_v1  ;;  %v631_v6 = vsel %vm5241_vm2, %v557_v59, 0  ;;  %v567_v8 = vor.u32 %v565_v54, %v564_v60  ;;  %v632_v11 = vsel %vm5241_vm2, %v564_v60, 0 }
 0x113   : > { %v622_v9 = vsel %vm5241_vm2, 0, %v553_v63  ;;  %v3562_v10 = vcombine.low %v631_v6, %v631_v6  ;;  %v574_v12 = vor.u32 %v572_v57, %v571_v2  ;;  %v623_v15 = vsel %vm5241_vm2, 0, %v560_v5 }
 0x114   : > { %v3557_v13 = vcombine.low %v622_v9, %v622_v9  ;;  %v3558_v14 = vcombine.high %v622_v9, %v622_v9  ;;  %729 = vst [vmem:[#allocation2 + $0x14] sm:$0x1] %v3559_v4  ;;  %v624_v16 = vsel %vm5241_vm2, 0, %v567_v8  ;;  %v3560_v17 = vcombine.low %v623_v15, %v623_v15 }
 0x115   : > { %v3561_v18 = vcombine.high %v623_v15, %v623_v15  ;;  %732 = vst [vmem:[#allocation2 + $0x20] sm:$0x1] %v3562_v10  ;;  %v3563_v19 = vcombine.low %v624_v16, %v624_v16  ;;  %v3564_v20 = vcombine.high %v624_v16, %v624_v16  ;;  %v3565_v22 = vcombine.low %v632_v11, %v632_v11 }
 0x116   : > { %727 = vst [vmem:[#allocation2 + $0xc] sm:$0xf] %v3557_v13  ;;  %728 = vst [vmem:[#allocation2 + $0x10] sm:$0xf] %v3558_v14  ;;  %v625_v23 = vsel %vm5241_vm2, 0, %v574_v12  ;;  %v633_v24 = vsel %vm5241_vm2, %v571_v2, 0  ;;  %v498_v32 = vmul.f32 %v3794_v62, %v5209_v0  ;;  %v3797_v33 = vunpack.c.l.bf16 %v3816_v21 }
 0x117   : > { %v531_v25 = vmax.f32 %v515_v61, 0.0  ;;  %730 = vst [vmem:[#allocation2 + $0x18] sm:$0xf] %v3560_v17  ;;  %731 = vst [vmem:[#allocation2 + $0x1c] sm:$0xf] %v3561_v18  ;;  %v3566_v27 = vcombine.low %v625_v23, %v625_v23  ;;  %v3567_v28 = vcombine.high %v625_v23, %v625_v23  ;;  %v3568_v29 = vcombine.low %v633_v24, %v633_v24 }
 0x118   : > { %733 = vst [vmem:[#allocation2 + $0x24] sm:$0xf] %v3563_v19  ;;  %734 = vst [vmem:[#allocation2 + $0x28] sm:$0xf] %v3564_v20  ;;  %v532_v30 = vmax.f32 %v516_v3, 0.0  ;;  %v3798_v34 = vunpack.c.h.bf16 %v3816_v21  ;;  %v3801_v36 = vunpack.c.l.bf16 %v3817_v26  ;;  %v3802_v37 = vunpack.c.h.bf16 %v3817_v26 }
 0x119   : > { %735 = vst [vmem:[#allocation2 + $0x2c] sm:$0x1] %v3565_v22  ;;  %736 = vst [vmem:[#allocation2 + $0x30] sm:$0xf] %v3566_v27  ;;  %v517_v38 = vadd.f32 %v5215_v7, %v497_v31  ;;  %v518_v39 = vadd.f32 %v5215_v7, %v498_v32  ;;  %v499_v40 = vmul.f32 %v3797_v33, %v5209_v0  ;;  %v4751_v32 = vmov (!%p3581_p9), 0  }
 0x11a   : > { %737 = vst [vmem:[#allocation2 + $0x34] sm:$0xf] %v3567_v28  ;;  %738 = vst [vmem:[#allocation2 + $0x38] sm:$0x1] %v3568_v29  ;;  %v543_v35 = vpack.c.bf16 %v532_v30, %v531_v25  ;;  %v500_v41 = vmul.f32 %v3798_v34, %v5209_v0  ;;  %v501_v44 = vmul.f32 %v3801_v36, %v5209_v0 }
 0x11b   : > { %v502_v45 = vmul.f32 %v3802_v37, %v5209_v0  ;;  %v533_v46 = vmax.f32 %v517_v38, 0.0  ;;  %v534_v47 = vmax.f32 %v518_v39, 0.0  ;;  %v519_v48 = vadd.f32 %v5215_v7, %v499_v40  ;;  %755 = vst [vmem:[#allocation2] sm:$0xf] (!%p3581_p9), %v4751_v32  ;;  %756 = vst [vmem:[#allocation2 + $0x4] sm:$0xf] (!%p3581_p9), %v4751_v32 }
 0x11c   : > { %v576_v42 = vshrl.u32 %v543_v35, 16  ;;  %v579_v43 = vshll.u32 %v543_v35, 16  ;;  %v520_v49 = vadd.f32 %v5215_v7, %v500_v41  ;;  %v521_v52 = vadd.f32 %v5215_v7, %v501_v44  ;;  %757 = vst [vmem:[#allocation2 + $0x8] sm:$0x1] (!%p3581_p9), %v4751_v32 }
 0x11d   : > { %v522_v53 = vadd.f32 %v5215_v7, %v502_v45  ;;  %v544_v54 = vpack.c.bf16 %v534_v47, %v533_v46  ;;  %v535_v55 = vmax.f32 %v519_v48, 0.0 }
 0x11e   : > { %v578_v51 = vrot.slane %v576_v42, 7  ;;  %v536_v56 = vmax.f32 %v520_v49, 0.0  ;;  %v537_v59 = vmax.f32 %v521_v52, 0.0 }
 0x11f   : > { %v538_v60 = vmax.f32 %v522_v53, 0.0  ;;  %v583_v62 = vshrl.u32 %v544_v54, 16  ;;  %v586_v63 = vshll.u32 %v544_v54, 16 }
 0x120   : > { %v581_v57 = vor.u32 %v579_v43, %v578_v51  ;;  %v634_v58 = vsel %vm5241_vm2, %v578_v51, 0  ;;  %v545_v1 = vpack.c.bf16 %v536_v56, %v535_v55 }
 0x121   : > { %v3571_v61 = vcombine.low %v634_v58, %v634_v58  ;;  %v546_v3 = vpack.c.bf16 %v538_v60, %v537_v59  ;;  %v585_v6 = vrot.slane %v583_v62, 7 }
 0x122   : > { %v626_v2 = vsel %vm5241_vm2, 0, %v581_v57  ;;  %v590_v8 = vshrl.u32 %v545_v1, 16  ;;  %v593_v9 = vshll.u32 %v545_v1, 16 }
 0x123   : > { %v3569_v4 = vcombine.low %v626_v2, %v626_v2  ;;  %v3570_v5 = vcombine.high %v626_v2, %v626_v2  ;;  %741 = vst [vmem:[#allocation2 + $0x44] sm:$0x1] %v3571_v61  ;;  %v597_v10 = vshrl.u32 %v546_v3, 16  ;;  %v600_v11 = vshll.u32 %v546_v3, 16 }
 0x124   : > { %v588_v12 = vor.u32 %v586_v63, %v585_v6  ;;  %v635_v13 = vsel %vm5241_vm2, %v585_v6, 0  ;;  %v592_v14 = vrot.slane %v590_v8, 7 }
 0x125   : > { %739 = vst [vmem:[#allocation2 + $0x3c] sm:$0xf] %v3569_v4  ;;  %740 = vst [vmem:[#allocation2 + $0x40] sm:$0xf] %v3570_v5  ;;  %v3574_v15 = vcombine.low %v635_v13, %v635_v13  ;;  %v599_v16 = vrot.slane %v597_v10, 7 }
 0x126   : > { %v627_v17 = vsel %vm5241_vm2, 0, %v588_v12  ;;  %v595_v18 = vor.u32 %v593_v9, %v592_v14  ;;  %v636_v19 = vsel %vm5241_vm2, %v592_v14, 0 }
 0x127   : > { %v3572_v20 = vcombine.low %v627_v17, %v627_v17  ;;  %v3573_v21 = vcombine.high %v627_v17, %v627_v17  ;;  %744 = vst [vmem:[#allocation2 + $0x50] sm:$0x1] %v3574_v15  ;;  %v3577_v22 = vcombine.low %v636_v19, %v636_v19  ;;  %v602_v23 = vor.u32 %v600_v11, %v599_v16  ;;  %754 = sbr.rel (%p3581_p9) target bundleno = 302 (0x12e), region = 64 }
 0x128   : > { %v628_v24 = vsel %vm5241_vm2, 0, %v595_v18  ;;  %v637_v25 = vsel %vm5241_vm2, %v599_v16, 0 }
 0x129   : > { %742 = vst [vmem:[#allocation2 + $0x48] sm:$0xf] %v3572_v20  ;;  %743 = vst [vmem:[#allocation2 + $0x4c] sm:$0xf] %v3573_v21  ;;  %v3575_v26 = vcombine.low %v628_v24, %v628_v24  ;;  %v3576_v27 = vcombine.high %v628_v24, %v628_v24  ;;  %v629_v28 = vsel %vm5241_vm2, 0, %v602_v23  ;;  %v3580_v29 = vcombine.low %v637_v25, %v637_v25 }
 0x12a   : > { %747 = vst [vmem:[#allocation2 + $0x5c] sm:$0x1] %v3577_v22  ;;  %v3578_v30 = vcombine.low %v629_v28, %v629_v28  ;;  %v3579_v31 = vcombine.high %v629_v28, %v629_v28 }
 0x12b   : > { %745 = vst [vmem:[#allocation2 + $0x54] sm:$0xf] %v3575_v26  ;;  %746 = vst [vmem:[#allocation2 + $0x58] sm:$0xf] %v3576_v27 }
 0x12c   : > { %750 = vst [vmem:[#allocation2 + $0x68] sm:$0x1] %v3580_v29  ;;  %748 = vst [vmem:[#allocation2 + $0x60] sm:$0xf] %v3578_v30 }
 0x12d   : > { %749 = vst [vmem:[#allocation2 + $0x64] sm:$0xf] %v3579_v31 }
 0x12e PF: > { %s6166_s21 = sld [smem:[#allocation25_spill]] }
 0x134   : > { %p3582_p8 = scmp.le.s32.totalorder %s6166_s21, 0 }
 0x135   : > { %v3804_v33 = vld [vmem:[%s381_s0] sm:$0xff] (!%p3582_p8)  }
 0x136   : > { %761 = sbr.rel (%p3582_p8) target bundleno = 330 (0x14a), region = 68  ;;  %v3805_v34 = vunpack.c.l.bf16 (!%p3582_p8), %v3804_v33  ;;  %v3806_v35 = vunpack.c.h.bf16 (!%p3582_p8), %v3804_v33 }
 0x138   : > { %v766_v36 = vmul.f32 (!%p3582_p8), %v3805_v34, %v5209_v0  ;;  %v767_v37 = vmul.f32 (!%p3582_p8), %v3806_v35, %v5209_v0 }
 0x13a   : > { %v768_v38 = vadd.f32 (!%p3582_p8), %v5215_v7, %v766_v36  ;;  %v769_v39 = vadd.f32 (!%p3582_p8), %v5215_v7, %v767_v37 }
 0x13c   : > { %v770_v40 = vmax.f32 (!%p3582_p8), %v768_v38, 0.0  ;;  %v771_v41 = vmax.f32 (!%p3582_p8), %v769_v39, 0.0 }
 0x13e   : > { %v772_v42 = vpack.c.bf16 %v771_v41, %v770_v40 }
 0x140   : > { %v774_v43 = vshrl.u32 %v772_v42, 16  ;;  %v777_v44 = vshll.u32 %v772_v42, 16 }
 0x142   : > { %v776_v45 = vrot.slane %v774_v43, 7 }
 0x144   : > { %v779_v46 = vor.u32 %v777_v44, %v776_v45  ;;  %v783_v47 = vsel %vm5241_vm2, %v776_v45, 0 }
 0x145   : > { %v3585_v48 = vcombine.low %v783_v47, %v783_v47 }
 0x146   : > { %v782_v49 = vsel %vm5241_vm2, 0, %v779_v46 }
 0x147   : > { %v3583_v51 = vcombine.low %v782_v49, %v782_v49  ;;  %v3584_v52 = vcombine.high %v782_v49, %v782_v49  ;;  %797 = vst [vmem:[#allocation2 + $0x8] sm:$0x1] %v3585_v48 }
 0x149   : > { %795 = vst [vmem:[#allocation2] sm:$0xf] %v3583_v51  ;;  %796 = vst [vmem:[#allocation2 + $0x4] sm:$0xf] %v3584_v52 }
 0x14a PF: > { %s6167_s29 = sld [smem:[#allocation25_spill]] }
 0x150   : > { %p3586_p5 = scmp.ne.s32.totalorder %s6167_s29, 1 }
 0x151   : > { %v4752_v53 = vmov (!%p3586_p5), 0  }
 0x152   : > { %801 = sbr.rel (%p3586_p5) target bundleno = 345 (0x159), region = 72  ;;  %803 = vst [vmem:[#allocation2 + $0x6c] sm:$0xf] (!%p3586_p5), %v4752_v53  ;;  %804 = vst [vmem:[#allocation2 + $0x70] sm:$0xf] (!%p3586_p5), %v4752_v53 }
 0x153   : > { %805 = vst [vmem:[#allocation2 + $0x74] sm:$0x1] (!%p3586_p5), %v4752_v53 }
 0x159 PF: > { %s6168_s16 = sld [smem:[#allocation25_spill]] }
 0x15f   : > { %p3587_p4 = scmp.ge.s32.totalorder %s6168_s16, 1 }
 0x160   : > { %v3808_v54 = vld [vmem:[%s390_s1] sm:$0xff] (!%p3587_p4)  }
 0x161   : > { %809 = sbr.rel (%p3587_p4) target bundleno = 373 (0x175), region = 76  ;;  %v3809_v55 = vunpack.c.l.bf16 (!%p3587_p4), %v3808_v54  ;;  %v3810_v56 = vunpack.c.h.bf16 (!%p3587_p4), %v3808_v54 }
 0x163   : > { %v814_v57 = vmul.f32 (!%p3587_p4), %v3809_v55, %v5209_v0  ;;  %v815_v58 = vmul.f32 (!%p3587_p4), %v3810_v56, %v5209_v0 }
 0x165   : > { %v816_v59 = vadd.f32 (!%p3587_p4), %v5215_v7, %v814_v57  ;;  %v817_v60 = vadd.f32 (!%p3587_p4), %v5215_v7, %v815_v58 }
 0x167   : > { %v818_v61 = vmax.f32 (!%p3587_p4), %v816_v59, 0.0  ;;  %v819_v62 = vmax.f32 (!%p3587_p4), %v817_v60, 0.0 }
 0x169   : > { %v820_v63 = vpack.c.bf16 %v819_v62, %v818_v61 }
 0x16b   : > { %v822_v1 = vshrl.u32 %v820_v63, 16  ;;  %v825_v2 = vshll.u32 %v820_v63, 16 }
 0x16d   : > { %v824_v3 = vrot.slane %v822_v1, 7 }
 0x16f   : > { %v827_v4 = vor.u32 %v825_v2, %v824_v3  ;;  %v831_v5 = vsel %vm5241_vm2, %v824_v3, 0 }
 0x170   : > { %v3590_v6 = vcombine.low %v831_v5, %v831_v5 }
 0x171   : > { %v830_v8 = vsel %vm5241_vm2, 0, %v827_v4 }
 0x172   : > { %v3588_v9 = vcombine.low %v830_v8, %v830_v8  ;;  %v3589_v0 = vcombine.high %v830_v8, %v830_v8  ;;  %846 = vst [vmem:[#allocation2 + $0x74] sm:$0x1] %v3590_v6 }
 0x174   : > { %844 = vst [vmem:[#allocation2 + $0x6c] sm:$0xf] %v3588_v9  ;;  %845 = vst [vmem:[#allocation2 + $0x70] sm:$0xf] %v3589_v0 }
 0x175 PF: > { %v4306_v7 = vld [vmem:[#allocation11 + $0xc0] sm:$0xff]   ;;  %v4310_v13 = vld [vmem:[#allocation11 + $0xc8] sm:$0xff]   ;;  %v4314_v16 = vld [vmem:[#allocation11 + $0xd0] sm:$0xff]   ;;  %vm1202_vm3 = vcmask 1042432   ;;  %vm1203_vm4 = vcmask 1046532   ;;  %s6173_s28 = sld [smem:[#allocation25_spill]] }
 0x176   : > { %v4307_v10 = vld [vmem:[#allocation11 + $0x40] sm:$0xff]   ;;  %3818 = vmatprep.subr.bf16.mxu0 %v4306_v7  ;;  %v4311_v14 = vld [vmem:[#allocation11 + $0x48] sm:$0xff]   ;;  %v4315_v17 = vld [vmem:[#allocation11 + $0x50] sm:$0xff]   ;;  %vm871_vm5 = vsmask.f32 3328  ;;  %s6174_s15 = sld [smem:[#allocation26_spill]] }
 0x177   : > { %v4308_v11 = vld [vmem:[#allocation11 + $0x80] sm:$0xff]   ;;  %3882 = vmatprep.subr.bf16.mxu1 %v4307_v10  ;;  %v4312_v15 = vld [vmem:[#allocation11 + $0x88] sm:$0xff]   ;;  %v4316_v18 = vld [vmem:[#allocation11 + $0x90] sm:$0xff]   ;;  %vm872_vm6 = vsmask.f32 7440  ;;  %s3310_s3 = sshll.u32 %s5297_s13, 4  ;;  %s5919_s3 = int_to_ptr.vmem [resolvable:$true] %s3310_s3 }
 0x178   : > { %v4309_v12 = vld [vmem:[#allocation11] sm:$0xff]   ;;  %3819 = vmatpush3.bf16.msra.mxu0 %v4308_v11  ;;  %v4313_v50 = vld [vmem:[#allocation11 + $0x8] sm:$0xff]   ;;  %v4317_v19 = vld [vmem:[#allocation11 + $0x10] sm:$0xff]   ;;  %s6175_s0 = sld [smem:[#allocation32_spill]]  ;;  %s6176_s14 = sld [smem:[#allocation39_spill]] }
 0x179   : > { %3883 = vmatpush3.bf16.msra.mxu1 %v4309_v12  ;;  %3820 = vmatprep.subr.bf16.mxu0 %v4310_v13  ;;  %v4318_v20 = vld [vmem:[#allocation11 + $0xd8] sm:$0xff]   ;;  %v4322_v24 = vld [vmem:[#allocation11 + $0xe0] sm:$0xff]   ;;  %v4326_v28 = vld [vmem:[#allocation11 + $0xe8] sm:$0xff]   ;;  %s3289_s7 = scalar_lea.sflag [#allocation5], %s5178_s2  ;;  %s4548_s5 = scalar_lea.vmem %s5919_s3, 2048 }
 0x17a   : > { %3884 = vmatprep.subr.bf16.mxu1 %v4311_v14  ;;  %v4319_v21 = vld [vmem:[#allocation11 + $0x58] sm:$0xff]   ;;  %v4323_v25 = vld [vmem:[#allocation11 + $0x60] sm:$0xff]   ;;  %v4327_v29 = vld [vmem:[#allocation11 + $0x68] sm:$0xff]   ;;  %p4549_p6 = scmp.ne.s32.totalorder %s5919_s3, %s4548_s5  ;;  %s4753_s9 = smov [#allocation12]  }
 0x17b   : > { %v4320_v22 = vld [vmem:[#allocation11 + $0x98] sm:$0xff]   ;;  %v4324_v26 = vld [vmem:[#allocation11 + $0xa0] sm:$0xff]   ;;  %v4328_v30 = vld [vmem:[#allocation11 + $0xa8] sm:$0xff]   ;;  %s3770_s17 = sshll.u32 %s6173_s28, 4  ;;  %s4552_s21 = sshll.u32 %s4753_s9, 4  ;;  %s4553_s21 = int_to_ptr.vmem [resolvable:$false] %s4552_s21 }
 0x17c   : > { %3821 = vmatpush3.bf16.msra.mxu0 %v4312_v15  ;;  %v4321_v23 = vld [vmem:[#allocation11 + $0x18] sm:$0xff]   ;;  %v4325_v27 = vld [vmem:[#allocation11 + $0x20] sm:$0xff]   ;;  %v4329_v31 = vld [vmem:[#allocation11 + $0x28] sm:$0xff]   ;;  %s3763_s24 = sshll.u32 %s6174_s15, 5  ;;  %s4554_s29 = scalar_lea.vmem %s4553_s21, 4096 }
 0x17d   : > { %3885 = vmatpush3.bf16.msra.mxu1 %v4313_v50  ;;  %3822 = vmatprep.subr.bf16.mxu0 %v4314_v16  ;;  %v4330_v32 = vld [vmem:[#allocation11 + $0xf0] sm:$0xff]   ;;  %v4334_v36 = vld [vmem:[#allocation11 + $0xf8] sm:$0xff]   ;;  %v5327_v41 = vld [vmem:[#allocation2] sm:$0xf]  ;;  %s5897_s27 = sadd.s32 %s3770_s17, %s3763_s24  ;;  %p4555_p12 = scmp.lt.s32.totalorder %s5919_s3, %s4553_s21 }
 0x17e   : > { %3886 = vmatprep.subr.bf16.mxu1 %v4315_v17  ;;  %v4331_v33 = vld [vmem:[#allocation11 + $0x70] sm:$0xff]   ;;  %v4335_v37 = vld [vmem:[#allocation11 + $0x78] sm:$0xff]   ;;  %v5329_v42 = vld [vmem:[#allocation2 + $0x4] sm:$0xf]  ;;  %v875_v44 = vshrl.u32 %v5327_v41, 16  ;;  %v878_v45 = vshll.u32 %v5327_v41, 16  ;;  %p4556_p3 = scmp.lt.s32.totalorder %s4554_s29, %s4548_s5 }
 0x17f   : > { %v4332_v34 = vld [vmem:[#allocation11 + $0xb0] sm:$0xff]   ;;  %v4336_v38 = vld [vmem:[#allocation11 + $0xb8] sm:$0xff]   ;;  %v863_v43 = vld [vmem:[#allocation2 + $0x8] sm:$0x1]  ;;  %v884_v46 = vshll.u32 %v5329_v42, 16  ;;  %v888_v47 = vshrl.u32 %v5329_v42, 16  ;;  %v3591_v6 = vcombine.low %v5327_v41, %v5329_v42 }
 0x180   : > { %3823 = vmatpush3.bf16.msra.mxu0 %v4316_v18  ;;  %v4333_v35 = vld [vmem:[#allocation11 + $0x30] sm:$0xff]   ;;  %v4337_v39 = vld [vmem:[#allocation11 + $0x38] sm:$0xff]   ;;  %v894_v48 = vshll.u32 %v863_v43, 16  ;;  %v1210_v49 = vrot.slane %v863_v43, 5  ;;  %v1178_v51 = vld [vmem:[#allocation2] sm:$0xe]  ;;  %p4557_p11 = por %p4556_p3, %p4555_p12 }
 0x181   : > { %3887 = vmatpush3.bf16.msra.mxu1 %v4317_v19  ;;  %3824 = vmatprep.subr.bf16.mxu0 %v4318_v20  ;;  %v4338_v40 = vld [vmem:[#allocation2 + $0xc] sm:$0xff]   ;;  %vm5337_vm7 = vmor %vm1202_vm3, %vm1203_vm4  ;;  %v877_v53 = vrot.slane %v875_v44, 4  ;;  %v880_v54 = vrot.slane %v878_v45, 5  ;;  %v3607_v55 = vrot.slane %v1178_v51, 9  ;;  %v1207_v56 = vrot.slane %v5329_v42, 5  ;;  %v4340_v59 = vld [vmem:[#allocation11 + $0x140] sm:$0xff]  }
 0x182   : > { %3888 = vmatprep.subr.bf16.mxu1 %v4319_v21  ;;  %1517 = vmatprep.mubr.bf16.mxu0 %v4338_v40  ;;  %v886_v57 = vrot.slane %v884_v46, 5  ;;  %v890_v58 = vrot.slane %v888_v47, 4  ;;  %vm5344_vm8 = vmor %vm871_vm5, %vm872_vm6  ;;  %v896_v2 = vrot.slane %v894_v48, 5  ;;  %v4341_v3 = vld [vmem:[#allocation11 + $0x100] sm:$0xff]   ;;  %v5354_v9 = vld [vmem:[#allocation2 + $0xc] sm:$0xf] }
 0x183   : > { %v881_v61 = vor.u32 %v880_v54, %v877_v53  ;;  %v1208_v62 = vsel %vm5337_vm7, %v3607_v55, %v1207_v56  ;;  %v1209_v63 = vrot.slane %v1207_v56, 4  ;;  %v4342_v8 = vld [vmem:[#allocation2 + $0x18] sm:$0xff]   ;;  %v5356_v0 = vld [vmem:[#allocation2 + $0x10] sm:$0xf]  ;;  %v864_v11 = vld [vmem:[#allocation2 + $0x14] sm:$0x1] }
 0x184   : > { %3825 = vmatpush3.bf16.msra.mxu0 %v4320_v22  ;;  %v891_v1 = vor.u32 %v890_v58, %v886_v57  ;;  %v899_v12 = vshrl.u32 %v5354_v9, 16  ;;  %v902_v13 = vshll.u32 %v5354_v9, 16  ;;  %v4344_v14 = vld [vmem:[#allocation11 + $0x148] sm:$0xff]   ;;  %v908_v50 = vshll.u32 %v5356_v0, 16  ;;  %v1179_v18 = vld [vmem:[#allocation2 + $0xc] sm:$0xe] }
 0x185   : > { %3889 = vmatpush3.bf16.msra.mxu1 %v4321_v23  ;;  %3826 = vmatprep.subr.bf16.mxu0 %v4322_v24  ;;  %v882_v4 = vrot.slane %v881_v61, 4  ;;  %v1211_v5 = vsel %vm5337_vm7, %v1209_v63, %v1210_v49  ;;  %v912_v16 = vshrl.u32 %v5356_v0, 16  ;;  %v918_v17 = vshll.u32 %v864_v11, 16  ;;  %v4345_v19 = vld [vmem:[#allocation11 + $0x108] sm:$0xff]   ;;  %v4348_v24 = vld [vmem:[#allocation11 + $0x150] sm:$0xff]   ;;  %s3764_s12 = sshll.u32 %s5897_s27, 7 }
 0x186   : > { %3890 = vmatprep.subr.bf16.mxu1 %v4323_v25  ;;  %v892_v7 = vrot.slane %v891_v1, 4  ;;  %v3615_v10 = vcombine.low %v1208_v62, %v1211_v5  ;;  %v901_v21 = vrot.slane %v899_v12, 4  ;;  %v904_v22 = vrot.slane %v902_v13, 5  ;;  %v5373_v40 = vld [vmem:[#allocation2 + $0x1c] sm:$0xf]  ;;  %v4350_v62 = vld [vmem:[#allocation11 + $0x110] sm:$0xff]   ;;  %s5926_s1 = scalar_lea.hbm %s6176_s14, %s3764_s12 }
 0x187   : > { %v887_v15 = vsel %vm5344_vm8, %v882_v4, %v886_v57  ;;  %v3608_v23 = vrot.slane %v1179_v18, 9  ;;  %v865_v41 = vld [vmem:[#allocation2 + $0x20] sm:$0x1]  ;;  %v932_v45 = vshll.u32 %v5373_v40, 16  ;;  %v1180_v46 = vld [vmem:[#allocation2 + $0x18] sm:$0xe] }
 0x188   : > { %3827 = vmatpush3.bf16.msra.mxu0 %v4324_v26  ;;  %v897_v20 = vsel %vm5344_vm8, %v892_v7, %v896_v2  ;;  %v910_v26 = vrot.slane %v908_v50, 5  ;;  %v936_v49 = vshrl.u32 %v5373_v40, 16  ;;  %v942_v51 = vshll.u32 %v865_v41, 16  ;;  %v4351_v4 = vld [vmem:[#allocation11 + $0x180] sm:$0xff]   ;;  %v5390_v12 = vld [vmem:[#allocation2 + $0x24] sm:$0xf] }
 0x189   : > { %3891 = vmatpush3.bf16.msra.mxu1 %v4325_v27  ;;  %3828 = vmatprep.subr.bf16.mxu0 %v4326_v28  ;;  %v3599_v25 = vcombine.low %v887_v15, %v897_v20  ;;  %v914_v27 = vrot.slane %v912_v16, 4  ;;  %v920_v28 = vrot.slane %v918_v17, 5  ;;  %v934_v58 = vrot.slane %v932_v45, 5  ;;  %v5392_v13 = vld [vmem:[#allocation2 + $0x28] sm:$0xf]  ;;  %p6177_p2 = scmp.ne.s32.totalorder %s6175_s0, 0 }
 0x18a   : > { %3892 = vmatprep.subr.bf16.mxu1 %v4327_v29  ;;  %v4349_v29 = vld [vmem:[#allocation11 + $0x1c0] sm:$0xff]   ;;  %v944_v61 = vrot.slane %v942_v51, 5  ;;  %v3609_v1 = vrot.slane %v1180_v46, 9  ;;  %v1221_v2 = vrot.slane %v5373_v40, 5  ;;  %v866_v16 = vld [vmem:[#allocation2 + $0x2c] sm:$0x1] }
 0x18b   : > { %1710 = vmatprep.mubr.bf16.mxu1 %v3599_v25  ;;  %v947_v17 = vshrl.u32 %v5390_v12, 16  ;;  %v950_v18 = vshll.u32 %v5390_v12, 16  ;;  %v5411_v45 = vld [vmem:[#allocation2 + $0x34] sm:$0xf]  ;;  %v4360_v46 = vld [vmem:[#allocation11 + $0x160] sm:$0xff]   ;;  %p4550_p10 = pnand %p4549_p6, %p6177_p2 }
 0x18c   : > { %3829 = vmatpush3.bf16.msra.mxu0 %v4328_v30  ;;  %v905_v30 = vor.u32 %v904_v22, %v901_v21  ;;  %v956_v22 = vshll.u32 %v5392_v13, 16 }
 0x18d   : > { %3893 = vmatpush3.bf16.msra.mxu1 %v4329_v31  ;;  %3830 = vmatprep.subr.bf16.mxu0 %v4330_v32  ;;  %v1214_v31 = vrot.slane %v5356_v0, 5  ;;  %v1217_v32 = vrot.slane %v864_v11, 5  ;;  %v4352_v11 = vld [vmem:[#allocation2 + $0x30] sm:$0xff]   ;;  %v949_v25 = vrot.slane %v947_v17, 4  ;;  %v5428_v17 = vld [vmem:[#allocation2 + $0x3c] sm:$0xf]  ;;  %p4551_p7 = pneg %p4550_p10 }
 0x18e   : > { %3894 = vmatprep.subr.bf16.mxu1 %v4331_v33  ;;  %v915_v33 = vor.u32 %v914_v27, %v910_v26  ;;  %v966_v27 = vshll.u32 %v866_v16, 16 }
 0x18f   : > { %p4558_p0 = pnand %p4557_p11, %p4551_p7 }
 0x190   : > { %3831 = vmatpush3.bf16.msra.mxu0 %v4332_v34  ;;  %v5367_v34 = vld [vmem:[#allocation2 + $0x18] sm:$0xf]  ;;  %v916_v42 = vrot.slane %v915_v33, 4 }
 0x191   : > { %3895 = vmatpush3.bf16.msra.mxu1 %v4333_v35  ;;  %3832 = vmatprep.subr.bf16.mxu0 %v4334_v36  ;;  %v906_v35 = vrot.slane %v905_v30, 4  ;;  %v1215_v36 = vsel %vm5337_vm7, %v3608_v23, %v1214_v31  ;;  %v923_v43 = vshrl.u32 %v5367_v34, 16  ;;  %v926_v44 = vshll.u32 %v5367_v34, 16 }
 0x192   : > { %3896 = vmatprep.subr.bf16.mxu1 %v4335_v37  ;;  %v1216_v37 = vrot.slane %v1214_v31, 4  ;;  %v921_v53 = vsel %vm5344_vm8, %v916_v42, %v920_v28  ;;  %v960_v23 = vshrl.u32 %v5392_v13, 16  ;;  %v4356_v28 = vld [vmem:[#allocation11 + $0x118] sm:$0xff]  }
 0x193   : > { %v911_v47 = vsel %vm5344_vm8, %v906_v35, %v910_v26  ;;  %v925_v55 = vrot.slane %v923_v43, 4  ;;  %v928_v56 = vrot.slane %v926_v44, 5  ;;  %v952_v26 = vrot.slane %v950_v18, 5  ;;  %v4358_v43 = vld [vmem:[#allocation2 + $0x3c] sm:$0xff]   ;;  %v5409_v44 = vld [vmem:[#allocation2 + $0x30] sm:$0xf] }
 0x194   : > { %3833 = vmatpush3.bf16.msra.mxu0 %v4336_v38  ;;  %v3592_v38 = vcombine.low %v5354_v9, %v5356_v0  ;;  %v1218_v48 = vsel %vm5337_vm7, %v1216_v37, %v1217_v32  ;;  %v3600_v57 = vcombine.low %v911_v47, %v921_v53  ;;  %v1223_v9 = vrot.slane %v1221_v2, 4  ;;  %v4354_v0 = vld [vmem:[#allocation11 + $0x158] sm:$0xff]  }
 0x195   : > { %3897 = vmatpush3.bf16.msra.mxu1 %v4337_v39  ;;  %3946 = vmatprep.subr.bf16.mxu0 %v4340_v59  ;;  %v4346_v39 = vld [vmem:[#allocation2 + $0x24] sm:$0xff]   ;;  %v3616_v54 = vcombine.low %v1215_v36, %v1218_v48  ;;  %v938_v59 = vrot.slane %v936_v49, 4  ;;  %v929_v63 = vor.u32 %v928_v56, %v925_v55  ;;  %v962_v30 = vrot.slane %v960_v23, 4  ;;  %v867_v49 = vld [vmem:[#allocation2 + $0x38] sm:$0x1] }
 0x196   : > { %4010 = vmatprep.subr.bf16.mxu1 %v4349_v29  ;;  %v958_v29 = vrot.slane %v956_v22, 5  ;;  %v1228_v32 = vrot.slane %v5392_v13, 5  ;;  %v953_v33 = vor.u32 %v952_v26, %v949_v25  ;;  %v1231_v35 = vrot.slane %v866_v16, 5  ;;  %v4364_v16 = vld [vmem:[#allocation2 + $0x48] sm:$0xff]   ;;  %v4367_v18 = vld [vmem:[#allocation11 + $0x1d8] sm:$0xff]  }
 0x197   : > { %1518 = vmatmul.mubr.bf16.vlgmr.msra.gmra.mrb[0].mxu0 %v3615_v10  ;;  %v939_v5 = vor.u32 %v938_v59, %v934_v58  ;;  %v3593_v10 = vcombine.low %v5367_v34, %v5373_v40  ;;  %v968_v34 = vrot.slane %v966_v27, 5  ;;  %v971_v51 = vshrl.u32 %v5409_v44, 16  ;;  %v4361_v59 = vld [vmem:[#allocation11 + $0x1d0] sm:$0xff]   ;;  %v868_v22 = vld [vmem:[#allocation2 + $0x44] sm:$0x1] }
 0x198   : > { %3947 = vmatpush3.bf16.msra.mxu0 %v4341_v3  ;;  %1525 = vmatprep.mubr.bf16.mxu0 %v4342_v8  ;;  %v1224_v3 = vrot.slane %v865_v41, 5  ;;  %v1222_v8 = vsel %vm5337_vm7, %v3609_v1, %v1221_v2  ;;  %v963_v36 = vor.u32 %v962_v30, %v958_v29  ;;  %v954_v40 = vrot.slane %v953_v33, 4  ;;  %v4362_v2 = vld [vmem:[#allocation11 + $0x120] sm:$0xff]   ;;  %v4368_v30 = vld [vmem:[#allocation11 + $0x128] sm:$0xff]  }
 0x199   : > { %3948 = vmatprep.subr.bf16.mxu0 %v4344_v14  ;;  %1711 = vmatmul.mubr.bf16.vlgmr.msra.gmra.mrb[0].mxu1 %v3591_v6  ;;  %v930_v6 = vrot.slane %v929_v63, 4  ;;  %v940_v7 = vrot.slane %v939_v5, 4  ;;  %v4355_v14 = vld [vmem:[#allocation11 + $0x1c8] sm:$0xff]   ;;  %v974_v53 = vshll.u32 %v5409_v44, 16  ;;  %v980_v56 = vshll.u32 %v5411_v45, 16 }
 0x19a   : > { %1718 = vmatprep.mubr.bf16.mxu1 %v3600_v57  ;;  %4011 = vmatpush3.bf16.msra.mxu1 %v4351_v4  ;;  %v1225_v50 = vsel %vm5337_vm7, %v1223_v9, %v1224_v3  ;;  %v964_v41 = vrot.slane %v963_v36, 4  ;;  %v959_v47 = vsel %vm5344_vm8, %v954_v40, %v958_v29  ;;  %v984_v57 = vshrl.u32 %v5411_v45, 16  ;;  %v1183_v29 = vld [vmem:[#allocation2 + $0x3c] sm:$0xe] }
 0x19b   : > { %v935_v15 = vsel %vm5344_vm8, %v930_v6, %v934_v58  ;;  %v945_v20 = vsel %vm5344_vm8, %v940_v7, %v944_v61  ;;  %v3617_v21 = vcombine.low %v1222_v8, %v1225_v50  ;;  %4012 = vmatprep.subr.bf16.mxu1 %v4355_v14  ;;  %v990_v58 = vshll.u32 %v867_v49, 16 }
 0x19c   : > { %3949 = vmatpush3.bf16.msra.mxu0 %v4345_v19  ;;  %v1181_v19 = vld [vmem:[#allocation2 + $0x24] sm:$0xe]  ;;  %v969_v55 = vsel %vm5344_vm8, %v964_v41, %v968_v34  ;;  %v976_v63 = vrot.slane %v974_v53, 5  ;;  %v3594_v3 = vcombine.low %v5390_v12, %v5392_v13  ;;  %v982_v4 = vrot.slane %v980_v56, 5  ;;  %v4370_v53 = vld [vmem:[#allocation2 + $0x54] sm:$0xff]  }
 0x19d   : > { %3950 = vmatprep.subr.bf16.mxu0 %v4348_v24  ;;  %v3601_v24 = vcombine.low %v935_v15, %v945_v20  ;;  %v3610_v31 = vrot.slane %v1181_v19, 9  ;;  %v3602_v61 = vcombine.low %v959_v47, %v969_v55  ;;  %v986_v5 = vrot.slane %v984_v57, 4  ;;  %v4366_v12 = vld [vmem:[#allocation11 + $0x168] sm:$0xff]  }
 0x19e   : > { %v1235_v6 = vrot.slane %v5411_v45, 5  ;;  %v1238_v9 = vrot.slane %v867_v49, 5  ;;  %v995_v23 = vshrl.u32 %v5428_v17, 16  ;;  %v3612_v34 = vrot.slane %v1183_v29, 9 }
 0x19f   : > { %1526 = vmatmul.mubr.bf16.gmra.mrb[4].mxu0 %v3616_v54  ;;  %v1229_v37 = vsel %vm5337_vm7, %v3610_v31, %v1228_v32  ;;  %v1182_v54 = vld [vmem:[#allocation2 + $0x30] sm:$0xe]  ;;  %v987_v7 = vor.u32 %v986_v5, %v982_v4  ;;  %v3595_v36 = vcombine.low %v5409_v44, %v5411_v45  ;;  %v4373_v44 = vld [vmem:[#allocation11 + $0x1e0] sm:$0xff]  }
 0x1a0   : > { %1533 = vmatprep.mubr.bf16.mxu0 %v4346_v39  ;;  %3951 = vmatpush3.bf16.msra.mxu0 %v4350_v62  ;;  %v4357_v39 = vld [vmem:[#allocation11 + $0x188] sm:$0xff]   ;;  %v973_v62 = vrot.slane %v971_v51, 4  ;;  %v3611_v1 = vrot.slane %v1182_v54, 9  ;;  %v1237_v14 = vrot.slane %v1235_v6, 4  ;;  %v4374_v54 = vld [vmem:[#allocation11 + $0x130] sm:$0xff]  }
 0x1a1   : > { %1719 = vmatmul.mubr.bf16.gmra.mrb[4].mxu1 %v3592_v38  ;;  %3952 = vmatprep.subr.bf16.mxu0 %v4354_v0  ;;  %v1230_v38 = vrot.slane %v1228_v32, 4  ;;  %v4363_v0 = vld [vmem:[#allocation11 + $0x190] sm:$0xff]   ;;  %v988_v13 = vrot.slane %v987_v7, 4  ;;  %v997_v32 = vrot.slane %v995_v23, 4  ;;  %v4380_v23 = vld [vmem:[#allocation11 + $0x178] sm:$0xff]  }
 0x1a2   : > { %1726 = vmatprep.mubr.bf16.mxu1 %v3601_v24  ;;  %4013 = vmatpush3.bf16.msra.mxu1 %v4357_v39  ;;  %v977_v8 = vor.u32 %v976_v63, %v973_v62  ;;  %v1239_v50 = vsel %vm5337_vm7, %v1237_v14, %v1238_v9  ;;  %v998_v24 = vshll.u32 %v5428_v17, 16 }
 0x1a3   : > { %v1232_v42 = vsel %vm5337_vm7, %v1230_v38, %v1231_v35  ;;  %4014 = vmatprep.subr.bf16.mxu1 %v4361_v59  ;;  %v4369_v35 = vld [vmem:[#allocation11 + $0x198] sm:$0xff]   ;;  %v5453_v59 = vld [vmem:[#allocation2 + $0x4c] sm:$0xf] }
 0x1a4   : > { %3953 = vmatpush3.bf16.msra.mxu0 %v4356_v28  ;;  %v3618_v48 = vcombine.low %v1229_v37, %v1232_v42  ;;  %v978_v15 = vrot.slane %v977_v8, 4  ;;  %v1014_v28 = vshll.u32 %v868_v22, 16  ;;  %v1000_v33 = vrot.slane %v998_v24, 5 }
 0x1a5   : > { %3954 = vmatprep.subr.bf16.mxu0 %v4360_v46  ;;  %v1245_v42 = vrot.slane %v868_v22, 5  ;;  %v1249_v14 = vrot.slane %v5453_v59, 5  ;;  %v4378_v22 = vld [vmem:[#allocation2 + $0x60] sm:$0xff]  }
 0x1a6   : > { %4015 = vmatpush3.bf16.msra.mxu1 %v4363_v0  ;;  %v983_v19 = vsel %vm5344_vm8, %v978_v15, %v982_v4  ;;  %v1001_v40 = vor.u32 %v1000_v33, %v997_v32  ;;  %v1016_v41 = vrot.slane %v1014_v28, 5  ;;  %v4375_v4 = vld [vmem:[#allocation11 + $0x1a0] sm:$0xff]   ;;  %v4376_v0 = vld [vmem:[#allocation11 + $0x1e8] sm:$0xff]   ;;  %v5468_v28 = vld [vmem:[#allocation2 + $0x54] sm:$0xf] }
 0x1a7   : > { %1534 = vmatmul.mubr.bf16.gmra.mrb[8].mxu0 %v3617_v21  ;;  %v5432_v21 = vld [vmem:[#allocation2 + $0x40] sm:$0xf]  ;;  %4016 = vmatprep.subr.bf16.mxu1 %v4367_v18  ;;  %v1251_v18 = vrot.slane %v1249_v14, 4  ;;  %v870_v32 = vld [vmem:[#allocation2 + $0x5c] sm:$0x1]  ;;  %v1043_v33 = vshrl.u32 %v5468_v28, 16 }
 0x1a8   : > { %1541 = vmatprep.mubr.bf16.mxu0 %v4352_v11  ;;  %v1236_v11 = vsel %vm5337_vm7, %v3611_v1, %v1235_v6  ;;  %3955 = vmatpush3.bf16.msra.mxu0 %v4362_v2  ;;  %v1004_v26 = vshll.u32 %v5432_v21, 16  ;;  %v1008_v27 = vshrl.u32 %v5432_v21, 16  ;;  %v1242_v39 = vrot.slane %v5432_v21, 5 }
 0x1a9   : > { %1727 = vmatmul.mubr.bf16.gmra.mrb[8].mxu1 %v3593_v10  ;;  %v992_v10 = vrot.slane %v990_v58, 5  ;;  %v3619_v20 = vcombine.low %v1236_v11, %v1239_v50  ;;  %3956 = vmatprep.subr.bf16.mxu0 %v4366_v12  ;;  %v1002_v49 = vrot.slane %v1001_v40, 4  ;;  %v3596_v57 = vcombine.low %v5428_v17, %v5432_v21  ;;  %v5451_v58 = vld [vmem:[#allocation2 + $0x48] sm:$0xf]  ;;  %v4382_v40 = vld [vmem:[#allocation11 + $0x138] sm:$0xff]  }
 0x1aa   : > { %1734 = vmatprep.mubr.bf16.mxu1 %v3602_v61  ;;  %v1006_v37 = vrot.slane %v1004_v26, 5  ;;  %v1010_v38 = vrot.slane %v1008_v27, 4  ;;  %v1243_v46 = vsel %vm5337_vm7, %v3612_v34, %v1242_v39  ;;  %v1244_v47 = vrot.slane %v1242_v39, 4  ;;  %4017 = vmatpush3.bf16.msra.mxu1 %v4369_v35  ;;  %v869_v61 = vld [vmem:[#allocation2 + $0x50] sm:$0x1] }
 0x1ab   : > { %v993_v25 = vsel %vm5344_vm8, %v988_v13, %v992_v10  ;;  %4018 = vmatprep.subr.bf16.mxu1 %v4373_v44  ;;  %v1019_v63 = vshrl.u32 %v5451_v58, 16  ;;  %v1022_v1 = vshll.u32 %v5451_v58, 16  ;;  %v1028_v2 = vshll.u32 %v5453_v59, 16  ;;  %v4377_v13 = vld [vmem:[#allocation11 + $0x1a8] sm:$0xff]   ;;  %v4381_v26 = vld [vmem:[#allocation11 + $0x1f0] sm:$0xff]  }
 0x1ac   : > { %v3603_v31 = vcombine.low %v983_v19, %v993_v25  ;;  %3957 = vmatpush3.bf16.msra.mxu0 %v4368_v30  ;;  %v1246_v51 = vsel %vm5337_vm7, %v1244_v47, %v1245_v42  ;;  %v1007_v55 = vsel %vm5344_vm8, %v1002_v49, %v1006_v37  ;;  %v1032_v6 = vshrl.u32 %v5453_v59, 16  ;;  %v1185_v39 = vld [vmem:[#allocation2 + $0x54] sm:$0xe] }
 0x1ad   : > { %v3620_v56 = vcombine.low %v1243_v46, %v1246_v51  ;;  %v1038_v8 = vshll.u32 %v869_v61, 16  ;;  %v1021_v7 = vrot.slane %v1019_v63, 4  ;;  %v1024_v10 = vrot.slane %v1022_v1, 5 }
 0x1ae   : > { %v1030_v11 = vrot.slane %v1028_v2, 5  ;;  %4019 = vmatpush3.bf16.msra.mxu1 %v4375_v4  ;;  %v1034_v15 = vrot.slane %v1032_v6, 4  ;;  %v1252_v12 = vrot.slane %v869_v61, 5  ;;  %v3597_v30 = vcombine.low %v5451_v58, %v5453_v59  ;;  %v4384_v58 = vld [vmem:[#allocation11 + $0x1f8] sm:$0xff]  }
 0x1af   : > { %1542 = vmatmul.mubr.bf16.gmra.mrb[12].mxu0 %v3618_v48  ;;  %v4372_v48 = vld [vmem:[#allocation11 + $0x170] sm:$0xff]   ;;  %v1025_v50 = vor.u32 %v1024_v10, %v1021_v7  ;;  %4020 = vmatprep.subr.bf16.mxu1 %v4376_v0  ;;  %v1046_v34 = vshll.u32 %v5468_v28, 16  ;;  %v1259_v44 = vrot.slane %v870_v32, 5  ;;  %v5491_v0 = vld [vmem:[#allocation11 + $0x200] sm:$0xff]  }
 0x1b0   : > { %1549 = vmatprep.mubr.bf16.mxu0 %v4358_v43  ;;  %v1011_v43 = vor.u32 %v1010_v38, %v1006_v37  ;;  %3958 = vmatprep.subr.bf16.mxu0 %v4372_v48  ;;  %v1035_v19 = vor.u32 %v1034_v15, %v1030_v11  ;;  %v1253_v21 = vsel %vm5337_vm7, %v1251_v18, %v1252_v12  ;;  %v1062_v38 = vshll.u32 %v870_v32, 16  ;;  %v1776_v2 = vld [vmem:[#allocation2 + $0x10] sm:$0xf]  ;;  %v5493_v15 = vld [vmem:[#allocation2 + $0x18] sm:$0xf] }
 0x1b1   : > { %1735 = vmatmul.mubr.bf16.gmra.mrb[12].mxu1 %v3594_v3  ;;  %v1184_v3 = vld [vmem:[#allocation2 + $0x48] sm:$0xe]  ;;  %3959 = vmatpush3.bf16.msra.mxu0 %v4374_v54  ;;  %v1048_v42 = vrot.slane %v1046_v34, 5  ;;  %v1813_v6 = vshrl.u32 %v1776_v2, 16 }
 0x1b2   : > { %1742 = vmatprep.mubr.bf16.mxu1 %v3603_v31  ;;  %v1012_v45 = vrot.slane %v1011_v43, 4  ;;  %v3613_v9 = vrot.slane %v1184_v3, 9  ;;  %v1036_v24 = vrot.slane %v1035_v19, 4  ;;  %4021 = vmatpush3.bf16.msra.mxu1 %v4377_v13  ;;  %v5474_v31 = vld [vmem:[#allocation2 + $0x58] sm:$0xf]  ;;  %v3614_v43 = vrot.slane %v1185_v39, 9 }
 0x1b3   : > { %3960 = vmatprep.subr.bf16.mxu0 %v4380_v23  ;;  %4022 = vmatprep.subr.bf16.mxu1 %v4381_v26  ;;  %v1056_v37 = vshrl.u32 %v5474_v31, 16  ;;  %v1256_v46 = vrot.slane %v5474_v31, 5  ;;  %v1064_v49 = vrot.slane %v1062_v38, 5  ;;  %v4383_v54 = vld [vmem:[#allocation11 + $0x1b0] sm:$0xff]   ;;  %v3598_v1 = vcombine.low %v5468_v28, %v5474_v31  ;;  %v1777_v3 = vld [vmem:[#allocation2 + $0x14] sm:$0x1] }
 0x1b4   : > { %v1017_v62 = vsel %vm5344_vm8, %v1012_v45, %v1016_v41  ;;  %v1250_v17 = vsel %vm5337_vm7, %v3613_v9, %v1249_v14  ;;  %v1045_v41 = vrot.slane %v1043_v33, 4  ;;  %v1991_v9 = vld [vmem:[#allocation2 + $0xc] sm:$0xe]  ;;  %v2028_v14 = vrot.slane %v1777_v3, 5 }
 0x1b5   : > { %v3604_v5 = vcombine.low %v1007_v55, %v1017_v62  ;;  %v3621_v25 = vcombine.low %v1250_v17, %v1253_v21  ;;  %v1058_v48 = vrot.slane %v1056_v37, 4  ;;  %v1257_v51 = vsel %vm5337_vm7, %v3614_v43, %v1256_v46  ;;  %3961 = vmatpush3.bf16.msra.mxu0 %v4382_v40  ;;  %v4385_v62 = vld [vmem:[#allocation11 + $0x1b8] sm:$0xff]   ;;  %v5517_v40 = vld [vmem:[#allocation2 + $0x1c] sm:$0xf] }
 0x1b6   : > { %v1049_v45 = vor.u32 %v1048_v42, %v1045_v41  ;;  %4023 = vmatpush3.bf16.msra.mxu1 %v4383_v54  ;;  %v3663_v10 = vrot.slane %v1991_v9, 9  ;;  %v1815_v13 = vrot.slane %v1813_v6, 4  ;;  %v2410_v17 = vshrl.u32 %v5493_v15, 16  ;;  %4090 = vmatprep.subr.bf16.mxu0 %v5491_v0  ;;  %v5519_v41 = vld [vmem:[#allocation2 + $0x20] sm:$0x1] }
 0x1b7   : > { %1550 = vmatmul.mubr.bf16.gmra.mrb[16].mxu0 %v3619_v20  ;;  %v1026_v20 = vrot.slane %v1025_v50, 4  ;;  %4024 = vmatprep.subr.bf16.mxu1 %v4384_v58  ;;  %v2413_v21 = vshll.u32 %v5493_v15, 16 }
 0x1b8   : > { %1557 = vmatprep.mubr.bf16.mxu0 %v4364_v16  ;;  %v1040_v16 = vrot.slane %v1038_v8, 5  ;;  %v1819_v8 = vshll.u32 %v1777_v3, 16 }
 0x1b9   : > { %1743 = vmatmul.mubr.bf16.gmra.mrb[16].mxu1 %v3595_v36  ;;  %v1031_v27 = vsel %vm5344_vm8, %v1026_v20, %v1030_v11  ;;  %v1052_v36 = vshll.u32 %v5474_v31, 16  ;;  %v2025_v11 = vrot.slane %v1776_v2, 5  ;;  %v5506_v20 = vld [vmem:[#allocation2 + $0x20] sm:$0x1] }
 0x1ba   : > { %1750 = vmatprep.mubr.bf16.mxu1 %v3604_v5  ;;  %v1041_v29 = vsel %vm5344_vm8, %v1036_v24, %v1040_v16  ;;  %v1809_v5 = vshll.u32 %v1776_v2, 16  ;;  %4025 = vmatpush3.bf16.msra.mxu1 %v4385_v62  ;;  %v5497_v50 = vrot.slane %v1819_v8, 5  ;;  %v5499_v16 = vld [vmem:[#allocation2 + $0x1c] sm:$0xf]  ;;  %v2412_v24 = vrot.slane %v2410_v17, 4 }
 0x1bb   : > { %v3605_v35 = vcombine.low %v1031_v27, %v1041_v29  ;;  %v1054_v47 = vrot.slane %v1052_v36, 5  ;;  %4122 = vmatprep.subr.bf16.mxu1 %v5491_v0  ;;  %v2026_v18 = vsel %vm5337_vm7, %v3663_v10, %v2025_v11  ;;  %v2027_v19 = vrot.slane %v2025_v11, 4  ;;  %v1775_v27 = vld [vmem:[#allocation2 + $0xc] sm:$0xf]  ;;  %v1778_v2 = vld [vmem:[#allocation2 + $0x18] sm:$0xf] }
 0x1bc   : > { %v5495_v12 = vrot.slane %v1809_v5, 5  ;;  %v2429_v26 = vshll.u32 %v5506_v20, 16  ;;  %v2415_v29 = vrot.slane %v2413_v21, 5  ;;  %v1800_v31 = vshrl.u32 %v1775_v27, 16 }
 0x1bd   : > { %v1059_v55 = vor.u32 %v1058_v48, %v1054_v47  ;;  %v2029_v28 = vsel %vm5337_vm7, %v2027_v19, %v2028_v14  ;;  %v1803_v38 = vshll.u32 %v1775_v27, 16  ;;  %v3703_v39 = vcombine.low %v5493_v15, %v5499_v16  ;;  %v5550_v27 = vld [vmem:[#allocation2 + $0x28] sm:$0xf] }
 0x1be   : > { %v1816_v23 = vor.u32 %v1815_v13, %v5495_v12  ;;  %v3679_v33 = vcombine.low %v2026_v18, %v2029_v28  ;;  %v2416_v36 = vor.u32 %v2415_v29, %v2412_v24  ;;  %v1802_v37 = vrot.slane %v1800_v31, 4  ;;  %v5552_v28 = vld [vmem:[#allocation2 + $0x2c] sm:$0x1] }
 0x1bf   : > { %1558 = vmatmul.mubr.bf16.gmra.mrb[20].mxu0 %v3620_v56  ;;  %v1050_v56 = vrot.slane %v1049_v45, 4  ;;  %v1060_v59 = vrot.slane %v1059_v55, 4  ;;  %v2035_v48 = vrot.slane %v5519_v41, 5  ;;  %v1805_v45 = vrot.slane %v1803_v38, 5 }
 0x1c0   : > { %1565 = vmatprep.mubr.bf16.mxu0 %v4370_v53  ;;  %v1258_v53 = vrot.slane %v1256_v46, 4  ;;  %v1817_v32 = vrot.slane %v1816_v23, 4  ;;  %v1992_v46 = vld [vmem:[#allocation2 + $0x18] sm:$0xe]  ;;  %v1824_v13 = vshrl.u32 %v1778_v2, 16  ;;  %v1827_v19 = vshll.u32 %v1778_v2, 16 }
 0x1c1   : > { %1751 = vmatmul.mubr.bf16.gmra.mrb[20].mxu1 %v3596_v57  ;;  %v1055_v63 = vsel %vm5344_vm8, %v1050_v56, %v1054_v47  ;;  %v1065_v4 = vsel %vm5344_vm8, %v1060_v59, %v1064_v49  ;;  %v2032_v47 = vrot.slane %v5517_v40, 5  ;;  %v5526_v49 = vld [vmem:[#allocation2 + $0x24] sm:$0xf]  ;;  %v1806_v62 = vor.u32 %v1805_v45, %v1802_v37  ;;  %v4393_v2 = vld [vmem:[#allocation11 + $0x218] sm:$0xff]  }
 0x1c2   : > { %1758 = vmatprep.mubr.bf16.mxu1 %v3605_v35  ;;  %v1260_v57 = vsel %vm5337_vm7, %v1258_v53, %v1259_v44  ;;  %v3606_v7 = vcombine.low %v1055_v63, %v1065_v4  ;;  %v2431_v35 = vrot.slane %v2429_v26, 5  ;;  %v1822_v43 = vsel %vm5344_vm8, %v1817_v32, %v5497_v50  ;;  %v5528_v53 = vld [vmem:[#allocation2 + $0x28] sm:$0xf] }
 0x1c3   : > { %v3622_v61 = vcombine.low %v1257_v51, %v1260_v57  ;;  %v2417_v44 = vrot.slane %v2416_v36, 4  ;;  %v3664_v51 = vrot.slane %v1992_v46, 9  ;;  %v2434_v54 = vshrl.u32 %v5526_v49, 16  ;;  %v5531_v57 = vld [vmem:[#allocation2 + $0x2c] sm:$0x1]  ;;  %v4389_v50 = vld [vmem:[#allocation11 + $0x208] sm:$0xff]  }
 0x1c4   : > { %v2034_v56 = vrot.slane %v2032_v47, 4  ;;  %v2437_v58 = vshll.u32 %v5526_v49, 16  ;;  %v2443_v59 = vshll.u32 %v5528_v53, 16  ;;  %v1807_v9 = vrot.slane %v1806_v62, 4 }
 0x1c5   : > { %v2033_v63 = vsel %vm5337_vm7, %v3664_v51, %v2032_v47  ;;  %v2447_v10 = vshrl.u32 %v5528_v53, 16  ;;  %v2453_v14 = vshll.u32 %v5531_v57, 16  ;;  %v2958_v15 = vrot.slane %v5531_v57, 5  ;;  %v5566_v47 = vld [vmem:[#allocation2 + $0x34] sm:$0xf] }
 0x1c6   : > { %v2036_v4 = vsel %vm5337_vm7, %v2034_v56, %v2035_v48  ;;  %v2439_v5 = vrot.slane %v2437_v58, 5  ;;  %v2445_v6 = vrot.slane %v2443_v59, 5  ;;  %v1812_v17 = vsel %vm5344_vm8, %v1807_v9, %v5495_v12  ;;  %v5555_v12 = vld [vmem:[#allocation2 + $0x30] sm:$0xf]  ;;  %v5574_v51 = vld [vmem:[#allocation2 + $0x38] sm:$0x1] }
 0x1c7   : > { %1566 = vmatmul.mubr.bf16.gmra.mrb[24].mxu0 %v3621_v25  ;;  %v2423_v25 = vshrl.u32 %v5499_v16, 16  ;;  %v2449_v18 = vrot.slane %v2447_v10, 4  ;;  %v1833_v21 = vshll.u32 %v5517_v40, 16  ;;  %v3671_v23 = vcombine.low %v1812_v17, %v1822_v43 }
 0x1c8   : > { %1573 = vmatprep.mubr.bf16.mxu0 %v4378_v22  ;;  %v2419_v22 = vshll.u32 %v5499_v16, 16  ;;  %v1826_v26 = vrot.slane %v1824_v13, 4  ;;  %v1837_v32 = vshrl.u32 %v5517_v40, 16  ;;  %v3704_v36 = vcombine.low %v5526_v49, %v5528_v53 }
 0x1c9   : > { %1759 = vmatmul.mubr.bf16.gmra.mrb[24].mxu1 %v3597_v30  ;;  %v2425_v34 = vrot.slane %v2423_v25, 4  ;;  %v2455_v25 = vrot.slane %v2453_v14, 5  ;;  %v2450_v29 = vor.u32 %v2449_v18, %v2445_v6  ;;  %v1835_v31 = vrot.slane %v1833_v21, 5  ;;  %v5585_v18 = vld [vmem:[#allocation2 + $0x38] sm:$0x1] }
 0x1ca   : > { %1766 = vmatprep.mubr.bf16.mxu1 %v3606_v7  ;;  %v2421_v30 = vrot.slane %v2419_v22, 5  ;;  %v3680_v7 = vcombine.low %v2033_v63, %v2036_v4  ;;  %v1993_v22 = vld [vmem:[#allocation2 + $0x24] sm:$0xe]  ;;  %v1839_v40 = vrot.slane %v1837_v32, 4  ;;  %v2042_v46 = vrot.slane %v5552_v28, 5 }
 0x1cb   : > { %v3665_v37 = vrot.slane %v1993_v22, 9  ;;  %v2451_v38 = vrot.slane %v2450_v29, 4  ;;  %v2461_v48 = vshll.u32 %v5555_v12, 16  ;;  %v2467_v63 = vshll.u32 %v5566_v47, 16 }
 0x1cc   : > { %v2426_v42 = vor.u32 %v2425_v34, %v2421_v30  ;;  %v1857_v22 = vshll.u32 %v5550_v27, 16  ;;  %v1867_v29 = vshll.u32 %v5552_v28, 16  ;;  %v2049_v28 = vrot.slane %v5585_v18, 5 }
 0x1cd   : > { %v2456_v49 = vsel %vm5344_vm8, %v2451_v38, %v2455_v25  ;;  %v2463_v59 = vrot.slane %v2461_v48, 5  ;;  %v4395_v25 = vld [vmem:[#allocation11 + $0x220] sm:$0xff]  }
 0x1ce   : > { %v2427_v55 = vrot.slane %v2426_v42, 4  ;;  %v2039_v42 = vrot.slane %v5550_v27, 5  ;;  %v1869_v38 = vrot.slane %v1867_v29, 5 }
 0x1cf   : > { %1574 = vmatmul.mubr.bf16.gmra.mrb[28].mxu0 %v3622_v61  ;;  %v2422_v61 = vsel %vm5344_vm8, %v2417_v44, %v2421_v30  ;;  %v1829_v30 = vrot.slane %v1827_v19, 5  ;;  %v1840_v44 = vor.u32 %v1839_v40, %v1835_v31  ;;  %v1784_v40 = vld [vmem:[#allocation2 + $0x30] sm:$0xf] }
 0x1d0   : > { %2303 = vmatprep.mubr.bf16.mxu0 %v3679_v33  ;;  %v2432_v3 = vsel %vm5344_vm8, %v2427_v55, %v2431_v35  ;;  %v4391_v33 = vld [vmem:[#allocation11 + $0x210] sm:$0xff]   ;;  %v1843_v35 = vshll.u32 %v5519_v41, 16  ;;  %v2458_v41 = vshrl.u32 %v5555_v12, 16  ;;  %v2040_v45 = vsel %vm5337_vm7, %v3665_v37, %v2039_v42  ;;  %v5600_v37 = vld [vmem:[#allocation2 + $0x44] sm:$0x1] }
 0x1d1   : > { %1767 = vmatmul.mubr.bf16.gmra.mrb[28].mxu1 %v3598_v1  ;;  %v2436_v1 = vrot.slane %v2434_v54, 4  ;;  %v3711_v8 = vcombine.low %v2422_v61, %v2432_v3  ;;  %v1781_v54 = vld [vmem:[#allocation2 + $0x24] sm:$0xf]  ;;  %v2041_v56 = vrot.slane %v2039_v42, 4  ;;  %v1841_v62 = vrot.slane %v1840_v44, 4 }
 0x1d2   : > { %v1845_v43 = vrot.slane %v1843_v35, 5  ;;  %v2460_v58 = vrot.slane %v2458_v41, 4  ;;  %v1851_v21 = vshll.u32 %v1781_v54, 16  ;;  %v1859_v35 = vrot.slane %v1857_v22, 5 }
 0x1d3   : > { %v2440_v11 = vor.u32 %v2439_v5, %v2436_v1  ;;  %2841 = vmatprep.mubr.bf16.mxu1 %v3711_v8  ;;  %v2471_v1 = vshrl.u32 %v5566_v47, 16  ;;  %v2043_v3 = vsel %vm5337_vm7, %v2041_v56, %v2042_v46  ;;  %v2477_v5 = vshll.u32 %v5574_v51, 16 }
 0x1d4   : > { %v2464_v4 = vor.u32 %v2463_v59, %v2460_v58  ;;  %v1846_v8 = vsel %vm5344_vm8, %v1841_v62, %v1845_v43  ;;  %v3681_v9 = vcombine.low %v2040_v45, %v2043_v3  ;;  %v4397_v45 = vld [vmem:[#allocation11 + $0x228] sm:$0xff]   ;;  %v2501_v62 = vshll.u32 %v5600_v37, 16 }
 0x1d5   : > { %v2441_v24 = vrot.slane %v2440_v11, 4  ;;  %v2473_v10 = vrot.slane %v2471_v1, 4  ;;  %v1994_v11 = vld [vmem:[#allocation2 + $0x30] sm:$0xe] }
 0x1d6   : > { %v2465_v13 = vrot.slane %v2464_v4, 4  ;;  %v3666_v32 = vrot.slane %v1994_v11, 9 }
 0x1d7   : > { %2304 = vmatmul.mubr.bf16.vlgmr.msra.gmra.mrb[32].mxu0 %v3671_v23  ;;  %v2446_v34 = vsel %vm5344_vm8, %v2441_v24, %v2445_v6  ;;  %v1848_v6 = vshrl.u32 %v1781_v54, 16  ;;  %v1861_v23 = vshrl.u32 %v5550_v27, 16  ;;  %v5589_v24 = vld [vmem:[#allocation2 + $0x3c] sm:$0xf] }
 0x1d8   : > { %4091 = vmatpush3.bf16.msra.mxu0 %v5491_v0  ;;  %2311 = vmatprep.mubr.bf16.mxu0 %v3680_v7  ;;  %v3712_v55 = vcombine.low %v2446_v34, %v2456_v49  ;;  %v2469_v7 = vrot.slane %v2467_v63, 5  ;;  %v5598_v34 = vld [vmem:[#allocation2 + $0x40] sm:$0xf]  ;;  %v2485_v41 = vshll.u32 %v5589_v24, 16  ;;  %v1872_v63 = vshrl.u32 %v1784_v40, 16 }
 0x1d9   : > { %2842 = vmatmul.mubr.bf16.vlgmr.msra.gmra.mrb[32].mxu1 %v3703_v39  ;;  %v1830_v39 = vor.u32 %v1829_v30, %v1826_v26  ;;  %4092 = vmatprep.subr.bf16.mxu0 %v4389_v50  ;;  %v1850_v17 = vrot.slane %v1848_v6, 4  ;;  %v3705_v30 = vcombine.low %v5555_v12, %v5566_v47  ;;  %v2482_v12 = vshrl.u32 %v5589_v24, 16  ;;  %v4399_v6 = vld [vmem:[#allocation11 + $0x230] sm:$0xff]  }
 0x1da   : > { %4130 = vmatpush3.bf16.msra.mxu1 %v5491_v0  ;;  %2849 = vmatprep.mubr.bf16.mxu1 %v3712_v55  ;;  %v2474_v19 = vor.u32 %v2473_v10, %v2469_v7  ;;  %v2470_v26 = vsel %vm5344_vm8, %v2465_v13, %v2469_v7  ;;  %v2487_v56 = vrot.slane %v2485_v41, 5  ;;  %v2491_v58 = vshll.u32 %v5598_v34, 16  ;;  %v5642_v41 = vld [vmem:[#allocation2 + $0x50] sm:$0x1] }
 0x1db   : > { %4123 = vmatprep.subr.bf16.mxu1 %v4389_v50  ;;  %v1831_v0 = vrot.slane %v1830_v39, 4  ;;  %v2484_v44 = vrot.slane %v2482_v12, 4  ;;  %v2503_v10 = vrot.slane %v2501_v62, 5  ;;  %v1875_v13 = vshll.u32 %v1784_v40, 16 }
 0x1dc   : > { %4093 = vmatpush3.bf16.msra.mxu0 %v4389_v50  ;;  %v2475_v27 = vrot.slane %v2474_v19, 4  ;;  %v3706_v22 = vcombine.low %v5589_v24, %v5598_v34 }
 0x1dd   : > { %v1836_v61 = vsel %vm5344_vm8, %v1831_v0, %v1835_v31  ;;  %4094 = vmatprep.subr.bf16.mxu0 %v4391_v33  ;;  %v5596_v31 = vld [vmem:[#allocation2 + $0x34] sm:$0xf]  ;;  %v2488_v4 = vor.u32 %v2487_v56, %v2484_v44  ;;  %v1877_v29 = vrot.slane %v1875_v13, 5 }
 0x1de   : > { %4131 = vmatpush3.bf16.msra.mxu1 %v4389_v50  ;;  %v3672_v14 = vcombine.low %v1836_v61, %v1846_v8  ;;  %v2479_v50 = vrot.slane %v2477_v5, 5  ;;  %v2046_v39 = vrot.slane %v5596_v31, 5  ;;  %v2495_v61 = vshrl.u32 %v5598_v34, 16  ;;  %v1995_v5 = vld [vmem:[#allocation2 + $0x3c] sm:$0xe] }
 0x1df   : > { %4124 = vmatprep.subr.bf16.mxu1 %v4391_v33  ;;  %v2489_v11 = vrot.slane %v2488_v4, 4  ;;  %v1885_v19 = vshrl.u32 %v5596_v31, 16 }
 0x1e0   : > { %4095 = vmatpush3.bf16.msra.mxu0 %v4391_v33  ;;  %v2480_v42 = vsel %vm5344_vm8, %v2475_v27, %v2479_v50  ;;  %v2047_v49 = vsel %vm5337_vm7, %v3666_v32, %v2046_v39  ;;  %v2048_v0 = vrot.slane %v2046_v39, 4  ;;  %v2497_v7 = vrot.slane %v2495_v61, 4  ;;  %v5630_v32 = vld [vmem:[#allocation2 + $0x40] sm:$0xf]  ;;  %v5634_v39 = vld [vmem:[#allocation2 + $0x4c] sm:$0xf] }
 0x1e1   : > { %2850 = vmatmul.mubr.bf16.gmra.mrb[36].mxu1 %v3704_v36  ;;  %2312 = vmatmul.mubr.bf16.gmra.mrb[36].mxu0 %v3672_v14  ;;  %v1863_v36 = vrot.slane %v1861_v23, 4  ;;  %v3713_v48 = vcombine.low %v2470_v26, %v2480_v42  ;;  %v1874_v14 = vrot.slane %v1872_v63, 4  ;;  %v1881_v50 = vshll.u32 %v5596_v31, 16  ;;  %v5624_v23 = vld [vmem:[#allocation2 + $0x44] sm:$0x1]  ;;  %v4401_v31 = vld [vmem:[#allocation11 + $0x238] sm:$0xff]  }
 0x1e2   : > { %4132 = vmatpush3.bf16.msra.mxu1 %v4391_v33  ;;  %4096 = vmatprep.subr.bf16.mxu0 %v4393_v2  ;;  %v1853_v33 = vrot.slane %v1851_v21, 5  ;;  %v2050_v59 = vsel %vm5337_vm7, %v2048_v0, %v2049_v28  ;;  %v1891_v21 = vshll.u32 %v5585_v18, 16  ;;  %v5626_v26 = vld [vmem:[#allocation2 + $0x48] sm:$0xf]  ;;  %v3667_v27 = vrot.slane %v1995_v5, 9 }
 0x1e3   : > { %4125 = vmatprep.subr.bf16.mxu1 %v4393_v2  ;;  %2319 = vmatprep.mubr.bf16.mxu0 %v3681_v9  ;;  %v1864_v46 = vor.u32 %v1863_v36, %v1859_v35  ;;  %v3682_v3 = vcombine.low %v2047_v49, %v2050_v59  ;;  %v2493_v9 = vrot.slane %v2491_v58, 5  ;;  %v2053_v24 = vrot.slane %v5630_v32, 5 }
 0x1e4   : > { %v1854_v43 = vor.u32 %v1853_v33, %v1850_v17  ;;  %4097 = vmatpush3.bf16.msra.mxu0 %v4393_v2  ;;  %2857 = vmatprep.mubr.bf16.mxu1 %v3713_v48  ;;  %v1887_v33 = vrot.slane %v1885_v19, 4  ;;  %v1878_v36 = vor.u32 %v1877_v29, %v1874_v14  ;;  %v2506_v28 = vshrl.u32 %v5626_v26, 16  ;;  %v1787_v48 = vld [vmem:[#allocation2 + $0x3c] sm:$0xf]  ;;  %v5664_v29 = vld [vmem:[#allocation2 + $0x54] sm:$0xf] }
 0x1e5   : > { %4098 = vmatprep.subr.bf16.mxu0 %v4395_v25  ;;  %v1865_v55 = vrot.slane %v1864_v46, 4  ;;  %v2498_v17 = vor.u32 %v2497_v7, %v2493_v9  ;;  %v2509_v12 = vshll.u32 %v5626_v26, 16  ;;  %v2055_v46 = vrot.slane %v2053_v24, 4  ;;  %v1996_v7 = vld [vmem:[#allocation2 + $0x48] sm:$0xe] }
 0x1e6   : > { %4133 = vmatpush3.bf16.msra.mxu1 %v4393_v2  ;;  %v1855_v54 = vrot.slane %v1854_v43, 4  ;;  %v2054_v43 = vsel %vm5337_vm7, %v3667_v27, %v2053_v24  ;;  %v1879_v0 = vrot.slane %v1878_v36, 4  ;;  %v2508_v44 = vrot.slane %v2506_v28, 4 }
 0x1e7   : > { %4126 = vmatprep.subr.bf16.mxu1 %v4395_v25  ;;  %v1870_v2 = vsel %vm5344_vm8, %v1865_v55, %v1869_v38  ;;  %v2499_v18 = vrot.slane %v2498_v17, 4  ;;  %v2056_v38 = vrot.slane %v5624_v23, 5  ;;  %v2515_v56 = vshll.u32 %v5634_v39, 16  ;;  %v5657_v17 = vld [vmem:[#allocation2 + $0x50] sm:$0x1] }
 0x1e8   : > { %v1860_v1 = vsel %vm5344_vm8, %v1855_v54, %v1859_v35  ;;  %4099 = vmatpush3.bf16.msra.mxu0 %v4395_v25  ;;  %v1893_v35 = vrot.slane %v1891_v21, 5  ;;  %v2519_v58 = vshrl.u32 %v5634_v39, 16  ;;  %v2525_v63 = vshll.u32 %v5642_v41, 16 }
 0x1e9   : > { %2858 = vmatmul.mubr.bf16.gmra.mrb[40].mxu1 %v3705_v30  ;;  %v3673_v8 = vcombine.low %v1860_v1, %v1870_v2  ;;  %4100 = vmatprep.subr.bf16.mxu0 %v4397_v45  ;;  %v1883_v30 = vrot.slane %v1881_v50, 5  ;;  %v2504_v40 = vsel %vm5344_vm8, %v2499_v18, %v2503_v10  ;;  %v2057_v55 = vsel %vm5337_vm7, %v2055_v46, %v2056_v38  ;;  %v5655_v50 = vld [vmem:[#allocation2 + $0x4c] sm:$0xf] }
 0x1ea   : > { %4134 = vmatpush3.bf16.msra.mxu1 %v4395_v25  ;;  %v2494_v25 = vsel %vm5344_vm8, %v2489_v11, %v2493_v9  ;;  %v3683_v61 = vcombine.low %v2054_v43, %v2057_v55  ;;  %v2517_v2 = vrot.slane %v2515_v56, 5  ;;  %v1896_v4 = vshrl.u32 %v1787_v48, 16 }
 0x1eb   : > { %4127 = vmatprep.subr.bf16.mxu1 %v4397_v45  ;;  %2320 = vmatmul.mubr.bf16.gmra.mrb[40].mxu0 %v3673_v8  ;;  %v1888_v42 = vor.u32 %v1887_v33, %v1883_v30  ;;  %v3714_v49 = vcombine.low %v2494_v25, %v2504_v40  ;;  %v1884_v59 = vsel %vm5344_vm8, %v1879_v0, %v1883_v30  ;;  %v2527_v9 = vrot.slane %v2525_v63, 5  ;;  %v5666_v30 = vld [vmem:[#allocation2 + $0x58] sm:$0xf] }
 0x1ec   : > { %2327 = vmatprep.mubr.bf16.mxu0 %v3682_v3  ;;  %4101 = vmatpush3.bf16.msra.mxu0 %v4397_v45  ;;  %v2521_v3 = vrot.slane %v2519_v58, 4  ;;  %v1898_v11 = vrot.slane %v1896_v4, 4  ;;  %v1905_v14 = vshll.u32 %v5630_v32, 16  ;;  %v1909_v13 = vshrl.u32 %v5630_v32, 16  ;;  %v1790_v58 = vld [vmem:[#allocation2 + $0x48] sm:$0xf] }
 0x1ed   : > { %4102 = vmatprep.subr.bf16.mxu0 %v4399_v6  ;;  %v1889_v54 = vrot.slane %v1888_v42, 4  ;;  %2865 = vmatprep.mubr.bf16.mxu1 %v3714_v49  ;;  %v3707_v25 = vcombine.low %v5626_v26, %v5634_v39  ;;  %v3668_v33 = vrot.slane %v1996_v7, 9  ;;  %v2060_v24 = vrot.slane %v5655_v50, 5  ;;  %v5672_v26 = vld [vmem:[#allocation2 + $0x5c] sm:$0x1] }
 0x1ee   : > { %4135 = vmatpush3.bf16.msra.mxu1 %v4397_v45  ;;  %v2511_v45 = vrot.slane %v2509_v12, 5  ;;  %v2522_v10 = vor.u32 %v2521_v3, %v2517_v2  ;;  %v1907_v27 = vrot.slane %v1905_v14, 5  ;;  %v1911_v18 = vrot.slane %v1909_v13, 4  ;;  %v1997_v7 = vld [vmem:[#allocation2 + $0x54] sm:$0xe] }
 0x1ef   : > { %4128 = vmatprep.subr.bf16.mxu1 %v4399_v6  ;;  %v1894_v1 = vsel %vm5344_vm8, %v1889_v54, %v1893_v35  ;;  %v2063_v36 = vrot.slane %v5657_v17, 5  ;;  %v2530_v28 = vshrl.u32 %v5664_v29, 16  ;;  %v2533_v12 = vshll.u32 %v5664_v29, 16 }
 0x1f0   : > { %4103 = vmatpush3.bf16.msra.mxu0 %v4399_v6  ;;  %v2512_v62 = vor.u32 %v2511_v45, %v2508_v44  ;;  %v3674_v5 = vcombine.low %v1884_v59, %v1894_v1  ;;  %v2523_v32 = vrot.slane %v2522_v10, 4  ;;  %v1912_v38 = vor.u32 %v1911_v18, %v1907_v27  ;;  %v5699_v18 = vld [vmem:[#allocation2 + $0x64] sm:$0xf] }
 0x1f1   : > { %4104 = vmatprep.subr.bf16.mxu0 %v4401_v31  ;;  %2866 = vmatmul.mubr.bf16.gmra.mrb[44].mxu1 %v3706_v22  ;;  %v1915_v22 = vshll.u32 %v5624_v23, 16  ;;  %v2061_v43 = vsel %vm5337_vm7, %v3668_v33, %v2060_v24  ;;  %v2062_v46 = vrot.slane %v2060_v24, 4  ;;  %v2532_v49 = vrot.slane %v2530_v28, 4 }
 0x1f2   : > { %4136 = vmatpush3.bf16.msra.mxu1 %v4399_v6  ;;  %v2513_v8 = vrot.slane %v2512_v62, 4  ;;  %v1899_v6 = vshll.u32 %v1787_v48, 16  ;;  %v2528_v23 = vsel %vm5344_vm8, %v2523_v32, %v2527_v9  ;;  %v1913_v48 = vrot.slane %v1912_v38, 4 }
 0x1f3   : > { %4129 = vmatprep.subr.bf16.mxu1 %v4401_v31  ;;  %2328 = vmatmul.mubr.bf16.gmra.mrb[44].mxu0 %v3674_v5  ;;  %v1917_v35 = vrot.slane %v1915_v22, 5  ;;  %v2535_v0 = vrot.slane %v2533_v12, 5  ;;  %v2539_v44 = vshll.u32 %v5666_v30, 16  ;;  %v2064_v54 = vsel %vm5337_vm7, %v2062_v46, %v2063_v36  ;;  %v5705_v12 = vld [vmem:[#allocation2 + $0x68] sm:$0x1] }
 0x1f4   : > { %4105 = vmatpush3.bf16.msra.mxu0 %v4401_v31  ;;  %v2518_v19 = vsel %vm5344_vm8, %v2513_v8, %v2517_v2  ;;  %v1901_v21 = vrot.slane %v1899_v6, 5  ;;  %2335 = vmatprep.mubr.bf16.mxu0 %v3683_v61  ;;  %v2543_v55 = vshrl.u32 %v5666_v30, 16  ;;  %v2549_v56 = vshll.u32 %v5672_v26, 16 }
 0x1f5   : > { %v3715_v40 = vcombine.low %v2518_v19, %v2528_v23  ;;  %v1918_v59 = vsel %vm5344_vm8, %v1913_v48, %v1917_v35  ;;  %v3684_v61 = vcombine.low %v2061_v43, %v2064_v54  ;;  %v2536_v62 = vor.u32 %v2535_v0, %v2532_v49  ;;  %v5693_v19 = vld [vmem:[#allocation2 + $0x5c] sm:$0x1]  ;;  %v1793_v0 = vld [vmem:[#allocation2 + $0x54] sm:$0xf] }
 0x1f6   : > { %4137 = vmatpush3.bf16.msra.mxu1 %v4401_v31  ;;  %v1902_v31 = vor.u32 %v1901_v21, %v1898_v11  ;;  %v2541_v63 = vrot.slane %v2539_v44, 5  ;;  %v2545_v2 = vrot.slane %v2543_v55, 4  ;;  %v2551_v3 = vrot.slane %v2549_v56, 5  ;;  %v5695_v21 = vld [vmem:[#allocation2 + $0x60] sm:$0xf] }
 0x1f7   : > { %2873 = vmatprep.mubr.bf16.mxu1 %v3715_v40  ;;  %v2986_v4 = vrot.slane %v5672_v26, 5  ;;  %v2537_v5 = vrot.slane %v2536_v62, 4  ;;  %v1920_v8 = vshrl.u32 %v1790_v58, 16  ;;  %v1923_v9 = vshll.u32 %v1790_v58, 16 }
 0x1f8   : > { %v1903_v42 = vrot.slane %v1902_v31, 4  ;;  %v1929_v6 = vshll.u32 %v5655_v50, 16  ;;  %v2546_v10 = vor.u32 %v2545_v2, %v2541_v63  ;;  %v1933_v11 = vshrl.u32 %v5655_v50, 16 }
 0x1f9   : > { %2874 = vmatmul.mubr.bf16.gmra.mrb[48].mxu1 %v3707_v25  ;;  %v1939_v14 = vshll.u32 %v5657_v17, 16  ;;  %v3708_v13 = vcombine.low %v5664_v29, %v5666_v30  ;;  %v2542_v22 = vsel %vm5344_vm8, %v2537_v5, %v2541_v63  ;;  %v1922_v25 = vrot.slane %v1920_v8, 4  ;;  %v1794_v17 = vld [vmem:[#allocation2 + $0x58] sm:$0xf] }
 0x1fa   : > { %v1908_v45 = vsel %vm5344_vm8, %v1903_v42, %v1907_v27  ;;  %v1925_v32 = vrot.slane %v1923_v9, 5  ;;  %v1931_v27 = vrot.slane %v1929_v6, 5  ;;  %v2547_v33 = vrot.slane %v2546_v10, 4  ;;  %v1998_v6 = vld [vmem:[#allocation2 + $0x60] sm:$0xe] }
 0x1fb   : > { %v3675_v1 = vcombine.low %v1908_v45, %v1918_v59  ;;  %v1935_v50 = vrot.slane %v1933_v11, 4  ;;  %v1941_v31 = vrot.slane %v1939_v14, 5  ;;  %v3669_v35 = vrot.slane %v1997_v7, 9 }
 0x1fc   : > { %v1926_v24 = vor.u32 %v1925_v32, %v1922_v25  ;;  %v2067_v29 = vrot.slane %v1794_v17, 5  ;;  %v2070_v36 = vrot.slane %v5693_v19, 5  ;;  %v2554_v23 = vshrl.u32 %v5695_v21, 16 }
 0x1fd   : > { %2336 = vmatmul.mubr.bf16.gmra.mrb[48].mxu0 %v3675_v1  ;;  %v2552_v38 = vsel %vm5344_vm8, %v2547_v33, %v2551_v3  ;;  %v1936_v28 = vor.u32 %v1935_v50, %v1931_v27  ;;  %v2557_v40 = vshll.u32 %v5695_v21, 16  ;;  %v2563_v42 = vshll.u32 %v5699_v18, 16  ;;  %v5722_v33 = vld [vmem:[#allocation2 + $0x6c] sm:$0xf] }
 0x1fe   : > { %2343 = vmatprep.mubr.bf16.mxu0 %v3684_v61  ;;  %v3716_v43 = vcombine.low %v2542_v22, %v2552_v38  ;;  %v1927_v46 = vrot.slane %v1926_v24, 4  ;;  %v2068_v48 = vsel %vm5337_vm7, %v3669_v35, %v2067_v29  ;;  %v2069_v49 = vrot.slane %v2067_v29, 4  ;;  %v1797_v24 = vld [vmem:[#allocation2 + $0x64] sm:$0xf] }
 0x1ff   : > { %v1937_v44 = vrot.slane %v1936_v28, 4  ;;  %v2556_v45 = vrot.slane %v2554_v23, 4  ;;  %v2559_v54 = vrot.slane %v2557_v40, 5  ;;  %v2565_v55 = vrot.slane %v2563_v42, 5  ;;  %v5726_v40 = vld [vmem:[#allocation2 + $0x70] sm:$0xf] }
 0x200   : > { %2881 = vmatprep.mubr.bf16.mxu1 %v3716_v43  ;;  %v1932_v56 = vsel %vm5344_vm8, %v1927_v46, %v1931_v27  ;;  %v2071_v58 = vsel %vm5337_vm7, %v2069_v49, %v2070_v36  ;;  %v2567_v59 = vshrl.u32 %v5699_v18, 16  ;;  %v2573_v61 = vshll.u32 %v5705_v12, 16  ;;  %v1798_v27 = vld [vmem:[#allocation2 + $0x68] sm:$0x1] }
 0x201   : > { %v1942_v62 = vsel %vm5344_vm8, %v1937_v44, %v1941_v31  ;;  %2882 = vmatmul.mubr.bf16.gmra.mrb[52].mxu1 %v3708_v13  ;;  %v3685_v63 = vcombine.low %v2068_v48, %v2071_v58  ;;  %v2560_v1 = vor.u32 %v2559_v54, %v2556_v45  ;;  %v1944_v2 = vshrl.u32 %v1793_v0, 16 }
 0x202   : > { %v3676_v3 = vcombine.low %v1932_v56, %v1942_v62  ;;  %v2569_v5 = vrot.slane %v2567_v59, 4  ;;  %v2575_v8 = vrot.slane %v2573_v61, 5  ;;  %v1947_v9 = vshll.u32 %v1793_v0, 16  ;;  %v5734_v0 = vld [vmem:[#allocation2 + $0x74] sm:$0x1] }
 0x203   : > { %v2561_v7 = vrot.slane %v2560_v1, 4  ;;  %v1946_v10 = vrot.slane %v1944_v2, 4  ;;  %v1953_v11 = vshll.u32 %v1794_v17, 16  ;;  %v1957_v14 = vshrl.u32 %v1794_v17, 16  ;;  %v1796_v56 = vld [vmem:[#allocation2 + $0x60] sm:$0xf] }
 0x204   : > { %v2570_v22 = vor.u32 %v2569_v5, %v2565_v55  ;;  %v1949_v25 = vrot.slane %v1947_v9, 5  ;;  %v1963_v32 = vshll.u32 %v5693_v19, 16  ;;  %v3709_v13 = vcombine.low %v5695_v21, %v5699_v18 }
 0x205   : > { %2344 = vmatmul.mubr.bf16.gmra.mrb[52].mxu0 %v3676_v3  ;;  %v2566_v50 = vsel %vm5344_vm8, %v2561_v7, %v2565_v55  ;;  %v1955_v31 = vrot.slane %v1953_v11, 5  ;;  %v1959_v35 = vrot.slane %v1957_v14, 4  ;;  %v3670_v29 = vrot.slane %v1998_v6, 9 }
 0x206   : > { %2351 = vmatprep.mubr.bf16.mxu0 %v3685_v63  ;;  %v2571_v17 = vrot.slane %v2570_v22, 4  ;;  %v1950_v36 = vor.u32 %v1949_v25, %v1946_v10  ;;  %v1965_v23 = vrot.slane %v1963_v32, 5  ;;  %v2074_v38 = vrot.slane %v1797_v24, 5  ;;  %v2922_v22 = vld [vmem:[#allocation2 + $0x18] sm:$0xe] }
 0x207   : > { %v1960_v28 = vor.u32 %v1959_v35, %v1955_v31  ;;  %v2077_v19 = vrot.slane %v1798_v27, 5  ;;  %v2578_v21 = vshrl.u32 %v5722_v33, 16  ;;  %v2581_v42 = vshll.u32 %v5722_v33, 16  ;;  %v2926_v35 = vld [vmem:[#allocation2 + $0x48] sm:$0xe] }
 0x208   : > { %v2576_v43 = vsel %vm5344_vm8, %v2571_v17, %v2575_v8  ;;  %v1951_v46 = vrot.slane %v1950_v36, 4  ;;  %v2075_v48 = vsel %vm5337_vm7, %v3670_v29, %v2074_v38  ;;  %v2076_v49 = vrot.slane %v2074_v38, 4 }
 0x209   : > { %v3717_v44 = vcombine.low %v2566_v50, %v2576_v43  ;;  %v1961_v45 = vrot.slane %v1960_v28, 4  ;;  %v2580_v54 = vrot.slane %v2578_v21, 4  ;;  %v2583_v55 = vrot.slane %v2581_v42, 5  ;;  %v2923_v43 = vld [vmem:[#allocation2 + $0x24] sm:$0xe] }
 0x20a   : > { %v1956_v58 = vsel %vm5344_vm8, %v1951_v46, %v1955_v31  ;;  %v2078_v59 = vsel %vm5337_vm7, %v2076_v49, %v2077_v19  ;;  %v2587_v61 = vshll.u32 %v5726_v40, 16  ;;  %v2591_v62 = vshrl.u32 %v5726_v40, 16 }
 0x20b   : > { %2889 = vmatprep.mubr.bf16.mxu1 %v3717_v44  ;;  %v1966_v63 = vsel %vm5344_vm8, %v1961_v45, %v1965_v23  ;;  %v3686_v1 = vcombine.low %v2075_v48, %v2078_v59  ;;  %v2584_v2 = vor.u32 %v2583_v55, %v2580_v54  ;;  %v2597_v3 = vshll.u32 %v5734_v0, 16 }
 0x20c   : > { %v3677_v5 = vcombine.low %v1956_v58, %v1966_v63  ;;  %2890 = vmatmul.mubr.bf16.gmra.mrb[56].mxu1 %v3709_v13  ;;  %v2589_v8 = vrot.slane %v2587_v61, 5  ;;  %v2593_v9 = vrot.slane %v2591_v62, 4  ;;  %v1968_v6 = vshrl.u32 %v1796_v56, 16  ;;  %v2924_v63 = vld [vmem:[#allocation2 + $0x30] sm:$0xe] }
 0x20d   : > { %v2585_v7 = vrot.slane %v2584_v2, 4  ;;  %v2599_v10 = vrot.slane %v2597_v3, 5  ;;  %v1971_v11 = vshll.u32 %v1796_v56, 16  ;;  %v1977_v14 = vshll.u32 %v1797_v24, 16 }
 0x20e   : > { %2352 = vmatmul.mubr.bf16.gmra.mrb[56].mxu0 %v3677_v5  ;;  %v2594_v25 = vor.u32 %v2593_v9, %v2589_v8  ;;  %v1970_v32 = vrot.slane %v1968_v6, 4  ;;  %v1981_v50 = vshrl.u32 %v1797_v24, 16  ;;  %v1987_v31 = vshll.u32 %v1798_v27, 16 }
 0x20f   : > { %2359 = vmatprep.mubr.bf16.mxu0 %v3686_v1  ;;  %v2590_v29 = vsel %vm5344_vm8, %v2585_v7, %v2589_v8  ;;  %v1973_v17 = vrot.slane %v1971_v11, 5  ;;  %v1979_v13 = vrot.slane %v1977_v14, 5  ;;  %v3710_v36 = vcombine.low %v5722_v33, %v5726_v40  ;;  %v2927_v33 = vld [vmem:[#allocation2 + $0x54] sm:$0xe]  ;;  %v2928_v8 = vld [vmem:[#allocation2 + $0x60] sm:$0xe] }
 0x210   : > { %v2595_v23 = vrot.slane %v2594_v25, 4  ;;  %v1983_v38 = vrot.slane %v1981_v50, 4  ;;  %v1989_v28 = vrot.slane %v1987_v31, 5  ;;  %v3735_v19 = vrot.slane %v2922_v22, 9  ;;  %v2925_v50 = vld [vmem:[#allocation2 + $0x3c] sm:$0xe] }
 0x211   : > { %v1974_v21 = vor.u32 %v1973_v17, %v1970_v32  ;;  %v2948_v42 = vrot.slane %v5499_v16, 5  ;;  %v2951_v24 = vrot.slane %v5506_v20, 5  ;;  %v3739_v27 = vrot.slane %v2926_v35, 9 }
 0x212   : > { %v2600_v46 = vsel %vm5344_vm8, %v2595_v23, %v2599_v10  ;;  %v1984_v48 = vor.u32 %v1983_v38, %v1979_v13  ;;  %v2976_v49 = vrot.slane %v5634_v39, 5  ;;  %v2979_v44 = vrot.slane %v5642_v41, 5 }
 0x213   : > { %v3718_v45 = vcombine.low %v2590_v29, %v2600_v46  ;;  %v1975_v54 = vrot.slane %v1974_v21, 4  ;;  %v2949_v55 = vsel %vm5337_vm7, %v3735_v19, %v2948_v42  ;;  %v2950_v56 = vrot.slane %v2948_v42, 4  ;;  %v2929_v29 = vld [vmem:[#allocation2 + $0x6c] sm:$0xe] }
 0x214   : > { %v1985_v16 = vrot.slane %v1984_v48, 4  ;;  %v2977_v20 = vsel %vm5337_vm7, %v3739_v27, %v2976_v49  ;;  %v2978_v58 = vrot.slane %v2976_v49, 4  ;;  %v3736_v59 = vrot.slane %v2923_v43, 9 }
 0x215   : > { %2897 = vmatprep.mubr.bf16.mxu1 %v3718_v45  ;;  %v1980_v61 = vsel %vm5344_vm8, %v1975_v54, %v1979_v13  ;;  %v2952_v39 = vsel %vm5337_vm7, %v2950_v56, %v2951_v24  ;;  %v2955_v41 = vrot.slane %v5528_v53, 5  ;;  %v3740_v62 = vrot.slane %v2927_v33, 9 }
 0x216   : > { %v1990_v1 = vsel %vm5344_vm8, %v1985_v16, %v1989_v28  ;;  %2898 = vmatmul.mubr.bf16.gmra.mrb[60].mxu1 %v3710_v36  ;;  %v3743_v2 = vcombine.low %v2949_v55, %v2952_v39  ;;  %v2980_v3 = vsel %vm5337_vm7, %v2978_v58, %v2979_v44  ;;  %v2983_v5 = vrot.slane %v5666_v30, 5 }
 0x217   : > { %v3678_v9 = vcombine.low %v1980_v61, %v1990_v1  ;;  %v3747_v6 = vcombine.low %v2977_v20, %v2980_v3  ;;  %v2956_v7 = vsel %vm5337_vm7, %v3736_v59, %v2955_v41  ;;  %v2957_v10 = vrot.slane %v2955_v41, 4 }
 0x218   : > { %v2984_v53 = vsel %vm5337_vm7, %v3740_v62, %v2983_v5  ;;  %v2985_v11 = vrot.slane %v2983_v5, 4  ;;  %v3737_v60 = vrot.slane %v2924_v63, 9  ;;  %v2962_v14 = vrot.slane %v5566_v47, 5 }
 0x219   : > { %2360 = vmatmul.mubr.bf16.gmra.mrb[60].mxu0 %v3678_v9  ;;  %4114 = vmatprep.mubr.bf16.mxu1 %v3747_v6  ;;  %v2959_v30 = vsel %vm5337_vm7, %v2957_v10, %v2958_v15  ;;  %v2965_v22 = vrot.slane %v5574_v51, 5  ;;  %v3741_v25 = vrot.slane %v2928_v8, 9  ;;  %v2990_v32 = vrot.slane %v5699_v18, 5 }
 0x21a   : > { %4106 = vmatprep.mubr.bf16.mxu0 %v3743_v2  ;;  %v3744_v31 = vcombine.low %v2956_v7, %v2959_v30  ;;  %v2987_v47 = vsel %vm5337_vm7, %v2985_v11, %v2986_v4  ;;  %v2963_v35 = vsel %vm5337_vm7, %v3737_v60, %v2962_v14  ;;  %v2964_v57 = vrot.slane %v2962_v14, 4 }
 0x21b   : > { %v3748_v17 = vcombine.low %v2984_v53, %v2987_v47  ;;  %v2991_v15 = vsel %vm5337_vm7, %v3741_v25, %v2990_v32  ;;  %v2992_v51 = vrot.slane %v2990_v32, 4  ;;  %v2993_v18 = vrot.slane %v5705_v12, 5 }
 0x21c   : > { %v2966_v13 = vsel %vm5337_vm7, %v2964_v57, %v2965_v22  ;;  %v3738_v36 = vrot.slane %v2925_v50, 9  ;;  %v2969_v26 = vrot.slane %v5598_v34, 5  ;;  %v2972_v4 = vrot.slane %v5600_v37, 5 }
 0x21d   : > { %v3745_v23 = vcombine.low %v2963_v35, %v2966_v13  ;;  %v2994_v38 = vsel %vm5337_vm7, %v2992_v51, %v2993_v18  ;;  %v3742_v28 = vrot.slane %v2929_v29, 9  ;;  %v2997_v19 = vrot.slane %v5726_v40, 5 }
 0x21e   : > { %4115 = vmatmul.mubr.bf16.vlgmr.msra.gmra.mrb[64].mxu1 %v3748_v17  ;;  %v3749_v21 = vcombine.low %v2991_v15, %v2994_v38  ;;  %v2970_v12 = vsel %vm5337_vm7, %v3738_v36, %v2969_v26  ;;  %v2971_v42 = vrot.slane %v2969_v26, 4  ;;  %v3000_v24 = vrot.slane %v5734_v0, 5 }
 0x21f   : > { %v2998_v34 = vsel %vm5337_vm7, %v3742_v28, %v2997_v19  ;;  %v2999_v27 = vrot.slane %v2997_v19, 4 }
 0x220   : > { %4118 = vmatprep.mubr.bf16.mxu1 %v3749_v21  ;;  %v2973_v37 = vsel %vm5337_vm7, %v2971_v42, %v2972_v4 }
 0x221   : > { %4107 = vmatmul.mubr.bf16.vlgmr.msra.gmra.mrb[64].mxu0 %v3744_v31  ;;  %v3746_v43 = vcombine.low %v2970_v12, %v2973_v37  ;;  %v3001_v40 = vsel %vm5337_vm7, %v2999_v27, %v3000_v24 }
 0x222   : > { %4110 = vmatprep.mubr.bf16.mxu0 %v3745_v23  ;;  %v3750_v46 = vcombine.low %v2998_v34, %v3001_v40 }
 0x226   : > { %4119 = vmatmul.mubr.bf16.gmra.mrb[68].mxu1 %v3750_v46 }
 0x229   : > { %4111 = vmatmul.mubr.bf16.gmra.mrb[68].mxu0 %v3746_v43 }
 0x26a   : > { %v3834_v48 = vpop.f32.mrb[0].mxu0 }
 0x26b   : > { %v3835_v49 = vpop.f32.mrb[1].mxu0 }
 0x26c   : > { %v3836_v0 = vadd.f32 %v3835_v49, %v3834_v48  ;;  %v3837_v44 = vpop.f32.mrb[2].mxu0  ;;  %v3898_v45 = vpop.f32.mrb[0].mxu1 }
 0x26d   : > { %v3838_v33 = vpop.f32.mrb[3].mxu0  ;;  %v3899_v55 = vpop.f32.mrb[1].mxu1 }
 0x26e   : > { %v3839_v54 = vadd.f32 %v3838_v33, %v3837_v44  ;;  %v3900_v56 = vadd.f32 %v3899_v55, %v3898_v45  ;;  %v3901_v16 = vpop.f32.mrb[2].mxu1 }
 0x26f   : > { %v3902_v20 = vpop.f32.mrb[3].mxu1 }
 0x270   : > { %v5805_v58 = vadd.f32 %v3900_v56, %v3836_v0  ;;  %v3903_v59 = vadd.f32 %v3902_v20, %v3901_v16 }
 0x272   : > { %v3840_v52 = vpop.f32.mrb[4].mxu0  ;;  %v5807_v61 = vadd.f32 %v3903_v59, %v3839_v54 }
 0x273   : > { %v3841_v39 = vpop.f32.mrb[5].mxu0 }
 0x274   : > { %v3842_v41 = vadd.f32 %v3841_v39, %v3840_v52  ;;  %v3843_v62 = vpop.f32.mrb[6].mxu0  ;;  %v3904_v63 = vpop.f32.mrb[4].mxu1 }
 0x275   : > { %v3844_v1 = vpop.f32.mrb[7].mxu0  ;;  %v3905_v2 = vpop.f32.mrb[5].mxu1 }
 0x276   : > { %v3845_v3 = vadd.f32 %v3844_v1, %v3843_v62  ;;  %v3906_v5 = vadd.f32 %v3905_v2, %v3904_v63  ;;  %v3907_v8 = vpop.f32.mrb[6].mxu1 }
 0x277   : > { %v3908_v9 = vpop.f32.mrb[7].mxu1 }
 0x278   : > { %v5809_v6 = vadd.f32 %v3906_v5, %v3842_v41  ;;  %v3909_v7 = vadd.f32 %v3908_v9, %v3907_v8 }
 0x27a   : > { %v3846_v10 = vpop.f32.mrb[8].mxu0  ;;  %v5811_v53 = vadd.f32 %v3909_v7, %v3845_v3 }
 0x27b   : > { %v3847_v11 = vpop.f32.mrb[9].mxu0 }
 0x27c   : > { %v3848_v60 = vadd.f32 %v3847_v11, %v3846_v10  ;;  %v3849_v14 = vpop.f32.mrb[10].mxu0  ;;  %v3910_v30 = vpop.f32.mrb[8].mxu1 }
 0x27d   : > { %v3850_v22 = vpop.f32.mrb[11].mxu0  ;;  %v3911_v25 = vpop.f32.mrb[9].mxu1 }
 0x27e   : > { %v3851_v32 = vadd.f32 %v3850_v22, %v3849_v14  ;;  %v3912_v50 = vadd.f32 %v3911_v25, %v3910_v30  ;;  %v3913_v31 = vpop.f32.mrb[10].mxu1 }
 0x27f   : > { %v3914_v47 = vpop.f32.mrb[11].mxu1 }
 0x280   : > { %v5813_v35 = vadd.f32 %v3912_v50, %v3848_v60  ;;  %v3915_v57 = vadd.f32 %v3914_v47, %v3913_v31 }
 0x282   : > { %v3852_v29 = vpop.f32.mrb[12].mxu0  ;;  %v5815_v17 = vadd.f32 %v3915_v57, %v3851_v32 }
 0x283   : > { %v3853_v15 = vpop.f32.mrb[13].mxu0 }
 0x284   : > { %v3854_v51 = vadd.f32 %v3853_v15, %v3852_v29  ;;  %v3855_v18 = vpop.f32.mrb[14].mxu0  ;;  %v3916_v13 = vpop.f32.mrb[12].mxu1 }
 0x285   : > { %v3856_v36 = vpop.f32.mrb[15].mxu0  ;;  %v3917_v26 = vpop.f32.mrb[13].mxu1 }
 0x286   : > { %v3857_v4 = vadd.f32 %v3856_v36, %v3855_v18  ;;  %v3918_v23 = vadd.f32 %v3917_v26, %v3916_v13  ;;  %v3919_v38 = vpop.f32.mrb[14].mxu1 }
 0x287   : > { %v3920_v28 = vpop.f32.mrb[15].mxu1 }
 0x288   : > { %v5817_v19 = vadd.f32 %v3918_v23, %v3854_v51  ;;  %v3921_v21 = vadd.f32 %v3920_v28, %v3919_v38 }
 0x28a   : > { %v3858_v12 = vpop.f32.mrb[16].mxu0  ;;  %v5819_v42 = vadd.f32 %v3921_v21, %v3857_v4 }
 0x28b   : > { %v3859_v24 = vpop.f32.mrb[17].mxu0 }
 0x28c   : > { %v3860_v34 = vadd.f32 %v3859_v24, %v3858_v12  ;;  %v3861_v27 = vpop.f32.mrb[18].mxu0  ;;  %v3922_v37 = vpop.f32.mrb[16].mxu1 }
 0x28d   : > { %v3862_v43 = vpop.f32.mrb[19].mxu0  ;;  %v3923_v40 = vpop.f32.mrb[17].mxu1 }
 0x28e   : > { %v3863_v46 = vadd.f32 %v3862_v43, %v3861_v27  ;;  %v3924_v48 = vadd.f32 %v3923_v40, %v3922_v37  ;;  %v3925_v49 = vpop.f32.mrb[18].mxu1 }
 0x28f   : > { %v3926_v0 = vpop.f32.mrb[19].mxu1 }
 0x290   : > { %v5821_v44 = vadd.f32 %v3924_v48, %v3860_v34  ;;  %v3927_v33 = vadd.f32 %v3926_v0, %v3925_v49 }
 0x292   : > { %v3864_v45 = vpop.f32.mrb[20].mxu0  ;;  %v5823_v54 = vadd.f32 %v3927_v33, %v3863_v46 }
 0x293   : > { %v3865_v55 = vpop.f32.mrb[21].mxu0 }
 0x294   : > { %v3866_v56 = vadd.f32 %v3865_v55, %v3864_v45  ;;  %v3867_v16 = vpop.f32.mrb[22].mxu0  ;;  %v3928_v20 = vpop.f32.mrb[20].mxu1 }
 0x295   : > { %v3868_v59 = vpop.f32.mrb[23].mxu0  ;;  %v3929_v52 = vpop.f32.mrb[21].mxu1 }
 0x296   : > { %v3869_v39 = vadd.f32 %v3868_v59, %v3867_v16  ;;  %v3930_v41 = vadd.f32 %v3929_v52, %v3928_v20  ;;  %v3931_v62 = vpop.f32.mrb[22].mxu1 }
 0x297   : > { %v3932_v63 = vpop.f32.mrb[23].mxu1 }
 0x298   : > { %v5825_v1 = vadd.f32 %v3930_v41, %v3866_v56  ;;  %v3933_v2 = vadd.f32 %v3932_v63, %v3931_v62 }
 0x29a   : > { %v3870_v3 = vpop.f32.mrb[24].mxu0  ;;  %v5827_v5 = vadd.f32 %v3933_v2, %v3869_v39 }
 0x29b   : > { %v3871_v8 = vpop.f32.mrb[25].mxu0 }
 0x29c   : > { %v3872_v9 = vadd.f32 %v3871_v8, %v3870_v3  ;;  %v3873_v7 = vpop.f32.mrb[26].mxu0  ;;  %v3934_v10 = vpop.f32.mrb[24].mxu1 }
 0x29d   : > { %v3874_v11 = vpop.f32.mrb[27].mxu0  ;;  %v3935_v60 = vpop.f32.mrb[25].mxu1 }
 0x29e   : > { %v3875_v14 = vadd.f32 %v3874_v11, %v3873_v7  ;;  %v3936_v30 = vadd.f32 %v3935_v60, %v3934_v10  ;;  %v3937_v22 = vpop.f32.mrb[26].mxu1 }
 0x29f   : > { %v3938_v25 = vpop.f32.mrb[27].mxu1 }
 0x2a0   : > { %v5829_v32 = vadd.f32 %v3936_v30, %v3872_v9  ;;  %v3939_v50 = vadd.f32 %v3938_v25, %v3937_v22 }
 0x2a2   : > { %v3876_v31 = vpop.f32.mrb[28].mxu0  ;;  %v5831_v47 = vadd.f32 %v3939_v50, %v3875_v14 }
 0x2a3   : > { %v3877_v57 = vpop.f32.mrb[29].mxu0 }
 0x2a4   : > { %v3878_v29 = vadd.f32 %v3877_v57, %v3876_v31  ;;  %v3879_v15 = vpop.f32.mrb[30].mxu0  ;;  %v3940_v51 = vpop.f32.mrb[28].mxu1 }
 0x2a5   : > { %v3880_v18 = vpop.f32.mrb[31].mxu0  ;;  %v3941_v13 = vpop.f32.mrb[29].mxu1 }
 0x2a6   : > { %v3881_v36 = vadd.f32 %v3880_v18, %v3879_v15  ;;  %v3942_v26 = vadd.f32 %v3941_v13, %v3940_v51  ;;  %v3943_v4 = vpop.f32.mrb[30].mxu1 }
 0x2a7   : > { %v3944_v23 = vpop.f32.mrb[31].mxu1 }
 0x2a8   : > { %v5833_v38 = vadd.f32 %v3942_v26, %v3878_v29  ;;  %v3945_v28 = vadd.f32 %v3944_v23, %v3943_v4 }
 0x2aa   : > { %v5835_v21 = vadd.f32 %v3945_v28, %v3881_v36  ;;  %v3962_v34 = vpop.f32.mrb[32].mxu0 }
 0x2ab   : > { %v3963_v43 = vpop.f32.mrb[33].mxu0 }
 0x2ac   : > { %v4026_v12 = vpop.f32.mrb[32].mxu1  ;;  %v3964_v46 = vadd.f32 %v3963_v43, %v3962_v34  ;;  %v3965_v48 = vpop.f32.mrb[34].mxu0 }
 0x2ad   : > { %v4027_v24 = vpop.f32.mrb[33].mxu1  ;;  %v3966_v0 = vpop.f32.mrb[35].mxu0 }
 0x2ae   : > { %v4028_v27 = vadd.f32 %v4027_v24, %v4026_v12  ;;  %v4029_v37 = vpop.f32.mrb[34].mxu1  ;;  %v2368_v33 = vadd.f32 %v3964_v46, %v5805_v58  ;;  %v3967_v45 = vadd.f32 %v3966_v0, %v3965_v48 }
 0x2af   : > { %v4030_v40 = vpop.f32.mrb[35].mxu1 }
 0x2b0   : > { %v4031_v49 = vadd.f32 %v4030_v40, %v4029_v37  ;;  %v2369_v55 = vadd.f32 %v3967_v45, %v5807_v61  ;;  %v5839_v56 = vadd.f32 %v4028_v27, %v2368_v33 }
 0x2b2   : > { %v5841_v59 = vadd.f32 %v4031_v49, %v2369_v55 }
 0x2b4   : > { %v4032_v16 = vpop.f32.mrb[36].mxu1  ;;  %v3968_v41 = vpop.f32.mrb[36].mxu0 }
 0x2b5   : > { %v4033_v20 = vpop.f32.mrb[37].mxu1  ;;  %v3969_v63 = vpop.f32.mrb[37].mxu0 }
 0x2b6   : > { %v4034_v52 = vadd.f32 %v4033_v20, %v4032_v16  ;;  %v4035_v39 = vpop.f32.mrb[38].mxu1  ;;  %v3970_v3 = vadd.f32 %v3969_v63, %v3968_v41  ;;  %v3971_v8 = vpop.f32.mrb[38].mxu0 }
 0x2b7   : > { %v4036_v62 = vpop.f32.mrb[39].mxu1  ;;  %v3972_v9 = vpop.f32.mrb[39].mxu0 }
 0x2b8   : > { %v4037_v2 = vadd.f32 %v4036_v62, %v4035_v39  ;;  %v2370_v58 = vadd.f32 %v3970_v3, %v5809_v6  ;;  %v3973_v7 = vadd.f32 %v3972_v9, %v3971_v8 }
 0x2ba   : > { %v2371_v61 = vadd.f32 %v3973_v7, %v5811_v53  ;;  %v5845_v10 = vadd.f32 %v4034_v52, %v2370_v58 }
 0x2bc   : > { %v4038_v11 = vpop.f32.mrb[40].mxu1  ;;  %v5847_v14 = vadd.f32 %v4037_v2, %v2371_v61 }
 0x2bd   : > { %v4039_v60 = vpop.f32.mrb[41].mxu1 }
 0x2be   : > { %v4040_v30 = vadd.f32 %v4039_v60, %v4038_v11  ;;  %v4041_v22 = vpop.f32.mrb[42].mxu1  ;;  %v3974_v25 = vpop.f32.mrb[40].mxu0 }
 0x2bf   : > { %v4042_v50 = vpop.f32.mrb[43].mxu1  ;;  %v3975_v31 = vpop.f32.mrb[41].mxu0 }
 0x2c0   : > { %v4043_v57 = vadd.f32 %v4042_v50, %v4041_v22  ;;  %v3976_v29 = vadd.f32 %v3975_v31, %v3974_v25  ;;  %v3977_v15 = vpop.f32.mrb[42].mxu0 }
 0x2c1   : > { %v3978_v51 = vpop.f32.mrb[43].mxu0 }
 0x2c2   : > { %v2372_v6 = vadd.f32 %v3976_v29, %v5813_v35  ;;  %v3979_v18 = vadd.f32 %v3978_v51, %v3977_v15 }
 0x2c4   : > { %v2373_v53 = vadd.f32 %v3979_v18, %v5815_v17  ;;  %v5851_v13 = vadd.f32 %v4040_v30, %v2372_v6  ;;  %v4044_v36 = vpop.f32.mrb[44].mxu1 }
 0x2c5   : > { %v4045_v4 = vpop.f32.mrb[45].mxu1 }
 0x2c6   : > { %v5853_v26 = vadd.f32 %v4043_v57, %v2373_v53  ;;  %v4046_v23 = vadd.f32 %v4045_v4, %v4044_v36  ;;  %v4047_v28 = vpop.f32.mrb[46].mxu1  ;;  %v3980_v12 = vpop.f32.mrb[44].mxu0 }
 0x2c7   : > { %v4048_v24 = vpop.f32.mrb[47].mxu1  ;;  %v3981_v34 = vpop.f32.mrb[45].mxu0 }
 0x2c8   : > { %v4049_v27 = vadd.f32 %v4048_v24, %v4047_v28  ;;  %v3982_v37 = vadd.f32 %v3981_v34, %v3980_v12  ;;  %v3983_v43 = vpop.f32.mrb[46].mxu0 }
 0x2c9   : > { %v3984_v40 = vpop.f32.mrb[47].mxu0 }
 0x2ca   : > { %v2374_v35 = vadd.f32 %v3982_v37, %v5817_v19  ;;  %v3985_v46 = vadd.f32 %v3984_v40, %v3983_v43 }
 0x2cc   : > { %v2375_v17 = vadd.f32 %v3985_v46, %v5819_v42  ;;  %v5857_v48 = vadd.f32 %v4046_v23, %v2374_v35  ;;  %v4050_v49 = vpop.f32.mrb[48].mxu1 }
 0x2cd   : > { %v4051_v0 = vpop.f32.mrb[49].mxu1 }
 0x2ce   : > { %v5859_v33 = vadd.f32 %v4049_v27, %v2375_v17  ;;  %v4052_v45 = vadd.f32 %v4051_v0, %v4050_v49  ;;  %v4053_v55 = vpop.f32.mrb[50].mxu1 }
 0x2cf   : > { %v4054_v20 = vpop.f32.mrb[51].mxu1 }
 0x2d0   : > { %v3986_v16 = vpop.f32.mrb[48].mxu0  ;;  %v4055_v39 = vadd.f32 %v4054_v20, %v4053_v55 }
 0x2d1   : > { %v3987_v52 = vpop.f32.mrb[49].mxu0 }
 0x2d2   : > { %v3988_v41 = vadd.f32 %v3987_v52, %v3986_v16  ;;  %v3989_v62 = vpop.f32.mrb[50].mxu0 }
 0x2d3   : > { %v3990_v63 = vpop.f32.mrb[51].mxu0 }
 0x2d4   : > { %v2376_v19 = vadd.f32 %v3988_v41, %v5821_v44  ;;  %v3991_v2 = vadd.f32 %v3990_v63, %v3989_v62  ;;  %v4056_v8 = vpop.f32.mrb[52].mxu1 }
 0x2d5   : > { %v4057_v58 = vpop.f32.mrb[53].mxu1 }
 0x2d6   : > { %v2377_v42 = vadd.f32 %v3991_v2, %v5823_v54  ;;  %v2914_v3 = vadd.f32 %v4052_v45, %v2376_v19  ;;  %v4058_v7 = vadd.f32 %v4057_v58, %v4056_v8  ;;  %v4059_v61 = vpop.f32.mrb[54].mxu1 }
 0x2d7   : > { %v4060_v60 = vpop.f32.mrb[55].mxu1 }
 0x2d8   : > { %v2915_v9 = vadd.f32 %v4055_v39, %v2377_v42  ;;  %v3992_v11 = vpop.f32.mrb[52].mxu0  ;;  %v4061_v22 = vadd.f32 %v4060_v60, %v4059_v61 }
 0x2d9   : > { %v3993_v30 = vpop.f32.mrb[53].mxu0 }
 0x2da   : > { %v3994_v25 = vadd.f32 %v3993_v30, %v3992_v11  ;;  %v3995_v50 = vpop.f32.mrb[54].mxu0 }
 0x2db   : > { %v3996_v31 = vpop.f32.mrb[55].mxu0 }
 0x2dc   : > { %v2378_v57 = vadd.f32 %v3994_v25, %v5825_v1  ;;  %v3997_v29 = vadd.f32 %v3996_v31, %v3995_v50 }
 0x2de   : > { %v2379_v44 = vadd.f32 %v3997_v29, %v5827_v5  ;;  %v2916_v15 = vadd.f32 %v4058_v7, %v2378_v57 }
 0x2df   : > { %v4062_v54 = vpop.f32.mrb[56].mxu1 }
 0x2e0   : > { %v2917_v51 = vadd.f32 %v4061_v22, %v2379_v44  ;;  %v4063_v6 = vpop.f32.mrb[57].mxu1 }
 0x2e1   : > { %v3998_v18 = vpop.f32.mrb[56].mxu0  ;;  %v4064_v53 = vadd.f32 %v4063_v6, %v4062_v54  ;;  %v4065_v36 = vpop.f32.mrb[58].mxu1 }
 0x2e2   : > { %v3999_v4 = vpop.f32.mrb[57].mxu0  ;;  %v4066_v23 = vpop.f32.mrb[59].mxu1 }
 0x2e3   : > { %v4000_v28 = vadd.f32 %v3999_v4, %v3998_v18  ;;  %v4001_v12 = vpop.f32.mrb[58].mxu0  ;;  %v4067_v24 = vadd.f32 %v4066_v23, %v4065_v36 }
 0x2e4   : > { %v4002_v34 = vpop.f32.mrb[59].mxu0 }
 0x2e5   : > { %v2380_v27 = vadd.f32 %v4000_v28, %v5829_v32  ;;  %v4003_v37 = vadd.f32 %v4002_v34, %v4001_v12 }
 0x2e7   : > { %v2381_v1 = vadd.f32 %v4003_v37, %v5831_v47  ;;  %v2918_v43 = vadd.f32 %v4064_v53, %v2380_v27 }
 0x2e9   : > { %v4068_v5 = vpop.f32.mrb[60].mxu1  ;;  %v2919_v40 = vadd.f32 %v4067_v24, %v2381_v1 }
 0x2ea   : > { %v4069_v35 = vpop.f32.mrb[61].mxu1 }
 0x2eb   : > { %v4070_v46 = vadd.f32 %v4069_v35, %v4068_v5  ;;  %v4071_v17 = vpop.f32.mrb[62].mxu1 }
 0x2ec   : > { %v4004_v49 = vpop.f32.mrb[60].mxu0  ;;  %v4072_v0 = vpop.f32.mrb[63].mxu1 }
 0x2ed   : > { %v4005_v45 = vpop.f32.mrb[61].mxu0  ;;  %v4073_v55 = vadd.f32 %v4072_v0, %v4071_v17 }
 0x2ee   : > { %v4006_v16 = vadd.f32 %v4005_v45, %v4004_v49  ;;  %v4007_v20 = vpop.f32.mrb[62].mxu0 }
 0x2ef   : > { %v4008_v52 = vpop.f32.mrb[63].mxu0 }
 0x2f0   : > { %v2382_v39 = vadd.f32 %v4006_v16, %v5833_v38  ;;  %v4009_v32 = vadd.f32 %v4008_v52, %v4007_v20 }
 0x2f1   : > { %v4116_v41 = vpop.f32.mrb[64].mxu1 }
 0x2f2   : > { %v2383_v47 = vadd.f32 %v4009_v32, %v5835_v21  ;;  %v5869_v62 = vadd.f32 %v4116_v41, %v2916_v15  ;;  %v3164_v63 = vpop.f32.mrb[65].mxu1  ;;  %v2920_v19 = vadd.f32 %v4070_v46, %v2382_v39 }
 0x2f3   : > { %v5871_v2 = vadd.f32 %v3164_v63, %v2914_v3  ;;  %v4117_v42 = vpop.f32.mrb[66].mxu1 }
 0x2f4   : > { %v4108_v8 = vpop.f32.mrb[64].mxu0  ;;  %3221 = vst [vmem:[%s5297_s13 + $0x50] sm:$0xff] %v5869_v62  ;;  %v5875_v38 = vadd.f32 %v4117_v42, %v2917_v51  ;;  %v3167_v58 = vpop.f32.mrb[67].mxu1  ;;  %v2921_v21 = vadd.f32 %v4073_v55, %v2383_v47 }
 0x2f5   : > { %v3197_v7 = vadd.f32 %v4108_v8, %v5845_v10  ;;  %v3132_v61 = vpop.f32.mrb[65].mxu0  ;;  %3219 = vst [vmem:[%s5297_s13 + $0x40] sm:$0xff] %v5871_v2  ;;  %v5880_v3 = vadd.f32 %v3167_v58, %v2915_v9 }
 0x2f6   : > { %v3195_v11 = vadd.f32 %v3132_v61, %v5839_v56  ;;  %v4109_v60 = vpop.f32.mrb[66].mxu0  ;;  %3222 = vst [vmem:[%s5297_s13 + $0x58] sm:$0xff] %v5875_v38 }
 0x2f7   : > { %3213 = vst [vmem:[%s5297_s13 + $0x10] sm:$0xff] %v3197_v7  ;;  %v3198_v30 = vadd.f32 %v4109_v60, %v5847_v14  ;;  %v3135_v22 = vpop.f32.mrb[67].mxu0  ;;  %3220 = vst [vmem:[%s5297_s13 + $0x48] sm:$0xff] %v5880_v3  ;;  %v3250_v44 = vmul.f32 %v3197_v7, %v3197_v7 }
 0x2f8   : > { %3211 = vst [vmem:[%s5297_s13] sm:$0xff] %v3195_v11  ;;  %v3196_v10 = vadd.f32 %v3135_v22, %v5841_v59  ;;  %v3248_v25 = vmul.f32 %v3195_v11, %v3195_v11 }
 0x2f9   : > { %3214 = vst [vmem:[%s5297_s13 + $0x18] sm:$0xff] %v3198_v30  ;;  %v4120_v9 = vpop.f32.mrb[68].mxu1  ;;  %v3251_v4 = vmul.f32 %v3198_v30, %v3198_v30 }
 0x2fa   : > { %3212 = vst [vmem:[%s5297_s13 + $0x8] sm:$0xff] %v3196_v10  ;;  %v3227_v56 = vadd.f32 %v3196_v10, %v3195_v11  ;;  %v3249_v50 = vmul.f32 %v3196_v10, %v3196_v10  ;;  %v5895_v31 = vadd.f32 %v4120_v9, %v2920_v19  ;;  %v3180_v14 = vpop.f32.mrb[69].mxu1 }
 0x2fb   : > { %v5899_v57 = vadd.f32 %v3180_v14, %v2918_v43  ;;  %v4121_v29 = vpop.f32.mrb[70].mxu1 }
 0x2fc   : > { %v3228_v59 = vadd.f32 %v3227_v56, %v3197_v7  ;;  %v3264_v15 = vadd.f32 %v3249_v50, %v3248_v25  ;;  %v4112_v54 = vpop.f32.mrb[68].mxu0  ;;  %3225 = vst [vmem:[%s5297_s13 + $0x70] sm:$0xff] %v5895_v31  ;;  %v5903_v51 = vadd.f32 %v4121_v29, %v2921_v21  ;;  %v3183_v6 = vpop.f32.mrb[71].mxu1 }
 0x2fd   : > { %v3201_v18 = vadd.f32 %v4112_v54, %v5857_v48  ;;  %v3148_v53 = vpop.f32.mrb[69].mxu0  ;;  %3223 = vst [vmem:[%s5297_s13 + $0x60] sm:$0xff] %v5899_v57  ;;  %v5909_v36 = vadd.f32 %v3183_v6, %v2919_v40 }
 0x2fe   : > { %v3265_v23 = vadd.f32 %v3264_v15, %v3250_v44  ;;  %v3199_v28 = vadd.f32 %v3148_v53, %v5851_v13  ;;  %v3229_v12 = vadd.f32 %v3228_v59, %v3198_v30  ;;  %v4113_v24 = vpop.f32.mrb[70].mxu0  ;;  %3226 = vst [vmem:[%s5297_s13 + $0x78] sm:$0xff] %v5903_v51 }
 0x2ff   : > { %3217 = vst [vmem:[%s5297_s13 + $0x30] sm:$0xff] %v3201_v18  ;;  %v3202_v48 = vadd.f32 %v4113_v24, %v5859_v33  ;;  %v3151_v34 = vpop.f32.mrb[71].mxu0  ;;  %3224 = vst [vmem:[%s5297_s13 + $0x68] sm:$0xff] %v5909_v36 }
 0x300   : > { %3215 = vst [vmem:[%s5297_s13 + $0x20] sm:$0xff] %v3199_v28  ;;  %v3230_v27 = vadd.f32 %v3229_v12, %v3199_v28  ;;  %v3252_v13 = vmul.f32 %v3199_v28, %v3199_v28  ;;  %v3266_v37 = vadd.f32 %v3265_v23, %v3251_v4  ;;  %v3200_v1 = vadd.f32 %v3151_v34, %v5853_v26 }
 0x301   : > { %3218 = vst [vmem:[%s5297_s13 + $0x38] sm:$0xff] %v3202_v48 }
 0x302   : > { %v3267_v33 = vadd.f32 %v3266_v37, %v3252_v13  ;;  %3216 = vst [vmem:[%s5297_s13 + $0x28] sm:$0xff] %v3200_v1  ;;  %v3231_v43 = vadd.f32 %v3230_v27, %v3200_v1  ;;  %v3253_v5 = vmul.f32 %v3200_v1, %v3200_v1 }
 0x303   : > { %4561 = shalt.err (!%p4558_p0)
}
 0x304   : > { %s4562_s13 = scalar_lea.hbm %s5926_s1, 2048  ;;  %s4566_s24 = scalar_lea.hbm %s6176_s14, 8192 }
 0x305   : > { %p4563_p13 = scmp.ne.s32.totalorder %s5926_s1, %s4562_s13  ;;  %p4567_p8 = scmp.lt.u32.totalorder %s5926_s1, %s6176_s14 }
 0x306   : > { %p4568_p5 = scmp.lt.u32.totalorder %s4566_s24, %s4562_s13  ;;  %p4570_p6 = scmp.lt.u32.totalorder %s4562_s13, %s5926_s1 }
 0x307   : > { %p4564_p1 = pnand %p4563_p13, %p6177_p2 }
 0x308   : > { %p4569_p4 = por %p4568_p5, %p4567_p8 }
 0x309   : > { %p4565_p9 = pneg %p4564_p1 }
 0x30a   : > { %p4571_p10 = por %p4570_p6, %p4569_p4 }
 0x30c   : > { %p4572_p7 = pnand %p4571_p10, %p4565_p9 }
 0x30e   : > { %4575 = shalt.err (!%p4572_p7)
}
 0x30f   : > { %s4754_s6 = smov 128   ;;  %s4755_s19 = smov 8   ;;  %v3254_v26 = vmul.f32 %v3201_v18, %v3201_v18  ;;  %v3232_v40 = vadd.f32 %v3231_v43, %v3201_v18  ;;  %v3268_v35 = vadd.f32 %v3267_v33, %v3253_v5  ;;  %v3255_v46 = vmul.f32 %v3202_v48, %v3202_v48 }
 0x310   : > { %4152 = dma.vmem_to_hbm [thread:$0]  (%p6177_p2), %s5919_s3, 2048, %s5926_s1, %s3289_s7, %s4754_s6, %s4754_s6, %s4755_s19   ;;  %v3256_v0 = vmul.f32 %v5871_v2, %v5871_v2  ;;  %v3257_v16 = vmul.f32 %v5880_v3, %v5880_v3  ;;  %v3258_v39 = vmul.f32 %v5869_v62, %v5869_v62  ;;  %v3259_v47 = vmul.f32 %v5875_v38, %v5875_v38 }
 0x311   : > { %v3233_v17 = vadd.f32 %v3232_v40, %v3202_v48  ;;  %v3269_v49 = vadd.f32 %v3268_v35, %v3254_v26  ;;  %v3261_v21 = vmul.f32 %v5909_v36, %v5909_v36  ;;  %v3262_v7 = vmul.f32 %v5895_v31, %v5895_v31  ;;  %s3765_s3 = sshll.u32 %s6174_s15, 1  ;;  %s3328_s5 = sshll.u32 %s5301_s18, 4  ;;  %s5986_s5 = int_to_ptr.vmem [resolvable:$true] %s3328_s5 }
 0x312   : > { %s3324_s1 = sadd.s32 %s6173_s28, %s3765_s3  ;;  %s6178_s29 = sld [smem:[#allocation40_spill]] }
 0x313   : > { %v3234_v45 = vadd.f32 %v3233_v17, %v5871_v2  ;;  %v3270_v55 = vadd.f32 %v3269_v49, %v3255_v46  ;;  %v3260_v2 = vmul.f32 %v5899_v57, %v5899_v57  ;;  %s3766_s7 = sshll.u32 %s3324_s1, 5  ;;  %s3294_s28 = scalar_lea.sflag [#allocation14], %s5178_s2 }
 0x314   : > { %s4576_s15 = scalar_lea.vmem %s5986_s5, 32  ;;  %s4756_s17 = smov [#allocation13]  }
 0x315   : > { %v3271_v20 = vadd.f32 %v3270_v55, %v3256_v0  ;;  %v3235_v52 = vadd.f32 %v3234_v45, %v5880_v3  ;;  %v3263_v3 = vmul.f32 %v5903_v51, %v5903_v51  ;;  %p4577_p12 = scmp.ne.s32.totalorder %s5986_s5, %s4576_s15  ;;  %s4580_s24 = sshll.u32 %s4756_s17, 4  ;;  %s4581_s24 = int_to_ptr.vmem [resolvable:$false] %s4580_s24 }
 0x316   : > { %s4582_s27 = scalar_lea.vmem %s4581_s24, 64  ;;  %p4583_p0 = scmp.lt.s32.totalorder %s5986_s5, %s4581_s24 }
 0x317   : > { %v3236_v32 = vadd.f32 %v3235_v52, %v5869_v62  ;;  %v3272_v41 = vadd.f32 %v3271_v20, %v3257_v16  ;;  %p4578_p3 = pnand %p4577_p12, %p6177_p2  ;;  %p4584_p13 = scmp.lt.s32.totalorder %s4582_s27, %s4576_s15 }
 0x318   : > { %s6179_s13 = smov %s6178_s29  ;;  %s5984_s16 = scalar_lea.hbm %s6178_s29, %s3766_s7 }
 0x319   : > { %v3237_v63 = vadd.f32 %v3236_v32, %v5875_v38  ;;  %v3273_v19 = vadd.f32 %v3272_v41, %v3258_v39  ;;  %p4579_p11 = pneg %p4578_p3  ;;  %p4585_p1 = por %p4584_p13, %p4583_p0 }
 0x31b   : > { %v3238_v42 = vadd.f32 %v3237_v63, %v5899_v57  ;;  %v3274_v8 = vadd.f32 %v3273_v19, %v3259_v47  ;;  %p4586_p9 = pnand %p4585_p1, %p4579_p11 }
 0x31d   : > { %v3239_v58 = vadd.f32 %v3238_v42, %v5909_v36  ;;  %v3275_v62 = vadd.f32 %v3274_v8, %v3260_v2 }
 0x31f   : > { %v3240_v38 = vadd.f32 %v3239_v58, %v5895_v31  ;;  %v3276_v61 = vadd.f32 %v3275_v62, %v3261_v21 }
 0x321   : > { %v3241_v11 = vadd.f32 %v3240_v38, %v5903_v51  ;;  %v3277_v60 = vadd.f32 %v3276_v61, %v3262_v7 }
 0x323   : > { %v3242_v30 = vrot.slane %v3241_v11, 4  ;;  %v3278_v22 = vadd.f32 %v3277_v60, %v3263_v3 }
 0x325   : > { %v3243_v10 = vadd.f32 %v3242_v30, %v3241_v11  ;;  %v3279_v9 = vrot.slane %v3278_v22, 4 }
 0x327   : > { %v3244_v25 = vrot.slane %v3243_v10, 2  ;;  %v3280_v56 = vadd.f32 %v3279_v9, %v3278_v22 }
 0x329   : > { %v3245_v50 = vadd.f32 %v3244_v25, %v3243_v10  ;;  %v3281_v14 = vrot.slane %v3280_v56, 2 }
 0x32b   : > { %v3246_v31 = vrot.slane %v3245_v50, 1  ;;  %v3282_v57 = vadd.f32 %v3281_v14, %v3280_v56 }
 0x32d   : > { %v3283_v29 = vrot.slane %v3282_v57, 1  ;;  %v3247_v44 = vadd.f32 %v3246_v31, %v3245_v50 }
 0x32f   : > { %v3284_v59 = vadd.f32 %v3283_v29, %v3282_v57 }
 0x331   : > { %v3286_v15 = vsel %vm619_vm0, %v3247_v44, %v3284_v59 }
 0x332   : > { %3287 = vst [vmem:[%s5301_s18] sm:$0x3] %v3286_v15 }
 0x333   : > { %4589 = shalt.err (!%p4586_p9)
}
 0x334   : > { %s4590_s2 = scalar_lea.hbm %s5984_s16, 32  ;;  %s4594_s6 = scalar_lea.hbm %s6179_s13, 128 }
 0x335   : > { %p4591_p8 = scmp.ne.s32.totalorder %s5984_s16, %s4590_s2  ;;  %p4595_p6 = scmp.lt.u32.totalorder %s5984_s16, %s6179_s13 }
 0x336   : > { %p4596_p10 = scmp.lt.u32.totalorder %s4594_s6, %s4590_s2  ;;  %p4598_p12 = scmp.lt.u32.totalorder %s4590_s2, %s5984_s16 }
 0x337   : > { %p4592_p5 = pnand %p4591_p8, %p6177_p2 }
 0x338   : > { %p4597_p7 = por %p4596_p10, %p4595_p6 }
 0x339   : > { %p4593_p4 = pneg %p4592_p5 }
 0x33a   : > { %p4599_p3 = por %p4598_p12, %p4597_p7 }
 0x33c   : > { %p4600_p11 = pnand %p4599_p3, %p4593_p4 }
 0x33e   : > { %4603 = shalt.err (!%p4600_p11)
}
 0x33f   : > { %4153 = dma.vmem_to_hbm [thread:$0]  (%p6177_p2), %s5986_s5, 32, %s5984_s16, %s3294_s28  }
 0x340 PF: > { %s6180_s1 = sld [smem:[#allocation22_spill]]  ;;  %p4185_p0 = scmp.ge.s32.totalorder %s4742_s10, 2 }
 0x341   : > { %p6181_p13 = scmp.ne.s32.totalorder %s6126_s4, 0 }
 0x343   : > { %p4174_p1 = pnand %p4185_p0, %p6181_p13 }
 0x346   : > { %s3340_s7 = sand.u32 1, %s6180_s1  }
 0x347   : > { %s3341_s9 = scalar_lea.sflag [#allocation5], %s3340_s7 }
 0x348   : > { %4681 = dma.done.wait (!%p4174_p1), %s3341_s9, 2048  }
 0x349   : > { %4683 = vsyncadd (!%p4174_p1), %s3341_s9, 4294965248  ;;  %s3350_s21 = scalar_lea.sflag [#allocation14], %s3340_s7 }
 0x34a   : > { %4685 = dma.done.wait (!%p4174_p1), %s3350_s21, 32  }
 0x34b   : > { %4687 = vsyncadd (!%p4174_p1), %s3350_s21, 4294967264  ;;  %s30_s10 = sadd.s32 1, %s4742_s10   ;;  %s6183_s27 = sld [smem:[#allocation23_spill]] }
 0x34c   : > { %p6017_p9 = scmp.ge.s32.totalorder %s30_s10, 6   ;;  %s6184_s28 = sld [smem:[#allocation24_spill]] }
 0x34d   : > { %s6185_s29 = sld [smem:[#allocation33_spill]]  ;;  %s6186_s7 = sld [smem:[#allocation27_spill]] }
 0x34e   : > { %s6187_s4 = sld [smem:[#allocation29_spill]]  ;;  %s6188_s9 = sld [smem:[#allocation30_spill]] }
 0x34f   : > { %s6189_s21 = smov %s4694_s22  ;;  %s6190_s22 = smov %s4698_s23 }
 0x350   : > { %s6191_s23 = smov %s5119_s20  ;;  %s6192_s24 = smov %s4706_s25 }
 0x351   : > { %s6193_s25 = smov %s4710_s26  ;;  %s6194_s26 = smov %s5050_s30 }
 0x352   : > { %s6195_s30 = smov %s4734_s8  ;;  %29 = sbr.rel (!%p6017_p9) target bundleno = 23 (0x17), region = 155 }
 0x354   : > { %s6196_s8 = smov %s6187_s4 }
 0x359   :  { %3355 = vsyncpa [#allocation4], 1 }
 0x35a   :  { %3357 = vsyncpa [#allocation4 + $0x1], 1 }
 0x35b   :  { %3358 = vsyncpa [#allocation7], 1 }
 0x35c   :  { %3360 = vsyncpa [#allocation7 + $0x1], 1 }
 0x35d   :  { %3361 = vsyncpa [#allocation10], 1 }
 0x35e   :  { %3363 = vsyncpa [#allocation10 + $0x1], 1 }
 0x35f   :  { %3364 = vsyncpa [#allocation5], 1 }
 0x360   :  { %3366 = vsyncpa [#allocation5 + $0x1], 1 }
 0x361   :  { %3367 = vsyncpa [#allocation14], 1 }
 0x362   :  { %3369 = vsyncpa [#allocation14 + $0x1], 1 }

// kernel: basic_block_forward.3
= control target key start
LH: loop header
LB: loop body
LE: loop exit
PB: predicated region body
PF: predicated region fallthrough
CT: control target
= control target key end

     0   :  { %s5899_s0 = inlined_call_operand.hbm [shape: f32[2,16,16,128], index: 0, kind: input, shape index: {}, may-alias: {0,1,2}]   ;;  %s5900_s1 = inlined_call_operand.hbm [shape: f32[2,16,16,128], index: 1, kind: input, shape index: {}, may-alias: {0,1,2}]   ;;  %s5901_s2 = inlined_call_operand.hbm [shape: f32[2,16,16,128], index: 2, kind: input, shape index: {}, may-alias: {0,1,2}]   ;;  %s5902_s3 = inlined_call_operand.hbm [shape: bf16[1152,128], index: 3, kind: input, shape index: {}]   ;;  %s5903_s4 = inlined_call_operand.hbm [shape: bf16[2,16,16,128], index: 4, kind: output, shape index: {0}]   ;;  %s5904_s5 = inlined_call_operand.hbm [shape: f32[2,2,2,128], index: 5, kind: output, shape index: {1}]  }
   0x1   :  { %5933 = sst [smem:[#allocation36_spill]] %s5899_s0 }
   0x2   :  { %5934 = sst [smem:[#allocation37_spill]] %s5900_s1 }
   0x3   :  { %5935 = sst [smem:[#allocation38_spill]] %s5901_s2 }
   0x4   :  { %5936 = sst [smem:[#allocation39_spill]] %s5902_s3 }
   0x5   :  { %5937 = sst [smem:[#allocation40_spill]] %s5903_s4 }
   0x6   :  { %5938 = sst [smem:[#allocation41_spill]] %s5904_s5 }
   0x7   :  { %11 = vsyncpa [#allocation4], 0 }
   0x8   :  { %13 = vsyncpa [#allocation4 + $0x1], 0 }
   0x9   :  { %14 = vsyncpa [#allocation7], 0 }
   0xa   :  { %16 = vsyncpa [#allocation7 + $0x1], 0 }
   0xb   :  { %17 = vsyncpa [#allocation10], 0 }
   0xc   :  { %18 = vsyncpa [#allocation5], 0 }
   0xd   :  { %20 = vsyncpa [#allocation5 + $0x1], 0 }
   0xe   :  { %21 = vsyncpa [#allocation13], 0 }
   0xf   :  { %23 = vsyncpa [#allocation13 + $0x1], 0  ;;  %s4700_s18 = smov 0   ;;  %s4702_s19 = smov 0  }
  0x10   :  { %s4704_s20 = smov 0   ;;  %s4706_s21 = smov 0  }
  0x11   :  { %s4708_s22 = smov 0   ;;  %s4710_s23 = smov 0  }
  0x12   :  { %s4712_s24 = smov 0   ;;  %s4714_s25 = smov 0  }
  0x13   :  { %s4716_s26 = smov 0   ;;  %s4718_s27 = smov 0  }
  0x14   :  { %s4720_s28 = smov 0   ;;  %s4722_s29 = smov 0  }
  0x15   :  { %s4724_s30 = smov 0   ;;  %s4726_s6 = smov 0  }
  0x16 LB: > { %5939 = sst [smem:[#allocation20_spill]] %s4602_s18  ;;  %s38_s7 = sadd.s32 1, %s4646_s29  ;;  %s4654_s6 = sphi %s4726_s6, %s29_s6   ;;  %s4650_s30 = sphi %s4724_s30, %s6022_s30   ;;  %s4646_s29 = sphi %s4722_s29, %s6021_s29   ;;  %s4642_s28 = sphi %s4720_s28, %s6028_s28   ;;  %s4638_s27 = sphi %s4718_s27, %s6019_s27   ;;  %s4634_s26 = sphi %s4716_s26, %s6018_s26   ;;  %s4630_s25 = sphi %s4714_s25, %s6027_s25   ;;  %s4626_s24 = sphi %s4712_s24, %s6026_s24   ;;  %s4622_s23 = sphi %s4710_s23, %s6016_s23   ;;  %s4618_s22 = sphi %s4708_s22, %s6025_s22   ;;  %s4614_s21 = sphi %s4706_s21, %s6024_s21   ;;  %s4610_s20 = sphi %s4704_s20, %s6023_s20   ;;  %s4606_s19 = sphi %s4702_s19, %s6014_s19   ;;  %s4602_s18 = sphi %s4700_s18, %s6013_s18  }
  0x17   : > { %5940 = sst [smem:[#allocation21_spill]] %s4606_s19  ;;  %s41_s8 = sadd.s32 1, %s4650_s30 }
  0x18   : > { %5941 = sst [smem:[#allocation22_spill]] %s4610_s20  ;;  %p39_p0 = scmp.ge.s32.totalorder %s38_s7, 2 }
  0x19   : > { %5942 = sst [smem:[#allocation23_spill]] %s4622_s23  ;;  %p5918_p1 = scmp.eq.s32.totalorder %s4654_s6, 0 }
  0x1a   : > { %5943 = sst [smem:[#allocation24_spill]] %s4634_s26  ;;  %s3445_s9 = sshll.u32 %s4646_s29, 3 }
  0x1b   : > { %5944 = sst [smem:[#allocation25_spill]] %s4638_s27  ;;  %s86_s10 = sadd.s32 1, %s4622_s23 }
  0x1c   : > { %5945 = sst [smem:[#allocation26_spill]] %s4642_s28  ;;  %s6030_s7 = smov (%p39_p0, %s38_s7), 0 }
  0x1d   : > { %5946 = sst [smem:[#allocation27_spill]] %s4646_s29  ;;  %s6032_s8 = smov (!%p39_p0, %s41_s8), %s4650_s30 }
  0x1e   : > { %5947 = sst [smem:[#allocation28_spill]] %s4650_s30  ;;  %s46_s11 = ssub.s32 %s4646_s29, %s6030_s7 }
  0x1f   : > { %5948 = sst [smem:[#allocation29_spill]] %s6030_s7  ;;  %s3446_s12 = sadd.s32 4294967295, %s3445_s9 }
  0x20   : > { %p43_p2 = scmp.ge.s32.totalorder %s6032_s8, 2  ;;  %p75_p3 = scmp.gt.s32.totalorder %s3446_s12, 0 }
  0x21   : > { %s3447_s13 = sshll.u32 %s6030_s7, 3  ;;  %p93_p4 = scmp.ne.s32.totalorder %s4622_s23, %s4618_s22 }
  0x22   : > { %s6034_s8 = smov (%p43_p2, %s6032_s8), 0  ;;  %s6036_s12 = smov (!%p75_p3, %s3446_s12), 0 }
  0x23   : > { %5949 = sst [smem:[#allocation30_spill]] %s6034_s8  ;;  %s4787_s14 = ssub.s32 %s4650_s30, %s6034_s8 }
  0x24   : > { %5950 = sst [smem:[#allocation31_spill]] %s4787_s14  ;;  %s3448_s15 = sadd.s32 4294967295, %s3447_s13 }
  0x25   : > { %s4790_s16 = sor.u32 %s46_s11, %s4787_s14  ;;  %p79_p5 = scmp.gt.s32.totalorder %s3448_s15, 0 }
  0x26   : > { %p4795_p7 = por %p93_p4, %p5918_p1  ;;  %p99_p8 = scmp.ne.s32.totalorder %s4618_s22, %s4614_s21 }
  0x27   : > { %s6038_s15 = smov (!%p79_p5, %s3448_s15), 0  ;;  %s4801_s8 = sadd.s32 8, %s3445_s9 }
  0x28   : > { %5952 = sst [smem:[#allocation32_spill]] %s4801_s8  ;;  %s82_s7 = ssub.s32 %s6036_s12, %s6038_s15 }
  0x29   : > { %s83_s5 = sor.u32 %s82_s7, %s4787_s14  ;;  %s4805_s11 = sadd.s32 8, %s3447_s13 }
  0x2a   : > { %p84_p10 = scmp.eq.s32.totalorder %s83_s5, 0  ;;  %p5917_p12 = scmp.lt.s32.totalorder %s4654_s6, 4 }
  0x2b   : > { %s4813_s28 = sshll.u32 %s4650_s30, 5  ;;  %s273_s27 = sand.u32 1, %s4654_s6  }
  0x2c   : > { %s4810_s4 = scalar_select %p84_p10, %s4622_s23, %s86_s10  }
  0x2d   : > { %s275_s9 = sand.u32 1, %s4622_s23   ;;  %s3462_s18 = sshll.u32 %s6036_s12, 1 }
  0x2e   : > { %5953 = sst [smem:[#allocation33_spill]] %s4810_s4  ;;  %s3459_s2 = sshll.u32 %s275_s9, 4 }
  0x2f   : > { %s287_s15 = sadd.s32 %s3462_s18, %s4813_s28  ;;  %s277_s7 = scalar_lea.vmem [#allocation6], %s3459_s2 }
  0x30   : > { %s3464_s19 = sshll.u32 %s287_s15, 7  ;;  %s290_s13 = sshll.u32 %s277_s7, 4  ;;  %s4823_s13 = int_to_ptr.vmem [resolvable:$true] %s290_s13 }
  0x31   : > { %s5954_s1 = sld [smem:[#allocation37_spill]]  ;;  %p4829_p13 = pnand %p5917_p12, %p4795_p7 }
  0x32   : > { %s4833_s2 = scalar_lea.sflag [#allocation7], %s273_s27 }
  0x33   : > { %p4348_p2 = pneg %p4829_p13 }
  0x37   : > { %s4821_s20 = scalar_lea.hbm %s5954_s1, %s3464_s19  ;;  %s4351_s10 = scalar_lea.hbm %s5954_s1, 8192 }
  0x38   : > { %s4346_s18 = scalar_lea.hbm %s4821_s20, 256  ;;  %p4352_p5 = scmp.lt.u32.totalorder %s4821_s20, %s5954_s1 }
  0x39   : > { %p4347_p0 = scmp.ne.s32.totalorder %s4821_s20, %s4346_s18  ;;  %p4353_p7 = scmp.lt.u32.totalorder %s4351_s10, %s4346_s18 }
  0x3a   : > { %p4355_p11 = scmp.lt.u32.totalorder %s4346_s18, %s4821_s20 }
  0x3b   : > { %p4349_p3 = pnand %p4348_p2, %p4347_p0  ;;  %p4354_p10 = por %p4353_p7, %p4352_p5 }
  0x3d   : > { %p4350_p4 = pneg %p4349_p3  ;;  %p4356_p9 = por %p4355_p11, %p4354_p10 }
  0x3f   : > { %p4357_p12 = pnand %p4356_p9, %p4350_p4 }
  0x41   : > { %4360 = shalt.err (!%p4357_p12)
}
  0x42   : > { %s4361_s27 = scalar_lea.vmem %s4823_s13, 256  ;;  %s4656_s17 = smov [#allocation6]  }
  0x43   : > { %p4362_p0 = scmp.ne.s32.totalorder %s4823_s13, %s4361_s27  ;;  %s4366_s9 = sshll.u32 %s4656_s17, 4  ;;  %s4367_s9 = int_to_ptr.vmem [resolvable:$false] %s4366_s9 }
  0x44   : > { %s4368_s15 = scalar_lea.vmem %s4367_s9, 512  ;;  %p4369_p6 = scmp.lt.s32.totalorder %s4823_s13, %s4367_s9 }
  0x45   : > { %p4364_p3 = pnand %p4362_p0, %p4348_p2  ;;  %p4370_p5 = scmp.lt.s32.totalorder %s4368_s15, %s4361_s27 }
  0x47   : > { %p4365_p1 = pneg %p4364_p3  ;;  %p4371_p7 = por %p4370_p5, %p4369_p6 }
  0x49   : > { %p4372_p11 = pnand %p4371_p7, %p4365_p1 }
  0x4b   : > { %4375 = shalt.err (!%p4372_p11)
}
  0x4c   : > { %s5922_s7 = smov 128   ;;  %s5924_s18 = smov 8  }
  0x4d   : > { %4114 = dma.hbm_to_vmem [thread:$0]  (!%p4829_p13), %s4821_s20, 256, %s4823_s13, %s4833_s2, %s5922_s7, %s5922_s7, %s5924_s18  }
  0x4e   : > { %s4865_s19 = sadd.s32 4294967295, %s4654_s6   ;;  %p3451_p1 = scmp.ge.s32.totalorder %s4654_s6, 1 }
  0x4f   : > { %p5919_p6 = scmp.eq.s32.totalorder %s4865_s19, 0  ;;  %p223_p12 = scmp.lt.s32.totalorder %s4654_s6, 5 }
  0x50   : > { %s4659_s20 = smov [#allocation9]   ;;  %s5959_s3 = sld [smem:[#allocation39_spill]] }
  0x51   : > { %p4876_p2 = por %p99_p8, %p5919_p6  ;;  %p4880_p4 = pnand %p3451_p1, %p223_p12 }
  0x52   : > { %s235_s13 = sshll.u32 %s4659_s20, 4  ;;  %s236_s13 = int_to_ptr.vmem [resolvable:$true] %s235_s13 }
  0x53   : > { %s5956_s8 = scalar_select %p4876_p2, 1, 0 }
  0x54   : > { %s5957_s5 = scalar_select %p4880_p4, 1, 0 }
  0x55   : > { %p4104_p13 = pneg %p4880_p4 }
  0x56   : > { %s4376_s14 = scalar_lea.hbm %s5959_s3, 9216 }
  0x57   : > { %p4888_p10 = pnand %p4104_p13, %p5919_p6  ;;  %p4377_p8 = scmp.ne.s32.totalorder %s5959_s3, %s4376_s14 }
  0x58   : > { %p4383_p7 = scmp.lt.u32.totalorder %s4376_s14, %s5959_s3 }
  0x59   : > { %p4378_p0 = pneg %p4888_p10 }
  0x5b   : > { %p4379_p3 = pnand %p4378_p0, %p4377_p8 }
  0x5d   : > { %p4380_p5 = pneg %p4379_p3 }
  0x5f   : > { %p4385_p11 = pnand %p4383_p7, %p4380_p5 }
  0x61   : > { %4388 = shalt.err (!%p4385_p11)
}
  0x62   : > { %s4389_s20 = scalar_lea.vmem %s236_s13, 9216  ;;  %p4397_p9 = scmp.lt.s32.totalorder %s236_s13, %s236_s13 }
  0x63   : > { %p4390_p1 = scmp.ne.s32.totalorder %s236_s13, %s4389_s20  ;;  %p4398_p6 = scmp.lt.s32.totalorder %s4389_s20, %s4389_s20 }
  0x65   : > { %p4392_p12 = pnand %p4390_p1, %p4378_p0  ;;  %p4399_p2 = por %p4398_p6, %p4397_p9 }
  0x67   : > { %p4393_p13 = pneg %p4392_p12 }
  0x69   : > { %p4400_p4 = pnand %p4399_p2, %p4393_p13 }
  0x6b   : > { %4403 = shalt.err (!%p4400_p4)
}
  0x6c   : > { %s4660_s21 = smov 64   ;;  %s4661_s12 = smov 4  }
  0x6d   : > { %4107 = dma.hbm_to_vmem [thread:$0]  (!%p4888_p10), %s5959_s3, 9216, %s236_s13, [#allocation10], %s4660_s21, %s4660_s21, %s4661_s12  }
  0x6e   : > { %s3444_s17 = sadd.s32 4294967294, %s4654_s6   ;;  %s50_s9 = sadd.s32 1, %s4634_s26 }
  0x6f   : > { %p5960_p6 = scmp.eq.s32.totalorder %s4790_s16, 0  ;;  %p57_p9 = scmp.ne.s32.totalorder %s4634_s26, %s4630_s25 }
  0x70   : > { %p63_p2 = scmp.ne.s32.totalorder %s4630_s25, %s4626_s24  ;;  %p188_p4 = scmp.eq.s32.totalorder %s3444_s17, 3 }
  0x71   : > { %s4913_s15 = scalar_select %p5960_p6, %s4634_s26, %s50_s9  }
  0x72   : > { %s249_s20 = sand.u32 1, %s4634_s26   ;;  %p5962_p8 = scmp.eq.s32.totalorder %s4654_s6, 0 }
  0x73   : > { %5961 = sst [smem:[#allocation34_spill]] %s4913_s15  ;;  %p5963_p3 = scmp.eq.s32.totalorder %s4865_s19, 0 }
  0x74   : > { %p59_p0 = por %p5962_p8, %p57_p9  ;;  %p5965_p7 = scmp.eq.s32.totalorder %s4865_s19, 3 }
  0x75   : > { %p4924_p5 = por %p5963_p3, %p63_p2  ;;  %p4934_p10 = por %p188_p4, %p63_p2 }
  0x76   : > { %p4930_p11 = por %p5965_p7, %p57_p9  ;;  %s3454_s10 = sshll.u32 %s249_s20, 7 }
  0x77   : > { %s5967_s16 = scalar_select %p4934_p10, 1, 0 }
  0x78   : > { %s5966_s13 = scalar_select %p4930_p11, 1, 0 }
  0x79   : > { %5968 = sst [smem:[#allocation35_spill]] %s5967_s16  ;;  %s3705_s21 = sshll.u32 %s4646_s29, 4 }
  0x7a   : > { %s260_s12 = sadd.s32 %s3705_s21, %s4813_s28  ;;  %s253_s14 = scalar_lea.vmem [#allocation3], %s3454_s10 }
  0x7b   : > { %s263_s27 = sshll.u32 %s253_s14, 4  ;;  %s3458_s17 = sshll.u32 %s260_s12, 7  ;;  %s4940_s27 = int_to_ptr.vmem [resolvable:$true] %s263_s27 }
  0x7c   : > { %s5969_s0 = sld [smem:[#allocation36_spill]]  ;;  %p5970_p1 = scmp.lt.s32.totalorder %s4654_s6, 4 }
  0x7d   : > { %s4953_s10 = scalar_lea.sflag [#allocation4], %s249_s20 }
  0x7e   : > { %p4949_p12 = pnand %p5970_p1, %p59_p0 }
  0x80   : > { %p4406_p6 = pneg %p4949_p12 }
  0x82   : > { %s4945_s1 = scalar_lea.hbm %s5969_s0, %s3458_s17  ;;  %s4409_s14 = scalar_lea.hbm %s5969_s0, 8192 }
  0x83   : > { %s4404_s21 = scalar_lea.hbm %s4945_s1, 2048  ;;  %p4410_p4 = scmp.lt.u32.totalorder %s4945_s1, %s5969_s0 }
  0x84   : > { %p4405_p13 = scmp.ne.s32.totalorder %s4945_s1, %s4404_s21  ;;  %p4411_p8 = scmp.lt.u32.totalorder %s4409_s14, %s4404_s21 }
  0x85   : > { %p4413_p3 = scmp.lt.u32.totalorder %s4404_s21, %s4945_s1 }
  0x86   : > { %p4407_p9 = pnand %p4406_p6, %p4405_p13  ;;  %p4412_p0 = por %p4411_p8, %p4410_p4 }
  0x88   : > { %p4408_p2 = pneg %p4407_p9  ;;  %p4414_p7 = por %p4413_p3, %p4412_p0 }
  0x8a   : > { %p4415_p1 = pnand %p4414_p7, %p4408_p2 }
  0x8c   : > { %4418 = shalt.err (!%p4415_p1)
}
  0x8d   : > { %s4419_s20 = scalar_lea.vmem %s4940_s27, 2048  ;;  %s4662_s18 = smov [#allocation3]  }
  0x8e   : > { %p4420_p13 = scmp.ne.s32.totalorder %s4940_s27, %s4419_s20  ;;  %s4424_s12 = sshll.u32 %s4662_s18, 4  ;;  %s4425_s12 = int_to_ptr.vmem [resolvable:$false] %s4424_s12 }
  0x8f   : > { %s4426_s17 = scalar_lea.vmem %s4425_s12, 4096  ;;  %p4427_p11 = scmp.lt.s32.totalorder %s4940_s27, %s4425_s12 }
  0x90   : > { %p4422_p9 = pnand %p4420_p13, %p4406_p6  ;;  %p4428_p4 = scmp.lt.s32.totalorder %s4426_s17, %s4419_s20 }
  0x92   : > { %p4423_p10 = pneg %p4422_p9  ;;  %p4429_p8 = por %p4428_p4, %p4427_p11 }
  0x94   : > { %p4430_p0 = pnand %p4429_p8, %p4423_p10 }
  0x96   : > { %4433 = shalt.err (!%p4430_p0)
}
  0x97   : > { %s5972_s21 = smov 8   ;;  %s5973_s14 = smov 128  }
  0x98   : > { %s5974_s9 = sld [smem:[#allocation22_spill]]  ;;  %s5975_s0 = sld [smem:[#allocation32_spill]] }
  0x99   : > { %s5976_s18 = sld [smem:[#allocation21_spill]]  ;;  %s5977_s12 = sld [smem:[#allocation20_spill]] }
  0x9a   : > { %s5978_s20 = sld [smem:[#allocation31_spill]]  ;;  %p5980_p10 = scmp.lt.s32.totalorder %s4805_s11, 15 }
  0x9b   : > { %4111 = dma.hbm_to_vmem [thread:$0]  (!%p4949_p12), %s4945_s1, 2048, %s4940_s27, %s4953_s10, %s5973_s14, %s5973_s14, %s5972_s21  }
  0x9c   : > { %s6042_s11 = smov (!%p5980_p10, %s4805_s11), 15  ;;  %p5981_p3 = scmp.eq.s32.totalorder %s4654_s6, 0 }
  0x9d   : > { %p5982_p13 = scmp.eq.s32.totalorder %s4865_s19, 0  ;;  %s5984_s23 = sld [smem:[#allocation38_spill]] }
  0x9e   : > { %s122_s3 = sadd.s32 1, %s5974_s9  ;;  %p5979_p11 = scmp.lt.s32.totalorder %s5975_s0, 15 }
  0x9f   : > { %p129_p6 = scmp.ne.s32.totalorder %s5974_s9, %s5976_s18  ;;  %p135_p2 = scmp.ne.s32.totalorder %s5976_s18, %s5977_s12 }
  0xa0   : > { %s6040_s0 = smov (!%p5979_p11, %s5975_s0), 15  ;;  %s302_s30 = sand.u32 1, %s5974_s9  }
  0xa1   : > { %s118_s17 = ssub.s32 %s6040_s0, %s6042_s11  ;;  %p131_p7 = por %p129_p6, %p5981_p3 }
  0xa2   : > { %s119_s29 = sor.u32 %s118_s17, %s5978_s20  ;;  %p5001_p9 = por %p135_p2, %p5982_p13 }
  0xa3   : > { %p120_p1 = scmp.eq.s32.totalorder %s119_s29, 0  ;;  %s3465_s1 = sshll.u32 %s302_s30, 4 }
  0xa4   : > { %s5983_s15 = scalar_select %p5001_p9, 1, 0 }
  0xa5   : > { %s3467_s27 = sshll.u32 %s6040_s0, 1  ;;  %s6044_s9 = smov (!%p120_p1, %s5974_s9), %s122_s3 }
  0xa6   : > { %s314_s10 = sadd.s32 %s3467_s27, %s4813_s28  ;;  %s304_s4 = scalar_lea.vmem [#allocation8], %s3465_s1 }
  0xa7   : > { %s3469_s26 = sshll.u32 %s314_s10, 7  ;;  %s317_s18 = sshll.u32 %s304_s4, 4  ;;  %s5014_s18 = int_to_ptr.vmem [resolvable:$true] %s317_s18 }
  0xa8   : > { %s5985_s16 = smov %s5984_s23  ;;  %s5012_s20 = scalar_lea.hbm %s5984_s23, %s3469_s26 }
  0xa9   : > { %p5986_p12 = scmp.lt.s32.totalorder %s4654_s6, 4  ;;  %s4434_s28 = scalar_lea.hbm %s5012_s20, 256 }
  0xaa   : > { %p4435_p8 = scmp.ne.s32.totalorder %s5012_s20, %s4434_s28  ;;  %s4439_s26 = scalar_lea.hbm %s5985_s16, 8192 }
  0xab   : > { %p5018_p4 = pnand %p5986_p12, %p131_p7  ;;  %p4440_p6 = scmp.lt.u32.totalorder %s5012_s20, %s5985_s16 }
  0xac   : > { %p4441_p2 = scmp.lt.u32.totalorder %s4439_s26, %s4434_s28  ;;  %p4443_p7 = scmp.lt.u32.totalorder %s4434_s28, %s5012_s20 }
  0xad   : > { %p4436_p0 = pneg %p5018_p4 }
  0xae   : > { %p4442_p3 = por %p4441_p2, %p4440_p6 }
  0xaf   : > { %p4437_p11 = pnand %p4436_p0, %p4435_p8 }
  0xb0   : > { %p4444_p1 = por %p4443_p7, %p4442_p3 }
  0xb1   : > { %p4438_p10 = pneg %p4437_p11 }
  0xb3   : > { %p4445_p13 = pnand %p4444_p1, %p4438_p10 }
  0xb5   : > { %4448 = shalt.err (!%p4445_p13)
}
  0xb6   : > { %s4449_s3 = scalar_lea.vmem %s5014_s18, 256  ;;  %s4663_s17 = smov [#allocation8]  }
  0xb7   : > { %p4450_p12 = scmp.ne.s32.totalorder %s5014_s18, %s4449_s3  ;;  %s4454_s1 = sshll.u32 %s4663_s17, 4  ;;  %s4455_s1 = int_to_ptr.vmem [resolvable:$false] %s4454_s1 }
  0xb8   : > { %s4456_s27 = scalar_lea.vmem %s4455_s1, 512  ;;  %p4457_p9 = scmp.lt.s32.totalorder %s5014_s18, %s4455_s1 }
  0xb9   : > { %p4452_p8 = pnand %p4450_p12, %p4436_p0  ;;  %p4458_p6 = scmp.lt.s32.totalorder %s4456_s27, %s4449_s3 }
  0xbb   : > { %p4453_p11 = pneg %p4452_p8  ;;  %p4459_p2 = por %p4458_p6, %p4457_p9 }
  0xbd   : > { %p4460_p3 = pnand %p4459_p2, %p4453_p11 }
  0xbf   : > { %4463 = shalt.err (!%p4460_p3)
}
  0xc0   : > { %4117 = dma.hbm_to_vmem [thread:$0]  (!%p5018_p4), %s5012_s20, 256, %s5014_s18, %s4833_s2, %s5973_s14, %s5973_s14, %s5972_s21  }
  0xc1   : > { %p5988_p0 = scmp.ne.s32.totalorder %s5957_s5, 0 }
  0xc2   : > { %s5054_s10 = sand.u32 (!%p5988_p0), 1, %s4630_s25  }
  0xc3   : > { %329 = sbr.rel (%p5988_p0) target bundleno = 762 (0x2fa), region = 36  ;;  %s3471_s12 = sshll.u32 (!%p5988_p0), %s5054_s10, 7 }
  0xc4   : > { %s332_s11 = scalar_lea.sflag (!%p5988_p0), [#allocation4], %s5054_s10  ;;  %s5058_s28 = scalar_lea.vmem (!%p5988_p0), [#allocation3], %s3471_s12 }
  0xca   : > { %4577 = dma.done.wait (%p4924_p5), %s332_s11, 2048  }
  0xcb   : > { %4579 = vsyncadd (%p4924_p5), %s332_s11, 4294965248  ;;  %s340_s2 = sand.u32 1, %s4865_s19   ;;  %s342_s5 = sand.u32 1, %s4618_s22  }
  0xcc   : > { %s5066_s21 = sshll.u32 %s342_s5, 4  ;;  %s341_s14 = scalar_lea.sflag [#allocation7], %s340_s2 }
  0xcd   : > { %s344_s18 = scalar_lea.vmem [#allocation6], %s5066_s21  ;;  %p5989_p9 = scmp.ne.s32.totalorder %s5956_s8, 0 }
  0xcf   : > { %4581 = dma.done.wait (%p5989_p9), %s341_s14, 256  }
  0xd0   : > { %4583 = vsyncadd (%p5989_p9), %s341_s14, 4294967040  ;;  %s5990_s20 = sld [smem:[#allocation21_spill]]  ;;  %p5991_p5 = scmp.ne.s32.totalorder %s5983_s15, 0 }
  0xd6   : > { %s351_s0 = sand.u32 1, %s5990_s20  }
  0xd7   : > { %s5074_s7 = sshll.u32 %s351_s0, 4 }
  0xd8   : > { %s353_s4 = scalar_lea.vmem [#allocation8], %s5074_s7 }
  0xd9   : > { %4585 = dma.done.wait (%p5991_p5), %s341_s14, 256  }
  0xda   : > { %4587 = vsyncadd (%p5991_p5), %s341_s14, 4294967040  ;;  %p5992_p4 = scmp.eq.s32.totalorder %s4865_s19, 0 }
  0xdc   : > { %4589 = dma.done.wait (%p5992_p4), [#allocation10], 9216   ;;  %p5993_p10 = pmov %p5992_p4 }
  0xdd   : > { %s3475_s8 = sshll.u32 %s5054_s10, 6  ;;  %s3476_s15 = sshll.u32 %s5054_s10, 1  ;;  %v410_v0 = vld [vmem:[%s5058_s28] sm:$0xff]  ;;  %v411_v1 = vld [vmem:[%s5058_s28 + $0x8] sm:$0xff]  ;;  %v412_v2 = vld [vmem:[%s5058_s28 + $0x10] sm:$0xff]  ;;  %vm506_vm0 = vcmask 1040384  }
  0xde   : > { %4591 = vsyncadd (%p5993_p10), [#allocation10], 4294958080  ;;  %v426_v3 = vpack.c.bf16 %v411_v1, %v410_v0  ;;  %vm507_vm1 = vsmask.f32 256  ;;  %v413_v4 = vld [vmem:[%s5058_s28 + $0x18] sm:$0xff]  ;;  %v414_v5 = vld [vmem:[%s5058_s28 + $0x20] sm:$0xff] }
  0xdf   : > { %v415_v6 = vld [vmem:[%s5058_s28 + $0x28] sm:$0xff]  ;;  %v427_v7 = vpack.c.bf16 %v413_v4, %v412_v2  ;;  %v416_v9 = vld [vmem:[%s5058_s28 + $0x30] sm:$0xff]  ;;  %v417_v10 = vld [vmem:[%s5058_s28 + $0x38] sm:$0xff]  ;;  %s5147_s19 = scalar_lea.vmem [#allocation11], %s3475_s8  ;;  %s5151_s23 = scalar_lea.vmem [#allocation12], %s3476_s15 }
  0xe0   : > { %v428_v8 = vpack.c.bf16 %v415_v6, %v414_v5  ;;  %v418_v11 = vld [vmem:[%s5058_s28 + $0x40] sm:$0xff]  ;;  %v435_v12 = vshrl.u32 %v426_v3, 16  ;;  %v438_v13 = vshll.u32 %v426_v3, 16  ;;  %v429_v14 = vpack.c.bf16 %v417_v10, %v416_v9  ;;  %v419_v15 = vld [vmem:[%s5058_s28 + $0x48] sm:$0xff]  ;;  %v420_v16 = vld [vmem:[%s5058_s28 + $0x50] sm:$0xff]  ;;  %s5996_s26 = sld [smem:[#allocation25_spill]] }
  0xe1   : > { %v421_v17 = vld [vmem:[%s5058_s28 + $0x58] sm:$0xff]  ;;  %vm5101_vm2 = vmand %vm506_vm0, %vm507_vm1  ;;  %v442_v19 = vshrl.u32 %v427_v7, 16  ;;  %v445_v20 = vshll.u32 %v427_v7, 16  ;;  %v422_v23 = vld [vmem:[%s5058_s28 + $0x60] sm:$0xff]  ;;  %v430_v28 = vpack.c.bf16 %v419_v15, %v418_v11 }
  0xe2   : > { %v449_v21 = vshrl.u32 %v428_v8, 16  ;;  %v452_v22 = vshll.u32 %v428_v8, 16  ;;  %v423_v24 = vld [vmem:[%s5058_s28 + $0x68] sm:$0xff]  ;;  %v437_v25 = vrot.slane %v435_v12, 7  ;;  %v456_v26 = vshrl.u32 %v429_v14, 16  ;;  %v424_v57 = vld [vmem:[%s5058_s28 + $0x70] sm:$0xff] }
  0xe3   : > { %v459_v27 = vshll.u32 %v429_v14, 16  ;;  %v444_v29 = vrot.slane %v442_v19, 7  ;;  %v431_v31 = vpack.c.bf16 %v421_v17, %v420_v16  ;;  %v5107_v32 = vpack.c.bf16 %v423_v24, %v422_v23  ;;  %v425_v58 = vld [vmem:[%s5058_s28 + $0x78] sm:$0xff] }
  0xe4   : > { %v451_v30 = vrot.slane %v449_v21, 7  ;;  %v440_v33 = vor.u32 %v438_v13, %v437_v25  ;;  %v517_v34 = vsel %vm5101_vm2, %v437_v25, 0  ;;  %v458_v35 = vrot.slane %v456_v26, 7 }
  0xe5   : > { %v463_v36 = vshrl.u32 %v430_v28, 16  ;;  %v3479_v37 = vcombine.low %v517_v34, %v517_v34  ;;  %v447_v38 = vor.u32 %v445_v20, %v444_v29  ;;  %v518_v39 = vsel %vm5101_vm2, %v444_v29, 0 }
  0xe6   : > { %v454_v40 = vor.u32 %v452_v22, %v451_v30  ;;  %v509_v41 = vsel %vm5101_vm2, 0, %v440_v33  ;;  %v3482_v42 = vcombine.low %v518_v39, %v518_v39  ;;  %v519_v43 = vsel %vm5101_vm2, %v451_v30, 0  ;;  %p3501_p7 = scmp.ne.s32.totalorder %s5996_s26, 0 }
  0xe7   : > { %v461_v44 = vor.u32 %v459_v27, %v458_v35  ;;  %v3477_v45 = vcombine.low %v509_v41, %v509_v41  ;;  %v3478_v46 = vcombine.high %v509_v41, %v509_v41  ;;  %616 = vst [vmem:[#allocation2 + $0x14] sm:$0x1] %v3479_v37  ;;  %v510_v47 = vsel %vm5101_vm2, 0, %v447_v38 }
  0xe8   : > { %v511_v48 = vsel %vm5101_vm2, 0, %v454_v40  ;;  %v3480_v49 = vcombine.low %v510_v47, %v510_v47  ;;  %v3481_v50 = vcombine.high %v510_v47, %v510_v47  ;;  %619 = vst [vmem:[#allocation2 + $0x20] sm:$0x1] %v3482_v42  ;;  %v3485_v53 = vcombine.low %v519_v43, %v519_v43 }
  0xe9   : > { %v3483_v51 = vcombine.low %v511_v48, %v511_v48  ;;  %v3484_v52 = vcombine.high %v511_v48, %v511_v48  ;;  %614 = vst [vmem:[#allocation2 + $0xc] sm:$0xf] %v3477_v45  ;;  %615 = vst [vmem:[#allocation2 + $0x10] sm:$0xf] %v3478_v46  ;;  %v512_v54 = vsel %vm5101_vm2, 0, %v461_v44  ;;  %v520_v55 = vsel %vm5101_vm2, %v458_v35, 0 }
  0xea   : > { %v465_v56 = vrot.slane %v463_v36, 7  ;;  %617 = vst [vmem:[#allocation2 + $0x18] sm:$0xf] %v3480_v49  ;;  %618 = vst [vmem:[#allocation2 + $0x1c] sm:$0xf] %v3481_v50  ;;  %v3486_v59 = vcombine.low %v512_v54, %v512_v54  ;;  %v3487_v60 = vcombine.high %v512_v54, %v512_v54  ;;  %v3488_v61 = vcombine.low %v520_v55, %v520_v55 }
  0xeb   : > { %620 = vst [vmem:[#allocation2 + $0x24] sm:$0xf] %v3483_v51  ;;  %621 = vst [vmem:[#allocation2 + $0x28] sm:$0xf] %v3484_v52  ;;  %v466_v62 = vshll.u32 %v430_v28, 16  ;;  %v470_v0 = vshrl.u32 %v431_v31, 16  ;;  %v433_v6 = vpack.c.bf16 %v425_v58, %v424_v57 }
  0xec   : > { %622 = vst [vmem:[#allocation2 + $0x2c] sm:$0x1] %v3485_v53  ;;  %v521_v63 = vsel %vm5101_vm2, %v465_v56, 0  ;;  %v473_v1 = vshll.u32 %v431_v31, 16  ;;  %v477_v2 = vshrl.u32 %v5107_v32, 16  ;;  %v480_v5 = vshll.u32 %v5107_v32, 16 }
  0xed   : > { %623 = vst [vmem:[#allocation2 + $0x30] sm:$0xf] %v3486_v59  ;;  %624 = vst [vmem:[#allocation2 + $0x34] sm:$0xf] %v3487_v60  ;;  %v468_v3 = vor.u32 %v466_v62, %v465_v56  ;;  %v3491_v4 = vcombine.low %v521_v63, %v521_v63  ;;  %v472_v7 = vrot.slane %v470_v0, 7  ;;  %v484_v10 = vshrl.u32 %v433_v6, 16 }
  0xee   : > { %625 = vst [vmem:[#allocation2 + $0x38] sm:$0x1] %v3488_v61  ;;  %v479_v8 = vrot.slane %v477_v2, 7  ;;  %v487_v11 = vshll.u32 %v433_v6, 16  ;;  %v4664_v34 = vmov (!%p3501_p7), 0  }
  0xef   : > { %v513_v9 = vsel %vm5101_vm2, 0, %v468_v3  ;;  %628 = vst [vmem:[#allocation2 + $0x44] sm:$0x1] %v3491_v4  ;;  %v475_v14 = vor.u32 %v473_v1, %v472_v7  ;;  %v522_v15 = vsel %vm5101_vm2, %v472_v7, 0  ;;  %v486_v20 = vrot.slane %v484_v10, 7 }
  0xf0   : > { %v3489_v12 = vcombine.low %v513_v9, %v513_v9  ;;  %v3490_v13 = vcombine.high %v513_v9, %v513_v9  ;;  %v3494_v16 = vcombine.low %v522_v15, %v522_v15  ;;  %v482_v17 = vor.u32 %v480_v5, %v479_v8  ;;  %642 = vst [vmem:[#allocation2] sm:$0xf] (!%p3501_p7), %v4664_v34 }
  0xf1   : > { %v523_v19 = vsel %vm5101_vm2, %v479_v8, 0  ;;  %v514_v21 = vsel %vm5101_vm2, 0, %v475_v14  ;;  %v489_v26 = vor.u32 %v487_v11, %v486_v20  ;;  %v524_v29 = vsel %vm5101_vm2, %v486_v20, 0  ;;  %641 = sbr.rel (%p3501_p7) target bundleno = 248 (0xf8), region = 56  ;;  %643 = vst [vmem:[#allocation2 + $0x4] sm:$0xf] (!%p3501_p7), %v4664_v34 }
  0xf2   : > { %626 = vst [vmem:[#allocation2 + $0x3c] sm:$0xf] %v3489_v12  ;;  %627 = vst [vmem:[#allocation2 + $0x40] sm:$0xf] %v3490_v13  ;;  %v3497_v22 = vcombine.low %v523_v19, %v523_v19  ;;  %v3492_v23 = vcombine.low %v514_v21, %v514_v21  ;;  %v3493_v24 = vcombine.high %v514_v21, %v514_v21  ;;  %v515_v25 = vsel %vm5101_vm2, 0, %v482_v17 }
  0xf3   : > { %631 = vst [vmem:[#allocation2 + $0x50] sm:$0x1] %v3494_v16  ;;  %v3495_v27 = vcombine.low %v515_v25, %v515_v25  ;;  %v3496_v28 = vcombine.high %v515_v25, %v515_v25  ;;  %v516_v30 = vsel %vm5101_vm2, 0, %v489_v26  ;;  %v3500_v31 = vcombine.low %v524_v29, %v524_v29  ;;  %644 = vst [vmem:[#allocation2 + $0x8] sm:$0x1] (!%p3501_p7), %v4664_v34 }
  0xf4   : > { %634 = vst [vmem:[#allocation2 + $0x5c] sm:$0x1] %v3497_v22  ;;  %629 = vst [vmem:[#allocation2 + $0x48] sm:$0xf] %v3492_v23  ;;  %v3498_v32 = vcombine.low %v516_v30, %v516_v30  ;;  %v3499_v33 = vcombine.high %v516_v30, %v516_v30 }
  0xf5   : > { %630 = vst [vmem:[#allocation2 + $0x4c] sm:$0xf] %v3493_v24  ;;  %632 = vst [vmem:[#allocation2 + $0x54] sm:$0xf] %v3495_v27 }
  0xf6   : > { %633 = vst [vmem:[#allocation2 + $0x58] sm:$0xf] %v3496_v28  ;;  %637 = vst [vmem:[#allocation2 + $0x68] sm:$0x1] %v3500_v31 }
  0xf7   : > { %635 = vst [vmem:[#allocation2 + $0x60] sm:$0xf] %v3498_v32  ;;  %636 = vst [vmem:[#allocation2 + $0x64] sm:$0xf] %v3499_v33 }
  0xf8 PF: > { %s5997_s29 = sld [smem:[#allocation25_spill]] }
  0xfe   : > { %p3502_p1 = scmp.le.s32.totalorder %s5997_s29, 0 }
  0xff   : > { %v649_v35 = vld [vmem:[%s344_s18] sm:$0xff] (!%p3502_p1)  ;;  %v650_v36 = vld [vmem:[%s344_s18 + $0x8] sm:$0xff] (!%p3502_p1) }
 0x100   : > { %648 = sbr.rel (%p3502_p1) target bundleno = 268 (0x10c), region = 60  ;;  %v651_v37 = vpack.c.bf16 (!%p3502_p1), %v650_v36, %v649_v35 }
 0x102   : > { %v653_v38 = vshrl.u32 (!%p3502_p1), %v651_v37, 16  ;;  %v656_v39 = vshll.u32 (!%p3502_p1), %v651_v37, 16 }
 0x104   : > { %v655_v40 = vrot.slane (!%p3502_p1), %v653_v38, 7 }
 0x106   : > { %v658_v41 = vor.u32 (!%p3502_p1), %v656_v39, %v655_v40  ;;  %v662_v42 = vsel (!%p3502_p1), %vm5101_vm2, %v655_v40, 0 }
 0x107   : > { %v3505_v43 = vcombine.low %v662_v42, %v662_v42 }
 0x108   : > { %v661_v44 = vsel %vm5101_vm2, 0, %v658_v41 }
 0x109   : > { %v3503_v45 = vcombine.low %v661_v44, %v661_v44  ;;  %v3504_v46 = vcombine.high %v661_v44, %v661_v44  ;;  %676 = vst [vmem:[#allocation2 + $0x8] sm:$0x1] %v3505_v43 }
 0x10b   : > { %674 = vst [vmem:[#allocation2] sm:$0xf] %v3503_v45  ;;  %675 = vst [vmem:[#allocation2 + $0x4] sm:$0xf] %v3504_v46 }
 0x10c PF: > { %s5998_s30 = sld [smem:[#allocation25_spill]] }
 0x112   : > { %p3506_p13 = scmp.ne.s32.totalorder %s5998_s30, 1 }
 0x113   : > { %v4665_v47 = vmov (!%p3506_p13), 0  }
 0x114   : > { %680 = sbr.rel (%p3506_p13) target bundleno = 283 (0x11b), region = 64  ;;  %682 = vst [vmem:[#allocation2 + $0x6c] sm:$0xf] (!%p3506_p13), %v4665_v47  ;;  %683 = vst [vmem:[#allocation2 + $0x70] sm:$0xf] (!%p3506_p13), %v4665_v47 }
 0x115   : > { %684 = vst [vmem:[#allocation2 + $0x74] sm:$0x1] (!%p3506_p13), %v4665_v47 }
 0x11b PF: > { %s5999_s3 = sld [smem:[#allocation25_spill]] }
 0x121   : > { %p3507_p12 = scmp.ge.s32.totalorder %s5999_s3, 1 }
 0x122   : > { %v689_v48 = vld [vmem:[%s353_s4] sm:$0xff] (!%p3507_p12)  ;;  %v690_v49 = vld [vmem:[%s353_s4 + $0x8] sm:$0xff] (!%p3507_p12) }
 0x123   : > { %688 = sbr.rel (%p3507_p12) target bundleno = 303 (0x12f), region = 68  ;;  %v691_v50 = vpack.c.bf16 (!%p3507_p12), %v690_v49, %v689_v48 }
 0x125   : > { %v693_v51 = vshrl.u32 (!%p3507_p12), %v691_v50, 16  ;;  %v696_v52 = vshll.u32 (!%p3507_p12), %v691_v50, 16 }
 0x127   : > { %v695_v53 = vrot.slane (!%p3507_p12), %v693_v51, 7 }
 0x129   : > { %v698_v54 = vor.u32 (!%p3507_p12), %v696_v52, %v695_v53  ;;  %v702_v55 = vsel (!%p3507_p12), %vm5101_vm2, %v695_v53, 0 }
 0x12a   : > { %v3510_v56 = vcombine.low %v702_v55, %v702_v55 }
 0x12b   : > { %v701_v57 = vsel %vm5101_vm2, 0, %v698_v54 }
 0x12c   : > { %v3508_v58 = vcombine.low %v701_v57, %v701_v57  ;;  %v3509_v59 = vcombine.high %v701_v57, %v701_v57  ;;  %717 = vst [vmem:[#allocation2 + $0x74] sm:$0x1] %v3510_v56 }
 0x12e   : > { %715 = vst [vmem:[#allocation2 + $0x6c] sm:$0xf] %v3508_v58  ;;  %716 = vst [vmem:[#allocation2 + $0x70] sm:$0xf] %v3509_v59 }
 0x12f PF: > { %v4250_v60 = vld [vmem:[#allocation9 + $0xc0] sm:$0xff]   ;;  %v4254_v0 = vld [vmem:[#allocation9 + $0xc8] sm:$0xff]   ;;  %v4258_v3 = vld [vmem:[#allocation9 + $0xd0] sm:$0xff]   ;;  %vm1073_vm3 = vcmask 1042432   ;;  %vm1074_vm4 = vcmask 1046532   ;;  %s6004_s17 = sld [smem:[#allocation25_spill]] }
 0x130   : > { %v4251_v61 = vld [vmem:[#allocation9 + $0x40] sm:$0xff]   ;;  %3770 = vmatprep.subr.bf16.mxu0 %v4250_v60  ;;  %v4255_v1 = vld [vmem:[#allocation9 + $0x48] sm:$0xff]   ;;  %v4259_v4 = vld [vmem:[#allocation9 + $0x50] sm:$0xff]   ;;  %vm742_vm5 = vsmask.f32 3328  ;;  %s6005_s1 = sld [smem:[#allocation26_spill]] }
 0x131   : > { %v4252_v62 = vld [vmem:[#allocation9 + $0x80] sm:$0xff]   ;;  %3834 = vmatprep.subr.bf16.mxu1 %v4251_v61  ;;  %v4256_v2 = vld [vmem:[#allocation9 + $0x88] sm:$0xff]   ;;  %v4260_v5 = vld [vmem:[#allocation9 + $0x90] sm:$0xff]   ;;  %vm743_vm6 = vsmask.f32 7440  ;;  %s3245_s28 = sshll.u32 %s5147_s19, 4  ;;  %s5756_s28 = int_to_ptr.vmem [resolvable:$true] %s3245_s28 }
 0x132   : > { %v4253_v63 = vld [vmem:[#allocation9] sm:$0xff]   ;;  %3771 = vmatpush3.bf16.msra.mxu0 %v4252_v62  ;;  %v4257_v18 = vld [vmem:[#allocation9 + $0x8] sm:$0xff]   ;;  %v4261_v6 = vld [vmem:[#allocation9 + $0x10] sm:$0xff]   ;;  %s6006_s14 = sld [smem:[#allocation40_spill]]  ;;  %s3224_s20 = scalar_lea.sflag [#allocation5], %s5054_s10 }
 0x133   : > { %3835 = vmatpush3.bf16.msra.mxu1 %v4253_v63  ;;  %3772 = vmatprep.subr.bf16.mxu0 %v4254_v0  ;;  %v4262_v7 = vld [vmem:[#allocation9 + $0xd8] sm:$0xff]   ;;  %v4266_v11 = vld [vmem:[#allocation9 + $0xe0] sm:$0xff]   ;;  %v4270_v15 = vld [vmem:[#allocation9 + $0xe8] sm:$0xff]   ;;  %s4464_s0 = scalar_lea.vmem %s5756_s28, 1024  ;;  %p6007_p11 = scmp.ne.s32.totalorder %s5966_s13, 0 }
 0x134   : > { %3836 = vmatprep.subr.bf16.mxu1 %v4255_v1  ;;  %v4263_v8 = vld [vmem:[#allocation9 + $0x58] sm:$0xff]   ;;  %v4267_v12 = vld [vmem:[#allocation9 + $0x60] sm:$0xff]   ;;  %v4271_v16 = vld [vmem:[#allocation9 + $0x68] sm:$0xff]   ;;  %p4465_p8 = scmp.ne.s32.totalorder %s5756_s28, %s4464_s0  ;;  %s4666_s7 = smov [#allocation11]  }
 0x135   : > { %v4264_v9 = vld [vmem:[#allocation9 + $0x98] sm:$0xff]   ;;  %v4268_v13 = vld [vmem:[#allocation9 + $0xa0] sm:$0xff]   ;;  %v4272_v17 = vld [vmem:[#allocation9 + $0xa8] sm:$0xff]   ;;  %s3722_s27 = sshll.u32 %s6004_s17, 4  ;;  %s4468_s4 = sshll.u32 %s4666_s7, 4  ;;  %s4469_s4 = int_to_ptr.vmem [resolvable:$false] %s4468_s4 }
 0x136   : > { %3773 = vmatpush3.bf16.msra.mxu0 %v4256_v2  ;;  %v4265_v10 = vld [vmem:[#allocation9 + $0x18] sm:$0xff]   ;;  %v4269_v14 = vld [vmem:[#allocation9 + $0x20] sm:$0xff]   ;;  %v4273_v19 = vld [vmem:[#allocation9 + $0x28] sm:$0xff]   ;;  %s3699_s12 = sshll.u32 %s6005_s1, 5  ;;  %p4466_p6 = pnand %p4465_p8, %p6007_p11 }
 0x137   : > { %3837 = vmatpush3.bf16.msra.mxu1 %v4257_v18  ;;  %3774 = vmatprep.subr.bf16.mxu0 %v4258_v3  ;;  %v4274_v20 = vld [vmem:[#allocation9 + $0xf0] sm:$0xff]   ;;  %v4278_v24 = vld [vmem:[#allocation9 + $0xf8] sm:$0xff]   ;;  %v5173_v29 = vld [vmem:[#allocation2] sm:$0xf]  ;;  %s3242_s11 = sadd.s32 %s3722_s27, %s3699_s12  ;;  %s4470_s8 = scalar_lea.vmem %s4469_s4, 2048 }
 0x138   : > { %3838 = vmatprep.subr.bf16.mxu1 %v4259_v4  ;;  %v4275_v21 = vld [vmem:[#allocation9 + $0x70] sm:$0xff]   ;;  %v4279_v25 = vld [vmem:[#allocation9 + $0x78] sm:$0xff]   ;;  %v5175_v30 = vld [vmem:[#allocation2 + $0x4] sm:$0xf]  ;;  %v746_v32 = vshrl.u32 %v5173_v29, 16  ;;  %v749_v33 = vshll.u32 %v5173_v29, 16  ;;  %p4467_p2 = pneg %p4466_p6  ;;  %p4471_p3 = scmp.lt.s32.totalorder %s5756_s28, %s4469_s4 }
 0x139   : > { %v4276_v22 = vld [vmem:[#allocation9 + $0xb0] sm:$0xff]   ;;  %v4280_v26 = vld [vmem:[#allocation9 + $0xb8] sm:$0xff]   ;;  %v755_v34 = vshll.u32 %v5175_v30, 16  ;;  %v759_v35 = vshrl.u32 %v5175_v30, 16  ;;  %v1049_v38 = vld [vmem:[#allocation2] sm:$0xe]  ;;  %v3511_v56 = vcombine.low %v5173_v29, %v5175_v30  ;;  %p4472_p0 = scmp.lt.s32.totalorder %s4470_s8, %s4464_s0 }
 0x13a   : > { %3775 = vmatpush3.bf16.msra.mxu0 %v4260_v5  ;;  %v4277_v23 = vld [vmem:[#allocation9 + $0x30] sm:$0xff]   ;;  %v4281_v27 = vld [vmem:[#allocation9 + $0x38] sm:$0xff]   ;;  %vm5183_vm7 = vmor %vm1073_vm3, %vm1074_vm4  ;;  %v748_v40 = vrot.slane %v746_v32, 4  ;;  %v751_v41 = vrot.slane %v749_v33, 5  ;;  %v3527_v42 = vrot.slane %v1049_v38, 9  ;;  %v1078_v43 = vrot.slane %v5175_v30, 5 }
 0x13b   : > { %3839 = vmatpush3.bf16.msra.mxu1 %v4261_v6  ;;  %3776 = vmatprep.subr.bf16.mxu0 %v4262_v7  ;;  %v4282_v28 = vld [vmem:[#allocation2 + $0xc] sm:$0xff]   ;;  %v734_v31 = vld [vmem:[#allocation2 + $0x8] sm:$0x1]  ;;  %v757_v44 = vrot.slane %v755_v34, 5  ;;  %v761_v45 = vrot.slane %v759_v35, 4  ;;  %v4284_v46 = vld [vmem:[#allocation9 + $0x140] sm:$0xff]   ;;  %p4473_p9 = por %p4472_p0, %p4471_p3 }
 0x13c   : > { %3840 = vmatprep.subr.bf16.mxu1 %v4263_v8  ;;  %1388 = vmatprep.mubr.bf16.mxu0 %v4282_v28  ;;  %v765_v36 = vshll.u32 %v734_v31, 16  ;;  %v1081_v37 = vrot.slane %v734_v31, 5  ;;  %vm5190_vm8 = vmor %vm742_vm5, %vm743_vm6  ;;  %v752_v48 = vor.u32 %v751_v41, %v748_v40  ;;  %v1079_v49 = vsel %vm5183_vm7, %v3527_v42, %v1078_v43  ;;  %v4285_v53 = vld [vmem:[#allocation9 + $0x100] sm:$0xff]   ;;  %v5200_v58 = vld [vmem:[#allocation2 + $0xc] sm:$0xf]  ;;  %s3700_s2 = sshll.u32 %s3242_s11, 6 }
 0x13d   : > { %v1080_v50 = vrot.slane %v1078_v43, 4  ;;  %v762_v51 = vor.u32 %v761_v45, %v757_v44  ;;  %v4286_v57 = vld [vmem:[#allocation2 + $0x18] sm:$0xff]   ;;  %v5202_v59 = vld [vmem:[#allocation2 + $0x10] sm:$0xf]  ;;  %v735_v62 = vld [vmem:[#allocation2 + $0x14] sm:$0x1]  ;;  %s5761_s18 = scalar_lea.hbm %s6006_s14, %s3700_s2  ;;  %p4474_p5 = pnand %p4473_p9, %p4467_p2 }
 0x13e   : > { %3777 = vmatpush3.bf16.msra.mxu0 %v4264_v9  ;;  %v767_v52 = vrot.slane %v765_v36, 5  ;;  %v753_v54 = vrot.slane %v752_v48, 4  ;;  %v770_v63 = vshrl.u32 %v5200_v58, 16  ;;  %v773_v0 = vshll.u32 %v5200_v58, 16  ;;  %v4288_v1 = vld [vmem:[#allocation9 + $0x148] sm:$0xff]  }
 0x13f   : > { %3841 = vmatpush3.bf16.msra.mxu1 %v4265_v10  ;;  %3778 = vmatprep.subr.bf16.mxu0 %v4266_v11  ;;  %v1082_v55 = vsel %vm5183_vm7, %v1080_v50, %v1081_v37  ;;  %v763_v60 = vrot.slane %v762_v51, 4  ;;  %v779_v18 = vshll.u32 %v5202_v59, 16  ;;  %v783_v3 = vshrl.u32 %v5202_v59, 16  ;;  %v1050_v5 = vld [vmem:[#allocation2 + $0xc] sm:$0xe]  ;;  %v4289_v6 = vld [vmem:[#allocation9 + $0x108] sm:$0xff]  }
 0x140   : > { %3842 = vmatprep.subr.bf16.mxu1 %v4267_v12  ;;  %v3535_v61 = vcombine.low %v1079_v49, %v1082_v55  ;;  %v758_v2 = vsel %vm5190_vm8, %v753_v54, %v757_v44  ;;  %v789_v4 = vshll.u32 %v735_v62, 16  ;;  %v772_v8 = vrot.slane %v770_v63, 4  ;;  %v4292_v11 = vld [vmem:[#allocation9 + $0x150] sm:$0xff]   ;;  %v5219_v28 = vld [vmem:[#allocation2 + $0x1c] sm:$0xf] }
 0x141   : > { %v768_v7 = vsel %vm5190_vm8, %v763_v60, %v767_v52  ;;  %v775_v9 = vrot.slane %v773_v0, 5  ;;  %v3528_v10 = vrot.slane %v1050_v5, 9  ;;  %v736_v29 = vld [vmem:[#allocation2 + $0x20] sm:$0x1]  ;;  %v803_v33 = vshll.u32 %v5219_v28, 16  ;;  %v4294_v49 = vld [vmem:[#allocation9 + $0x110] sm:$0xff]  }
 0x142   : > { %3779 = vmatpush3.bf16.msra.mxu0 %v4268_v13  ;;  %v3519_v12 = vcombine.low %v758_v2, %v768_v7  ;;  %v781_v13 = vrot.slane %v779_v18, 5  ;;  %v1051_v34 = vld [vmem:[#allocation2 + $0x18] sm:$0xe]  ;;  %v807_v37 = vshrl.u32 %v5219_v28, 16  ;;  %v813_v38 = vshll.u32 %v736_v29, 16 }
 0x143   : > { %3843 = vmatpush3.bf16.msra.mxu1 %v4269_v14  ;;  %3780 = vmatprep.subr.bf16.mxu0 %v4270_v15  ;;  %v785_v14 = vrot.slane %v783_v3, 4  ;;  %v791_v15 = vrot.slane %v789_v4, 5  ;;  %v805_v45 = vrot.slane %v803_v33, 5  ;;  %v3529_v51 = vrot.slane %v1051_v34, 9  ;;  %v4295_v54 = vld [vmem:[#allocation9 + $0x180] sm:$0xff]  }
 0x144   : > { %3844 = vmatprep.subr.bf16.mxu1 %v4271_v16  ;;  %v4293_v16 = vld [vmem:[#allocation9 + $0x1c0] sm:$0xff]   ;;  %1581 = vmatprep.mubr.bf16.mxu1 %v3519_v12  ;;  %v815_v48 = vrot.slane %v813_v38, 5  ;;  %v1092_v52 = vrot.slane %v5219_v28, 5  ;;  %v5236_v63 = vld [vmem:[#allocation2 + $0x24] sm:$0xf] }
 0x145   : > { %v5238_v0 = vld [vmem:[#allocation2 + $0x28] sm:$0xf]  ;;  %v737_v3 = vld [vmem:[#allocation2 + $0x2c] sm:$0x1]  ;;  %v818_v4 = vshrl.u32 %v5236_v63, 16  ;;  %v821_v5 = vshll.u32 %v5236_v63, 16 }
 0x146   : > { %3781 = vmatpush3.bf16.msra.mxu0 %v4272_v17  ;;  %v776_v17 = vor.u32 %v775_v9, %v772_v8  ;;  %v827_v9 = vshll.u32 %v5238_v0, 16  ;;  %v5257_v33 = vld [vmem:[#allocation2 + $0x34] sm:$0xf]  ;;  %v4304_v34 = vld [vmem:[#allocation9 + $0x160] sm:$0xff]  }
 0x147   : > { %3845 = vmatpush3.bf16.msra.mxu1 %v4273_v19  ;;  %3782 = vmatprep.subr.bf16.mxu0 %v4274_v20  ;;  %v1085_v19 = vrot.slane %v5202_v59, 5  ;;  %v1088_v20 = vrot.slane %v735_v62, 5  ;;  %v4296_v62 = vld [vmem:[#allocation2 + $0x30] sm:$0xff]   ;;  %v820_v12 = vrot.slane %v818_v4, 4  ;;  %v5274_v4 = vld [vmem:[#allocation2 + $0x3c] sm:$0xf] }
 0x148   : > { %3846 = vmatprep.subr.bf16.mxu1 %v4275_v21  ;;  %v786_v21 = vor.u32 %v785_v14, %v781_v13  ;;  %v837_v14 = vshll.u32 %v737_v3, 16 }
 0x14a   : > { %3783 = vmatpush3.bf16.msra.mxu0 %v4276_v22  ;;  %v5213_v22 = vld [vmem:[#allocation2 + $0x18] sm:$0xf]  ;;  %v787_v30 = vrot.slane %v786_v21, 4 }
 0x14b   : > { %3847 = vmatpush3.bf16.msra.mxu1 %v4277_v23  ;;  %3784 = vmatprep.subr.bf16.mxu0 %v4278_v24  ;;  %v777_v23 = vrot.slane %v776_v17, 4  ;;  %v1086_v24 = vsel %vm5183_vm7, %v3528_v10, %v1085_v19  ;;  %v794_v31 = vshrl.u32 %v5213_v22, 16  ;;  %v797_v32 = vshll.u32 %v5213_v22, 16 }
 0x14c   : > { %3848 = vmatprep.subr.bf16.mxu1 %v4279_v25  ;;  %v1087_v25 = vrot.slane %v1085_v19, 4  ;;  %v792_v40 = vsel %vm5190_vm8, %v787_v30, %v791_v15  ;;  %v831_v10 = vshrl.u32 %v5238_v0, 16  ;;  %v4300_v15 = vld [vmem:[#allocation9 + $0x118] sm:$0xff]  }
 0x14d   : > { %v782_v35 = vsel %vm5190_vm8, %v777_v23, %v781_v13  ;;  %v796_v42 = vrot.slane %v794_v31, 4  ;;  %v799_v43 = vrot.slane %v797_v32, 5  ;;  %v823_v13 = vrot.slane %v821_v5, 5  ;;  %v4302_v31 = vld [vmem:[#allocation2 + $0x3c] sm:$0xff]   ;;  %v5255_v32 = vld [vmem:[#allocation2 + $0x30] sm:$0xf] }
 0x14e   : > { %3785 = vmatpush3.bf16.msra.mxu0 %v4280_v26  ;;  %v3512_v26 = vcombine.low %v5200_v58, %v5202_v59  ;;  %v1089_v36 = vsel %vm5183_vm7, %v1087_v25, %v1088_v20  ;;  %v3520_v44 = vcombine.low %v782_v35, %v792_v40  ;;  %v1094_v58 = vrot.slane %v1092_v52, 4  ;;  %v4298_v59 = vld [vmem:[#allocation9 + $0x158] sm:$0xff]  }
 0x14f   : > { %3849 = vmatpush3.bf16.msra.mxu1 %v4281_v27  ;;  %3898 = vmatprep.subr.bf16.mxu0 %v4284_v46  ;;  %v4290_v27 = vld [vmem:[#allocation2 + $0x24] sm:$0xff]   ;;  %v3536_v41 = vcombine.low %v1086_v24, %v1089_v36  ;;  %v809_v46 = vrot.slane %v807_v37, 4  ;;  %v800_v50 = vor.u32 %v799_v43, %v796_v42  ;;  %v833_v17 = vrot.slane %v831_v10, 4  ;;  %v738_v37 = vld [vmem:[#allocation2 + $0x38] sm:$0x1]  ;;  %v4311_v5 = vld [vmem:[#allocation9 + $0x1d8] sm:$0xff]  }
 0x150   : > { %3962 = vmatprep.subr.bf16.mxu1 %v4293_v16  ;;  %v829_v16 = vrot.slane %v827_v9, 5  ;;  %v1099_v20 = vrot.slane %v5238_v0, 5  ;;  %v824_v21 = vor.u32 %v823_v13, %v820_v12  ;;  %v1102_v23 = vrot.slane %v737_v3, 5  ;;  %v4308_v3 = vld [vmem:[#allocation2 + $0x48] sm:$0xff]   ;;  %v739_v9 = vld [vmem:[#allocation2 + $0x44] sm:$0x1] }
 0x151   : > { %1389 = vmatmul.mubr.bf16.vlgmr.msra.gmra.mrb[0].mxu0 %v3535_v61  ;;  %v810_v55 = vor.u32 %v809_v46, %v805_v45  ;;  %v3513_v61 = vcombine.low %v5213_v22, %v5219_v28  ;;  %v839_v22 = vrot.slane %v837_v14, 5  ;;  %v842_v38 = vshrl.u32 %v5255_v32, 16  ;;  %v4305_v46 = vld [vmem:[#allocation9 + $0x1d0] sm:$0xff]  }
 0x152   : > { %3899 = vmatpush3.bf16.msra.mxu0 %v4285_v53  ;;  %1396 = vmatprep.mubr.bf16.mxu0 %v4286_v57  ;;  %v1095_v53 = vrot.slane %v736_v29, 5  ;;  %v1093_v57 = vsel %vm5183_vm7, %v3529_v51, %v1092_v52  ;;  %v834_v24 = vor.u32 %v833_v17, %v829_v16  ;;  %v825_v28 = vrot.slane %v824_v21, 4  ;;  %v4306_v52 = vld [vmem:[#allocation9 + $0x120] sm:$0xff]   ;;  %v4312_v17 = vld [vmem:[#allocation9 + $0x128] sm:$0xff]  }
 0x153   : > { %3900 = vmatprep.subr.bf16.mxu0 %v4288_v1  ;;  %1582 = vmatmul.mubr.bf16.vlgmr.msra.gmra.mrb[0].mxu1 %v3511_v56  ;;  %v801_v56 = vrot.slane %v800_v50, 4  ;;  %v811_v60 = vrot.slane %v810_v55, 4  ;;  %v4299_v1 = vld [vmem:[#allocation9 + $0x1c8] sm:$0xff]   ;;  %v845_v40 = vshll.u32 %v5255_v32, 16  ;;  %v851_v43 = vshll.u32 %v5257_v33, 16 }
 0x154   : > { %1589 = vmatprep.mubr.bf16.mxu1 %v3520_v44  ;;  %3963 = vmatpush3.bf16.msra.mxu1 %v4295_v54  ;;  %v1096_v18 = vsel %vm5183_vm7, %v1094_v58, %v1095_v53  ;;  %v835_v29 = vrot.slane %v834_v24, 4  ;;  %v830_v35 = vsel %vm5190_vm8, %v825_v28, %v829_v16  ;;  %v855_v44 = vshrl.u32 %v5257_v33, 16  ;;  %v1054_v16 = vld [vmem:[#allocation2 + $0x3c] sm:$0xe] }
 0x155   : > { %v806_v2 = vsel %vm5190_vm8, %v801_v56, %v805_v45  ;;  %v816_v7 = vsel %vm5190_vm8, %v811_v60, %v815_v48  ;;  %v3537_v8 = vcombine.low %v1093_v57, %v1096_v18  ;;  %3964 = vmatprep.subr.bf16.mxu1 %v4299_v1  ;;  %v861_v45 = vshll.u32 %v738_v37, 16 }
 0x156   : > { %3901 = vmatpush3.bf16.msra.mxu0 %v4289_v6  ;;  %v1052_v6 = vld [vmem:[#allocation2 + $0x24] sm:$0xe]  ;;  %v840_v42 = vsel %vm5190_vm8, %v835_v29, %v839_v22  ;;  %v847_v50 = vrot.slane %v845_v40, 5  ;;  %v3514_v53 = vcombine.low %v5236_v63, %v5238_v0  ;;  %v853_v54 = vrot.slane %v851_v43, 5  ;;  %v4314_v40 = vld [vmem:[#allocation2 + $0x54] sm:$0xff]  }
 0x157   : > { %3902 = vmatprep.subr.bf16.mxu0 %v4292_v11  ;;  %v3521_v11 = vcombine.low %v806_v2, %v816_v7  ;;  %v3530_v19 = vrot.slane %v1052_v6, 9  ;;  %v3522_v48 = vcombine.low %v830_v35, %v840_v42  ;;  %v857_v55 = vrot.slane %v855_v44, 4  ;;  %v4310_v63 = vld [vmem:[#allocation9 + $0x168] sm:$0xff]  }
 0x158   : > { %v1106_v56 = vrot.slane %v5257_v33, 5  ;;  %v1109_v58 = vrot.slane %v738_v37, 5  ;;  %v866_v10 = vshrl.u32 %v5274_v4, 16  ;;  %v3532_v22 = vrot.slane %v1054_v16, 9 }
 0x159   : > { %1397 = vmatmul.mubr.bf16.gmra.mrb[4].mxu0 %v3536_v41  ;;  %v1100_v25 = vsel %vm5183_vm7, %v3530_v19, %v1099_v20  ;;  %v1053_v41 = vld [vmem:[#allocation2 + $0x30] sm:$0xe]  ;;  %v858_v60 = vor.u32 %v857_v55, %v853_v54  ;;  %v3515_v24 = vcombine.low %v5255_v32, %v5257_v33  ;;  %v4317_v32 = vld [vmem:[#allocation9 + $0x1e0] sm:$0xff]  }
 0x15a   : > { %1404 = vmatprep.mubr.bf16.mxu0 %v4290_v27  ;;  %3903 = vmatpush3.bf16.msra.mxu0 %v4294_v49  ;;  %v4301_v27 = vld [vmem:[#allocation9 + $0x188] sm:$0xff]   ;;  %v844_v49 = vrot.slane %v842_v38, 4  ;;  %v3531_v51 = vrot.slane %v1053_v41, 9  ;;  %v1108_v1 = vrot.slane %v1106_v56, 4  ;;  %v4318_v41 = vld [vmem:[#allocation9 + $0x130] sm:$0xff]  }
 0x15b   : > { %1590 = vmatmul.mubr.bf16.gmra.mrb[4].mxu1 %v3512_v26  ;;  %3904 = vmatprep.subr.bf16.mxu0 %v4298_v59  ;;  %v1101_v26 = vrot.slane %v1099_v20, 4  ;;  %v4307_v59 = vld [vmem:[#allocation9 + $0x190] sm:$0xff]   ;;  %v859_v0 = vrot.slane %v858_v60, 4  ;;  %v868_v20 = vrot.slane %v866_v10, 4  ;;  %v4324_v10 = vld [vmem:[#allocation9 + $0x178] sm:$0xff]  }
 0x15c   : > { %1597 = vmatprep.mubr.bf16.mxu1 %v3521_v11  ;;  %3965 = vmatpush3.bf16.msra.mxu1 %v4301_v27  ;;  %v848_v57 = vor.u32 %v847_v50, %v844_v49  ;;  %v1110_v18 = vsel %vm5183_vm7, %v1108_v1, %v1109_v58  ;;  %v869_v11 = vshll.u32 %v5274_v4, 16 }
 0x15d   : > { %v1103_v30 = vsel %vm5183_vm7, %v1101_v26, %v1102_v23  ;;  %3966 = vmatprep.subr.bf16.mxu1 %v4305_v46  ;;  %v4313_v23 = vld [vmem:[#allocation9 + $0x198] sm:$0xff]   ;;  %v5299_v46 = vld [vmem:[#allocation2 + $0x4c] sm:$0xf] }
 0x15e   : > { %3905 = vmatpush3.bf16.msra.mxu0 %v4300_v15  ;;  %v3538_v36 = vcombine.low %v1100_v25, %v1103_v30  ;;  %v849_v2 = vrot.slane %v848_v57, 4  ;;  %v885_v15 = vshll.u32 %v739_v9, 16  ;;  %v871_v21 = vrot.slane %v869_v11, 5 }
 0x15f   : > { %3906 = vmatprep.subr.bf16.mxu0 %v4304_v34  ;;  %v1116_v30 = vrot.slane %v739_v9, 5  ;;  %v1120_v1 = vrot.slane %v5299_v46, 5  ;;  %v4322_v9 = vld [vmem:[#allocation2 + $0x60] sm:$0xff]  }
 0x160   : > { %3967 = vmatpush3.bf16.msra.mxu1 %v4307_v59  ;;  %v854_v6 = vsel %vm5190_vm8, %v849_v2, %v853_v54  ;;  %v872_v28 = vor.u32 %v871_v21, %v868_v20  ;;  %v887_v29 = vrot.slane %v885_v15, 5  ;;  %v4319_v54 = vld [vmem:[#allocation9 + $0x1a0] sm:$0xff]   ;;  %v4320_v59 = vld [vmem:[#allocation9 + $0x1e8] sm:$0xff]   ;;  %v5314_v15 = vld [vmem:[#allocation2 + $0x54] sm:$0xf] }
 0x161   : > { %1405 = vmatmul.mubr.bf16.gmra.mrb[8].mxu0 %v3537_v8  ;;  %v5278_v8 = vld [vmem:[#allocation2 + $0x40] sm:$0xf]  ;;  %3968 = vmatprep.subr.bf16.mxu1 %v4311_v5  ;;  %v1122_v5 = vrot.slane %v1120_v1, 4  ;;  %v741_v20 = vld [vmem:[#allocation2 + $0x5c] sm:$0x1]  ;;  %v914_v21 = vshrl.u32 %v5314_v15, 16 }
 0x162   : > { %1412 = vmatprep.mubr.bf16.mxu0 %v4296_v62  ;;  %v1107_v62 = vsel %vm5183_vm7, %v3531_v51, %v1106_v56  ;;  %3907 = vmatpush3.bf16.msra.mxu0 %v4306_v52  ;;  %v875_v13 = vshll.u32 %v5278_v8, 16  ;;  %v879_v14 = vshrl.u32 %v5278_v8, 16  ;;  %v1113_v27 = vrot.slane %v5278_v8, 5 }
 0x163   : > { %1598 = vmatmul.mubr.bf16.gmra.mrb[8].mxu1 %v3513_v61  ;;  %v863_v61 = vrot.slane %v861_v45, 5  ;;  %v3539_v7 = vcombine.low %v1107_v62, %v1110_v18  ;;  %3908 = vmatprep.subr.bf16.mxu0 %v4310_v63  ;;  %v873_v37 = vrot.slane %v872_v28, 4  ;;  %v3516_v44 = vcombine.low %v5274_v4, %v5278_v8  ;;  %v5297_v45 = vld [vmem:[#allocation2 + $0x48] sm:$0xf]  ;;  %v4326_v28 = vld [vmem:[#allocation9 + $0x138] sm:$0xff]  }
 0x164   : > { %1605 = vmatprep.mubr.bf16.mxu1 %v3522_v48  ;;  %v877_v25 = vrot.slane %v875_v13, 5  ;;  %v881_v26 = vrot.slane %v879_v14, 4  ;;  %v1114_v34 = vsel %vm5183_vm7, %v3532_v22, %v1113_v27  ;;  %v1115_v35 = vrot.slane %v1113_v27, 4  ;;  %3969 = vmatpush3.bf16.msra.mxu1 %v4313_v23  ;;  %v740_v48 = vld [vmem:[#allocation2 + $0x50] sm:$0x1]  ;;  %v4325_v13 = vld [vmem:[#allocation9 + $0x1f0] sm:$0xff]  }
 0x165   : > { %v864_v12 = vsel %vm5190_vm8, %v859_v0, %v863_v61  ;;  %3970 = vmatprep.subr.bf16.mxu1 %v4317_v32  ;;  %v890_v50 = vshrl.u32 %v5297_v45, 16  ;;  %v893_v51 = vshll.u32 %v5297_v45, 16  ;;  %v899_v52 = vshll.u32 %v5299_v46, 16  ;;  %v4321_v0 = vld [vmem:[#allocation9 + $0x1a8] sm:$0xff]   ;;  %v1056_v27 = vld [vmem:[#allocation2 + $0x54] sm:$0xe] }
 0x166   : > { %v3523_v19 = vcombine.low %v854_v6, %v864_v12  ;;  %3909 = vmatpush3.bf16.msra.mxu0 %v4312_v17  ;;  %v1117_v38 = vsel %vm5183_vm7, %v1115_v35, %v1116_v30  ;;  %v878_v42 = vsel %vm5190_vm8, %v873_v37, %v877_v25  ;;  %v903_v56 = vshrl.u32 %v5299_v46, 16 }
 0x167   : > { %v3540_v43 = vcombine.low %v1114_v34, %v1117_v38  ;;  %v909_v57 = vshll.u32 %v740_v48, 16  ;;  %v892_v60 = vrot.slane %v890_v50, 4  ;;  %v895_v61 = vrot.slane %v893_v51, 5 }
 0x168   : > { %v901_v62 = vrot.slane %v899_v52, 5  ;;  %3971 = vmatpush3.bf16.msra.mxu1 %v4319_v54  ;;  %v905_v2 = vrot.slane %v903_v56, 4  ;;  %v1123_v63 = vrot.slane %v740_v48, 5  ;;  %v3517_v17 = vcombine.low %v5297_v45, %v5299_v46  ;;  %v4328_v45 = vld [vmem:[#allocation9 + $0x1f8] sm:$0xff]  }
 0x169   : > { %1413 = vmatmul.mubr.bf16.gmra.mrb[12].mxu0 %v3538_v36  ;;  %v4316_v36 = vld [vmem:[#allocation9 + $0x170] sm:$0xff]   ;;  %v896_v18 = vor.u32 %v895_v61, %v892_v60  ;;  %3972 = vmatprep.subr.bf16.mxu1 %v4320_v59  ;;  %v917_v22 = vshll.u32 %v5314_v15, 16  ;;  %v1130_v32 = vrot.slane %v741_v20, 5  ;;  %v1647_v52 = vld [vmem:[#allocation2 + $0x10] sm:$0xf]  ;;  %v5337_v59 = vld [vmem:[#allocation9 + $0x200] sm:$0xff]  }
 0x16a   : > { %1420 = vmatprep.mubr.bf16.mxu0 %v4302_v31  ;;  %v882_v31 = vor.u32 %v881_v26, %v877_v25  ;;  %3910 = vmatprep.subr.bf16.mxu0 %v4316_v36  ;;  %v906_v6 = vor.u32 %v905_v2, %v901_v62  ;;  %v1124_v8 = vsel %vm5183_vm7, %v1122_v5, %v1123_v63  ;;  %v933_v26 = vshll.u32 %v741_v20, 16  ;;  %v5339_v2 = vld [vmem:[#allocation2 + $0x18] sm:$0xf] }
 0x16b   : > { %1606 = vmatmul.mubr.bf16.gmra.mrb[12].mxu1 %v3514_v53  ;;  %v1055_v53 = vld [vmem:[#allocation2 + $0x48] sm:$0xe]  ;;  %3911 = vmatpush3.bf16.msra.mxu0 %v4318_v41  ;;  %v919_v30 = vrot.slane %v917_v22, 5  ;;  %v1684_v56 = vshrl.u32 %v1647_v52, 16 }
 0x16c   : > { %1613 = vmatprep.mubr.bf16.mxu1 %v3523_v19  ;;  %v883_v33 = vrot.slane %v882_v31, 4  ;;  %v3533_v58 = vrot.slane %v1055_v53, 9  ;;  %v907_v11 = vrot.slane %v906_v6, 4  ;;  %3973 = vmatpush3.bf16.msra.mxu1 %v4321_v0  ;;  %v5320_v19 = vld [vmem:[#allocation2 + $0x58] sm:$0xf]  ;;  %v3534_v31 = vrot.slane %v1056_v27, 9 }
 0x16d   : > { %3912 = vmatprep.subr.bf16.mxu0 %v4324_v10  ;;  %3974 = vmatprep.subr.bf16.mxu1 %v4325_v13  ;;  %v927_v25 = vshrl.u32 %v5320_v19, 16  ;;  %v1127_v34 = vrot.slane %v5320_v19, 5  ;;  %v935_v37 = vrot.slane %v933_v26, 5  ;;  %v4327_v41 = vld [vmem:[#allocation9 + $0x1b0] sm:$0xff]   ;;  %v3518_v51 = vcombine.low %v5314_v15, %v5320_v19  ;;  %v1648_v53 = vld [vmem:[#allocation2 + $0x14] sm:$0x1] }
 0x16e   : > { %v888_v49 = vsel %vm5190_vm8, %v883_v33, %v887_v29  ;;  %v1121_v4 = vsel %vm5183_vm7, %v3533_v58, %v1120_v1  ;;  %v916_v29 = vrot.slane %v914_v21, 4  ;;  %v1862_v58 = vld [vmem:[#allocation2 + $0xc] sm:$0xe]  ;;  %v1899_v1 = vrot.slane %v1648_v53, 5 }
 0x16f   : > { %v3524_v55 = vcombine.low %v878_v42, %v888_v49  ;;  %v3541_v12 = vcombine.low %v1121_v4, %v1124_v8  ;;  %v929_v36 = vrot.slane %v927_v25, 4  ;;  %v1128_v38 = vsel %vm5183_vm7, %v3534_v31, %v1127_v34  ;;  %3913 = vmatpush3.bf16.msra.mxu0 %v4326_v28  ;;  %v4329_v49 = vld [vmem:[#allocation9 + $0x1b8] sm:$0xff]   ;;  %v5363_v28 = vld [vmem:[#allocation2 + $0x1c] sm:$0xf] }
 0x170   : > { %v920_v33 = vor.u32 %v919_v30, %v916_v29  ;;  %3975 = vmatpush3.bf16.msra.mxu1 %v4327_v41  ;;  %v3583_v61 = vrot.slane %v1862_v58, 9  ;;  %v1686_v0 = vrot.slane %v1684_v56, 4  ;;  %v2281_v4 = vshrl.u32 %v5339_v2, 16  ;;  %4042 = vmatprep.subr.bf16.mxu0 %v5337_v59  ;;  %v5365_v29 = vld [vmem:[#allocation2 + $0x20] sm:$0x1] }
 0x171   : > { %1421 = vmatmul.mubr.bf16.gmra.mrb[16].mxu0 %v3539_v7  ;;  %v897_v7 = vrot.slane %v896_v18, 4  ;;  %3976 = vmatprep.subr.bf16.mxu1 %v4328_v45  ;;  %v2284_v8 = vshll.u32 %v5339_v2, 16 }
 0x172   : > { %1428 = vmatprep.mubr.bf16.mxu0 %v4308_v3  ;;  %v911_v3 = vrot.slane %v909_v57, 5  ;;  %v1690_v57 = vshll.u32 %v1648_v53, 16 }
 0x173   : > { %1614 = vmatmul.mubr.bf16.gmra.mrb[16].mxu1 %v3515_v24  ;;  %v902_v14 = vsel %vm5190_vm8, %v897_v7, %v901_v62  ;;  %v923_v24 = vshll.u32 %v5320_v19, 16  ;;  %v1896_v62 = vrot.slane %v1647_v52, 5  ;;  %v5352_v7 = vld [vmem:[#allocation2 + $0x20] sm:$0x1] }
 0x174   : > { %1621 = vmatprep.mubr.bf16.mxu1 %v3524_v55  ;;  %v912_v16 = vsel %vm5190_vm8, %v907_v11, %v911_v3  ;;  %v1680_v55 = vshll.u32 %v1647_v52, 16  ;;  %3977 = vmatpush3.bf16.msra.mxu1 %v4329_v49  ;;  %v5343_v18 = vrot.slane %v1690_v57, 5  ;;  %v5345_v3 = vld [vmem:[#allocation2 + $0x1c] sm:$0xf]  ;;  %v2283_v11 = vrot.slane %v2281_v4, 4 }
 0x175   : > { %v3525_v23 = vcombine.low %v902_v14, %v912_v16  ;;  %v925_v35 = vrot.slane %v923_v24, 5  ;;  %4074 = vmatprep.subr.bf16.mxu1 %v5337_v59  ;;  %v1897_v5 = vsel %vm5183_vm7, %v3583_v61, %v1896_v62  ;;  %v1898_v6 = vrot.slane %v1896_v62, 4  ;;  %v1646_v14 = vld [vmem:[#allocation2 + $0xc] sm:$0xf]  ;;  %v1649_v52 = vld [vmem:[#allocation2 + $0x18] sm:$0xf] }
 0x176   : > { %v5341_v63 = vrot.slane %v1680_v55, 5  ;;  %v2300_v13 = vshll.u32 %v5352_v7, 16  ;;  %v2286_v16 = vrot.slane %v2284_v8, 5  ;;  %v1671_v19 = vshrl.u32 %v1646_v14, 16 }
 0x177   : > { %v930_v42 = vor.u32 %v929_v36, %v925_v35  ;;  %v1900_v15 = vsel %vm5183_vm7, %v1898_v6, %v1899_v1  ;;  %v1674_v26 = vshll.u32 %v1646_v14, 16  ;;  %v3623_v27 = vcombine.low %v5339_v2, %v5345_v3  ;;  %v5396_v14 = vld [vmem:[#allocation2 + $0x28] sm:$0xf] }
 0x178   : > { %v1687_v10 = vor.u32 %v1686_v0, %v5341_v63  ;;  %v3599_v21 = vcombine.low %v1897_v5, %v1900_v15  ;;  %v2287_v24 = vor.u32 %v2286_v16, %v2283_v11  ;;  %v1673_v25 = vrot.slane %v1671_v19, 4  ;;  %v5398_v15 = vld [vmem:[#allocation2 + $0x2c] sm:$0x1] }
 0x179   : > { %1429 = vmatmul.mubr.bf16.gmra.mrb[20].mxu0 %v3540_v43  ;;  %v921_v43 = vrot.slane %v920_v33, 4  ;;  %v931_v46 = vrot.slane %v930_v42, 4  ;;  %v1906_v36 = vrot.slane %v5365_v29, 5  ;;  %v1676_v33 = vrot.slane %v1674_v26, 5 }
 0x17a   : > { %1436 = vmatprep.mubr.bf16.mxu0 %v4314_v40  ;;  %v1129_v40 = vrot.slane %v1127_v34, 4  ;;  %v1688_v20 = vrot.slane %v1687_v10, 4  ;;  %v1863_v34 = vld [vmem:[#allocation2 + $0x18] sm:$0xe]  ;;  %v1695_v0 = vshrl.u32 %v1649_v52, 16  ;;  %v1698_v6 = vshll.u32 %v1649_v52, 16 }
 0x17b   : > { %1622 = vmatmul.mubr.bf16.gmra.mrb[20].mxu1 %v3516_v44  ;;  %v926_v50 = vsel %vm5190_vm8, %v921_v43, %v925_v35  ;;  %v936_v54 = vsel %vm5190_vm8, %v931_v46, %v935_v37  ;;  %v1903_v35 = vrot.slane %v5363_v28, 5  ;;  %v5372_v37 = vld [vmem:[#allocation2 + $0x24] sm:$0xf]  ;;  %v1677_v49 = vor.u32 %v1676_v33, %v1673_v25  ;;  %v4337_v52 = vld [vmem:[#allocation9 + $0x218] sm:$0xff]  }
 0x17c   : > { %1629 = vmatprep.mubr.bf16.mxu1 %v3525_v23  ;;  %v1131_v44 = vsel %vm5183_vm7, %v1129_v40, %v1130_v32  ;;  %v3526_v60 = vcombine.low %v926_v50, %v936_v54  ;;  %v2302_v23 = vrot.slane %v2300_v13, 5  ;;  %v1693_v31 = vsel %vm5190_vm8, %v1688_v20, %v5343_v18  ;;  %v5374_v40 = vld [vmem:[#allocation2 + $0x28] sm:$0xf]  ;;  %v4333_v18 = vld [vmem:[#allocation9 + $0x208] sm:$0xff]  }
 0x17d   : > { %v3542_v48 = vcombine.low %v1128_v38, %v1131_v44  ;;  %v2288_v32 = vrot.slane %v2287_v24, 4  ;;  %v3584_v38 = vrot.slane %v1863_v34, 9  ;;  %v2305_v41 = vshrl.u32 %v5372_v37, 16  ;;  %v5377_v44 = vld [vmem:[#allocation2 + $0x2c] sm:$0x1] }
 0x17e   : > { %v1905_v43 = vrot.slane %v1903_v35, 4  ;;  %v2308_v45 = vshll.u32 %v5372_v37, 16  ;;  %v2314_v46 = vshll.u32 %v5374_v40, 16  ;;  %v1678_v58 = vrot.slane %v1677_v49, 4 }
 0x17f   : > { %v1904_v50 = vsel %vm5183_vm7, %v3584_v38, %v1903_v35  ;;  %v2318_v61 = vshrl.u32 %v5374_v40, 16  ;;  %v2324_v1 = vshll.u32 %v5377_v44, 16  ;;  %v2829_v2 = vrot.slane %v5377_v44, 5  ;;  %v5412_v35 = vld [vmem:[#allocation2 + $0x34] sm:$0xf] }
 0x180   : > { %v1907_v54 = vsel %vm5183_vm7, %v1905_v43, %v1906_v36  ;;  %v2310_v55 = vrot.slane %v2308_v45, 5  ;;  %v2316_v56 = vrot.slane %v2314_v46, 5  ;;  %v1683_v4 = vsel %vm5190_vm8, %v1678_v58, %v5341_v63  ;;  %v5401_v63 = vld [vmem:[#allocation2 + $0x30] sm:$0xf]  ;;  %v5420_v38 = vld [vmem:[#allocation2 + $0x38] sm:$0x1] }
 0x181   : > { %1437 = vmatmul.mubr.bf16.gmra.mrb[24].mxu0 %v3541_v12  ;;  %v2294_v12 = vshrl.u32 %v5345_v3, 16  ;;  %v2320_v5 = vrot.slane %v2318_v61, 4  ;;  %v1704_v8 = vshll.u32 %v5363_v28, 16  ;;  %v3591_v10 = vcombine.low %v1683_v4, %v1693_v31 }
 0x182   : > { %1444 = vmatprep.mubr.bf16.mxu0 %v4322_v9  ;;  %v2290_v9 = vshll.u32 %v5345_v3, 16  ;;  %v1697_v13 = vrot.slane %v1695_v0, 4  ;;  %v1708_v20 = vshrl.u32 %v5363_v28, 16  ;;  %v3624_v24 = vcombine.low %v5372_v37, %v5374_v40 }
 0x183   : > { %1630 = vmatmul.mubr.bf16.gmra.mrb[24].mxu1 %v3517_v17  ;;  %v2296_v22 = vrot.slane %v2294_v12, 4  ;;  %v2326_v12 = vrot.slane %v2324_v1, 5  ;;  %v2321_v16 = vor.u32 %v2320_v5, %v2316_v56  ;;  %v1706_v19 = vrot.slane %v1704_v8, 5  ;;  %v5431_v5 = vld [vmem:[#allocation2 + $0x38] sm:$0x1] }
 0x184   : > { %1637 = vmatprep.mubr.bf16.mxu1 %v3526_v60  ;;  %v2292_v17 = vrot.slane %v2290_v9, 5  ;;  %v3600_v60 = vcombine.low %v1904_v50, %v1907_v54  ;;  %v1864_v9 = vld [vmem:[#allocation2 + $0x24] sm:$0xe]  ;;  %v1710_v28 = vrot.slane %v1708_v20, 4  ;;  %v1913_v34 = vrot.slane %v5398_v15, 5 }
 0x185   : > { %v3585_v25 = vrot.slane %v1864_v9, 9  ;;  %v2322_v26 = vrot.slane %v2321_v16, 4  ;;  %v2332_v36 = vshll.u32 %v5401_v63, 16  ;;  %v2338_v50 = vshll.u32 %v5412_v35, 16 }
 0x186   : > { %v2297_v30 = vor.u32 %v2296_v22, %v2292_v17  ;;  %v1728_v9 = vshll.u32 %v5396_v14, 16  ;;  %v1738_v16 = vshll.u32 %v5398_v15, 16  ;;  %v1920_v15 = vrot.slane %v5431_v5, 5 }
 0x187   : > { %v2327_v37 = vsel %vm5190_vm8, %v2322_v26, %v2326_v12  ;;  %v2334_v46 = vrot.slane %v2332_v36, 5  ;;  %v4339_v12 = vld [vmem:[#allocation9 + $0x220] sm:$0xff]  }
 0x188   : > { %v2298_v42 = vrot.slane %v2297_v30, 4  ;;  %v1910_v30 = vrot.slane %v5396_v14, 5  ;;  %v1740_v26 = vrot.slane %v1738_v16, 5 }
 0x189   : > { %1445 = vmatmul.mubr.bf16.gmra.mrb[28].mxu0 %v3542_v48  ;;  %v2293_v48 = vsel %vm5190_vm8, %v2288_v32, %v2292_v17  ;;  %v1700_v17 = vrot.slane %v1698_v6, 5  ;;  %v1711_v32 = vor.u32 %v1710_v28, %v1706_v19  ;;  %v1655_v28 = vld [vmem:[#allocation2 + $0x30] sm:$0xf] }
 0x18a   : > { %2174 = vmatprep.mubr.bf16.mxu0 %v3599_v21  ;;  %v2303_v53 = vsel %vm5190_vm8, %v2298_v42, %v2302_v23  ;;  %v4335_v21 = vld [vmem:[#allocation9 + $0x210] sm:$0xff]   ;;  %v1714_v23 = vshll.u32 %v5365_v29, 16  ;;  %v2329_v29 = vshrl.u32 %v5401_v63, 16  ;;  %v1911_v33 = vsel %vm5183_vm7, %v3585_v25, %v1910_v30  ;;  %v5446_v25 = vld [vmem:[#allocation2 + $0x44] sm:$0x1] }
 0x18b   : > { %1638 = vmatmul.mubr.bf16.gmra.mrb[28].mxu1 %v3518_v51  ;;  %v2307_v51 = vrot.slane %v2305_v41, 4  ;;  %v3631_v57 = vcombine.low %v2293_v48, %v2303_v53  ;;  %v1652_v41 = vld [vmem:[#allocation2 + $0x24] sm:$0xf]  ;;  %v1912_v43 = vrot.slane %v1910_v30, 4  ;;  %v1712_v49 = vrot.slane %v1711_v32, 4 }
 0x18c   : > { %v1716_v31 = vrot.slane %v1714_v23, 5  ;;  %v2331_v45 = vrot.slane %v2329_v29, 4  ;;  %v1722_v8 = vshll.u32 %v1652_v41, 16  ;;  %v1730_v23 = vrot.slane %v1728_v9, 5 }
 0x18d   : > { %v2311_v62 = vor.u32 %v2310_v55, %v2307_v51  ;;  %2712 = vmatprep.mubr.bf16.mxu1 %v3631_v57  ;;  %v2342_v51 = vshrl.u32 %v5412_v35, 16  ;;  %v1914_v53 = vsel %vm5183_vm7, %v1912_v43, %v1913_v34  ;;  %v2348_v55 = vshll.u32 %v5420_v38, 16 }
 0x18e   : > { %v2335_v54 = vor.u32 %v2334_v46, %v2331_v45  ;;  %v1717_v57 = vsel %vm5190_vm8, %v1712_v49, %v1716_v31  ;;  %v3601_v58 = vcombine.low %v1911_v33, %v1914_v53  ;;  %v4341_v33 = vld [vmem:[#allocation9 + $0x228] sm:$0xff]   ;;  %v2372_v49 = vshll.u32 %v5446_v25, 16 }
 0x18f   : > { %v2312_v11 = vrot.slane %v2311_v62, 4  ;;  %v2344_v61 = vrot.slane %v2342_v51, 4  ;;  %v1865_v62 = vld [vmem:[#allocation2 + $0x30] sm:$0xe] }
 0x190   : > { %v2336_v0 = vrot.slane %v2335_v54, 4  ;;  %v3586_v20 = vrot.slane %v1865_v62, 9 }
 0x191   : > { %2175 = vmatmul.mubr.bf16.vlgmr.msra.gmra.mrb[32].mxu0 %v3591_v10  ;;  %v2317_v22 = vsel %vm5190_vm8, %v2312_v11, %v2316_v56  ;;  %v1719_v56 = vshrl.u32 %v1652_v41, 16  ;;  %v1732_v10 = vshrl.u32 %v5396_v14, 16  ;;  %v5435_v11 = vld [vmem:[#allocation2 + $0x3c] sm:$0xf] }
 0x192   : > { %4043 = vmatpush3.bf16.msra.mxu0 %v5337_v59  ;;  %2182 = vmatprep.mubr.bf16.mxu0 %v3600_v60  ;;  %v3632_v42 = vcombine.low %v2317_v22, %v2327_v37  ;;  %v2340_v60 = vrot.slane %v2338_v50, 5  ;;  %v5444_v22 = vld [vmem:[#allocation2 + $0x40] sm:$0xf]  ;;  %v2356_v29 = vshll.u32 %v5435_v11, 16  ;;  %v1743_v50 = vshrl.u32 %v1655_v28, 16 }
 0x193   : > { %2713 = vmatmul.mubr.bf16.vlgmr.msra.gmra.mrb[32].mxu1 %v3623_v27  ;;  %v1701_v27 = vor.u32 %v1700_v17, %v1697_v13  ;;  %4044 = vmatprep.subr.bf16.mxu0 %v4333_v18  ;;  %v1721_v4 = vrot.slane %v1719_v56, 4  ;;  %v3625_v17 = vcombine.low %v5401_v63, %v5412_v35  ;;  %v2353_v63 = vshrl.u32 %v5435_v11, 16  ;;  %v4343_v56 = vld [vmem:[#allocation9 + $0x230] sm:$0xff]  }
 0x194   : > { %4082 = vmatpush3.bf16.msra.mxu1 %v5337_v59  ;;  %2720 = vmatprep.mubr.bf16.mxu1 %v3632_v42  ;;  %v2345_v6 = vor.u32 %v2344_v61, %v2340_v60  ;;  %v2341_v13 = vsel %vm5190_vm8, %v2336_v0, %v2340_v60  ;;  %v2358_v43 = vrot.slane %v2356_v29, 5  ;;  %v2362_v45 = vshll.u32 %v5444_v22, 16  ;;  %v5488_v29 = vld [vmem:[#allocation2 + $0x50] sm:$0x1] }
 0x195   : > { %4075 = vmatprep.subr.bf16.mxu1 %v4333_v18  ;;  %v1702_v59 = vrot.slane %v1701_v27, 4  ;;  %v2355_v32 = vrot.slane %v2353_v63, 4  ;;  %v2374_v61 = vrot.slane %v2372_v49, 5  ;;  %v1746_v0 = vshll.u32 %v1655_v28, 16 }
 0x196   : > { %4045 = vmatpush3.bf16.msra.mxu0 %v4333_v18  ;;  %v2346_v14 = vrot.slane %v2345_v6, 4  ;;  %v3626_v9 = vcombine.low %v5435_v11, %v5444_v22 }
 0x197   : > { %v1707_v48 = vsel %vm5190_vm8, %v1702_v59, %v1706_v19  ;;  %4046 = vmatprep.subr.bf16.mxu0 %v4335_v21  ;;  %v5442_v19 = vld [vmem:[#allocation2 + $0x34] sm:$0xf]  ;;  %v2359_v54 = vor.u32 %v2358_v43, %v2355_v32  ;;  %v1748_v16 = vrot.slane %v1746_v0, 5 }
 0x198   : > { %4083 = vmatpush3.bf16.msra.mxu1 %v4333_v18  ;;  %v3592_v1 = vcombine.low %v1707_v48, %v1717_v57  ;;  %v2350_v18 = vrot.slane %v2348_v55, 5  ;;  %v1917_v27 = vrot.slane %v5442_v19, 5  ;;  %v2366_v48 = vshrl.u32 %v5444_v22, 16  ;;  %v1866_v55 = vld [vmem:[#allocation2 + $0x3c] sm:$0xe] }
 0x199   : > { %4076 = vmatprep.subr.bf16.mxu1 %v4335_v21  ;;  %v2360_v62 = vrot.slane %v2359_v54, 4  ;;  %v1756_v6 = vshrl.u32 %v5442_v19, 16 }
 0x19a   : > { %4047 = vmatpush3.bf16.msra.mxu0 %v4335_v21  ;;  %v2351_v30 = vsel %vm5190_vm8, %v2346_v14, %v2350_v18  ;;  %v1918_v37 = vsel %vm5183_vm7, %v3586_v20, %v1917_v27  ;;  %v1919_v59 = vrot.slane %v1917_v27, 4  ;;  %v2368_v60 = vrot.slane %v2366_v48, 4  ;;  %v5476_v20 = vld [vmem:[#allocation2 + $0x40] sm:$0xf]  ;;  %v5480_v27 = vld [vmem:[#allocation2 + $0x4c] sm:$0xf] }
 0x19b   : > { %2721 = vmatmul.mubr.bf16.gmra.mrb[36].mxu1 %v3624_v24  ;;  %2183 = vmatmul.mubr.bf16.gmra.mrb[36].mxu0 %v3592_v1  ;;  %v1734_v24 = vrot.slane %v1732_v10, 4  ;;  %v3633_v36 = vcombine.low %v2341_v13, %v2351_v30  ;;  %v1745_v1 = vrot.slane %v1743_v50, 4  ;;  %v1752_v18 = vshll.u32 %v5442_v19, 16  ;;  %v5470_v10 = vld [vmem:[#allocation2 + $0x44] sm:$0x1]  ;;  %v4345_v19 = vld [vmem:[#allocation9 + $0x238] sm:$0xff]  }
 0x19c   : > { %4084 = vmatpush3.bf16.msra.mxu1 %v4335_v21  ;;  %4048 = vmatprep.subr.bf16.mxu0 %v4337_v52  ;;  %v1724_v21 = vrot.slane %v1722_v8, 5  ;;  %v1921_v46 = vsel %vm5183_vm7, %v1919_v59, %v1920_v15  ;;  %v1762_v8 = vshll.u32 %v5431_v5, 16  ;;  %v5472_v13 = vld [vmem:[#allocation2 + $0x48] sm:$0xf]  ;;  %v3587_v14 = vrot.slane %v1866_v55, 9 }
 0x19d   : > { %4077 = vmatprep.subr.bf16.mxu1 %v4337_v52  ;;  %2190 = vmatprep.mubr.bf16.mxu0 %v3601_v58  ;;  %v1735_v34 = vor.u32 %v1734_v24, %v1730_v23  ;;  %v3602_v53 = vcombine.low %v1918_v37, %v1921_v46  ;;  %v2364_v58 = vrot.slane %v2362_v45, 5  ;;  %v1924_v11 = vrot.slane %v5476_v20, 5 }
 0x19e   : > { %v1725_v31 = vor.u32 %v1724_v21, %v1721_v4  ;;  %4049 = vmatpush3.bf16.msra.mxu0 %v4337_v52  ;;  %2728 = vmatprep.mubr.bf16.mxu1 %v3633_v36  ;;  %v1758_v21 = vrot.slane %v1756_v6, 4  ;;  %v1749_v24 = vor.u32 %v1748_v16, %v1745_v1  ;;  %v2377_v15 = vshrl.u32 %v5472_v13, 16  ;;  %v1658_v36 = vld [vmem:[#allocation2 + $0x3c] sm:$0xf]  ;;  %v5510_v16 = vld [vmem:[#allocation2 + $0x54] sm:$0xf] }
 0x19f   : > { %4050 = vmatprep.subr.bf16.mxu0 %v4339_v12  ;;  %v1736_v42 = vrot.slane %v1735_v34, 4  ;;  %v2369_v4 = vor.u32 %v2368_v60, %v2364_v58  ;;  %v2380_v63 = vshll.u32 %v5472_v13, 16  ;;  %v1926_v34 = vrot.slane %v1924_v11, 4  ;;  %v1867_v60 = vld [vmem:[#allocation2 + $0x48] sm:$0xe] }
 0x1a0   : > { %4085 = vmatpush3.bf16.msra.mxu1 %v4337_v52  ;;  %v1726_v41 = vrot.slane %v1725_v31, 4  ;;  %v1925_v31 = vsel %vm5183_vm7, %v3587_v14, %v1924_v11  ;;  %v1750_v59 = vrot.slane %v1749_v24, 4  ;;  %v2379_v32 = vrot.slane %v2377_v15, 4 }
 0x1a1   : > { %4078 = vmatprep.subr.bf16.mxu1 %v4339_v12  ;;  %v1741_v52 = vsel %vm5190_vm8, %v1736_v42, %v1740_v26  ;;  %v2370_v5 = vrot.slane %v2369_v4, 4  ;;  %v1927_v26 = vrot.slane %v5470_v10, 5  ;;  %v2386_v43 = vshll.u32 %v5480_v27, 16  ;;  %v5503_v4 = vld [vmem:[#allocation2 + $0x50] sm:$0x1] }
 0x1a2   : > { %v1731_v51 = vsel %vm5190_vm8, %v1726_v41, %v1730_v23  ;;  %4051 = vmatpush3.bf16.msra.mxu0 %v4339_v12  ;;  %v1764_v23 = vrot.slane %v1762_v8, 5  ;;  %v2390_v45 = vshrl.u32 %v5480_v27, 16  ;;  %v2396_v50 = vshll.u32 %v5488_v29, 16 }
 0x1a3   : > { %2729 = vmatmul.mubr.bf16.gmra.mrb[40].mxu1 %v3625_v17  ;;  %v3593_v57 = vcombine.low %v1731_v51, %v1741_v52  ;;  %4052 = vmatprep.subr.bf16.mxu0 %v4341_v33  ;;  %v1754_v17 = vrot.slane %v1752_v18, 5  ;;  %v2375_v28 = vsel %vm5190_vm8, %v2370_v5, %v2374_v61  ;;  %v1928_v42 = vsel %vm5183_vm7, %v1926_v34, %v1927_v26  ;;  %v5501_v18 = vld [vmem:[#allocation2 + $0x4c] sm:$0xf] }
 0x1a4   : > { %4086 = vmatpush3.bf16.msra.mxu1 %v4339_v12  ;;  %v2365_v12 = vsel %vm5190_vm8, %v2360_v62, %v2364_v58  ;;  %v3603_v48 = vcombine.low %v1925_v31, %v1928_v42  ;;  %v2388_v52 = vrot.slane %v2386_v43, 5  ;;  %v1767_v54 = vshrl.u32 %v1658_v36, 16 }
 0x1a5   : > { %4079 = vmatprep.subr.bf16.mxu1 %v4341_v33  ;;  %2191 = vmatmul.mubr.bf16.gmra.mrb[40].mxu0 %v3593_v57  ;;  %v1759_v30 = vor.u32 %v1758_v21, %v1754_v17  ;;  %v3634_v37 = vcombine.low %v2365_v12, %v2375_v28  ;;  %v1755_v46 = vsel %vm5190_vm8, %v1750_v59, %v1754_v17  ;;  %v2398_v58 = vrot.slane %v2396_v50, 5  ;;  %v5512_v17 = vld [vmem:[#allocation2 + $0x58] sm:$0xf] }
 0x1a6   : > { %2198 = vmatprep.mubr.bf16.mxu0 %v3602_v53  ;;  %4053 = vmatpush3.bf16.msra.mxu0 %v4341_v33  ;;  %v2392_v53 = vrot.slane %v2390_v45, 4  ;;  %v1769_v62 = vrot.slane %v1767_v54, 4  ;;  %v1776_v1 = vshll.u32 %v5476_v20, 16  ;;  %v1780_v0 = vshrl.u32 %v5476_v20, 16  ;;  %v1661_v45 = vld [vmem:[#allocation2 + $0x48] sm:$0xf] }
 0x1a7   : > { %4054 = vmatprep.subr.bf16.mxu0 %v4343_v56  ;;  %v1760_v41 = vrot.slane %v1759_v30, 4  ;;  %2736 = vmatprep.mubr.bf16.mxu1 %v3634_v37  ;;  %v3627_v12 = vcombine.low %v5472_v13, %v5480_v27  ;;  %v3588_v21 = vrot.slane %v1867_v60, 9  ;;  %v1931_v11 = vrot.slane %v5501_v18, 5  ;;  %v5518_v13 = vld [vmem:[#allocation2 + $0x5c] sm:$0x1] }
 0x1a8   : > { %4087 = vmatpush3.bf16.msra.mxu1 %v4341_v33  ;;  %v2382_v33 = vrot.slane %v2380_v63, 5  ;;  %v2393_v61 = vor.u32 %v2392_v53, %v2388_v52  ;;  %v1778_v14 = vrot.slane %v1776_v1, 5  ;;  %v1782_v5 = vrot.slane %v1780_v0, 4  ;;  %v1868_v60 = vld [vmem:[#allocation2 + $0x54] sm:$0xe] }
 0x1a9   : > { %4080 = vmatprep.subr.bf16.mxu1 %v4343_v56  ;;  %v1765_v51 = vsel %vm5190_vm8, %v1760_v41, %v1764_v23  ;;  %v1934_v24 = vrot.slane %v5503_v4, 5  ;;  %v2401_v15 = vshrl.u32 %v5510_v16, 16  ;;  %v2404_v63 = vshll.u32 %v5510_v16, 16 }
 0x1aa   : > { %4055 = vmatpush3.bf16.msra.mxu0 %v4343_v56  ;;  %v2383_v49 = vor.u32 %v2382_v33, %v2379_v32  ;;  %v3594_v55 = vcombine.low %v1755_v46, %v1765_v51  ;;  %v2394_v20 = vrot.slane %v2393_v61, 4  ;;  %v1783_v26 = vor.u32 %v1782_v5, %v1778_v14  ;;  %v5545_v5 = vld [vmem:[#allocation2 + $0x64] sm:$0xf] }
 0x1ab   : > { %4056 = vmatprep.subr.bf16.mxu0 %v4345_v19  ;;  %2737 = vmatmul.mubr.bf16.gmra.mrb[44].mxu1 %v3626_v9  ;;  %v1786_v9 = vshll.u32 %v5470_v10, 16  ;;  %v1932_v31 = vsel %vm5183_vm7, %v3588_v21, %v1931_v11  ;;  %v1933_v34 = vrot.slane %v1931_v11, 4  ;;  %v2403_v37 = vrot.slane %v2401_v15, 4 }
 0x1ac   : > { %4088 = vmatpush3.bf16.msra.mxu1 %v4343_v56  ;;  %v2384_v57 = vrot.slane %v2383_v49, 4  ;;  %v1770_v56 = vshll.u32 %v1658_v36, 16  ;;  %v2399_v10 = vsel %vm5190_vm8, %v2394_v20, %v2398_v58  ;;  %v1784_v36 = vrot.slane %v1783_v26, 4 }
 0x1ad   : > { %4081 = vmatprep.subr.bf16.mxu1 %v4345_v19  ;;  %2199 = vmatmul.mubr.bf16.gmra.mrb[44].mxu0 %v3594_v55  ;;  %v1788_v23 = vrot.slane %v1786_v9, 5  ;;  %v2406_v59 = vrot.slane %v2404_v63, 5  ;;  %v2410_v32 = vshll.u32 %v5512_v17, 16  ;;  %v1935_v41 = vsel %vm5183_vm7, %v1933_v34, %v1934_v24  ;;  %v5551_v63 = vld [vmem:[#allocation2 + $0x68] sm:$0x1] }
 0x1ae   : > { %4057 = vmatpush3.bf16.msra.mxu0 %v4345_v19  ;;  %v2389_v6 = vsel %vm5190_vm8, %v2384_v57, %v2388_v52  ;;  %v1772_v8 = vrot.slane %v1770_v56, 5  ;;  %2206 = vmatprep.mubr.bf16.mxu0 %v3603_v48  ;;  %v2414_v42 = vshrl.u32 %v5512_v17, 16  ;;  %v2420_v43 = vshll.u32 %v5518_v13, 16 }
 0x1af   : > { %v3635_v28 = vcombine.low %v2389_v6, %v2399_v10  ;;  %v1789_v46 = vsel %vm5190_vm8, %v1784_v36, %v1788_v23  ;;  %v3604_v48 = vcombine.low %v1932_v31, %v1935_v41  ;;  %v2407_v49 = vor.u32 %v2406_v59, %v2403_v37  ;;  %v5539_v6 = vld [vmem:[#allocation2 + $0x5c] sm:$0x1]  ;;  %v1664_v59 = vld [vmem:[#allocation2 + $0x54] sm:$0xf] }
 0x1b0   : > { %4089 = vmatpush3.bf16.msra.mxu1 %v4345_v19  ;;  %v1773_v19 = vor.u32 %v1772_v8, %v1769_v62  ;;  %v2412_v50 = vrot.slane %v2410_v32, 5  ;;  %v2416_v52 = vrot.slane %v2414_v42, 4  ;;  %v2422_v53 = vrot.slane %v2420_v43, 5  ;;  %v5541_v8 = vld [vmem:[#allocation2 + $0x60] sm:$0xf] }
 0x1b1   : > { %2744 = vmatprep.mubr.bf16.mxu1 %v3635_v28  ;;  %v2857_v54 = vrot.slane %v5518_v13, 5  ;;  %v2408_v55 = vrot.slane %v2407_v49, 4  ;;  %v1791_v57 = vshrl.u32 %v1661_v45, 16  ;;  %v1794_v58 = vshll.u32 %v1661_v45, 16 }
 0x1b2   : > { %v1774_v30 = vrot.slane %v1773_v19, 4  ;;  %v1800_v56 = vshll.u32 %v5501_v18, 16  ;;  %v2417_v61 = vor.u32 %v2416_v52, %v2412_v50  ;;  %v1804_v62 = vshrl.u32 %v5501_v18, 16 }
 0x1b3   : > { %2745 = vmatmul.mubr.bf16.gmra.mrb[48].mxu1 %v3627_v12  ;;  %v1810_v1 = vshll.u32 %v5503_v4, 16  ;;  %v3628_v0 = vcombine.low %v5510_v16, %v5512_v17  ;;  %v2413_v9 = vsel %vm5190_vm8, %v2408_v55, %v2412_v50  ;;  %v1793_v12 = vrot.slane %v1791_v57, 4  ;;  %v1665_v4 = vld [vmem:[#allocation2 + $0x58] sm:$0xf] }
 0x1b4   : > { %v1779_v33 = vsel %vm5190_vm8, %v1774_v30, %v1778_v14  ;;  %v1796_v20 = vrot.slane %v1794_v58, 5  ;;  %v1802_v14 = vrot.slane %v1800_v56, 5  ;;  %v2418_v21 = vrot.slane %v2417_v61, 4  ;;  %v1869_v56 = vld [vmem:[#allocation2 + $0x60] sm:$0xe] }
 0x1b5   : > { %v3595_v51 = vcombine.low %v1779_v33, %v1789_v46  ;;  %v1806_v18 = vrot.slane %v1804_v62, 4  ;;  %v1812_v19 = vrot.slane %v1810_v1, 5  ;;  %v3589_v23 = vrot.slane %v1868_v60, 9 }
 0x1b6   : > { %v1797_v11 = vor.u32 %v1796_v20, %v1793_v12  ;;  %v1938_v16 = vrot.slane %v1665_v4, 5  ;;  %v1941_v24 = vrot.slane %v5539_v6, 5  ;;  %v2425_v10 = vshrl.u32 %v5541_v8, 16 }
 0x1b7   : > { %2207 = vmatmul.mubr.bf16.gmra.mrb[48].mxu0 %v3595_v51  ;;  %v2423_v26 = vsel %vm5190_vm8, %v2418_v21, %v2422_v53  ;;  %v1807_v15 = vor.u32 %v1806_v18, %v1802_v14  ;;  %v2428_v28 = vshll.u32 %v5541_v8, 16  ;;  %v2434_v30 = vshll.u32 %v5545_v5, 16  ;;  %v5568_v21 = vld [vmem:[#allocation2 + $0x6c] sm:$0xf] }
 0x1b8   : > { %2214 = vmatprep.mubr.bf16.mxu0 %v3604_v48  ;;  %v3636_v31 = vcombine.low %v2413_v9, %v2423_v26  ;;  %v1798_v34 = vrot.slane %v1797_v11, 4  ;;  %v1939_v36 = vsel %vm5183_vm7, %v3589_v23, %v1938_v16  ;;  %v1940_v37 = vrot.slane %v1938_v16, 4  ;;  %v1668_v11 = vld [vmem:[#allocation2 + $0x64] sm:$0xf] }
 0x1b9   : > { %v1808_v32 = vrot.slane %v1807_v15, 4  ;;  %v2427_v33 = vrot.slane %v2425_v10, 4  ;;  %v2430_v41 = vrot.slane %v2428_v28, 5  ;;  %v2436_v42 = vrot.slane %v2434_v30, 5  ;;  %v5572_v28 = vld [vmem:[#allocation2 + $0x70] sm:$0xf] }
 0x1ba   : > { %2752 = vmatprep.mubr.bf16.mxu1 %v3636_v31  ;;  %v1803_v43 = vsel %vm5190_vm8, %v1798_v34, %v1802_v14  ;;  %v1942_v45 = vsel %vm5183_vm7, %v1940_v37, %v1941_v24  ;;  %v2438_v46 = vshrl.u32 %v5545_v5, 16  ;;  %v2444_v48 = vshll.u32 %v5551_v63, 16  ;;  %v1669_v14 = vld [vmem:[#allocation2 + $0x68] sm:$0x1] }
 0x1bb   : > { %v1813_v49 = vsel %vm5190_vm8, %v1808_v32, %v1812_v19  ;;  %2753 = vmatmul.mubr.bf16.gmra.mrb[52].mxu1 %v3628_v0  ;;  %v3605_v50 = vcombine.low %v1939_v36, %v1942_v45  ;;  %v2431_v51 = vor.u32 %v2430_v41, %v2427_v33  ;;  %v1815_v52 = vshrl.u32 %v1664_v59, 16 }
 0x1bc   : > { %v3596_v53 = vcombine.low %v1803_v43, %v1813_v49  ;;  %v2440_v55 = vrot.slane %v2438_v46, 4  ;;  %v2446_v57 = vrot.slane %v2444_v48, 5  ;;  %v1818_v58 = vshll.u32 %v1664_v59, 16  ;;  %v5580_v59 = vld [vmem:[#allocation2 + $0x74] sm:$0x1] }
 0x1bd   : > { %v2432_v60 = vrot.slane %v2431_v51, 4  ;;  %v1817_v61 = vrot.slane %v1815_v52, 4  ;;  %v1824_v62 = vshll.u32 %v1665_v4, 16  ;;  %v1828_v1 = vshrl.u32 %v1665_v4, 16  ;;  %v1667_v43 = vld [vmem:[#allocation2 + $0x60] sm:$0xf] }
 0x1be   : > { %v2441_v9 = vor.u32 %v2440_v55, %v2436_v42  ;;  %v1820_v12 = vrot.slane %v1818_v58, 5  ;;  %v1834_v20 = vshll.u32 %v5539_v6, 16  ;;  %v3629_v0 = vcombine.low %v5541_v8, %v5545_v5 }
 0x1bf   : > { %2215 = vmatmul.mubr.bf16.gmra.mrb[52].mxu0 %v3596_v53  ;;  %v2437_v18 = vsel %vm5190_vm8, %v2432_v60, %v2436_v42  ;;  %v1826_v19 = vrot.slane %v1824_v62, 5  ;;  %v1830_v23 = vrot.slane %v1828_v1, 4  ;;  %v3590_v16 = vrot.slane %v1869_v56, 9 }
 0x1c0   : > { %2222 = vmatprep.mubr.bf16.mxu0 %v3605_v50  ;;  %v2442_v4 = vrot.slane %v2441_v9, 4  ;;  %v1821_v24 = vor.u32 %v1820_v12, %v1817_v61  ;;  %v1836_v10 = vrot.slane %v1834_v20, 5  ;;  %v1945_v26 = vrot.slane %v1668_v11, 5  ;;  %v2793_v9 = vld [vmem:[#allocation2 + $0x18] sm:$0xe] }
 0x1c1   : > { %v1831_v15 = vor.u32 %v1830_v23, %v1826_v19  ;;  %v1948_v6 = vrot.slane %v1669_v14, 5  ;;  %v2449_v8 = vshrl.u32 %v5568_v21, 16  ;;  %v2452_v30 = vshll.u32 %v5568_v21, 16  ;;  %v2797_v23 = vld [vmem:[#allocation2 + $0x48] sm:$0xe] }
 0x1c2   : > { %v2447_v31 = vsel %vm5190_vm8, %v2442_v4, %v2446_v57  ;;  %v1822_v34 = vrot.slane %v1821_v24, 4  ;;  %v1946_v36 = vsel %vm5183_vm7, %v3590_v16, %v1945_v26  ;;  %v1947_v37 = vrot.slane %v1945_v26, 4 }
 0x1c3   : > { %v3637_v32 = vcombine.low %v2437_v18, %v2447_v31  ;;  %v1832_v33 = vrot.slane %v1831_v15, 4  ;;  %v2451_v41 = vrot.slane %v2449_v8, 4  ;;  %v2454_v42 = vrot.slane %v2452_v30, 5  ;;  %v2794_v31 = vld [vmem:[#allocation2 + $0x24] sm:$0xe] }
 0x1c4   : > { %v1827_v45 = vsel %vm5190_vm8, %v1822_v34, %v1826_v19  ;;  %v1949_v46 = vsel %vm5183_vm7, %v1947_v37, %v1948_v6  ;;  %v2458_v48 = vshll.u32 %v5572_v28, 16  ;;  %v2462_v49 = vshrl.u32 %v5572_v28, 16 }
 0x1c5   : > { %2760 = vmatprep.mubr.bf16.mxu1 %v3637_v32  ;;  %v1837_v50 = vsel %vm5190_vm8, %v1832_v33, %v1836_v10  ;;  %v3606_v51 = vcombine.low %v1946_v36, %v1949_v46  ;;  %v2455_v52 = vor.u32 %v2454_v42, %v2451_v41  ;;  %v2468_v53 = vshll.u32 %v5580_v59, 16 }
 0x1c6   : > { %v3597_v55 = vcombine.low %v1827_v45, %v1837_v50  ;;  %2761 = vmatmul.mubr.bf16.gmra.mrb[56].mxu1 %v3629_v0  ;;  %v2460_v57 = vrot.slane %v2458_v48, 5  ;;  %v2464_v58 = vrot.slane %v2462_v49, 4  ;;  %v1839_v56 = vshrl.u32 %v1667_v43, 16  ;;  %v2795_v50 = vld [vmem:[#allocation2 + $0x30] sm:$0xe] }
 0x1c7   : > { %v2456_v60 = vrot.slane %v2455_v52, 4  ;;  %v2470_v61 = vrot.slane %v2468_v53, 5  ;;  %v1842_v62 = vshll.u32 %v1667_v43, 16  ;;  %v1848_v1 = vshll.u32 %v1668_v11, 16 }
 0x1c8   : > { %2223 = vmatmul.mubr.bf16.gmra.mrb[56].mxu0 %v3597_v55  ;;  %v2465_v12 = vor.u32 %v2464_v58, %v2460_v57  ;;  %v1841_v20 = vrot.slane %v1839_v56, 4  ;;  %v1852_v18 = vshrl.u32 %v1668_v11, 16  ;;  %v1858_v19 = vshll.u32 %v1669_v14, 16 }
 0x1c9   : > { %2230 = vmatprep.mubr.bf16.mxu0 %v3606_v51  ;;  %v2461_v16 = vsel %vm5190_vm8, %v2456_v60, %v2460_v57  ;;  %v1844_v4 = vrot.slane %v1842_v62, 5  ;;  %v1850_v0 = vrot.slane %v1848_v1, 5  ;;  %v3630_v24 = vcombine.low %v5568_v21, %v5572_v28  ;;  %v2798_v21 = vld [vmem:[#allocation2 + $0x54] sm:$0xe]  ;;  %v2799_v57 = vld [vmem:[#allocation2 + $0x60] sm:$0xe] }
 0x1ca   : > { %v2466_v10 = vrot.slane %v2465_v12, 4  ;;  %v1854_v26 = vrot.slane %v1852_v18, 4  ;;  %v1860_v15 = vrot.slane %v1858_v19, 5  ;;  %v3655_v6 = vrot.slane %v2793_v9, 9  ;;  %v2796_v18 = vld [vmem:[#allocation2 + $0x3c] sm:$0xe] }
 0x1cb   : > { %v1845_v8 = vor.u32 %v1844_v4, %v1841_v20  ;;  %v2819_v30 = vrot.slane %v5345_v3, 5  ;;  %v2822_v11 = vrot.slane %v5352_v7, 5  ;;  %v3659_v14 = vrot.slane %v2797_v23, 9 }
 0x1cc   : > { %v2471_v34 = vsel %vm5190_vm8, %v2466_v10, %v2470_v61  ;;  %v1855_v36 = vor.u32 %v1854_v26, %v1850_v0  ;;  %v2847_v37 = vrot.slane %v5480_v27, 5  ;;  %v2850_v32 = vrot.slane %v5488_v29, 5 }
 0x1cd   : > { %v3638_v33 = vcombine.low %v2461_v16, %v2471_v34  ;;  %v1846_v41 = vrot.slane %v1845_v8, 4  ;;  %v2820_v42 = vsel %vm5183_vm7, %v3655_v6, %v2819_v30  ;;  %v2821_v43 = vrot.slane %v2819_v30, 4  ;;  %v2800_v16 = vld [vmem:[#allocation2 + $0x6c] sm:$0xe] }
 0x1ce   : > { %v1856_v3 = vrot.slane %v1855_v36, 4  ;;  %v2848_v7 = vsel %vm5183_vm7, %v3659_v14, %v2847_v37  ;;  %v2849_v45 = vrot.slane %v2847_v37, 4  ;;  %v3656_v46 = vrot.slane %v2794_v31, 9 }
 0x1cf   : > { %2768 = vmatprep.mubr.bf16.mxu1 %v3638_v33  ;;  %v1851_v48 = vsel %vm5190_vm8, %v1846_v41, %v1850_v0  ;;  %v2823_v27 = vsel %vm5183_vm7, %v2821_v43, %v2822_v11  ;;  %v2826_v29 = vrot.slane %v5374_v40, 5  ;;  %v3660_v49 = vrot.slane %v2798_v21, 9 }
 0x1d0   : > { %v1861_v51 = vsel %vm5190_vm8, %v1856_v3, %v1860_v15  ;;  %2769 = vmatmul.mubr.bf16.gmra.mrb[60].mxu1 %v3630_v24  ;;  %v3663_v52 = vcombine.low %v2820_v42, %v2823_v27  ;;  %v2851_v53 = vsel %vm5183_vm7, %v2849_v45, %v2850_v32  ;;  %v2854_v55 = vrot.slane %v5512_v17, 5 }
 0x1d1   : > { %v3598_v58 = vcombine.low %v1851_v48, %v1861_v51  ;;  %v3667_v56 = vcombine.low %v2848_v7, %v2851_v53  ;;  %v2827_v60 = vsel %vm5183_vm7, %v3656_v46, %v2826_v29  ;;  %v2828_v61 = vrot.slane %v2826_v29, 4 }
 0x1d2   : > { %v2855_v40 = vsel %vm5183_vm7, %v3660_v49, %v2854_v55  ;;  %v2856_v62 = vrot.slane %v2854_v55, 4  ;;  %v3657_v47 = vrot.slane %v2795_v50, 9  ;;  %v2833_v1 = vrot.slane %v5412_v35, 5 }
 0x1d3   : > { %2231 = vmatmul.mubr.bf16.gmra.mrb[60].mxu0 %v3598_v58  ;;  %4066 = vmatprep.mubr.bf16.mxu1 %v3667_v56  ;;  %v2830_v17 = vsel %vm5183_vm7, %v2828_v61, %v2829_v2  ;;  %v2836_v9 = vrot.slane %v5420_v38, 5  ;;  %v3661_v12 = vrot.slane %v2799_v57, 9  ;;  %v2861_v20 = vrot.slane %v5545_v5, 5 }
 0x1d4   : > { %4058 = vmatprep.mubr.bf16.mxu0 %v3663_v52  ;;  %v3664_v19 = vcombine.low %v2827_v60, %v2830_v17  ;;  %v2858_v35 = vsel %vm5183_vm7, %v2856_v62, %v2857_v54  ;;  %v2834_v23 = vsel %vm5183_vm7, %v3657_v47, %v2833_v1  ;;  %v2835_v44 = vrot.slane %v2833_v1, 4 }
 0x1d5   : > { %v3668_v4 = vcombine.low %v2855_v40, %v2858_v35  ;;  %v2862_v2 = vsel %vm5183_vm7, %v3661_v12, %v2861_v20  ;;  %v2863_v38 = vrot.slane %v2861_v20, 4  ;;  %v2864_v5 = vrot.slane %v5551_v63, 5 }
 0x1d6   : > { %v2837_v0 = vsel %vm5183_vm7, %v2835_v44, %v2836_v9  ;;  %v3658_v24 = vrot.slane %v2796_v18, 9  ;;  %v2840_v13 = vrot.slane %v5444_v22, 5  ;;  %v2843_v54 = vrot.slane %v5446_v25, 5 }
 0x1d7   : > { %v3665_v10 = vcombine.low %v2834_v23, %v2837_v0  ;;  %v2865_v26 = vsel %vm5183_vm7, %v2863_v38, %v2864_v5  ;;  %v3662_v15 = vrot.slane %v2800_v16, 9  ;;  %v2868_v6 = vrot.slane %v5572_v28, 5 }
 0x1d8   : > { %4067 = vmatmul.mubr.bf16.vlgmr.msra.gmra.mrb[64].mxu1 %v3668_v4  ;;  %v3669_v8 = vcombine.low %v2862_v2, %v2865_v26  ;;  %v2841_v63 = vsel %vm5183_vm7, %v3658_v24, %v2840_v13  ;;  %v2842_v30 = vrot.slane %v2840_v13, 4  ;;  %v2871_v11 = vrot.slane %v5580_v59, 5 }
 0x1d9   : > { %v2869_v22 = vsel %vm5183_vm7, %v3662_v15, %v2868_v6  ;;  %v2870_v14 = vrot.slane %v2868_v6, 4 }
 0x1da   : > { %4070 = vmatprep.mubr.bf16.mxu1 %v3669_v8  ;;  %v2844_v25 = vsel %vm5183_vm7, %v2842_v30, %v2843_v54 }
 0x1db   : > { %4059 = vmatmul.mubr.bf16.vlgmr.msra.gmra.mrb[64].mxu0 %v3664_v19  ;;  %v3666_v31 = vcombine.low %v2841_v63, %v2844_v25  ;;  %v2872_v28 = vsel %vm5183_vm7, %v2870_v14, %v2871_v11 }
 0x1dc   : > { %4062 = vmatprep.mubr.bf16.mxu0 %v3665_v10  ;;  %v3670_v34 = vcombine.low %v2869_v22, %v2872_v28 }
 0x1e0   : > { %4071 = vmatmul.mubr.bf16.gmra.mrb[68].mxu1 %v3670_v34 }
 0x1e3   : > { %4063 = vmatmul.mubr.bf16.gmra.mrb[68].mxu0 %v3666_v31 }
 0x224   : > { %v3786_v36 = vpop.f32.mrb[0].mxu0 }
 0x225   : > { %v3787_v37 = vpop.f32.mrb[1].mxu0 }
 0x226   : > { %v3788_v59 = vadd.f32 %v3787_v37, %v3786_v36  ;;  %v3789_v32 = vpop.f32.mrb[2].mxu0  ;;  %v3850_v33 = vpop.f32.mrb[0].mxu1 }
 0x227   : > { %v3790_v21 = vpop.f32.mrb[3].mxu0  ;;  %v3851_v42 = vpop.f32.mrb[1].mxu1 }
 0x228   : > { %v3791_v41 = vadd.f32 %v3790_v21, %v3789_v32  ;;  %v3852_v43 = vadd.f32 %v3851_v42, %v3850_v33  ;;  %v3853_v3 = vpop.f32.mrb[2].mxu1 }
 0x229   : > { %v3854_v7 = vpop.f32.mrb[3].mxu1 }
 0x22a   : > { %v5651_v45 = vadd.f32 %v3852_v43, %v3788_v59  ;;  %v3855_v46 = vadd.f32 %v3854_v7, %v3853_v3 }
 0x22c   : > { %v3792_v39 = vpop.f32.mrb[4].mxu0  ;;  %v5653_v48 = vadd.f32 %v3855_v46, %v3791_v41 }
 0x22d   : > { %v3793_v27 = vpop.f32.mrb[5].mxu0 }
 0x22e   : > { %v3794_v29 = vadd.f32 %v3793_v27, %v3792_v39  ;;  %v3795_v49 = vpop.f32.mrb[6].mxu0  ;;  %v3856_v50 = vpop.f32.mrb[4].mxu1 }
 0x22f   : > { %v3796_v51 = vpop.f32.mrb[7].mxu0  ;;  %v3857_v52 = vpop.f32.mrb[5].mxu1 }
 0x230   : > { %v3797_v53 = vadd.f32 %v3796_v51, %v3795_v49  ;;  %v3858_v55 = vadd.f32 %v3857_v52, %v3856_v50  ;;  %v3859_v57 = vpop.f32.mrb[6].mxu1 }
 0x231   : > { %v3860_v58 = vpop.f32.mrb[7].mxu1 }
 0x232   : > { %v5655_v56 = vadd.f32 %v3858_v55, %v3794_v29  ;;  %v3861_v60 = vadd.f32 %v3860_v58, %v3859_v57 }
 0x234   : > { %v3798_v61 = vpop.f32.mrb[8].mxu0  ;;  %v5657_v40 = vadd.f32 %v3861_v60, %v3797_v53 }
 0x235   : > { %v3799_v62 = vpop.f32.mrb[9].mxu0 }
 0x236   : > { %v3800_v47 = vadd.f32 %v3799_v62, %v3798_v61  ;;  %v3801_v1 = vpop.f32.mrb[10].mxu0  ;;  %v3862_v17 = vpop.f32.mrb[8].mxu1 }
 0x237   : > { %v3802_v9 = vpop.f32.mrb[11].mxu0  ;;  %v3863_v12 = vpop.f32.mrb[9].mxu1 }
 0x238   : > { %v3803_v20 = vadd.f32 %v3802_v9, %v3801_v1  ;;  %v3864_v18 = vadd.f32 %v3863_v12, %v3862_v17  ;;  %v3865_v19 = vpop.f32.mrb[10].mxu1 }
 0x239   : > { %v3866_v35 = vpop.f32.mrb[11].mxu1 }
 0x23a   : > { %v5659_v23 = vadd.f32 %v3864_v18, %v3800_v47  ;;  %v3867_v44 = vadd.f32 %v3866_v35, %v3865_v19 }
 0x23c   : > { %v3804_v16 = vpop.f32.mrb[12].mxu0  ;;  %v5661_v4 = vadd.f32 %v3867_v44, %v3803_v20 }
 0x23d   : > { %v3805_v2 = vpop.f32.mrb[13].mxu0 }
 0x23e   : > { %v3806_v38 = vadd.f32 %v3805_v2, %v3804_v16  ;;  %v3807_v5 = vpop.f32.mrb[14].mxu0  ;;  %v3868_v0 = vpop.f32.mrb[12].mxu1 }
 0x23f   : > { %v3808_v24 = vpop.f32.mrb[15].mxu0  ;;  %v3869_v13 = vpop.f32.mrb[13].mxu1 }
 0x240   : > { %v3809_v54 = vadd.f32 %v3808_v24, %v3807_v5  ;;  %v3870_v10 = vadd.f32 %v3869_v13, %v3868_v0  ;;  %v3871_v26 = vpop.f32.mrb[14].mxu1 }
 0x241   : > { %v3872_v15 = vpop.f32.mrb[15].mxu1 }
 0x242   : > { %v5663_v6 = vadd.f32 %v3870_v10, %v3806_v38  ;;  %v3873_v8 = vadd.f32 %v3872_v15, %v3871_v26 }
 0x244   : > { %v3810_v63 = vpop.f32.mrb[16].mxu0  ;;  %v5665_v30 = vadd.f32 %v3873_v8, %v3809_v54 }
 0x245   : > { %v3811_v11 = vpop.f32.mrb[17].mxu0 }
 0x246   : > { %v3812_v22 = vadd.f32 %v3811_v11, %v3810_v63  ;;  %v3813_v14 = vpop.f32.mrb[18].mxu0  ;;  %v3874_v25 = vpop.f32.mrb[16].mxu1 }
 0x247   : > { %v3814_v31 = vpop.f32.mrb[19].mxu0  ;;  %v3875_v28 = vpop.f32.mrb[17].mxu1 }
 0x248   : > { %v3815_v34 = vadd.f32 %v3814_v31, %v3813_v14  ;;  %v3876_v36 = vadd.f32 %v3875_v28, %v3874_v25  ;;  %v3877_v37 = vpop.f32.mrb[18].mxu1 }
 0x249   : > { %v3878_v59 = vpop.f32.mrb[19].mxu1 }
 0x24a   : > { %v5667_v32 = vadd.f32 %v3876_v36, %v3812_v22  ;;  %v3879_v21 = vadd.f32 %v3878_v59, %v3877_v37 }
 0x24c   : > { %v3816_v33 = vpop.f32.mrb[20].mxu0  ;;  %v5669_v41 = vadd.f32 %v3879_v21, %v3815_v34 }
 0x24d   : > { %v3817_v42 = vpop.f32.mrb[21].mxu0 }
 0x24e   : > { %v3818_v43 = vadd.f32 %v3817_v42, %v3816_v33  ;;  %v3819_v3 = vpop.f32.mrb[22].mxu0  ;;  %v3880_v7 = vpop.f32.mrb[20].mxu1 }
 0x24f   : > { %v3820_v46 = vpop.f32.mrb[23].mxu0  ;;  %v3881_v39 = vpop.f32.mrb[21].mxu1 }
 0x250   : > { %v3821_v27 = vadd.f32 %v3820_v46, %v3819_v3  ;;  %v3882_v29 = vadd.f32 %v3881_v39, %v3880_v7  ;;  %v3883_v49 = vpop.f32.mrb[22].mxu1 }
 0x251   : > { %v3884_v50 = vpop.f32.mrb[23].mxu1 }
 0x252   : > { %v5671_v51 = vadd.f32 %v3882_v29, %v3818_v43  ;;  %v3885_v52 = vadd.f32 %v3884_v50, %v3883_v49 }
 0x254   : > { %v3822_v53 = vpop.f32.mrb[24].mxu0  ;;  %v5673_v55 = vadd.f32 %v3885_v52, %v3821_v27 }
 0x255   : > { %v3823_v57 = vpop.f32.mrb[25].mxu0 }
 0x256   : > { %v3824_v58 = vadd.f32 %v3823_v57, %v3822_v53  ;;  %v3825_v60 = vpop.f32.mrb[26].mxu0  ;;  %v3886_v61 = vpop.f32.mrb[24].mxu1 }
 0x257   : > { %v3826_v62 = vpop.f32.mrb[27].mxu0  ;;  %v3887_v47 = vpop.f32.mrb[25].mxu1 }
 0x258   : > { %v3827_v1 = vadd.f32 %v3826_v62, %v3825_v60  ;;  %v3888_v17 = vadd.f32 %v3887_v47, %v3886_v61  ;;  %v3889_v9 = vpop.f32.mrb[26].mxu1 }
 0x259   : > { %v3890_v12 = vpop.f32.mrb[27].mxu1 }
 0x25a   : > { %v5675_v20 = vadd.f32 %v3888_v17, %v3824_v58  ;;  %v3891_v18 = vadd.f32 %v3890_v12, %v3889_v9 }
 0x25c   : > { %v3828_v19 = vpop.f32.mrb[28].mxu0  ;;  %v5677_v35 = vadd.f32 %v3891_v18, %v3827_v1 }
 0x25d   : > { %v3829_v44 = vpop.f32.mrb[29].mxu0 }
 0x25e   : > { %v3830_v16 = vadd.f32 %v3829_v44, %v3828_v19  ;;  %v3831_v2 = vpop.f32.mrb[30].mxu0  ;;  %v3892_v38 = vpop.f32.mrb[28].mxu1 }
 0x25f   : > { %v3832_v5 = vpop.f32.mrb[31].mxu0  ;;  %v3893_v0 = vpop.f32.mrb[29].mxu1 }
 0x260   : > { %v3833_v24 = vadd.f32 %v3832_v5, %v3831_v2  ;;  %v3894_v13 = vadd.f32 %v3893_v0, %v3892_v38  ;;  %v3895_v54 = vpop.f32.mrb[30].mxu1 }
 0x261   : > { %v3896_v10 = vpop.f32.mrb[31].mxu1 }
 0x262   : > { %v5679_v26 = vadd.f32 %v3894_v13, %v3830_v16  ;;  %v3897_v15 = vadd.f32 %v3896_v10, %v3895_v54 }
 0x264   : > { %v5681_v8 = vadd.f32 %v3897_v15, %v3833_v24  ;;  %v3914_v22 = vpop.f32.mrb[32].mxu0 }
 0x265   : > { %v3915_v31 = vpop.f32.mrb[33].mxu0 }
 0x266   : > { %v3978_v63 = vpop.f32.mrb[32].mxu1  ;;  %v3916_v34 = vadd.f32 %v3915_v31, %v3914_v22  ;;  %v3917_v36 = vpop.f32.mrb[34].mxu0 }
 0x267   : > { %v3979_v11 = vpop.f32.mrb[33].mxu1  ;;  %v3918_v59 = vpop.f32.mrb[35].mxu0 }
 0x268   : > { %v3980_v14 = vadd.f32 %v3979_v11, %v3978_v63  ;;  %v3981_v25 = vpop.f32.mrb[34].mxu1  ;;  %v2239_v21 = vadd.f32 %v3916_v34, %v5651_v45  ;;  %v3919_v33 = vadd.f32 %v3918_v59, %v3917_v36 }
 0x269   : > { %v3982_v28 = vpop.f32.mrb[35].mxu1 }
 0x26a   : > { %v3983_v37 = vadd.f32 %v3982_v28, %v3981_v25  ;;  %v2240_v42 = vadd.f32 %v3919_v33, %v5653_v48  ;;  %v5685_v43 = vadd.f32 %v3980_v14, %v2239_v21 }
 0x26c   : > { %v5687_v46 = vadd.f32 %v3983_v37, %v2240_v42 }
 0x26e   : > { %v3984_v3 = vpop.f32.mrb[36].mxu1  ;;  %v3920_v29 = vpop.f32.mrb[36].mxu0 }
 0x26f   : > { %v3985_v7 = vpop.f32.mrb[37].mxu1  ;;  %v3921_v50 = vpop.f32.mrb[37].mxu0 }
 0x270   : > { %v3986_v39 = vadd.f32 %v3985_v7, %v3984_v3  ;;  %v3987_v27 = vpop.f32.mrb[38].mxu1  ;;  %v3922_v53 = vadd.f32 %v3921_v50, %v3920_v29  ;;  %v3923_v57 = vpop.f32.mrb[38].mxu0 }
 0x271   : > { %v3988_v49 = vpop.f32.mrb[39].mxu1  ;;  %v3924_v58 = vpop.f32.mrb[39].mxu0 }
 0x272   : > { %v3989_v52 = vadd.f32 %v3988_v49, %v3987_v27  ;;  %v2241_v45 = vadd.f32 %v3922_v53, %v5655_v56  ;;  %v3925_v60 = vadd.f32 %v3924_v58, %v3923_v57 }
 0x274   : > { %v2242_v48 = vadd.f32 %v3925_v60, %v5657_v40  ;;  %v5691_v61 = vadd.f32 %v3986_v39, %v2241_v45 }
 0x276   : > { %v3990_v62 = vpop.f32.mrb[40].mxu1  ;;  %v5693_v1 = vadd.f32 %v3989_v52, %v2242_v48 }
 0x277   : > { %v3991_v47 = vpop.f32.mrb[41].mxu1 }
 0x278   : > { %v3992_v17 = vadd.f32 %v3991_v47, %v3990_v62  ;;  %v3993_v9 = vpop.f32.mrb[42].mxu1  ;;  %v3926_v12 = vpop.f32.mrb[40].mxu0 }
 0x279   : > { %v3994_v18 = vpop.f32.mrb[43].mxu1  ;;  %v3927_v19 = vpop.f32.mrb[41].mxu0 }
 0x27a   : > { %v3995_v44 = vadd.f32 %v3994_v18, %v3993_v9  ;;  %v3928_v16 = vadd.f32 %v3927_v19, %v3926_v12  ;;  %v3929_v2 = vpop.f32.mrb[42].mxu0 }
 0x27b   : > { %v3930_v38 = vpop.f32.mrb[43].mxu0 }
 0x27c   : > { %v2243_v56 = vadd.f32 %v3928_v16, %v5659_v23  ;;  %v3931_v5 = vadd.f32 %v3930_v38, %v3929_v2 }
 0x27e   : > { %v2244_v40 = vadd.f32 %v3931_v5, %v5661_v4  ;;  %v5697_v0 = vadd.f32 %v3992_v17, %v2243_v56  ;;  %v3996_v24 = vpop.f32.mrb[44].mxu1 }
 0x27f   : > { %v3997_v54 = vpop.f32.mrb[45].mxu1 }
 0x280   : > { %v5699_v13 = vadd.f32 %v3995_v44, %v2244_v40  ;;  %v3998_v10 = vadd.f32 %v3997_v54, %v3996_v24  ;;  %v3999_v15 = vpop.f32.mrb[46].mxu1  ;;  %v3932_v63 = vpop.f32.mrb[44].mxu0 }
 0x281   : > { %v4000_v11 = vpop.f32.mrb[47].mxu1  ;;  %v3933_v22 = vpop.f32.mrb[45].mxu0 }
 0x282   : > { %v4001_v14 = vadd.f32 %v4000_v11, %v3999_v15  ;;  %v3934_v25 = vadd.f32 %v3933_v22, %v3932_v63  ;;  %v3935_v31 = vpop.f32.mrb[46].mxu0 }
 0x283   : > { %v3936_v28 = vpop.f32.mrb[47].mxu0 }
 0x284   : > { %v2245_v23 = vadd.f32 %v3934_v25, %v5663_v6  ;;  %v3937_v34 = vadd.f32 %v3936_v28, %v3935_v31 }
 0x286   : > { %v2246_v4 = vadd.f32 %v3937_v34, %v5665_v30  ;;  %v5703_v36 = vadd.f32 %v3998_v10, %v2245_v23  ;;  %v4002_v37 = vpop.f32.mrb[48].mxu1 }
 0x287   : > { %v4003_v59 = vpop.f32.mrb[49].mxu1 }
 0x288   : > { %v5705_v21 = vadd.f32 %v4001_v14, %v2246_v4  ;;  %v4004_v33 = vadd.f32 %v4003_v59, %v4002_v37  ;;  %v4005_v42 = vpop.f32.mrb[50].mxu1 }
 0x289   : > { %v4006_v7 = vpop.f32.mrb[51].mxu1 }
 0x28a   : > { %v3938_v3 = vpop.f32.mrb[48].mxu0  ;;  %v4007_v27 = vadd.f32 %v4006_v7, %v4005_v42 }
 0x28b   : > { %v3939_v39 = vpop.f32.mrb[49].mxu0 }
 0x28c   : > { %v3940_v29 = vadd.f32 %v3939_v39, %v3938_v3  ;;  %v3941_v49 = vpop.f32.mrb[50].mxu0 }
 0x28d   : > { %v3942_v50 = vpop.f32.mrb[51].mxu0 }
 0x28e   : > { %v2247_v6 = vadd.f32 %v3940_v29, %v5667_v32  ;;  %v3943_v52 = vadd.f32 %v3942_v50, %v3941_v49  ;;  %v4008_v57 = vpop.f32.mrb[52].mxu1 }
 0x28f   : > { %v4009_v45 = vpop.f32.mrb[53].mxu1 }
 0x290   : > { %v2248_v30 = vadd.f32 %v3943_v52, %v5669_v41  ;;  %v2785_v53 = vadd.f32 %v4004_v33, %v2247_v6  ;;  %v4010_v60 = vadd.f32 %v4009_v45, %v4008_v57  ;;  %v4011_v48 = vpop.f32.mrb[54].mxu1 }
 0x291   : > { %v4012_v47 = vpop.f32.mrb[55].mxu1 }
 0x292   : > { %v2786_v58 = vadd.f32 %v4007_v27, %v2248_v30  ;;  %v3944_v62 = vpop.f32.mrb[52].mxu0  ;;  %v4013_v9 = vadd.f32 %v4012_v47, %v4011_v48 }
 0x293   : > { %v3945_v17 = vpop.f32.mrb[53].mxu0 }
 0x294   : > { %v3946_v12 = vadd.f32 %v3945_v17, %v3944_v62  ;;  %v3947_v18 = vpop.f32.mrb[54].mxu0 }
 0x295   : > { %v3948_v19 = vpop.f32.mrb[55].mxu0 }
 0x296   : > { %v2249_v44 = vadd.f32 %v3946_v12, %v5671_v51  ;;  %v3949_v16 = vadd.f32 %v3948_v19, %v3947_v18 }
 0x298   : > { %v2250_v32 = vadd.f32 %v3949_v16, %v5673_v55  ;;  %v2787_v2 = vadd.f32 %v4010_v60, %v2249_v44 }
 0x299   : > { %v4014_v41 = vpop.f32.mrb[56].mxu1 }
 0x29a   : > { %v2788_v38 = vadd.f32 %v4013_v9, %v2250_v32  ;;  %v4015_v56 = vpop.f32.mrb[57].mxu1 }
 0x29b   : > { %v3950_v5 = vpop.f32.mrb[56].mxu0  ;;  %v4016_v40 = vadd.f32 %v4015_v56, %v4014_v41  ;;  %v4017_v24 = vpop.f32.mrb[58].mxu1 }
 0x29c   : > { %v3951_v54 = vpop.f32.mrb[57].mxu0  ;;  %v4018_v10 = vpop.f32.mrb[59].mxu1 }
 0x29d   : > { %v3952_v15 = vadd.f32 %v3951_v54, %v3950_v5  ;;  %v3953_v63 = vpop.f32.mrb[58].mxu0  ;;  %v4019_v11 = vadd.f32 %v4018_v10, %v4017_v24 }
 0x29e   : > { %v3954_v22 = vpop.f32.mrb[59].mxu0 }
 0x29f   : > { %v2251_v14 = vadd.f32 %v3952_v15, %v5675_v20  ;;  %v3955_v25 = vadd.f32 %v3954_v22, %v3953_v63 }
 0x2a1   : > { %v2252_v51 = vadd.f32 %v3955_v25, %v5677_v35  ;;  %v2789_v31 = vadd.f32 %v4016_v40, %v2251_v14 }
 0x2a3   : > { %v4020_v55 = vpop.f32.mrb[60].mxu1  ;;  %v2790_v28 = vadd.f32 %v4019_v11, %v2252_v51 }
 0x2a4   : > { %v4021_v23 = vpop.f32.mrb[61].mxu1 }
 0x2a5   : > { %v4022_v34 = vadd.f32 %v4021_v23, %v4020_v55  ;;  %v4023_v4 = vpop.f32.mrb[62].mxu1 }
 0x2a6   : > { %v3956_v37 = vpop.f32.mrb[60].mxu0  ;;  %v4024_v59 = vpop.f32.mrb[63].mxu1 }
 0x2a7   : > { %v3957_v33 = vpop.f32.mrb[61].mxu0  ;;  %v4025_v42 = vadd.f32 %v4024_v59, %v4023_v4 }
 0x2a8   : > { %v3958_v3 = vadd.f32 %v3957_v33, %v3956_v37  ;;  %v3959_v7 = vpop.f32.mrb[62].mxu0 }
 0x2a9   : > { %v3960_v39 = vpop.f32.mrb[63].mxu0 }
 0x2aa   : > { %v2253_v27 = vadd.f32 %v3958_v3, %v5679_v26  ;;  %v3961_v29 = vadd.f32 %v3960_v39, %v3959_v7 }
 0x2ab   : > { %v4068_v20 = vpop.f32.mrb[64].mxu1 }
 0x2ac   : > { %v2254_v49 = vadd.f32 %v3961_v29, %v5681_v8  ;;  %v5715_v35 = vadd.f32 %v4068_v20, %v2787_v2  ;;  %v3035_v50 = vpop.f32.mrb[65].mxu1  ;;  %v2791_v6 = vadd.f32 %v4022_v34, %v2253_v27 }
 0x2ad   : > { %v5717_v52 = vadd.f32 %v3035_v50, %v2785_v53  ;;  %v4069_v30 = vpop.f32.mrb[66].mxu1 }
 0x2ae   : > { %v4060_v57 = vpop.f32.mrb[64].mxu0  ;;  %v5719_v45 = vadd.f32 %v4069_v30, %v2788_v38  ;;  %v3038_v60 = vpop.f32.mrb[67].mxu1  ;;  %v2792_v48 = vadd.f32 %v4025_v42, %v2254_v49 }
 0x2af   : > { %v3068_v26 = vadd.f32 %v4060_v57, %v5691_v61  ;;  %v3003_v62 = vpop.f32.mrb[65].mxu0  ;;  %v5722_v8 = vadd.f32 %v3038_v60, %v2786_v58 }
 0x2b0   : > { %v3066_v47 = vadd.f32 %v3003_v62, %v5685_v43  ;;  %v4061_v17 = vpop.f32.mrb[66].mxu0  ;;  %v3751_v53 = vpack.c.bf16 %v5719_v45, %v5715_v35 }
 0x2b1   : > { %v3069_v9 = vadd.f32 %v4061_v17, %v5693_v1  ;;  %v3006_v12 = vpop.f32.mrb[67].mxu0  ;;  %v3746_v18 = vpack.c.bf16 %v5722_v8, %v5717_v52  ;;  %v3185_v56 = vmul.f32 %v3068_v26, %v3068_v26 }
 0x2b2   : > { %3767 = vst [vmem:[%s5147_s19 + $0x28] sm:$0xff] %v3751_v53   ;;  %v3067_v61 = vadd.f32 %v3006_v12, %v5687_v46  ;;  %v3183_v19 = vmul.f32 %v3066_v47, %v3066_v47 }
 0x2b3   : > { %v3731_v58 = vpack.c.bf16 %v3069_v9, %v3068_v26  ;;  %3766 = vst [vmem:[%s5147_s19 + $0x20] sm:$0xff] %v3746_v18   ;;  %v4072_v44 = vpop.f32.mrb[68].mxu1  ;;  %v3186_v10 = vmul.f32 %v3069_v9, %v3069_v9 }
 0x2b4   : > { %v3726_v43 = vpack.c.bf16 %v3067_v61, %v3066_v47  ;;  %v3162_v16 = vadd.f32 %v3067_v61, %v3066_v47  ;;  %v3184_v32 = vmul.f32 %v3067_v61, %v3067_v61  ;;  %v5735_v2 = vadd.f32 %v4072_v44, %v2791_v6  ;;  %v3051_v1 = vpop.f32.mrb[69].mxu1 }
 0x2b5   : > { %3763 = vst [vmem:[%s5147_s19 + $0x8] sm:$0xff] %v3731_v58   ;;  %v5738_v41 = vadd.f32 %v3051_v1, %v2789_v31  ;;  %v4073_v38 = vpop.f32.mrb[70].mxu1 }
 0x2b6   : > { %3727 = vst [vmem:[%s5147_s19] sm:$0xff] %v3726_v43   ;;  %v3163_v46 = vadd.f32 %v3162_v16, %v3068_v26  ;;  %v3199_v5 = vadd.f32 %v3184_v32, %v3183_v19  ;;  %v4064_v40 = vpop.f32.mrb[68].mxu0  ;;  %v5741_v24 = vadd.f32 %v4073_v38, %v2792_v48  ;;  %v3054_v54 = vpop.f32.mrb[71].mxu1 }
 0x2b7   : > { %v3072_v15 = vadd.f32 %v4064_v40, %v5703_v36  ;;  %v3019_v63 = vpop.f32.mrb[69].mxu0  ;;  %v5744_v11 = vadd.f32 %v3054_v54, %v2790_v28 }
 0x2b8   : > { %v3200_v22 = vadd.f32 %v3199_v5, %v3185_v56  ;;  %v3070_v14 = vadd.f32 %v3019_v63, %v5697_v0  ;;  %v3164_v25 = vadd.f32 %v3163_v46, %v3069_v9  ;;  %v4065_v51 = vpop.f32.mrb[70].mxu0  ;;  %v3761_v31 = vpack.c.bf16 %v5741_v24, %v5735_v2 }
 0x2b9   : > { %v3073_v55 = vadd.f32 %v4065_v51, %v5705_v21  ;;  %v3022_v23 = vpop.f32.mrb[71].mxu0  ;;  %v3756_v36 = vpack.c.bf16 %v5744_v11, %v5738_v41  ;;  %v3189_v3 = vmul.f32 %v3072_v15, %v3072_v15 }
 0x2ba   : > { %v3165_v28 = vadd.f32 %v3164_v25, %v3070_v14  ;;  %v3187_v34 = vmul.f32 %v3070_v14, %v3070_v14  ;;  %v3201_v4 = vadd.f32 %v3200_v22, %v3186_v10  ;;  %3769 = vst [vmem:[%s5147_s19 + $0x38] sm:$0xff] %v3761_v31   ;;  %v3071_v0 = vadd.f32 %v3022_v23, %v5699_v13 }
 0x2bb   : > { %v3741_v37 = vpack.c.bf16 %v3073_v55, %v3072_v15  ;;  %3768 = vst [vmem:[%s5147_s19 + $0x30] sm:$0xff] %v3756_v36  }
 0x2bc   : > { %v3202_v21 = vadd.f32 %v3201_v4, %v3187_v34  ;;  %v3736_v59 = vpack.c.bf16 %v3071_v0, %v3070_v14  ;;  %v3166_v33 = vadd.f32 %v3165_v28, %v3071_v0  ;;  %v3188_v42 = vmul.f32 %v3071_v0, %v3071_v0 }
 0x2bd   : > { %3765 = vst [vmem:[%s5147_s19 + $0x18] sm:$0xff] %v3741_v37  }
 0x2be   : > { %3764 = vst [vmem:[%s5147_s19 + $0x10] sm:$0xff] %v3736_v59   ;;  %v3167_v13 = vadd.f32 %v3166_v33, %v3072_v15  ;;  %v3203_v7 = vadd.f32 %v3202_v21, %v3188_v42 }
 0x2bf   : > { %4477 = shalt.err (!%p4474_p5)
}
 0x2c0   : > { %s4478_s15 = scalar_lea.hbm %s5761_s18, 1024  ;;  %s4482_s29 = scalar_lea.hbm %s6006_s14, 4096 }
 0x2c1   : > { %p4479_p4 = scmp.ne.s32.totalorder %s5761_s18, %s4478_s15  ;;  %p4483_p1 = scmp.lt.u32.totalorder %s5761_s18, %s6006_s14 }
 0x2c2   : > { %p4484_p13 = scmp.lt.u32.totalorder %s4482_s29, %s4478_s15  ;;  %p4486_p8 = scmp.lt.u32.totalorder %s4478_s15, %s5761_s18 }
 0x2c3   : > { %p4480_p10 = pnand %p4479_p4, %p6007_p11 }
 0x2c4   : > { %p4485_p12 = por %p4484_p13, %p4483_p1 }
 0x2c5   : > { %p4481_p7 = pneg %p4480_p10 }
 0x2c6   : > { %p4487_p6 = por %p4486_p8, %p4485_p12 }
 0x2c8   : > { %p4488_p2 = pnand %p4487_p6, %p4481_p7 }
 0x2ca   : > { %4491 = shalt.err (!%p4488_p2)
}
 0x2cb   : > { %s4667_s27 = smov 64   ;;  %s4668_s12 = smov 4   ;;  %v3190_v39 = vmul.f32 %v3073_v55, %v3073_v55  ;;  %v3168_v27 = vadd.f32 %v3167_v13, %v3073_v55  ;;  %v3204_v29 = vadd.f32 %v3203_v7, %v3189_v3  ;;  %v3191_v20 = vmul.f32 %v5717_v52, %v5717_v52 }
 0x2cc   : > { %4100 = dma.vmem_to_hbm [thread:$0]  (%p6007_p11), %s5756_s28, 1024, %s5761_s18, %s3224_s20, %s4667_s27, %s4667_s27, %s4668_s12   ;;  %v3192_v6 = vmul.f32 %v5722_v8, %v5722_v8  ;;  %v3193_v60 = vmul.f32 %v5715_v35, %v5715_v35  ;;  %v3194_v62 = vmul.f32 %v5719_v45, %v5719_v45  ;;  %v3196_v12 = vmul.f32 %v5744_v11, %v5744_v11 }
 0x2cd   : > { %v3169_v49 = vadd.f32 %v3168_v27, %v5717_v52  ;;  %v3205_v50 = vadd.f32 %v3204_v29, %v3190_v39  ;;  %v3195_v52 = vmul.f32 %v5738_v41, %v5738_v41  ;;  %v3197_v18 = vmul.f32 %v5735_v2, %v5735_v2  ;;  %s3701_s11 = sshll.u32 %s6005_s1, 1  ;;  %s3263_s5 = sshll.u32 %s5151_s23, 4  ;;  %s5821_s5 = int_to_ptr.vmem [resolvable:$true] %s3263_s5 }
 0x2ce   : > { %v3198_v19 = vmul.f32 %v5741_v24, %v5741_v24  ;;  %s3259_s28 = sadd.s32 %s6004_s17, %s3701_s11  ;;  %s6008_s20 = sld [smem:[#allocation41_spill]] }
 0x2cf   : > { %v3206_v30 = vadd.f32 %v3205_v50, %v3191_v20  ;;  %v3170_v57 = vadd.f32 %v3169_v49, %v5722_v8  ;;  %s3702_s2 = sshll.u32 %s3259_s28, 5  ;;  %s3229_s17 = scalar_lea.sflag [#allocation13], %s5054_s10 }
 0x2d0   : > { %s4492_s1 = scalar_lea.vmem %s5821_s5, 32  ;;  %s4669_s4 = smov [#allocation12]  }
 0x2d1   : > { %v3171_v48 = vadd.f32 %v3170_v57, %v5715_v35  ;;  %v3207_v26 = vadd.f32 %v3206_v30, %v3192_v6  ;;  %p4493_p3 = scmp.ne.s32.totalorder %s5821_s5, %s4492_s1  ;;  %s4496_s8 = sshll.u32 %s4669_s4, 4  ;;  %s4497_s8 = int_to_ptr.vmem [resolvable:$false] %s4496_s8 }
 0x2d2   : > { %s4498_s15 = scalar_lea.vmem %s4497_s8, 64  ;;  %p4499_p5 = scmp.lt.s32.totalorder %s5821_s5, %s4497_s8 }
 0x2d3   : > { %v3172_v47 = vadd.f32 %v3171_v48, %v5719_v45  ;;  %v3208_v17 = vadd.f32 %v3207_v26, %v3193_v60  ;;  %p4494_p0 = pnand %p4493_p3, %p6007_p11  ;;  %p4500_p4 = scmp.lt.s32.totalorder %s4498_s15, %s4492_s1 }
 0x2d4   : > { %s6009_s0 = smov %s6008_s20  ;;  %s5819_s7 = scalar_lea.hbm %s6008_s20, %s3702_s2 }
 0x2d5   : > { %v3173_v53 = vadd.f32 %v3172_v47, %v5738_v41  ;;  %v3209_v9 = vadd.f32 %v3208_v17, %v3194_v62  ;;  %p4495_p9 = pneg %p4494_p0  ;;  %p4501_p10 = por %p4500_p4, %p4499_p5 }
 0x2d7   : > { %v3174_v8 = vadd.f32 %v3173_v53, %v5744_v11  ;;  %v3210_v35 = vadd.f32 %v3209_v9, %v3195_v52  ;;  %p4502_p7 = pnand %p4501_p10, %p4495_p9 }
 0x2d9   : > { %v3175_v45 = vadd.f32 %v3174_v8, %v5735_v2  ;;  %v3211_v61 = vadd.f32 %v3210_v35, %v3196_v12 }
 0x2db   : > { %v3176_v58 = vadd.f32 %v3175_v45, %v5741_v24  ;;  %v3212_v44 = vadd.f32 %v3211_v61, %v3197_v18 }
 0x2dd   : > { %v3177_v43 = vrot.slane %v3176_v58, 4  ;;  %v3213_v16 = vadd.f32 %v3212_v44, %v3198_v19 }
 0x2df   : > { %v3178_v32 = vadd.f32 %v3177_v43, %v3176_v58  ;;  %v3214_v1 = vrot.slane %v3213_v16, 4 }
 0x2e1   : > { %v3179_v41 = vrot.slane %v3178_v32, 2  ;;  %v3215_v38 = vadd.f32 %v3214_v1, %v3213_v16 }
 0x2e3   : > { %v3180_v56 = vadd.f32 %v3179_v41, %v3178_v32  ;;  %v3216_v46 = vrot.slane %v3215_v38, 2 }
 0x2e5   : > { %v3181_v2 = vrot.slane %v3180_v56, 1  ;;  %v3217_v5 = vadd.f32 %v3216_v46, %v3215_v38 }
 0x2e7   : > { %v3218_v40 = vrot.slane %v3217_v5, 1  ;;  %v3182_v24 = vadd.f32 %v3181_v2, %v3180_v56 }
 0x2e9   : > { %v3219_v54 = vadd.f32 %v3218_v40, %v3217_v5 }
 0x2eb   : > { %v3221_v10 = vsel %vm506_vm0, %v3182_v24, %v3219_v54 }
 0x2ec   : > { %3222 = vst [vmem:[%s5151_s23] sm:$0x3] %v3221_v10 }
 0x2ed   : > { %4505 = shalt.err (!%p4502_p7)
}
 0x2ee   : > { %s4506_s10 = scalar_lea.hbm %s5819_s7, 32  ;;  %s4510_s26 = scalar_lea.hbm %s6009_s0, 128 }
 0x2ef   : > { %p4507_p1 = scmp.ne.s32.totalorder %s5819_s7, %s4506_s10  ;;  %p4511_p8 = scmp.lt.u32.totalorder %s5819_s7, %s6009_s0 }
 0x2f0   : > { %p4512_p6 = scmp.lt.u32.totalorder %s4510_s26, %s4506_s10  ;;  %p4514_p3 = scmp.lt.u32.totalorder %s4506_s10, %s5819_s7 }
 0x2f1   : > { %p4508_p13 = pnand %p4507_p1, %p6007_p11 }
 0x2f2   : > { %p4513_p2 = por %p4512_p6, %p4511_p8 }
 0x2f3   : > { %p4509_p12 = pneg %p4508_p13 }
 0x2f4   : > { %p4515_p0 = por %p4514_p3, %p4513_p2 }
 0x2f6   : > { %p4516_p9 = pnand %p4515_p0, %p4509_p12 }
 0x2f8   : > { %4519 = shalt.err (!%p4516_p9)
}
 0x2f9   : > { %4101 = dma.vmem_to_hbm [thread:$0]  (%p6007_p11), %s5821_s5, 32, %s5819_s7, %s3229_s17  }
 0x2fa PF: > { %s6010_s3 = sld [smem:[#allocation35_spill]]  ;;  %p4128_p5 = scmp.ge.s32.totalorder %s4654_s6, 2 }
 0x2fb   : > { %s3275_s27 = sand.u32 1, %s4626_s24  }
 0x2fc   : > { %s3276_s12 = scalar_lea.sflag [#allocation5], %s3275_s27 }
 0x300   : > { %p6011_p4 = scmp.ne.s32.totalorder %s6010_s3, 0 }
 0x302   : > { %p4119_p10 = pnand %p4128_p5, %p6011_p4 }
 0x304   : > { %4593 = dma.done.wait (!%p4119_p10), %s3276_s12, 1024  }
 0x305   : > { %4595 = vsyncadd (!%p4119_p10), %s3276_s12, 4294966272  ;;  %s3285_s11 = scalar_lea.sflag [#allocation13], %s3275_s27 }
 0x306   : > { %4597 = dma.done.wait (!%p4119_p10), %s3285_s11, 32  }
 0x307   : > { %4599 = vsyncadd (!%p4119_p10), %s3285_s11, 4294967264  ;;  %s29_s6 = sadd.s32 1, %s4654_s6   ;;  %s6013_s18 = sld [smem:[#allocation21_spill]] }
 0x308   : > { %p5852_p7 = scmp.ge.s32.totalorder %s29_s6, 6   ;;  %s6014_s19 = sld [smem:[#allocation22_spill]] }
 0x309   : > { %s6015_s28 = sld [smem:[#allocation23_spill]]  ;;  %s6016_s23 = sld [smem:[#allocation33_spill]] }
 0x30a   : > { %s6017_s2 = sld [smem:[#allocation24_spill]]  ;;  %s6018_s26 = sld [smem:[#allocation34_spill]] }
 0x30b   : > { %s6019_s27 = sld [smem:[#allocation27_spill]]  ;;  %s6020_s5 = sld [smem:[#allocation28_spill]] }
 0x30c   : > { %s6021_s29 = sld [smem:[#allocation29_spill]]  ;;  %s6022_s30 = sld [smem:[#allocation30_spill]] }
 0x30d   : > { %s6023_s20 = smov %s6044_s9  ;;  %s6024_s21 = smov %s4618_s22 }
 0x30e   : > { %s6026_s24 = smov %s4630_s25  ;;  %28 = sbr.rel (!%p5852_p7) target bundleno = 22 (0x16), region = 146 }
 0x30f   : > { %s6025_s22 = smov %s6015_s28 }
 0x310   : > { %s6027_s25 = smov %s6017_s2 }
 0x311   : > { %s6028_s28 = smov %s6020_s5 }
 0x315   :  { %3290 = vsyncpa [#allocation4], 1 }
 0x316   :  { %3292 = vsyncpa [#allocation4 + $0x1], 1 }
 0x317   :  { %3293 = vsyncpa [#allocation7], 1 }
 0x318   :  { %3295 = vsyncpa [#allocation7 + $0x1], 1 }
 0x319   :  { %3296 = vsyncpa [#allocation10], 1 }
 0x31a   :  { %3297 = vsyncpa [#allocation5], 1 }
 0x31b   :  { %3299 = vsyncpa [#allocation5 + $0x1], 1 }
 0x31c   :  { %3300 = vsyncpa [#allocation13], 1 }
 0x31d   :  { %3302 = vsyncpa [#allocation13 + $0x1], 1 }

</bundles_post_ra>
